<compile_context>
chip_gen: v6e
topology: v6e:2x2x1
jax: 0.10.0
libtpu: 0.0.40
codegen_flags: <defaults>
</compile_context>

<pallas_src>
import math
import functools

import jax
import jax.numpy as jnp
from jax.experimental import pallas as pl
from jax.experimental.pallas import tpu as pltpu


ACT_DTYPE = jnp.bfloat16          # internal activation dtype (MXU-native)
BUF_BUDGET = 32 * 1024 * 1024     # target bytes for double-buffered tiles


def _pick_vmem_limit():
    """Scoped-VMEM limit: generous on 128-MiB parts, safe on v7x (64 MiB/TC)."""
    try:
        kind = jax.devices()[0].device_kind.lower()
    except Exception:
        return 48 * 1024 * 1024
    if "v5" in kind or "v6" in kind:
        return 96 * 1024 * 1024
    return 48 * 1024 * 1024


VMEM_LIMIT = _pick_vmem_limit()


# ----------------------------------------------------------------------------
# Helpers
# ----------------------------------------------------------------------------

def _pad_up(x, m):
    return ((x + m - 1) // m) * m


def _choose_tile_m(M, K, out_w, out_itemsize):
    """Largest M tile (multiple of 16, <= 4096) whose double-buffered operands
    fit BUF_BUDGET, keeping >= 2 grid steps along M when M is large."""
    fixed = 2 * K * out_w * 2 + 2 * out_w * 4           # weight + bias tiles
    per_row = 2 * K * 2 + 2 * out_w * out_itemsize      # x tile + out tile
    tm = max(16, (BUF_BUDGET - fixed) // per_row)
    tm = min(tm, 4096)
    tm = max(16, (tm // 16) * 16)
    Mp0 = _pad_up(M, 16)
    if Mp0 >= 1024:
        # keep at least 2 steps on the parallel M axis (megacore / v7x 2-TC)
        tm = min(tm, _pad_up(max(Mp0 // 2, 16), 16))
    tm = min(tm, Mp0)
    Mp = _pad_up(M, tm)
    return tm, Mp


# ----------------------------------------------------------------------------
# Pallas kernels
# ----------------------------------------------------------------------------

def _mm_kernel(x_ref, w_ref, b_ref, o_ref, *, relu):
    """Single-pass MXU matmul (full K in one block) with fused bias(+relu)."""
    y = jnp.dot(x_ref[...], w_ref[...], preferred_element_type=jnp.float32)
    y = y + b_ref[...]
    if relu:
        y = jnp.maximum(y, 0.0)
    o_ref[...] = y.astype(o_ref.dtype)


def _maxpool_kernel(x_ref, o_ref):
    # x_ref: [K*K, TL, 128] -> elementwise max over the window-position axis.
    o_ref[...] = jnp.max(x_ref[...], axis=0)


# ----------------------------------------------------------------------------
# Wrappers around pallas_call
# ----------------------------------------------------------------------------

def fused_matmul(x, w, bias, *, relu, out_dtype):
    """out = maybe_relu(x @ w + bias); x:[M,K] bf16 (K % 128 == 0), w:[K,N]."""
    M, K = x.shape
    Kw, N = w.shape
    assert K == Kw and K % 128 == 0, (K, Kw)

    if N <= 256:                       # full-dim output block, no N padding
        tn, Np = N, N
    else:
        tn = 256
        Np = _pad_up(N, tn)
        w = jnp.pad(w, ((0, 0), (0, Np - N)))
        bias = jnp.pad(bias, (0, Np - N))

    out_isz = jnp.dtype(out_dtype).itemsize
    tm, Mp = _choose_tile_m(M, K, tn, out_isz)
    if Mp != M:
        x = jnp.pad(x, ((0, Mp - M), (0, 0)))
    bp = bias.astype(jnp.float32).reshape(1, Np)

    grid = (Mp // tm, Np // tn)
    out = pl.pallas_call(
        functools.partial(_mm_kernel, relu=relu),
        out_shape=jax.ShapeDtypeStruct((Mp, Np), out_dtype),
        grid_spec=pltpu.PrefetchScalarGridSpec(
            num_scalar_prefetch=0,
            grid=grid,
            in_specs=[
                pl.BlockSpec((tm, K), lambda i, j: (i, 0)),
                pl.BlockSpec((K, tn), lambda i, j: (0, j)),
                pl.BlockSpec((1, tn), lambda i, j: (0, j)),
            ],
            out_specs=pl.BlockSpec((tm, tn), lambda i, j: (i, j)),
        ),
        compiler_params=pltpu.CompilerParams(
            dimension_semantics=("parallel", "parallel"),
            vmem_limit_bytes=VMEM_LIMIT,
        ),
    )(x, w, bp)
    if Mp != M or Np != N:
        out = out[:M, :N]
    return out


def maxpool2d(x, k=3, stride=2, pad=1):
    """Max pooling (PyTorch F.max_pool2d semantics, -inf padding); x: NHWC."""
    n, H, W, C = x.shape
    xp = jnp.pad(
        x, ((0, 0), (pad, pad), (pad, pad), (0, 0)), constant_values=-jnp.inf
    )
    OH = (H + 2 * pad - k) // stride + 1
    OW = (W + 2 * pad - k) // stride + 1
    slices = []
    for i in range(k):
        for j in range(k):
            slices.append(
                xp[:, i:i + stride * (OH - 1) + 1:stride,
                      j:j + stride * (OW - 1) + 1:stride, :]
            )
    M = n * OH * OW
    L = M * C
    stacked = jnp.stack(slices, axis=0).reshape(k * k, L)

    # Lane-dense layout: the max is elementwise over axis 0, so reduce over a
    # (k*k, L/128, 128) view -> full 128-lane unmasked stores.
    R = -(-L // 128)
    tl = min(1024, _pad_up(R, 16))
    Rp = _pad_up(R, tl)
    Lp = Rp * 128
    if Lp != L:
        stacked = jnp.pad(stacked, ((0, 0), (0, Lp - L)),
                          constant_values=-jnp.inf)
    stacked = stacked.reshape(k * k, Rp, 128)

    out = pl.pallas_call(
        _maxpool_kernel,
        out_shape=jax.ShapeDtypeStruct((Rp, 128), x.dtype),
        grid_spec=pltpu.PrefetchScalarGridSpec(
            num_scalar_prefetch=0,
            grid=(Rp // tl,),
            in_specs=[pl.BlockSpec((k * k, tl, 128), lambda i: (0, i, 0))],
            out_specs=pl.BlockSpec((tl, 128), lambda i: (i, 0)),
        ),
        compiler_params=pltpu.CompilerParams(
            dimension_semantics=("parallel",),
            vmem_limit_bytes=VMEM_LIMIT,
        ),
    )(stacked)
    return out.reshape(Lp)[:L].reshape(n, OH, OW, C)


# ----------------------------------------------------------------------------
# Conv = im2col (glue, K pre-padded) + fused Pallas matmul
# ----------------------------------------------------------------------------

def _im2col(x, kh, kw, stride, pad, k_pad_to):
    """x: NHWC -> patches [N, OH, OW, k_pad_to] with (kh, kw, c) ordering."""
    if pad > 0:
        x = jnp.pad(x, ((0, 0), (pad, pad), (pad, pad), (0, 0)))
    n, Hp, Wp, C = x.shape
    OH = (Hp - kh) // stride + 1
    OW = (Wp - kw) // stride + 1
    cols = []
    for i in range(kh):
        for j in range(kw):
            cols.append(
                x[:, i:i + stride * (OH - 1) + 1:stride,
                     j:j + stride * (OW - 1) + 1:stride, :]
            )
    K = kh * kw * C
    if k_pad_to > K:
        cols.append(jnp.zeros((n, OH, OW, k_pad_to - K), x.dtype))
    patches = cols[0] if len(cols) == 1 else jnp.concatenate(cols, axis=-1)
    return patches, OH, OW


def conv_apply(x, layer, kh, kw, stride, pad, mode="relu",
               out_dtype=ACT_DTYPE):
    """x: NHWC; layer: prepped {"w2d": bf16 [Kp, Cout], "bias": f32 [Cout]}."""
    w2d, bias = layer["w2d"], layer["bias"]
    Kp, oc = w2d.shape
    n = x.shape[0]

    if kh == 1 and kw == 1 and stride == 1 and pad == 0:
        _, H, W, C = x.shape
        OH, OW = H, W
        x2d = x.astype(ACT_DTYPE).reshape(n * H * W, C)
        if Kp != C:
            x2d = jnp.pad(x2d, ((0, 0), (0, Kp - C)))
    else:
        patches, OH, OW = _im2col(x.astype(ACT_DTYPE), kh, kw, stride, pad, Kp)
        x2d = patches.reshape(n * OH * OW, Kp)

    y = fused_matmul(x2d, w2d, bias, relu=(mode == "relu"),
                     out_dtype=out_dtype)
    return y.reshape(n, OH, OW, oc)


# ----------------------------------------------------------------------------
# Parameter construction (deterministic, synthetic) and one-time prep
# ----------------------------------------------------------------------------

def _init_conv(key, kh, kw, cin, cout):
    kw_, kb = jax.random.split(key)
    fan_in = kh * kw * cin
    w = jax.random.normal(kw_, (kh, kw, cin, cout), jnp.float32) / math.sqrt(fan_in)
    b = 0.01 * jax.random.normal(kb, (cout,), jnp.float32)
    return {"w": w, "b": b}


def _init_bn(key, c):
    k1, k2 = jax.random.split(key)
    return {
        "gamma": 1.0 + 0.1 * jax.random.normal(k1, (c,), jnp.float32),
        "beta": 0.1 * jax.random.normal(k2, (c,), jnp.float32),
        "mean": jnp.zeros((c,), jnp.float32),
        "var": jnp.ones((c,), jnp.float32),
    }


def _init_conv_bn(key, kh, kw, cin, cout):
    k1, k2 = jax.random.split(key)
    p = _init_conv(k1, kh, kw, cin, cout)
    p.update(_init_bn(k2, cout))
    return p


def build_params(key):
    keys = iter(jax.random.split(key, 64))
    p = {}
    p["conv1"] = _init_conv(next(keys), 7, 7, 3, 24)
    p["bn1"] = _init_bn(next(keys), 24)
    p["conv2"] = _init_conv(next(keys), 5, 5, 48, 64)
    p["bn2"] = _init_bn(next(keys), 64)
    for name in ("inc1", "inc2", "inc3"):
        p[name] = {
            "conv1": _init_conv_bn(next(keys), 1, 1, 128, 32),
            "conv2": _init_conv_bn(next(keys), 1, 1, 128, 32),
            "conv3": _init_conv_bn(next(keys), 1, 1, 128, 24),
            "conv4": _init_conv_bn(next(keys), 3, 3, 24, 32),
            "conv5": _init_conv_bn(next(keys), 1, 1, 128, 24),
            "conv6": _init_conv_bn(next(keys), 3, 3, 24, 32),
            "conv7": _init_conv_bn(next(keys), 3, 3, 32, 32),
        }
    p["conv3_1"] = _init_conv_bn(next(keys), 1, 1, 128, 128)
    p["conv3_2"] = _init_conv_bn(next(keys), 3, 3, 128, 256)
    p["conv4_1"] = _init_conv_bn(next(keys), 1, 1, 256, 128)
    p["conv4_2"] = _init_conv_bn(next(keys), 3, 3, 128, 256)
    in_planes = [128, 256, 256]
    anchors = [21, 1, 1]
    p["multibox"] = {"loc": [], "conf": []}
    for ip, na in zip(in_planes, anchors):
        p["multibox"]["loc"].append(_init_conv(next(keys), 3, 3, ip, na * 4))
        p["multibox"]["conf"].append(_init_conv(next(keys), 3, 3, ip, na * 2))
    return p


def _fold_bn(w, b, bn):
    """Fold eval-mode BatchNorm into the conv weight/bias (per-Cout scale)."""
    if bn is not None:
        scale = bn["gamma"] / jnp.sqrt(bn["var"] + 1e-5)
        b = bn["beta"] + (b - bn["mean"]) * scale
        w = w * scale
    return w, b


def _prep_conv(w, b, *, crelu=False):
    """-> {"w2d": bf16 [Kp, Cout'], "bias": f32 [Cout']} with K padded to 128.

    crelu=True encodes relu(cat([y, -y])) by mirroring the weight/bias, so the
    plain matmul+relu kernel produces the full 2*Cout CReLU output directly.
    """
    kh, kw, cin, _ = w.shape
    if crelu:
        w = jnp.concatenate([w, -w], axis=3)
        b = jnp.concatenate([b, -b])
    K = kh * kw * cin
    Kp = _pad_up(K, 128)
    w2d = w.reshape(K, w.shape[3])
    if Kp != K:
        w2d = jnp.pad(w2d, ((0, Kp - K), (0, 0)))
    return {"w2d": w2d.astype(ACT_DTYPE), "bias": b.astype(jnp.float32)}


def _prep_cbr(p):
    w, b = _fold_bn(p["w"], p["b"], p)
    return _prep_conv(w, b)


def prepare_params(p):
    """One-time prep: BN folding, bf16 cast, K padding, branch/head fusion."""
    pp = {}
    w, b = _fold_bn(p["conv1"]["w"], p["conv1"]["b"], p["bn1"])
    pp["conv1"] = _prep_conv(w, b, crelu=True)
    w, b = _fold_bn(p["conv2"]["w"], p["conv2"]["b"], p["bn2"])
    pp["conv2"] = _prep_conv(w, b, crelu=True)

    for name in ("inc1", "inc2", "inc3"):
        q = p[name]
        ws, bs = [], []
        for br in ("conv1", "conv3", "conv5"):   # parallel 1x1 convs -> fuse
            w, b = _fold_bn(q[br]["w"], q[br]["b"], q[br])
            ws.append(w)
            bs.append(b)
        pp[name] = {
            "branch": _prep_conv(jnp.concatenate(ws, axis=3),
                                 jnp.concatenate(bs)),
            "conv2": _prep_cbr(q["conv2"]),
            "conv4": _prep_cbr(q["conv4"]),
            "conv6": _prep_cbr(q["conv6"]),
            "conv7": _prep_cbr(q["conv7"]),
        }

    for name in ("conv3_1", "conv3_2", "conv4_1", "conv4_2"):
        pp[name] = _prep_cbr(p[name])

    heads = []
    for i in range(3):                            # fuse loc + conf per head
        loc, conf = p["multibox"]["loc"][i], p["multibox"]["conf"][i]
        w = jnp.concatenate([loc["w"], conf["w"]], axis=3)
        b = jnp.concatenate([loc["b"], conf["b"]])
        heads.append(_prep_conv(w, b))
    pp["multibox"] = {"head": heads}
    return pp


# ----------------------------------------------------------------------------
# Model forward
# ----------------------------------------------------------------------------

def inception_apply(x, pp):
    # conv1/conv3/conv5 share the 128-ch input -> single fused matmul (Cout=80).
    y = conv_apply(x, pp["branch"], 1, 1, 1, 0, mode="relu")
    x1 = y[..., 0:32]
    x3 = y[..., 32:56]
    x4 = y[..., 56:80]

    x2 = maxpool2d(x, 3, 1, 1)
    x2 = conv_apply(x2, pp["conv2"], 1, 1, 1, 0, mode="relu")
    x3 = conv_apply(x3, pp["conv4"], 3, 3, 1, 1, mode="relu")
    x4 = conv_apply(x4, pp["conv6"], 3, 3, 1, 1, mode="relu")
    x4 = conv_apply(x4, pp["conv7"], 3, 3, 1, 1, mode="relu")
    return jnp.concatenate([x1, x2, x3, x4], axis=-1)


def multibox_apply(hs, pp, anchors=(21, 1, 1)):
    locs, confs = [], []
    for i, h in enumerate(hs):
        na = anchors[i]
        # Fused loc+conf 3x3 conv head (channels [4*na | 2*na]).
        y = conv_apply(h, pp["head"][i], 3, 3, 1, 1, mode="linear",
                       out_dtype=jnp.float32)
        n, H, W, _ = y.shape
        locs.append(y[..., :4 * na].reshape(n, H * W * na, 4))
        confs.append(y[..., 4 * na:].reshape(n, H * W * na, 2))
    return jnp.concatenate(locs, axis=1), jnp.concatenate(confs, axis=1)


def facebox_forward(x_nchw, pp):
    x = jnp.transpose(x_nchw, (0, 2, 3, 1)).astype(ACT_DTYPE)  # NCHW -> NHWC
    # conv1 + bn1 + CReLU: prepped weight is [w,-w], so one relu matmul emits
    # the 48-channel cat([y, -y]) directly.
    x = conv_apply(x, pp["conv1"], 7, 7, 4, 3, mode="relu")
    x = maxpool2d(x, 3, 2, 1)
    x = conv_apply(x, pp["conv2"], 5, 5, 2, 2, mode="relu")    # CReLU -> 128ch
    x = maxpool2d(x, 3, 2, 1)
    x = inception_apply(x, pp["inc1"])
    x = inception_apply(x, pp["inc2"])
    x = inception_apply(x, pp["inc3"])
    hs = [x]
    x = conv_apply(x, pp["conv3_1"], 1, 1, 1, 0)
    x = conv_apply(x, pp["conv3_2"], 3, 3, 2, 1)
    hs.append(x)
    x = conv_apply(x, pp["conv4_1"], 1, 1, 1, 0)
    x = conv_apply(x, pp["conv4_2"], 3, 3, 2, 1)
    hs.append(x)
    return multibox_apply(hs, pp["multibox"])


# ----------------------------------------------------------------------------
# Main
# ----------------------------------------------------------------------------

if __name__ == "__main__":
    key = jax.random.PRNGKey(0)
    k_param, k_x = jax.random.split(key)
    params = build_params(k_param)
    prepped = prepare_params(params)   # one-time fold/cast/fuse (outside jit)

    # Small input (FaceBox.input_size is 1024; 128 keeps the same spatial
    # pipeline: 128 -> 32 -> 16 -> 8 -> 4 -> 4 -> 2 -> 1).
    x = jax.random.normal(k_x, (2, 3, 128, 128), jnp.float32)

    fwd = jax.jit(facebox_forward)
    loc_preds, conf_preds = fwd(x, prepped)
    jax.block_until_ready((loc_preds, conf_preds))

    assert loc_preds.shape == (2, 341, 4), loc_preds.shape
    assert conf_preds.shape == (2, 341, 2), conf_preds.shape
    assert bool(jnp.all(jnp.isfinite(loc_preds)))
    assert bool(jnp.all(jnp.isfinite(conf_preds)))
    print("KERNEL_OK")
</pallas_src>

<mosaic_0001>
module attributes {stable_mosaic.version = 11 : i64} {
  func.func @_mm_kernel(%arg0: i32, %arg1: i32, %arg2: memref<1024x256xbf16, #tpu.memory_space<vmem>>, %arg3: memref<256x48xbf16, #tpu.memory_space<vmem>>, %arg4: memref<1x48xf32, #tpu.memory_space<vmem>>, %arg5: memref<1024x48xbf16, #tpu.memory_space<vmem>>) attributes {dimension_semantics = [#tpu.dimension_semantics<parallel>, #tpu.dimension_semantics<parallel>], iteration_bounds = array<i64: 2, 1>, scalar_prefetch = 0 : i64, scratch_operands = 0 : i64, tpu.core_type = #tpu.core_type<tc>, window_params = [{transform_indices = @transform_0, window_bounds = array<i64: 1024, 256>}, {transform_indices = @transform_1, window_bounds = array<i64: 256, 48>}, {transform_indices = @transform_2, window_bounds = array<i64: 1, 48>}, {transform_indices = @transform_3, window_bounds = array<i64: 1024, 48>}]} {
    %c0 = arith.constant 0 : index
    %c0_0 = arith.constant 0 : index
    %0 = vector.load %arg2[%c0, %c0_0] : memref<1024x256xbf16, #tpu.memory_space<vmem>>, vector<1024x256xbf16>
    %c0_1 = arith.constant 0 : index
    %c0_2 = arith.constant 0 : index
    %1 = vector.load %arg3[%c0_1, %c0_2] : memref<256x48xbf16, #tpu.memory_space<vmem>>, vector<256x48xbf16>
    %cst = arith.constant dense<0.000000e+00> : vector<1024x48xf32>
    %2 = tpu.matmul %0, %1, %cst {dimension_numbers = #tpu.dot_dimension_numbers<[1], [0], [0], [1], [0, 0, 1, 1], [], []>} : vector<1024x256xbf16>, vector<256x48xbf16>, vector<1024x48xf32> -> vector<1024x48xf32>
    %c0_3 = arith.constant 0 : index
    %c0_4 = arith.constant 0 : index
    %3 = vector.load %arg4[%c0_3, %c0_4] : memref<1x48xf32, #tpu.memory_space<vmem>>, vector<1x48xf32>
    %4 = vector.broadcast %3 : vector<1x48xf32> to vector<1024x48xf32>
    %5 = arith.addf %2, %4 : vector<1024x48xf32>
    %cst_5 = arith.constant 0.000000e+00 : f32
    %6 = vector.broadcast %cst_5 : f32 to vector<1024x48xf32>
    %7 = arith.maximumf %5, %6 : vector<1024x48xf32>
    %8 = arith.truncf %7 : vector<1024x48xf32> to vector<1024x48xbf16>
    %c0_6 = arith.constant 0 : index
    %c0_7 = arith.constant 0 : index
    %9 = vector.load %arg5[%c0_6, %c0_7] : memref<1024x48xbf16, #tpu.memory_space<vmem>>, vector<1024x48xbf16>
    tpu.vector_store %arg5[%c0_6, %c0_7], %8 {strides = array<i32>} : memref<1024x48xbf16, #tpu.memory_space<vmem>>, vector<1024x48xbf16>,
    return
  }
  func.func @transform_0(%arg0: i32, %arg1: i32) -> (i32, i32) {
    %c0_i32 = arith.constant 0 : i32
    %c0_i32_0 = arith.constant 0 : i32
    return %arg0, %c0_i32 : i32, i32
  }
  func.func @transform_1(%arg0: i32, %arg1: i32) -> (i32, i32) {
    %c0_i32 = arith.constant 0 : i32
    %c0_i32_0 = arith.constant 0 : i32
    return %c0_i32, %arg1 : i32, i32
  }
  func.func @transform_2(%arg0: i32, %arg1: i32) -> (i32, i32) {
    %c0_i32 = arith.constant 0 : i32
    %c0_i32_0 = arith.constant 0 : i32
    return %c0_i32, %arg1 : i32, i32
  }
  func.func @transform_3(%arg0: i32, %arg1: i32) -> (i32, i32) {
    %c0_i32 = arith.constant 0 : i32
    return %arg0, %arg1 : i32, i32
  }
}

module attributes {stable_mosaic.version = 11 : i64} {
  func.func @_maxpool_kernel(%arg0: i32, %arg1: memref<9x192x128xbf16, #tpu.memory_space<vmem>>, %arg2: memref<192x128xbf16, #tpu.memory_space<vmem>>) attributes {dimension_semantics = [#tpu.dimension_semantics<parallel>], iteration_bounds = array<i64: 1>, scalar_prefetch = 0 : i64, scratch_operands = 0 : i64, tpu.core_type = #tpu.core_type<tc>, window_params = [{transform_indices = @transform_0, window_bounds = array<i64: 9, 192, 128>}, {transform_indices = @transform_1, window_bounds = array<i64: 192, 128>}]} {
    %c0 = arith.constant 0 : index
    %c0_0 = arith.constant 0 : index
    %c0_1 = arith.constant 0 : index
    %0 = vector.load %arg1[%c0, %c0_0, %c0_1] : memref<9x192x128xbf16, #tpu.memory_space<vmem>>, vector<9x192x128xbf16>
    %cst = arith.constant dense<0xFF80> : vector<192x128xbf16>
    %1 = vector.multi_reduction <maximumf>, %0, %cst [0] : vector<9x192x128xbf16> to vector<192x128xbf16>
    %c0_2 = arith.constant 0 : index
    %c0_3 = arith.constant 0 : index
    %2 = vector.load %arg2[%c0_2, %c0_3] : memref<192x128xbf16, #tpu.memory_space<vmem>>, vector<192x128xbf16>
    tpu.vector_store %arg2[%c0_2, %c0_3], %1 {strides = array<i32>} : memref<192x128xbf16, #tpu.memory_space<vmem>>, vector<192x128xbf16>,
    return
  }
  func.func @transform_0(%arg0: i32) -> (i32, i32, i32) {
    %c0_i32 = arith.constant 0 : i32
    %c0_i32_0 = arith.constant 0 : i32
    %c0_i32_1 = arith.constant 0 : i32
    return %c0_i32, %arg0, %c0_i32_0 : i32, i32, i32
  }
  func.func @transform_1(%arg0: i32) -> (i32, i32) {
    %c0_i32 = arith.constant 0 : i32
    %c0_i32_0 = arith.constant 0 : i32
    return %arg0, %c0_i32 : i32, i32
  }
}

module attributes {stable_mosaic.version = 11 : i64} {
  func.func @_mm_kernel(%arg0: i32, %arg1: i32, %arg2: memref<128x1280xbf16, #tpu.memory_space<vmem>>, %arg3: memref<1280x128xbf16, #tpu.memory_space<vmem>>, %arg4: memref<1x128xf32, #tpu.memory_space<vmem>>, %arg5: memref<128x128xbf16, #tpu.memory_space<vmem>>) attributes {dimension_semantics = [#tpu.dimension_semantics<parallel>, #tpu.dimension_semantics<parallel>], iteration_bounds = array<i64: 1, 1>, scalar_prefetch = 0 : i64, scratch_operands = 0 : i64, tpu.core_type = #tpu.core_type<tc>, window_params = [{transform_indices = @transform_0, window_bounds = array<i64: 128, 1280>}, {transform_indices = @transform_1, window_bounds = array<i64: 1280, 128>}, {transform_indices = @transform_2, window_bounds = array<i64: 1, 128>}, {transform_indices = @transform_3, window_bounds = array<i64: 128, 128>}]} {
    %c0 = arith.constant 0 : index
    %c0_0 = arith.constant 0 : index
    %0 = vector.load %arg2[%c0, %c0_0] : memref<128x1280xbf16, #tpu.memory_space<vmem>>, vector<128x1280xbf16>
    %c0_1 = arith.constant 0 : index
    %c0_2 = arith.constant 0 : index
    %1 = vector.load %arg3[%c0_1, %c0_2] : memref<1280x128xbf16, #tpu.memory_space<vmem>>, vector<1280x128xbf16>
    %cst = arith.constant dense<0.000000e+00> : vector<128x128xf32>
    %2 = tpu.matmul %0, %1, %cst {dimension_numbers = #tpu.dot_dimension_numbers<[1], [0], [0], [1], [0, 0, 1, 1], [], []>} : vector<128x1280xbf16>, vector<1280x128xbf16>, vector<128x128xf32> -> vector<128x128xf32>
    %c0_3 = arith.constant 0 : index
    %c0_4 = arith.constant 0 : index
    %3 = vector.load %arg4[%c0_3, %c0_4] : memref<1x128xf32, #tpu.memory_space<vmem>>, vector<1x128xf32>
    %4 = vector.broadcast %3 : vector<1x128xf32> to vector<128x128xf32>
    %5 = arith.addf %2, %4 : vector<128x128xf32>
    %cst_5 = arith.constant 0.000000e+00 : f32
    %6 = vector.broadcast %cst_5 : f32 to vector<128x128xf32>
    %7 = arith.maximumf %5, %6 : vector<128x128xf32>
    %8 = arith.truncf %7 : vector<128x128xf32> to vector<128x128xbf16>
    %c0_6 = arith.constant 0 : index
    %c0_7 = arith.constant 0 : index
    %9 = vector.load %arg5[%c0_6, %c0_7] : memref<128x128xbf16, #tpu.memory_space<vmem>>, vector<128x128xbf16>
    tpu.vector_store %arg5[%c0_6, %c0_7], %8 {strides = array<i32>} : memref<128x128xbf16, #tpu.memory_space<vmem>>, vector<128x128xbf16>,
    return
  }
  func.func @transform_0(%arg0: i32, %arg1: i32) -> (i32, i32) {
    %c0_i32 = arith.constant 0 : i32
    %c0_i32_0 = arith.constant 0 : i32
    return %arg0, %c0_i32 : i32, i32
  }
  func.func @transform_1(%arg0: i32, %arg1: i32) -> (i32, i32) {
    %c0_i32 = arith.constant 0 : i32
    %c0_i32_0 = arith.constant 0 : i32
    return %c0_i32, %arg1 : i32, i32
  }
  func.func @transform_2(%arg0: i32, %arg1: i32) -> (i32, i32) {
    %c0_i32 = arith.constant 0 : i32
    %c0_i32_0 = arith.constant 0 : i32
    return %c0_i32, %arg1 : i32, i32
  }
  func.func @transform_3(%arg0: i32, %arg1: i32) -> (i32, i32) {
    %c0_i32 = arith.constant 0 : i32
    return %arg0, %arg1 : i32, i32
  }
}

module attributes {stable_mosaic.version = 11 : i64} {
  func.func @_maxpool_kernel(%arg0: i32, %arg1: memref<9x32x128xbf16, #tpu.memory_space<vmem>>, %arg2: memref<32x128xbf16, #tpu.memory_space<vmem>>) attributes {dimension_semantics = [#tpu.dimension_semantics<parallel>], iteration_bounds = array<i64: 1>, scalar_prefetch = 0 : i64, scratch_operands = 0 : i64, tpu.core_type = #tpu.core_type<tc>, window_params = [{transform_indices = @transform_0, window_bounds = array<i64: 9, 32, 128>}, {transform_indices = @transform_1, window_bounds = array<i64: 32, 128>}]} {
    %c0 = arith.constant 0 : index
    %c0_0 = arith.constant 0 : index
    %c0_1 = arith.constant 0 : index
    %0 = vector.load %arg1[%c0, %c0_0, %c0_1] : memref<9x32x128xbf16, #tpu.memory_space<vmem>>, vector<9x32x128xbf16>
    %cst = arith.constant dense<0xFF80> : vector<32x128xbf16>
    %1 = vector.multi_reduction <maximumf>, %0, %cst [0] : vector<9x32x128xbf16> to vector<32x128xbf16>
    %c0_2 = arith.constant 0 : index
    %c0_3 = arith.constant 0 : index
    %2 = vector.load %arg2[%c0_2, %c0_3] : memref<32x128xbf16, #tpu.memory_space<vmem>>, vector<32x128xbf16>
    tpu.vector_store %arg2[%c0_2, %c0_3], %1 {strides = array<i32>} : memref<32x128xbf16, #tpu.memory_space<vmem>>, vector<32x128xbf16>,
    return
  }
  func.func @transform_0(%arg0: i32) -> (i32, i32, i32) {
    %c0_i32 = arith.constant 0 : i32
    %c0_i32_0 = arith.constant 0 : i32
    %c0_i32_1 = arith.constant 0 : i32
    return %c0_i32, %arg0, %c0_i32_0 : i32, i32, i32
  }
  func.func @transform_1(%arg0: i32) -> (i32, i32) {
    %c0_i32 = arith.constant 0 : i32
    %c0_i32_0 = arith.constant 0 : i32
    return %arg0, %c0_i32 : i32, i32
  }
}

module attributes {stable_mosaic.version = 11 : i64} {
  func.func @_mm_kernel(%arg0: i32, %arg1: i32, %arg2: memref<32x128xbf16, #tpu.memory_space<vmem>>, %arg3: memref<128x32xbf16, #tpu.memory_space<vmem>>, %arg4: memref<1x32xf32, #tpu.memory_space<vmem>>, %arg5: memref<32x32xbf16, #tpu.memory_space<vmem>>) attributes {dimension_semantics = [#tpu.dimension_semantics<parallel>, #tpu.dimension_semantics<parallel>], iteration_bounds = array<i64: 1, 1>, scalar_prefetch = 0 : i64, scratch_operands = 0 : i64, tpu.core_type = #tpu.core_type<tc>, window_params = [{transform_indices = @transform_0, window_bounds = array<i64: 32, 128>}, {transform_indices = @transform_1, window_bounds = array<i64: 128, 32>}, {transform_indices = @transform_2, window_bounds = array<i64: 1, 32>}, {transform_indices = @transform_3, window_bounds = array<i64: 32, 32>}]} {
    %c0 = arith.constant 0 : index
    %c0_0 = arith.constant 0 : index
    %0 = vector.load %arg2[%c0, %c0_0] : memref<32x128xbf16, #tpu.memory_space<vmem>>, vector<32x128xbf16>
    %c0_1 = arith.constant 0 : index
    %c0_2 = arith.constant 0 : index
    %1 = vector.load %arg3[%c0_1, %c0_2] : memref<128x32xbf16, #tpu.memory_space<vmem>>, vector<128x32xbf16>
    %cst = arith.constant dense<0.000000e+00> : vector<32x32xf32>
    %2 = tpu.matmul %0, %1, %cst {dimension_numbers = #tpu.dot_dimension_numbers<[1], [0], [0], [1], [0, 0, 1, 1], [], []>} : vector<32x128xbf16>, vector<128x32xbf16>, vector<32x32xf32> -> vector<32x32xf32>
    %c0_3 = arith.constant 0 : index
    %c0_4 = arith.constant 0 : index
    %3 = vector.load %arg4[%c0_3, %c0_4] : memref<1x32xf32, #tpu.memory_space<vmem>>, vector<1x32xf32>
    %4 = vector.broadcast %3 : vector<1x32xf32> to vector<32x32xf32>
    %5 = arith.addf %2, %4 : vector<32x32xf32>
    %cst_5 = arith.constant 0.000000e+00 : f32
    %6 = vector.broadcast %cst_5 : f32 to vector<32x32xf32>
    %7 = arith.maximumf %5, %6 : vector<32x32xf32>
    %8 = arith.truncf %7 : vector<32x32xf32> to vector<32x32xbf16>
    %c0_6 = arith.constant 0 : index
    %c0_7 = arith.constant 0 : index
    %9 = vector.load %arg5[%c0_6, %c0_7] : memref<32x32xbf16, #tpu.memory_space<vmem>>, vector<32x32xbf16>
    tpu.vector_store %arg5[%c0_6, %c0_7], %8 {strides = array<i32>} : memref<32x32xbf16, #tpu.memory_space<vmem>>, vector<32x32xbf16>,
    return
  }
  func.func @transform_0(%arg0: i32, %arg1: i32) -> (i32, i32) {
    %c0_i32 = arith.constant 0 : i32
    %c0_i32_0 = arith.constant 0 : i32
    return %arg0, %c0_i32 : i32, i32
  }
  func.func @transform_1(%arg0: i32, %arg1: i32) -> (i32, i32) {
    %c0_i32 = arith.constant 0 : i32
    %c0_i32_0 = arith.constant 0 : i32
    return %c0_i32, %arg1 : i32, i32
  }
  func.func @transform_2(%arg0: i32, %arg1: i32) -> (i32, i32) {
    %c0_i32 = arith.constant 0 : i32
    %c0_i32_0 = arith.constant 0 : i32
    return %c0_i32, %arg1 : i32, i32
  }
  func.func @transform_3(%arg0: i32, %arg1: i32) -> (i32, i32) {
    %c0_i32 = arith.constant 0 : i32
    return %arg0, %arg1 : i32, i32
  }
}

module attributes {stable_mosaic.version = 11 : i64} {
  func.func @_mm_kernel(%arg0: i32, %arg1: i32, %arg2: memref<32x128xbf16, #tpu.memory_space<vmem>>, %arg3: memref<128x80xbf16, #tpu.memory_space<vmem>>, %arg4: memref<1x80xf32, #tpu.memory_space<vmem>>, %arg5: memref<32x80xbf16, #tpu.memory_space<vmem>>) attributes {dimension_semantics = [#tpu.dimension_semantics<parallel>, #tpu.dimension_semantics<parallel>], iteration_bounds = array<i64: 1, 1>, scalar_prefetch = 0 : i64, scratch_operands = 0 : i64, tpu.core_type = #tpu.core_type<tc>, window_params = [{transform_indices = @transform_0, window_bounds = array<i64: 32, 128>}, {transform_indices = @transform_1, window_bounds = array<i64: 128, 80>}, {transform_indices = @transform_2, window_bounds = array<i64: 1, 80>}, {transform_indices = @transform_3, window_bounds = array<i64: 32, 80>}]} {
    %c0 = arith.constant 0 : index
    %c0_0 = arith.constant 0 : index
    %0 = vector.load %arg2[%c0, %c0_0] : memref<32x128xbf16, #tpu.memory_space<vmem>>, vector<32x128xbf16>
    %c0_1 = arith.constant 0 : index
    %c0_2 = arith.constant 0 : index
    %1 = vector.load %arg3[%c0_1, %c0_2] : memref<128x80xbf16, #tpu.memory_space<vmem>>, vector<128x80xbf16>
    %cst = arith.constant dense<0.000000e+00> : vector<32x80xf32>
    %2 = tpu.matmul %0, %1, %cst {dimension_numbers = #tpu.dot_dimension_numbers<[1], [0], [0], [1], [0, 0, 1, 1], [], []>} : vector<32x128xbf16>, vector<128x80xbf16>, vector<32x80xf32> -> vector<32x80xf32>
    %c0_3 = arith.constant 0 : index
    %c0_4 = arith.constant 0 : index
    %3 = vector.load %arg4[%c0_3, %c0_4] : memref<1x80xf32, #tpu.memory_space<vmem>>, vector<1x80xf32>
    %4 = vector.broadcast %3 : vector<1x80xf32> to vector<32x80xf32>
    %5 = arith.addf %2, %4 : vector<32x80xf32>
    %cst_5 = arith.constant 0.000000e+00 : f32
    %6 = vector.broadcast %cst_5 : f32 to vector<32x80xf32>
    %7 = arith.maximumf %5, %6 : vector<32x80xf32>
    %8 = arith.truncf %7 : vector<32x80xf32> to vector<32x80xbf16>
    %c0_6 = arith.constant 0 : index
    %c0_7 = arith.constant 0 : index
    %9 = vector.load %arg5[%c0_6, %c0_7] : memref<32x80xbf16, #tpu.memory_space<vmem>>, vector<32x80xbf16>
    tpu.vector_store %arg5[%c0_6, %c0_7], %8 {strides = array<i32>} : memref<32x80xbf16, #tpu.memory_space<vmem>>, vector<32x80xbf16>,
    return
  }
  func.func @transform_0(%arg0: i32, %arg1: i32) -> (i32, i32) {
    %c0_i32 = arith.constant 0 : i32
    %c0_i32_0 = arith.constant 0 : i32
    return %arg0, %c0_i32 : i32, i32
  }
  func.func @transform_1(%arg0: i32, %arg1: i32) -> (i32, i32) {
    %c0_i32 = arith.constant 0 : i32
    %c0_i32_0 = arith.constant 0 : i32
    return %c0_i32, %arg1 : i32, i32
  }
  func.func @transform_2(%arg0: i32, %arg1: i32) -> (i32, i32) {
    %c0_i32 = arith.constant 0 : i32
    %c0_i32_0 = arith.constant 0 : i32
    return %c0_i32, %arg1 : i32, i32
  }
  func.func @transform_3(%arg0: i32, %arg1: i32) -> (i32, i32) {
    %c0_i32 = arith.constant 0 : i32
    return %arg0, %arg1 : i32, i32
  }
}

module attributes {stable_mosaic.version = 11 : i64} {
  func.func @_mm_kernel(%arg0: i32, %arg1: i32, %arg2: memref<32x256xbf16, #tpu.memory_space<vmem>>, %arg3: memref<256x32xbf16, #tpu.memory_space<vmem>>, %arg4: memref<1x32xf32, #tpu.memory_space<vmem>>, %arg5: memref<32x32xbf16, #tpu.memory_space<vmem>>) attributes {dimension_semantics = [#tpu.dimension_semantics<parallel>, #tpu.dimension_semantics<parallel>], iteration_bounds = array<i64: 1, 1>, scalar_prefetch = 0 : i64, scratch_operands = 0 : i64, tpu.core_type = #tpu.core_type<tc>, window_params = [{transform_indices = @transform_0, window_bounds = array<i64: 32, 256>}, {transform_indices = @transform_1, window_bounds = array<i64: 256, 32>}, {transform_indices = @transform_2, window_bounds = array<i64: 1, 32>}, {transform_indices = @transform_3, window_bounds = array<i64: 32, 32>}]} {
    %c0 = arith.constant 0 : index
    %c0_0 = arith.constant 0 : index
    %0 = vector.load %arg2[%c0, %c0_0] : memref<32x256xbf16, #tpu.memory_space<vmem>>, vector<32x256xbf16>
    %c0_1 = arith.constant 0 : index
    %c0_2 = arith.constant 0 : index
    %1 = vector.load %arg3[%c0_1, %c0_2] : memref<256x32xbf16, #tpu.memory_space<vmem>>, vector<256x32xbf16>
    %cst = arith.constant dense<0.000000e+00> : vector<32x32xf32>
    %2 = tpu.matmul %0, %1, %cst {dimension_numbers = #tpu.dot_dimension_numbers<[1], [0], [0], [1], [0, 0, 1, 1], [], []>} : vector<32x256xbf16>, vector<256x32xbf16>, vector<32x32xf32> -> vector<32x32xf32>
    %c0_3 = arith.constant 0 : index
    %c0_4 = arith.constant 0 : index
    %3 = vector.load %arg4[%c0_3, %c0_4] : memref<1x32xf32, #tpu.memory_space<vmem>>, vector<1x32xf32>
    %4 = vector.broadcast %3 : vector<1x32xf32> to vector<32x32xf32>
    %5 = arith.addf %2, %4 : vector<32x32xf32>
    %cst_5 = arith.constant 0.000000e+00 : f32
    %6 = vector.broadcast %cst_5 : f32 to vector<32x32xf32>
    %7 = arith.maximumf %5, %6 : vector<32x32xf32>
    %8 = arith.truncf %7 : vector<32x32xf32> to vector<32x32xbf16>
    %c0_6 = arith.constant 0 : index
    %c0_7 = arith.constant 0 : index
    %9 = vector.load %arg5[%c0_6, %c0_7] : memref<32x32xbf16, #tpu.memory_space<vmem>>, vector<32x32xbf16>
    tpu.vector_store %arg5[%c0_6, %c0_7], %8 {strides = array<i32>} : memref<32x32xbf16, #tpu.memory_space<vmem>>, vector<32x32xbf16>,
    return
  }
  func.func @transform_0(%arg0: i32, %arg1: i32) -> (i32, i32) {
    %c0_i32 = arith.constant 0 : i32
    %c0_i32_0 = arith.constant 0 : i32
    return %arg0, %c0_i32 : i32, i32
  }
  func.func @transform_1(%arg0: i32, %arg1: i32) -> (i32, i32) {
    %c0_i32 = arith.constant 0 : i32
    %c0_i32_0 = arith.constant 0 : i32
    return %c0_i32, %arg1 : i32, i32
  }
  func.func @transform_2(%arg0: i32, %arg1: i32) -> (i32, i32) {
    %c0_i32 = arith.constant 0 : i32
    %c0_i32_0 = arith.constant 0 : i32
    return %c0_i32, %arg1 : i32, i32
  }
  func.func @transform_3(%arg0: i32, %arg1: i32) -> (i32, i32) {
    %c0_i32 = arith.constant 0 : i32
    return %arg0, %arg1 : i32, i32
  }
}

module attributes {stable_mosaic.version = 11 : i64} {
  func.func @_mm_kernel(%arg0: i32, %arg1: i32, %arg2: memref<32x384xbf16, #tpu.memory_space<vmem>>, %arg3: memref<384x32xbf16, #tpu.memory_space<vmem>>, %arg4: memref<1x32xf32, #tpu.memory_space<vmem>>, %arg5: memref<32x32xbf16, #tpu.memory_space<vmem>>) attributes {dimension_semantics = [#tpu.dimension_semantics<parallel>, #tpu.dimension_semantics<parallel>], iteration_bounds = array<i64: 1, 1>, scalar_prefetch = 0 : i64, scratch_operands = 0 : i64, tpu.core_type = #tpu.core_type<tc>, window_params = [{transform_indices = @transform_0, window_bounds = array<i64: 32, 384>}, {transform_indices = @transform_1, window_bounds = array<i64: 384, 32>}, {transform_indices = @transform_2, window_bounds = array<i64: 1, 32>}, {transform_indices = @transform_3, window_bounds = array<i64: 32, 32>}]} {
    %c0 = arith.constant 0 : index
    %c0_0 = arith.constant 0 : index
    %0 = vector.load %arg2[%c0, %c0_0] : memref<32x384xbf16, #tpu.memory_space<vmem>>, vector<32x384xbf16>
    %c0_1 = arith.constant 0 : index
    %c0_2 = arith.constant 0 : index
    %1 = vector.load %arg3[%c0_1, %c0_2] : memref<384x32xbf16, #tpu.memory_space<vmem>>, vector<384x32xbf16>
    %cst = arith.constant dense<0.000000e+00> : vector<32x32xf32>
    %2 = tpu.matmul %0, %1, %cst {dimension_numbers = #tpu.dot_dimension_numbers<[1], [0], [0], [1], [0, 0, 1, 1], [], []>} : vector<32x384xbf16>, vector<384x32xbf16>, vector<32x32xf32> -> vector<32x32xf32>
    %c0_3 = arith.constant 0 : index
    %c0_4 = arith.constant 0 : index
    %3 = vector.load %arg4[%c0_3, %c0_4] : memref<1x32xf32, #tpu.memory_space<vmem>>, vector<1x32xf32>
    %4 = vector.broadcast %3 : vector<1x32xf32> to vector<32x32xf32>
    %5 = arith.addf %2, %4 : vector<32x32xf32>
    %cst_5 = arith.constant 0.000000e+00 : f32
    %6 = vector.broadcast %cst_5 : f32 to vector<32x32xf32>
    %7 = arith.maximumf %5, %6 : vector<32x32xf32>
    %8 = arith.truncf %7 : vector<32x32xf32> to vector<32x32xbf16>
    %c0_6 = arith.constant 0 : index
    %c0_7 = arith.constant 0 : index
    %9 = vector.load %arg5[%c0_6, %c0_7] : memref<32x32xbf16, #tpu.memory_space<vmem>>, vector<32x32xbf16>
    tpu.vector_store %arg5[%c0_6, %c0_7], %8 {strides = array<i32>} : memref<32x32xbf16, #tpu.memory_space<vmem>>, vector<32x32xbf16>,
    return
  }
  func.func @transform_0(%arg0: i32, %arg1: i32) -> (i32, i32) {
    %c0_i32 = arith.constant 0 : i32
    %c0_i32_0 = arith.constant 0 : i32
    return %arg0, %c0_i32 : i32, i32
  }
  func.func @transform_1(%arg0: i32, %arg1: i32) -> (i32, i32) {
    %c0_i32 = arith.constant 0 : i32
    %c0_i32_0 = arith.constant 0 : i32
    return %c0_i32, %arg1 : i32, i32
  }
  func.func @transform_2(%arg0: i32, %arg1: i32) -> (i32, i32) {
    %c0_i32 = arith.constant 0 : i32
    %c0_i32_0 = arith.constant 0 : i32
    return %c0_i32, %arg1 : i32, i32
  }
  func.func @transform_3(%arg0: i32, %arg1: i32) -> (i32, i32) {
    %c0_i32 = arith.constant 0 : i32
    return %arg0, %arg1 : i32, i32
  }
}

module attributes {stable_mosaic.version = 11 : i64} {
  func.func @_mm_kernel(%arg0: i32, %arg1: i32, %arg2: memref<32x1152xbf16, #tpu.memory_space<vmem>>, %arg3: memref<1152x126xbf16, #tpu.memory_space<vmem>>, %arg4: memref<1x126xf32, #tpu.memory_space<vmem>>, %arg5: memref<32x126xf32, #tpu.memory_space<vmem>>) attributes {dimension_semantics = [#tpu.dimension_semantics<parallel>, #tpu.dimension_semantics<parallel>], iteration_bounds = array<i64: 1, 1>, scalar_prefetch = 0 : i64, scratch_operands = 0 : i64, tpu.core_type = #tpu.core_type<tc>, window_params = [{transform_indices = @transform_0, window_bounds = array<i64: 32, 1152>}, {transform_indices = @transform_1, window_bounds = array<i64: 1152, 126>}, {transform_indices = @transform_2, window_bounds = array<i64: 1, 126>}, {transform_indices = @transform_3, window_bounds = array<i64: 32, 126>}]} {
    %c0 = arith.constant 0 : index
    %c0_0 = arith.constant 0 : index
    %0 = vector.load %arg2[%c0, %c0_0] : memref<32x1152xbf16, #tpu.memory_space<vmem>>, vector<32x1152xbf16>
    %c0_1 = arith.constant 0 : index
    %c0_2 = arith.constant 0 : index
    %1 = vector.load %arg3[%c0_1, %c0_2] : memref<1152x126xbf16, #tpu.memory_space<vmem>>, vector<1152x126xbf16>
    %cst = arith.constant dense<0.000000e+00> : vector<32x126xf32>
    %2 = tpu.matmul %0, %1, %cst {dimension_numbers = #tpu.dot_dimension_numbers<[1], [0], [0], [1], [0, 0, 1, 1], [], []>} : vector<32x1152xbf16>, vector<1152x126xbf16>, vector<32x126xf32> -> vector<32x126xf32>
    %c0_3 = arith.constant 0 : index
    %c0_4 = arith.constant 0 : index
    %3 = vector.load %arg4[%c0_3, %c0_4] : memref<1x126xf32, #tpu.memory_space<vmem>>, vector<1x126xf32>
    %4 = vector.broadcast %3 : vector<1x126xf32> to vector<32x126xf32>
    %5 = arith.addf %2, %4 : vector<32x126xf32>
    %c0_5 = arith.constant 0 : index
    %c0_6 = arith.constant 0 : index
    %6 = vector.load %arg5[%c0_5, %c0_6] : memref<32x126xf32, #tpu.memory_space<vmem>>, vector<32x126xf32>
    tpu.vector_store %arg5[%c0_5, %c0_6], %5 {strides = array<i32>} : memref<32x126xf32, #tpu.memory_space<vmem>>, vector<32x126xf32>,
    return
  }
  func.func @transform_0(%arg0: i32, %arg1: i32) -> (i32, i32) {
    %c0_i32 = arith.constant 0 : i32
    %c0_i32_0 = arith.constant 0 : i32
    return %arg0, %c0_i32 : i32, i32
  }
  func.func @transform_1(%arg0: i32, %arg1: i32) -> (i32, i32) {
    %c0_i32 = arith.constant 0 : i32
    %c0_i32_0 = arith.constant 0 : i32
    return %c0_i32, %arg1 : i32, i32
  }
  func.func @transform_2(%arg0: i32, %arg1: i32) -> (i32, i32) {
    %c0_i32 = arith.constant 0 : i32
    %c0_i32_0 = arith.constant 0 : i32
    return %c0_i32, %arg1 : i32, i32
  }
  func.func @transform_3(%arg0: i32, %arg1: i32) -> (i32, i32) {
    %c0_i32 = arith.constant 0 : i32
    return %arg0, %arg1 : i32, i32
  }
}

module attributes {stable_mosaic.version = 11 : i64} {
  func.func @_mm_kernel(%arg0: i32, %arg1: i32, %arg2: memref<32x128xbf16, #tpu.memory_space<vmem>>, %arg3: memref<128x128xbf16, #tpu.memory_space<vmem>>, %arg4: memref<1x128xf32, #tpu.memory_space<vmem>>, %arg5: memref<32x128xbf16, #tpu.memory_space<vmem>>) attributes {dimension_semantics = [#tpu.dimension_semantics<parallel>, #tpu.dimension_semantics<parallel>], iteration_bounds = array<i64: 1, 1>, scalar_prefetch = 0 : i64, scratch_operands = 0 : i64, tpu.core_type = #tpu.core_type<tc>, window_params = [{transform_indices = @transform_0, window_bounds = array<i64: 32, 128>}, {transform_indices = @transform_1, window_bounds = array<i64: 128, 128>}, {transform_indices = @transform_2, window_bounds = array<i64: 1, 128>}, {transform_indices = @transform_3, window_bounds = array<i64: 32, 128>}]} {
    %c0 = arith.constant 0 : index
    %c0_0 = arith.constant 0 : index
    %0 = vector.load %arg2[%c0, %c0_0] : memref<32x128xbf16, #tpu.memory_space<vmem>>, vector<32x128xbf16>
    %c0_1 = arith.constant 0 : index
    %c0_2 = arith.constant 0 : index
    %1 = vector.load %arg3[%c0_1, %c0_2] : memref<128x128xbf16, #tpu.memory_space<vmem>>, vector<128x128xbf16>
    %cst = arith.constant dense<0.000000e+00> : vector<32x128xf32>
    %2 = tpu.matmul %0, %1, %cst {dimension_numbers = #tpu.dot_dimension_numbers<[1], [0], [0], [1], [0, 0, 1, 1], [], []>} : vector<32x128xbf16>, vector<128x128xbf16>, vector<32x128xf32> -> vector<32x128xf32>
    %c0_3 = arith.constant 0 : index
    %c0_4 = arith.constant 0 : index
    %3 = vector.load %arg4[%c0_3, %c0_4] : memref<1x128xf32, #tpu.memory_space<vmem>>, vector<1x128xf32>
    %4 = vector.broadcast %3 : vector<1x128xf32> to vector<32x128xf32>
    %5 = arith.addf %2, %4 : vector<32x128xf32>
    %cst_5 = arith.constant 0.000000e+00 : f32
    %6 = vector.broadcast %cst_5 : f32 to vector<32x128xf32>
    %7 = arith.maximumf %5, %6 : vector<32x128xf32>
    %8 = arith.truncf %7 : vector<32x128xf32> to vector<32x128xbf16>
    %c0_6 = arith.constant 0 : index
    %c0_7 = arith.constant 0 : index
    %9 = vector.load %arg5[%c0_6, %c0_7] : memref<32x128xbf16, #tpu.memory_space<vmem>>, vector<32x128xbf16>
    tpu.vector_store %arg5[%c0_6, %c0_7], %8 {strides = array<i32>} : memref<32x128xbf16, #tpu.memory_space<vmem>>, vector<32x128xbf16>,
    return
  }
  func.func @transform_0(%arg0: i32, %arg1: i32) -> (i32, i32) {
    %c0_i32 = arith.constant 0 : i32
    %c0_i32_0 = arith.constant 0 : i32
    return %arg0, %c0_i32 : i32, i32
  }
  func.func @transform_1(%arg0: i32, %arg1: i32) -> (i32, i32) {
    %c0_i32 = arith.constant 0 : i32
    %c0_i32_0 = arith.constant 0 : i32
    return %c0_i32, %arg1 : i32, i32
  }
  func.func @transform_2(%arg0: i32, %arg1: i32) -> (i32, i32) {
    %c0_i32 = arith.constant 0 : i32
    %c0_i32_0 = arith.constant 0 : i32
    return %c0_i32, %arg1 : i32, i32
  }
  func.func @transform_3(%arg0: i32, %arg1: i32) -> (i32, i32) {
    %c0_i32 = arith.constant 0 : i32
    return %arg0, %arg1 : i32, i32
  }
}

module attributes {stable_mosaic.version = 11 : i64} {
  func.func @_mm_kernel(%arg0: i32, %arg1: i32, %arg2: memref<16x1152xbf16, #tpu.memory_space<vmem>>, %arg3: memref<1152x256xbf16, #tpu.memory_space<vmem>>, %arg4: memref<1x256xf32, #tpu.memory_space<vmem>>, %arg5: memref<16x256xbf16, #tpu.memory_space<vmem>>) attributes {dimension_semantics = [#tpu.dimension_semantics<parallel>, #tpu.dimension_semantics<parallel>], iteration_bounds = array<i64: 1, 1>, scalar_prefetch = 0 : i64, scratch_operands = 0 : i64, tpu.core_type = #tpu.core_type<tc>, window_params = [{transform_indices = @transform_0, window_bounds = array<i64: 16, 1152>}, {transform_indices = @transform_1, window_bounds = array<i64: 1152, 256>}, {transform_indices = @transform_2, window_bounds = array<i64: 1, 256>}, {transform_indices = @transform_3, window_bounds = array<i64: 16, 256>}]} {
    %c0 = arith.constant 0 : index
    %c0_0 = arith.constant 0 : index
    %0 = vector.load %arg2[%c0, %c0_0] : memref<16x1152xbf16, #tpu.memory_space<vmem>>, vector<16x1152xbf16>
    %c0_1 = arith.constant 0 : index
    %c0_2 = arith.constant 0 : index
    %1 = vector.load %arg3[%c0_1, %c0_2] : memref<1152x256xbf16, #tpu.memory_space<vmem>>, vector<1152x256xbf16>
    %cst = arith.constant dense<0.000000e+00> : vector<16x256xf32>
    %2 = tpu.matmul %0, %1, %cst {dimension_numbers = #tpu.dot_dimension_numbers<[1], [0], [0], [1], [0, 0, 1, 1], [], []>} : vector<16x1152xbf16>, vector<1152x256xbf16>, vector<16x256xf32> -> vector<16x256xf32>
    %c0_3 = arith.constant 0 : index
    %c0_4 = arith.constant 0 : index
    %3 = vector.load %arg4[%c0_3, %c0_4] : memref<1x256xf32, #tpu.memory_space<vmem>>, vector<1x256xf32>
    %4 = vector.broadcast %3 : vector<1x256xf32> to vector<16x256xf32>
    %5 = arith.addf %2, %4 : vector<16x256xf32>
    %cst_5 = arith.constant 0.000000e+00 : f32
    %6 = vector.broadcast %cst_5 : f32 to vector<16x256xf32>
    %7 = arith.maximumf %5, %6 : vector<16x256xf32>
    %8 = arith.truncf %7 : vector<16x256xf32> to vector<16x256xbf16>
    %c0_6 = arith.constant 0 : index
    %c0_7 = arith.constant 0 : index
    %9 = vector.load %arg5[%c0_6, %c0_7] : memref<16x256xbf16, #tpu.memory_space<vmem>>, vector<16x256xbf16>
    tpu.vector_store %arg5[%c0_6, %c0_7], %8 {strides = array<i32>} : memref<16x256xbf16, #tpu.memory_space<vmem>>, vector<16x256xbf16>,
    return
  }
  func.func @transform_0(%arg0: i32, %arg1: i32) -> (i32, i32) {
    %c0_i32 = arith.constant 0 : i32
    %c0_i32_0 = arith.constant 0 : i32
    return %arg0, %c0_i32 : i32, i32
  }
  func.func @transform_1(%arg0: i32, %arg1: i32) -> (i32, i32) {
    %c0_i32 = arith.constant 0 : i32
    %c0_i32_0 = arith.constant 0 : i32
    return %c0_i32, %arg1 : i32, i32
  }
  func.func @transform_2(%arg0: i32, %arg1: i32) -> (i32, i32) {
    %c0_i32 = arith.constant 0 : i32
    %c0_i32_0 = arith.constant 0 : i32
    return %c0_i32, %arg1 : i32, i32
  }
  func.func @transform_3(%arg0: i32, %arg1: i32) -> (i32, i32) {
    %c0_i32 = arith.constant 0 : i32
    return %arg0, %arg1 : i32, i32
  }
}

module attributes {stable_mosaic.version = 11 : i64} {
  func.func @_mm_kernel(%arg0: i32, %arg1: i32, %arg2: memref<16x2304xbf16, #tpu.memory_space<vmem>>, %arg3: memref<2304x6xbf16, #tpu.memory_space<vmem>>, %arg4: memref<1x6xf32, #tpu.memory_space<vmem>>, %arg5: memref<16x6xf32, #tpu.memory_space<vmem>>) attributes {dimension_semantics = [#tpu.dimension_semantics<parallel>, #tpu.dimension_semantics<parallel>], iteration_bounds = array<i64: 1, 1>, scalar_prefetch = 0 : i64, scratch_operands = 0 : i64, tpu.core_type = #tpu.core_type<tc>, window_params = [{transform_indices = @transform_0, window_bounds = array<i64: 16, 2304>}, {transform_indices = @transform_1, window_bounds = array<i64: 2304, 6>}, {transform_indices = @transform_2, window_bounds = array<i64: 1, 6>}, {transform_indices = @transform_3, window_bounds = array<i64: 16, 6>}]} {
    %c0 = arith.constant 0 : index
    %c0_0 = arith.constant 0 : index
    %0 = vector.load %arg2[%c0, %c0_0] : memref<16x2304xbf16, #tpu.memory_space<vmem>>, vector<16x2304xbf16>
    %c0_1 = arith.constant 0 : index
    %c0_2 = arith.constant 0 : index
    %1 = vector.load %arg3[%c0_1, %c0_2] : memref<2304x6xbf16, #tpu.memory_space<vmem>>, vector<2304x6xbf16>
    %cst = arith.constant dense<0.000000e+00> : vector<16x6xf32>
    %2 = tpu.matmul %0, %1, %cst {dimension_numbers = #tpu.dot_dimension_numbers<[1], [0], [0], [1], [0, 0, 1, 1], [], []>} : vector<16x2304xbf16>, vector<2304x6xbf16>, vector<16x6xf32> -> vector<16x6xf32>
    %c0_3 = arith.constant 0 : index
    %c0_4 = arith.constant 0 : index
    %3 = vector.load %arg4[%c0_3, %c0_4] : memref<1x6xf32, #tpu.memory_space<vmem>>, vector<1x6xf32>
    %4 = vector.broadcast %3 : vector<1x6xf32> to vector<16x6xf32>
    %5 = arith.addf %2, %4 : vector<16x6xf32>
    %c0_5 = arith.constant 0 : index
    %c0_6 = arith.constant 0 : index
    %6 = vector.load %arg5[%c0_5, %c0_6] : memref<16x6xf32, #tpu.memory_space<vmem>>, vector<16x6xf32>
    tpu.vector_store %arg5[%c0_5, %c0_6], %5 {strides = array<i32>} : memref<16x6xf32, #tpu.memory_space<vmem>>, vector<16x6xf32>,
    return
  }
  func.func @transform_0(%arg0: i32, %arg1: i32) -> (i32, i32) {
    %c0_i32 = arith.constant 0 : i32
    %c0_i32_0 = arith.constant 0 : i32
    return %arg0, %c0_i32 : i32, i32
  }
  func.func @transform_1(%arg0: i32, %arg1: i32) -> (i32, i32) {
    %c0_i32 = arith.constant 0 : i32
    %c0_i32_0 = arith.constant 0 : i32
    return %c0_i32, %arg1 : i32, i32
  }
  func.func @transform_2(%arg0: i32, %arg1: i32) -> (i32, i32) {
    %c0_i32 = arith.constant 0 : i32
    %c0_i32_0 = arith.constant 0 : i32
    return %c0_i32, %arg1 : i32, i32
  }
  func.func @transform_3(%arg0: i32, %arg1: i32) -> (i32, i32) {
    %c0_i32 = arith.constant 0 : i32
    return %arg0, %arg1 : i32, i32
  }
}

module attributes {stable_mosaic.version = 11 : i64} {
  func.func @_mm_kernel(%arg0: i32, %arg1: i32, %arg2: memref<16x256xbf16, #tpu.memory_space<vmem>>, %arg3: memref<256x128xbf16, #tpu.memory_space<vmem>>, %arg4: memref<1x128xf32, #tpu.memory_space<vmem>>, %arg5: memref<16x128xbf16, #tpu.memory_space<vmem>>) attributes {dimension_semantics = [#tpu.dimension_semantics<parallel>, #tpu.dimension_semantics<parallel>], iteration_bounds = array<i64: 1, 1>, scalar_prefetch = 0 : i64, scratch_operands = 0 : i64, tpu.core_type = #tpu.core_type<tc>, window_params = [{transform_indices = @transform_0, window_bounds = array<i64: 16, 256>}, {transform_indices = @transform_1, window_bounds = array<i64: 256, 128>}, {transform_indices = @transform_2, window_bounds = array<i64: 1, 128>}, {transform_indices = @transform_3, window_bounds = array<i64: 16, 128>}]} {
    %c0 = arith.constant 0 : index
    %c0_0 = arith.constant 0 : index
    %0 = vector.load %arg2[%c0, %c0_0] : memref<16x256xbf16, #tpu.memory_space<vmem>>, vector<16x256xbf16>
    %c0_1 = arith.constant 0 : index
    %c0_2 = arith.constant 0 : index
    %1 = vector.load %arg3[%c0_1, %c0_2] : memref<256x128xbf16, #tpu.memory_space<vmem>>, vector<256x128xbf16>
    %cst = arith.constant dense<0.000000e+00> : vector<16x128xf32>
    %2 = tpu.matmul %0, %1, %cst {dimension_numbers = #tpu.dot_dimension_numbers<[1], [0], [0], [1], [0, 0, 1, 1], [], []>} : vector<16x256xbf16>, vector<256x128xbf16>, vector<16x128xf32> -> vector<16x128xf32>
    %c0_3 = arith.constant 0 : index
    %c0_4 = arith.constant 0 : index
    %3 = vector.load %arg4[%c0_3, %c0_4] : memref<1x128xf32, #tpu.memory_space<vmem>>, vector<1x128xf32>
    %4 = vector.broadcast %3 : vector<1x128xf32> to vector<16x128xf32>
    %5 = arith.addf %2, %4 : vector<16x128xf32>
    %cst_5 = arith.constant 0.000000e+00 : f32
    %6 = vector.broadcast %cst_5 : f32 to vector<16x128xf32>
    %7 = arith.maximumf %5, %6 : vector<16x128xf32>
    %8 = arith.truncf %7 : vector<16x128xf32> to vector<16x128xbf16>
    %c0_6 = arith.constant 0 : index
    %c0_7 = arith.constant 0 : index
    %9 = vector.load %arg5[%c0_6, %c0_7] : memref<16x128xbf16, #tpu.memory_space<vmem>>, vector<16x128xbf16>
    tpu.vector_store %arg5[%c0_6, %c0_7], %8 {strides = array<i32>} : memref<16x128xbf16, #tpu.memory_space<vmem>>, vector<16x128xbf16>,
    return
  }
  func.func @transform_0(%arg0: i32, %arg1: i32) -> (i32, i32) {
    %c0_i32 = arith.constant 0 : i32
    %c0_i32_0 = arith.constant 0 : i32
    return %arg0, %c0_i32 : i32, i32
  }
  func.func @transform_1(%arg0: i32, %arg1: i32) -> (i32, i32) {
    %c0_i32 = arith.constant 0 : i32
    %c0_i32_0 = arith.constant 0 : i32
    return %c0_i32, %arg1 : i32, i32
  }
  func.func @transform_2(%arg0: i32, %arg1: i32) -> (i32, i32) {
    %c0_i32 = arith.constant 0 : i32
    %c0_i32_0 = arith.constant 0 : i32
    return %c0_i32, %arg1 : i32, i32
  }
  func.func @transform_3(%arg0: i32, %arg1: i32) -> (i32, i32) {
    %c0_i32 = arith.constant 0 : i32
    return %arg0, %arg1 : i32, i32
  }
}

</mosaic_0001>

<bundles_post_ra>
// kernel: facebox_forward.29
= control target key start
LH: loop header
LB: loop body
LE: loop exit
PB: predicated region body
PF: predicated region fallthrough
CT: control target
= control target key end

     0   :  { %s3267_s12 = smov 0   ;;  %s3269_s13 = smov 0   ;;  %s3918_s0 = inlined_call_operand.vmem [shape: bf16[2048,256], index: 0, kind: input, shape index: {}]   ;;  %s3919_s1 = inlined_call_operand.vmem [shape: bf16[256,48], index: 1, kind: input, shape index: {}]   ;;  %s3920_s2 = inlined_call_operand.vmem [shape: f32[1,48], index: 2, kind: input, shape index: {}]   ;;  %s3921_s3 = inlined_call_operand.vmem [shape: bf16[2048,48], index: 3, kind: output, shape index: {}]  }
   0x1   :  { %s3271_s14 = smov 0  }
   0x2 LB: > { %s25_s15 = sadd.s32 1, %s3240_s13  ;;  %p2554_p0 = scmp.ge.s32.totalorder %s3244_s14, 1  ;;  %s3244_s14 = sphi %s3271_s14, %s13_s14   ;;  %s3240_s13 = sphi %s3269_s13, %s3923_s13   ;;  %s3236_s12 = sphi %s3267_s12, %s3922_s12  }
   0x3   : > { %p27_p1 = scmp.ge.s32.totalorder %s25_s15, 2  ;;  %p170_p2 = scmp.lt.s32.totalorder %s3244_s14, 3 }
   0x5   : > { %s3925_s15 = smov (%p27_p1, %s25_s15), 0  ;;  %p171_p3 = pnand %p2554_p0, %p170_p2 }
   0x6   : > { %s2555_s18 = sshll.u32 (!%p171_p3), %s3236_s12, 7 }
   0x7   : > { %174 = sbr.rel (%p171_p3) target bundleno = 529 (0x211), region = 32  ;;  %p206_p4 = scmp.lt.s32.totalorder (!%p171_p3), %s2555_s18, 255 }
   0xc   : > { %v3021_v0 = vld [vmem:[%s3919_s1 + $0x38] sm:$0xff]   ;;  %v3246_v1 = vmov 0   ;;  %v3022_v2 = vld [vmem:[%s3919_s1 + $0x30] sm:$0xff]   ;;  %v3023_v3 = vld [vmem:[%s3919_s1 + $0x28] sm:$0xff]   ;;  %s3927_s18 = smov (!%p206_p4, %s2555_s18), 255  ;;  %vm2317_vm0 = vcmask 388096  }
   0xd   : > { %1132 = vmatprep.subr.bf16.mxu0 %v3246_v1  ;;  %2964 = vmatprep.subr.bf16.mxu1 %v3246_v1  ;;  %v3024_v4 = vld [vmem:[%s3919_s1 + $0x20] sm:$0xff]   ;;  %s2835_s25 = sshll.u32 %s3927_s18, 3  ;;  %v3025_v5 = vld [vmem:[%s3919_s1 + $0x18] sm:$0xff]   ;;  %v3026_v7 = vld [vmem:[%s3919_s1 + $0x10] sm:$0xff]   ;;  %s2559_s6 = sshll.u32 %s3927_s18, 2 }
   0xe   : > { %1133 = vmatpush1.bf16.msra.mxu0 %v3021_v0  ;;  %2980 = vmatpush1.bf16.msra.mxu1 %v3021_v0  ;;  %s3314_s30 = scalar_lea.vmem %s3918_s0, %s2835_s25  ;;  %v3027_v9 = vld [vmem:[%s3919_s1 + $0x8] sm:$0xff]   ;;  %v3028_v10 = vld [vmem:[%s3919_s1] sm:$0xff]   ;;  %v3029_v11 = vld [vmem:[%s3919_s1 + $0x78] sm:$0xff]   ;;  %s3492_s9 = scalar_lea.vmem %s3921_s3, %s2559_s6 }
   0xf   : > { %1134 = vmatprep.subr.bf16.mxu0 %v3246_v1  ;;  %2965 = vmatprep.subr.bf16.mxu1 %v3246_v1  ;;  %v3039_v6 = vld [vmem:[%s3314_s30 + $0x4] ss:$8 sps:$4 sm:$0xff]   ;;  %v3030_v12 = vld [vmem:[%s3919_s1 + $0x70] sm:$0xff]   ;;  %v3033_v15 = vld [vmem:[%s3919_s1 + $0x58] sm:$0xff]  }
  0x10   : > { %v3042_v8 = vld [vmem:[%s3314_s30 + $0x204] ss:$8 sps:$4 sm:$0xff]   ;;  %1164 = vmatprep.mubr.bf16.mxu0 %v3039_v6  ;;  %v3034_v16 = vld [vmem:[%s3919_s1 + $0x50] sm:$0xff]   ;;  %v3037_v19 = vld [vmem:[%s3314_s30] ss:$8 sps:$4 sm:$0xff]  }
  0x11   : > { %1420 = vmatprep.mubr.bf16.mxu1 %v3042_v8  ;;  %v3031_v13 = vld [vmem:[%s3919_s1 + $0x68] sm:$0xff]   ;;  %v3032_v14 = vld [vmem:[%s3919_s1 + $0x60] sm:$0xff]   ;;  %v3043_v21 = vld [vmem:[%s3314_s30 + $0x14] ss:$8 sps:$4 sm:$0xff]  }
  0x12   : > { %1135 = vmatpush1.bf16.msra.mxu0 %v3022_v2  ;;  %2981 = vmatpush1.bf16.msra.mxu1 %v3022_v2  ;;  %v3035_v17 = vld [vmem:[%s3919_s1 + $0x48] sm:$0xff]   ;;  %v3036_v18 = vld [vmem:[%s3919_s1 + $0x40] sm:$0xff]   ;;  %v3045_v22 = vld [vmem:[%s3314_s30 + $0x214] ss:$8 sps:$4 sm:$0xff]  }
  0x13   : > { %1136 = vmatprep.subr.bf16.mxu0 %v3246_v1  ;;  %2966 = vmatprep.subr.bf16.mxu1 %v3246_v1  ;;  %v3040_v20 = vld [vmem:[%s3314_s30 + $0x200] ss:$8 sps:$4 sm:$0xff]   ;;  %v3047_v23 = vld [vmem:[%s3314_s30 + $0x10] ss:$8 sps:$4 sm:$0xff]   ;;  %v3049_v25 = vld [vmem:[%s3314_s30 + $0x24] ss:$8 sps:$4 sm:$0xff]  }
  0x14   : > { %v3048_v24 = vld [vmem:[%s3314_s30 + $0x210] ss:$8 sps:$4 sm:$0xff]   ;;  %v3051_v26 = vld [vmem:[%s3314_s30 + $0x224] ss:$8 sps:$4 sm:$0xff]   ;;  %v3053_v27 = vld [vmem:[%s3314_s30 + $0x20] ss:$8 sps:$4 sm:$0xff]  }
  0x15   : > { %v3054_v28 = vld [vmem:[%s3314_s30 + $0x220] ss:$8 sps:$4 sm:$0xff]   ;;  %v3055_v29 = vld [vmem:[%s3314_s30 + $0x34] ss:$8 sps:$4 sm:$0xff]   ;;  %v3059_v31 = vld [vmem:[%s3314_s30 + $0x30] ss:$8 sps:$4 sm:$0xff]  }
  0x16   : > { %1137 = vmatpush1.bf16.msra.mxu0 %v3023_v3  ;;  %2982 = vmatpush1.bf16.msra.mxu1 %v3023_v3  ;;  %v3057_v30 = vld [vmem:[%s3314_s30 + $0x234] ss:$8 sps:$4 sm:$0xff]   ;;  %v3060_v32 = vld [vmem:[%s3314_s30 + $0x230] ss:$8 sps:$4 sm:$0xff]   ;;  %v3061_v33 = vld [vmem:[%s3314_s30 + $0x44] ss:$8 sps:$4 sm:$0xff]  }
  0x17   : > { %1138 = vmatprep.subr.bf16.mxu0 %v3246_v1  ;;  %2967 = vmatprep.subr.bf16.mxu1 %v3246_v1  ;;  %v3063_v34 = vld [vmem:[%s3314_s30 + $0x244] ss:$8 sps:$4 sm:$0xff]   ;;  %v3065_v35 = vld [vmem:[%s3314_s30 + $0x40] ss:$8 sps:$4 sm:$0xff]   ;;  %v3067_v37 = vld [vmem:[%s3314_s30 + $0x54] ss:$8 sps:$4 sm:$0xff]  }
  0x18   : > { %v3066_v36 = vld [vmem:[%s3314_s30 + $0x240] ss:$8 sps:$4 sm:$0xff]   ;;  %v3069_v38 = vld [vmem:[%s3314_s30 + $0x254] ss:$8 sps:$4 sm:$0xff]   ;;  %v3071_v39 = vld [vmem:[%s3314_s30 + $0x50] ss:$8 sps:$4 sm:$0xff]  }
  0x19   : > { %v3072_v40 = vld [vmem:[%s3314_s30 + $0x250] ss:$8 sps:$4 sm:$0xff]   ;;  %v3073_v41 = vld [vmem:[%s3314_s30 + $0x64] ss:$8 sps:$4 sm:$0xff]   ;;  %v3077_v43 = vld [vmem:[%s3314_s30 + $0x60] ss:$8 sps:$4 sm:$0xff]  }
  0x1a   : > { %1139 = vmatpush1.bf16.msra.mxu0 %v3024_v4  ;;  %2983 = vmatpush1.bf16.msra.mxu1 %v3024_v4  ;;  %v3075_v42 = vld [vmem:[%s3314_s30 + $0x264] ss:$8 sps:$4 sm:$0xff]   ;;  %v3078_v44 = vld [vmem:[%s3314_s30 + $0x260] ss:$8 sps:$4 sm:$0xff]   ;;  %v3079_v45 = vld [vmem:[%s3314_s30 + $0x74] ss:$8 sps:$4 sm:$0xff]  }
  0x1b   : > { %1140 = vmatprep.subr.bf16.mxu0 %v3246_v1  ;;  %2968 = vmatprep.subr.bf16.mxu1 %v3246_v1  ;;  %v3081_v46 = vld [vmem:[%s3314_s30 + $0x274] ss:$8 sps:$4 sm:$0xff]   ;;  %v3083_v47 = vld [vmem:[%s3314_s30 + $0x70] ss:$8 sps:$4 sm:$0xff]   ;;  %v3085_v49 = vld [vmem:[%s3314_s30 + $0x84] ss:$8 sps:$4 sm:$0xff]  }
  0x1c   : > { %v3084_v48 = vld [vmem:[%s3314_s30 + $0x270] ss:$8 sps:$4 sm:$0xff]   ;;  %v3087_v50 = vld [vmem:[%s3314_s30 + $0x284] ss:$8 sps:$4 sm:$0xff]   ;;  %v3089_v51 = vld [vmem:[%s3314_s30 + $0x80] ss:$8 sps:$4 sm:$0xff]  }
  0x1d   : > { %v3090_v52 = vld [vmem:[%s3314_s30 + $0x280] ss:$8 sps:$4 sm:$0xff]   ;;  %v3091_v53 = vld [vmem:[%s3314_s30 + $0x94] ss:$8 sps:$4 sm:$0xff]   ;;  %v3095_v55 = vld [vmem:[%s3314_s30 + $0x90] ss:$8 sps:$4 sm:$0xff]  }
  0x1e   : > { %1141 = vmatpush1.bf16.msra.mxu0 %v3025_v5  ;;  %2984 = vmatpush1.bf16.msra.mxu1 %v3025_v5  ;;  %v3093_v54 = vld [vmem:[%s3314_s30 + $0x294] ss:$8 sps:$4 sm:$0xff]   ;;  %v3096_v56 = vld [vmem:[%s3314_s30 + $0x290] ss:$8 sps:$4 sm:$0xff]   ;;  %v3097_v57 = vld [vmem:[%s3314_s30 + $0xa4] ss:$8 sps:$4 sm:$0xff]  }
  0x1f   : > { %1142 = vmatprep.subr.bf16.mxu0 %v3246_v1  ;;  %2969 = vmatprep.subr.bf16.mxu1 %v3246_v1  ;;  %v3099_v58 = vld [vmem:[%s3314_s30 + $0x2a4] ss:$8 sps:$4 sm:$0xff]   ;;  %v3101_v59 = vld [vmem:[%s3314_s30 + $0xa0] ss:$8 sps:$4 sm:$0xff]   ;;  %v3103_v61 = vld [vmem:[%s3314_s30 + $0xb4] ss:$8 sps:$4 sm:$0xff]  }
  0x20   : > { %v3102_v60 = vld [vmem:[%s3314_s30 + $0x2a0] ss:$8 sps:$4 sm:$0xff]   ;;  %v3105_v62 = vld [vmem:[%s3314_s30 + $0x2b4] ss:$8 sps:$4 sm:$0xff]   ;;  %v3107_v63 = vld [vmem:[%s3314_s30 + $0xb0] ss:$8 sps:$4 sm:$0xff]  }
  0x21   : > { %v3108_v0 = vld [vmem:[%s3314_s30 + $0x2b0] ss:$8 sps:$4 sm:$0xff]   ;;  %v3111_v2 = vld [vmem:[%s3314_s30 + $0x2c4] ss:$8 sps:$4 sm:$0xff]   ;;  %v3113_v3 = vld [vmem:[%s3314_s30 + $0xc0] ss:$8 sps:$4 sm:$0xff]  }
  0x22   : > { %1143 = vmatpush1.bf16.msra.mxu0 %v3026_v7  ;;  %2985 = vmatpush1.bf16.msra.mxu1 %v3026_v7  ;;  %v3114_v4 = vld [vmem:[%s3314_s30 + $0x2c0] ss:$8 sps:$4 sm:$0xff]   ;;  %v3115_v5 = vld [vmem:[%s3314_s30 + $0xd4] ss:$8 sps:$4 sm:$0xff]   ;;  %v3119_v7 = vld [vmem:[%s3314_s30 + $0xd0] ss:$8 sps:$4 sm:$0xff]  }
  0x23   : > { %1144 = vmatprep.subr.bf16.mxu0 %v3246_v1  ;;  %2970 = vmatprep.subr.bf16.mxu1 %v3246_v1  ;;  %v3117_v6 = vld [vmem:[%s3314_s30 + $0x2d4] ss:$8 sps:$4 sm:$0xff]   ;;  %v3120_v8 = vld [vmem:[%s3314_s30 + $0x2d0] ss:$8 sps:$4 sm:$0xff]  }
  0x26   : > { %1145 = vmatpush1.bf16.msra.mxu0 %v3027_v9  ;;  %2986 = vmatpush1.bf16.msra.mxu1 %v3027_v9  ;;  %v3121_v9 = vld [vmem:[%s3314_s30 + $0xe4] ss:$8 sps:$4 sm:$0xff]  }
  0x27   : > { %1146 = vmatprep.subr.bf16.mxu0 %v3246_v1  ;;  %2971 = vmatprep.subr.bf16.mxu1 %v3246_v1 }
  0x2a   : > { %1147 = vmatpush1.bf16.msra.mxu0 %v3028_v10  ;;  %2987 = vmatpush1.bf16.msra.mxu1 %v3028_v10  ;;  %v3123_v10 = vld [vmem:[%s3314_s30 + $0x2e4] ss:$8 sps:$4 sm:$0xff]  }
  0x2b   : > { %1148 = vmatprep.subr.bf16.mxu0 %v3246_v1  ;;  %2972 = vmatprep.subr.bf16.mxu1 %v3246_v1 }
  0x2e   : > { %1149 = vmatpush2.bf16.msra.mxu0 %v3029_v11  ;;  %2988 = vmatpush2.bf16.msra.mxu1 %v3029_v11  ;;  %v3125_v11 = vld [vmem:[%s3314_s30 + $0xe0] ss:$8 sps:$4 sm:$0xff]  }
  0x2f   : > { %1150 = vmatprep.subr.bf16.mxu0 %v3246_v1  ;;  %2973 = vmatprep.subr.bf16.mxu1 %v3246_v1 }
  0x32   : > { %1151 = vmatpush2.bf16.msra.mxu0 %v3030_v12  ;;  %2989 = vmatpush2.bf16.msra.mxu1 %v3030_v12  ;;  %v3126_v12 = vld [vmem:[%s3314_s30 + $0x2e0] ss:$8 sps:$4 sm:$0xff]  }
  0x33   : > { %1152 = vmatprep.subr.bf16.mxu0 %v3246_v1  ;;  %2974 = vmatprep.subr.bf16.mxu1 %v3246_v1 }
  0x36   : > { %1153 = vmatpush2.bf16.msra.mxu0 %v3031_v13  ;;  %2990 = vmatpush2.bf16.msra.mxu1 %v3031_v13  ;;  %v3127_v13 = vld [vmem:[%s3314_s30 + $0xf4] ss:$8 sps:$4 sm:$0xff]  }
  0x37   : > { %1154 = vmatprep.subr.bf16.mxu0 %v3246_v1  ;;  %2975 = vmatprep.subr.bf16.mxu1 %v3246_v1 }
  0x3a   : > { %1155 = vmatpush2.bf16.msra.mxu0 %v3032_v14  ;;  %2991 = vmatpush2.bf16.msra.mxu1 %v3032_v14  ;;  %v3129_v14 = vld [vmem:[%s3314_s30 + $0x2f4] ss:$8 sps:$4 sm:$0xff]  }
  0x3b   : > { %1156 = vmatprep.subr.bf16.mxu0 %v3246_v1  ;;  %2976 = vmatprep.subr.bf16.mxu1 %v3246_v1 }
  0x3e   : > { %1157 = vmatpush2.bf16.msra.mxu0 %v3033_v15  ;;  %2992 = vmatpush2.bf16.msra.mxu1 %v3033_v15  ;;  %v3131_v15 = vld [vmem:[%s3314_s30 + $0xf0] ss:$8 sps:$4 sm:$0xff]  }
  0x3f   : > { %1158 = vmatprep.subr.bf16.mxu0 %v3246_v1  ;;  %2977 = vmatprep.subr.bf16.mxu1 %v3246_v1 }
  0x42   : > { %1159 = vmatpush2.bf16.msra.mxu0 %v3034_v16  ;;  %2993 = vmatpush2.bf16.msra.mxu1 %v3034_v16  ;;  %v3132_v16 = vld [vmem:[%s3314_s30 + $0x2f0] ss:$8 sps:$4 sm:$0xff]  }
  0x43   : > { %1160 = vmatprep.subr.bf16.mxu0 %v3246_v1  ;;  %2978 = vmatprep.subr.bf16.mxu1 %v3246_v1 }
  0x46   : > { %1161 = vmatpush2.bf16.msra.mxu0 %v3035_v17  ;;  %2994 = vmatpush2.bf16.msra.mxu1 %v3035_v17  ;;  %v3133_v17 = vld [vmem:[%s3314_s30 + $0x104] ss:$8 sps:$4 sm:$0xff]  }
  0x47   : > { %1162 = vmatprep.subr.bf16.mxu0 %v3246_v1  ;;  %2979 = vmatprep.subr.bf16.mxu1 %v3246_v1  ;;  %v3109_v1 = vld [vmem:[%s3314_s30 + $0xc4] ss:$8 sps:$4 sm:$0xff]  }
  0x4a   : > { %1163 = vmatpush2.bf16.msra.mxu0 %v3036_v18  ;;  %2995 = vmatpush2.bf16.msra.mxu1 %v3036_v18  ;;  %v3135_v18 = vld [vmem:[%s3314_s30 + $0x304] ss:$8 sps:$4 sm:$0xff]  }
  0x4d   : > { %1165 = vmatmul.mubr.bf16.vlgmr.msra.gmra.mxu0 %v3037_v19  ;;  %1421 = vmatmul.mubr.bf16.vlgmr.msra.gmra.mxu1 %v3040_v20  ;;  %v3137_v19 = vld [vmem:[%s3314_s30 + $0x100] ss:$8 sps:$4 sm:$0xff]  }
  0x4e   : > { %1172 = vmatprep.mubr.bf16.mxu0 %v3043_v21  ;;  %1428 = vmatprep.mubr.bf16.mxu1 %v3045_v22  ;;  %v3138_v20 = vld [vmem:[%s3314_s30 + $0x300] ss:$8 sps:$4 sm:$0xff]   ;;  %v3139_v21 = vld [vmem:[%s3314_s30 + $0x114] ss:$8 sps:$4 sm:$0xff]  }
  0x4f   : > { %v3141_v22 = vld [vmem:[%s3314_s30 + $0x314] ss:$8 sps:$4 sm:$0xff]  }
  0x55   : > { %1173 = vmatmul.mubr.bf16.gmra.mxu0 %v3047_v23  ;;  %1429 = vmatmul.mubr.bf16.gmra.mxu1 %v3048_v24  ;;  %v3143_v23 = vld [vmem:[%s3314_s30 + $0x110] ss:$8 sps:$4 sm:$0xff]  }
  0x56   : > { %1180 = vmatprep.mubr.bf16.mxu0 %v3049_v25  ;;  %1436 = vmatprep.mubr.bf16.mxu1 %v3051_v26  ;;  %v3144_v24 = vld [vmem:[%s3314_s30 + $0x310] ss:$8 sps:$4 sm:$0xff]   ;;  %v3145_v25 = vld [vmem:[%s3314_s30 + $0x124] ss:$8 sps:$4 sm:$0xff]  }
  0x57   : > { %v3147_v26 = vld [vmem:[%s3314_s30 + $0x324] ss:$8 sps:$4 sm:$0xff]  }
  0x5d   : > { %1181 = vmatmul.mubr.bf16.gmra.mxu0 %v3053_v27  ;;  %1437 = vmatmul.mubr.bf16.gmra.mxu1 %v3054_v28  ;;  %v3149_v27 = vld [vmem:[%s3314_s30 + $0x120] ss:$8 sps:$4 sm:$0xff]  }
  0x5e   : > { %1188 = vmatprep.mubr.bf16.mxu0 %v3055_v29  ;;  %1444 = vmatprep.mubr.bf16.mxu1 %v3057_v30  ;;  %v3150_v28 = vld [vmem:[%s3314_s30 + $0x320] ss:$8 sps:$4 sm:$0xff]   ;;  %v3151_v29 = vld [vmem:[%s3314_s30 + $0x134] ss:$8 sps:$4 sm:$0xff]  }
  0x5f   : > { %v3153_v30 = vld [vmem:[%s3314_s30 + $0x334] ss:$8 sps:$4 sm:$0xff]  }
  0x65   : > { %1189 = vmatmul.mubr.bf16.gmra.mxu0 %v3059_v31  ;;  %1445 = vmatmul.mubr.bf16.gmra.mxu1 %v3060_v32  ;;  %v3155_v31 = vld [vmem:[%s3314_s30 + $0x130] ss:$8 sps:$4 sm:$0xff]  }
  0x66   : > { %1196 = vmatprep.mubr.bf16.mxu0 %v3061_v33  ;;  %1452 = vmatprep.mubr.bf16.mxu1 %v3063_v34  ;;  %v3156_v32 = vld [vmem:[%s3314_s30 + $0x330] ss:$8 sps:$4 sm:$0xff]   ;;  %v3157_v33 = vld [vmem:[%s3314_s30 + $0x144] ss:$8 sps:$4 sm:$0xff]  }
  0x67   : > { %v3159_v34 = vld [vmem:[%s3314_s30 + $0x344] ss:$8 sps:$4 sm:$0xff]  }
  0x6d   : > { %1197 = vmatmul.mubr.bf16.gmra.mxu0 %v3065_v35  ;;  %1453 = vmatmul.mubr.bf16.gmra.mxu1 %v3066_v36  ;;  %v3161_v35 = vld [vmem:[%s3314_s30 + $0x140] ss:$8 sps:$4 sm:$0xff]  }
  0x6e   : > { %1204 = vmatprep.mubr.bf16.mxu0 %v3067_v37  ;;  %1460 = vmatprep.mubr.bf16.mxu1 %v3069_v38  ;;  %v3162_v36 = vld [vmem:[%s3314_s30 + $0x340] ss:$8 sps:$4 sm:$0xff]   ;;  %v3163_v37 = vld [vmem:[%s3314_s30 + $0x154] ss:$8 sps:$4 sm:$0xff]  }
  0x6f   : > { %v3165_v38 = vld [vmem:[%s3314_s30 + $0x354] ss:$8 sps:$4 sm:$0xff]  }
  0x75   : > { %1205 = vmatmul.mubr.bf16.gmra.mxu0 %v3071_v39  ;;  %1461 = vmatmul.mubr.bf16.gmra.mxu1 %v3072_v40  ;;  %v3167_v39 = vld [vmem:[%s3314_s30 + $0x150] ss:$8 sps:$4 sm:$0xff]  }
  0x76   : > { %1212 = vmatprep.mubr.bf16.mxu0 %v3073_v41  ;;  %1468 = vmatprep.mubr.bf16.mxu1 %v3075_v42  ;;  %v3168_v40 = vld [vmem:[%s3314_s30 + $0x350] ss:$8 sps:$4 sm:$0xff]   ;;  %v3169_v41 = vld [vmem:[%s3314_s30 + $0x164] ss:$8 sps:$4 sm:$0xff]  }
  0x77   : > { %v3171_v42 = vld [vmem:[%s3314_s30 + $0x364] ss:$8 sps:$4 sm:$0xff]  }
  0x7d   : > { %1213 = vmatmul.mubr.bf16.gmra.mxu0 %v3077_v43  ;;  %1469 = vmatmul.mubr.bf16.gmra.mxu1 %v3078_v44  ;;  %v3173_v43 = vld [vmem:[%s3314_s30 + $0x160] ss:$8 sps:$4 sm:$0xff]  }
  0x7e   : > { %1220 = vmatprep.mubr.bf16.mxu0 %v3079_v45  ;;  %1476 = vmatprep.mubr.bf16.mxu1 %v3081_v46  ;;  %v3174_v44 = vld [vmem:[%s3314_s30 + $0x360] ss:$8 sps:$4 sm:$0xff]   ;;  %v3175_v45 = vld [vmem:[%s3314_s30 + $0x174] ss:$8 sps:$4 sm:$0xff]  }
  0x7f   : > { %v3177_v46 = vld [vmem:[%s3314_s30 + $0x374] ss:$8 sps:$4 sm:$0xff]  }
  0x85   : > { %1221 = vmatmul.mubr.bf16.gmra.mxu0 %v3083_v47  ;;  %1477 = vmatmul.mubr.bf16.gmra.mxu1 %v3084_v48  ;;  %v3179_v47 = vld [vmem:[%s3314_s30 + $0x170] ss:$8 sps:$4 sm:$0xff]  }
  0x86   : > { %1228 = vmatprep.mubr.bf16.mxu0 %v3085_v49  ;;  %1484 = vmatprep.mubr.bf16.mxu1 %v3087_v50  ;;  %v3180_v48 = vld [vmem:[%s3314_s30 + $0x370] ss:$8 sps:$4 sm:$0xff]   ;;  %v3181_v49 = vld [vmem:[%s3314_s30 + $0x184] ss:$8 sps:$4 sm:$0xff]  }
  0x87   : > { %v3183_v50 = vld [vmem:[%s3314_s30 + $0x384] ss:$8 sps:$4 sm:$0xff]  }
  0x8d   : > { %1229 = vmatmul.mubr.bf16.gmra.mxu0 %v3089_v51  ;;  %1485 = vmatmul.mubr.bf16.gmra.mxu1 %v3090_v52  ;;  %v277_v51 = vld [vmem:[%s3314_s30 + $0x180] sm:$0xff]  ;;  %v278_v52 = vld [vmem:[%s3314_s30 + $0x188] sm:$0xff] }
  0x8e   : > { %1236 = vmatprep.mubr.bf16.mxu0 %v3091_v53  ;;  %1492 = vmatprep.mubr.bf16.mxu1 %v3093_v54  ;;  %v341_v53 = vld [vmem:[%s3314_s30 + $0x380] sm:$0xff]  ;;  %v342_v54 = vld [vmem:[%s3314_s30 + $0x388] sm:$0xff] }
  0x95   : > { %1237 = vmatmul.mubr.bf16.gmra.mxu0 %v3095_v55  ;;  %1493 = vmatmul.mubr.bf16.gmra.mxu1 %v3096_v56  ;;  %v2609_v55 = vcombine.low %v277_v51, %v278_v52  ;;  %v2673_v56 = vcombine.low %v341_v53, %v342_v54  ;;  %v283_v52 = vld [vmem:[%s3314_s30 + $0x1b0] sm:$0xff] }
  0x96   : > { %1244 = vmatprep.mubr.bf16.mxu0 %v3097_v57  ;;  %1500 = vmatprep.mubr.bf16.mxu1 %v3099_v58  ;;  %v3185_v57 = vld [vmem:[%s3314_s30 + $0x194] ss:$8 sps:$4 sm:$0xff]  }
  0x97   : > { %v3187_v58 = vld [vmem:[%s3314_s30 + $0x394] ss:$8 sps:$4 sm:$0xff]  }
  0x9d   : > { %1245 = vmatmul.mubr.bf16.gmra.mxu0 %v3101_v59  ;;  %1501 = vmatmul.mubr.bf16.gmra.mxu1 %v3102_v60  ;;  %v3480_v59 = vld [vmem:[%s3920_s2] ss:$0 sm:$0xff] }
  0x9e   : > { %1252 = vmatprep.mubr.bf16.mxu0 %v3103_v61  ;;  %1508 = vmatprep.mubr.bf16.mxu1 %v3105_v62  ;;  %v279_v62 = vld [vmem:[%s3314_s30 + $0x190] sm:$0xff] }
  0xa5   : > { %1253 = vmatmul.mubr.bf16.gmra.mxu0 %v3107_v63  ;;  %1509 = vmatmul.mubr.bf16.gmra.mxu1 %v3108_v0 }
  0xa6   : > { %1260 = vmatprep.mubr.bf16.mxu0 %v3109_v1  ;;  %1516 = vmatprep.mubr.bf16.mxu1 %v3111_v2  ;;  %v280_v1 = vld [vmem:[%s3314_s30 + $0x198] sm:$0xff]  ;;  %v343_v2 = vld [vmem:[%s3314_s30 + $0x390] sm:$0xff] }
  0xad   : > { %1261 = vmatmul.mubr.bf16.gmra.mxu0 %v3113_v3  ;;  %1517 = vmatmul.mubr.bf16.gmra.mxu1 %v3114_v4  ;;  %v344_v3 = vld [vmem:[%s3314_s30 + $0x398] sm:$0xff] }
  0xae   : > { %1268 = vmatprep.mubr.bf16.mxu0 %v3115_v5  ;;  %1524 = vmatprep.mubr.bf16.mxu1 %v3117_v6 }
  0xb5   : > { %1269 = vmatmul.mubr.bf16.gmra.mxu0 %v3119_v7  ;;  %1525 = vmatmul.mubr.bf16.gmra.mxu1 %v3120_v8 }
  0xb6   : > { %1276 = vmatprep.mubr.bf16.mxu0 %v3121_v9  ;;  %1532 = vmatprep.mubr.bf16.mxu1 %v3123_v10  ;;  %v2611_v10 = vcombine.low %v279_v62, %v280_v1 }
  0xbd   : > { %1277 = vmatmul.mubr.bf16.gmra.mxu0 %v3125_v11  ;;  %1533 = vmatmul.mubr.bf16.gmra.mxu1 %v3126_v12  ;;  %v2675_v11 = vcombine.low %v343_v2, %v344_v3 }
  0xbe   : > { %1284 = vmatprep.mubr.bf16.mxu0 %v3127_v13  ;;  %1540 = vmatprep.mubr.bf16.mxu1 %v3129_v14 }
  0xc5   : > { %1285 = vmatmul.mubr.bf16.gmra.mxu0 %v3131_v15  ;;  %1541 = vmatmul.mubr.bf16.gmra.mxu1 %v3132_v16  ;;  %v3189_v16 = vld [vmem:[%s3314_s30 + $0x1a4] ss:$8 sps:$4 sm:$0xff]  }
  0xc6   : > { %1292 = vmatprep.mubr.bf16.mxu0 %v3133_v17  ;;  %1548 = vmatprep.mubr.bf16.mxu1 %v3135_v18 }
  0xcd   : > { %1293 = vmatmul.mubr.bf16.gmra.mxu0 %v3137_v19  ;;  %1549 = vmatmul.mubr.bf16.gmra.mxu1 %v3138_v20  ;;  %v3191_v19 = vld [vmem:[%s3314_s30 + $0x3a4] ss:$8 sps:$4 sm:$0xff]  }
  0xce   : > { %1300 = vmatprep.mubr.bf16.mxu0 %v3139_v21  ;;  %1556 = vmatprep.mubr.bf16.mxu1 %v3141_v22 }
  0xd5   : > { %1301 = vmatmul.mubr.bf16.gmra.mxu0 %v3143_v23  ;;  %1557 = vmatmul.mubr.bf16.gmra.mxu1 %v3144_v24  ;;  %v281_v24 = vld [vmem:[%s3314_s30 + $0x1a0] sm:$0xff] }
  0xd6   : > { %1308 = vmatprep.mubr.bf16.mxu0 %v3145_v25  ;;  %1564 = vmatprep.mubr.bf16.mxu1 %v3147_v26 }
  0xdd   : > { %1309 = vmatmul.mubr.bf16.gmra.mxu0 %v3149_v27  ;;  %1565 = vmatmul.mubr.bf16.gmra.mxu1 %v3150_v28 }
  0xde   : > { %1316 = vmatprep.mubr.bf16.mxu0 %v3151_v29  ;;  %1572 = vmatprep.mubr.bf16.mxu1 %v3153_v30  ;;  %v282_v29 = vld [vmem:[%s3314_s30 + $0x1a8] sm:$0xff]  ;;  %v345_v30 = vld [vmem:[%s3314_s30 + $0x3a0] sm:$0xff] }
  0xe5   : > { %1317 = vmatmul.mubr.bf16.gmra.mxu0 %v3155_v31  ;;  %1573 = vmatmul.mubr.bf16.gmra.mxu1 %v3156_v32  ;;  %v346_v31 = vld [vmem:[%s3314_s30 + $0x3a8] sm:$0xff] }
  0xe6   : > { %1324 = vmatprep.mubr.bf16.mxu0 %v3157_v33  ;;  %1580 = vmatprep.mubr.bf16.mxu1 %v3159_v34 }
  0xed   : > { %1325 = vmatmul.mubr.bf16.gmra.mxu0 %v3161_v35  ;;  %1581 = vmatmul.mubr.bf16.gmra.mxu1 %v3162_v36 }
  0xee   : > { %1332 = vmatprep.mubr.bf16.mxu0 %v3163_v37  ;;  %1588 = vmatprep.mubr.bf16.mxu1 %v3165_v38  ;;  %v2613_v38 = vcombine.low %v281_v24, %v282_v29 }
  0xf5   : > { %1333 = vmatmul.mubr.bf16.gmra.mxu0 %v3167_v39  ;;  %1589 = vmatmul.mubr.bf16.gmra.mxu1 %v3168_v40  ;;  %v2677_v39 = vcombine.low %v345_v30, %v346_v31 }
  0xf6   : > { %1340 = vmatprep.mubr.bf16.mxu0 %v3169_v41  ;;  %1596 = vmatprep.mubr.bf16.mxu1 %v3171_v42 }
  0xfd   : > { %1341 = vmatmul.mubr.bf16.gmra.mxu0 %v3173_v43  ;;  %1597 = vmatmul.mubr.bf16.gmra.mxu1 %v3174_v44  ;;  %v3193_v44 = vld [vmem:[%s3314_s30 + $0x1b4] ss:$8 sps:$4 sm:$0xff]  }
  0xfe   : > { %1348 = vmatprep.mubr.bf16.mxu0 %v3175_v45  ;;  %1604 = vmatprep.mubr.bf16.mxu1 %v3177_v46 }
 0x105   : > { %1349 = vmatmul.mubr.bf16.gmra.mxu0 %v3179_v47  ;;  %1605 = vmatmul.mubr.bf16.gmra.mxu1 %v3180_v48  ;;  %v3195_v47 = vld [vmem:[%s3314_s30 + $0x3b4] ss:$8 sps:$4 sm:$0xff]  }
 0x106   : > { %1356 = vmatprep.mubr.bf16.mxu0 %v3181_v49  ;;  %1612 = vmatprep.mubr.bf16.mxu1 %v3183_v50 }
 0x10d   : > { %v1166_v60 = vpop.f32.mrf.mxu0  ;;  %1357 = vmatmul.mubr.bf16.gmra.mxu0 %v2609_v55  ;;  %v1422_v61 = vpop.f32.mrf.mxu1  ;;  %1613 = vmatmul.mubr.bf16.gmra.mxu1 %v2673_v56 }
 0x10e   : > { %v1167_v63 = vadd.f32 %v3480_v59, %v1166_v60  ;;  %v1423_v0 = vadd.f32 %v3480_v59, %v1422_v61  ;;  %1364 = vmatprep.mubr.bf16.mxu0 %v3185_v57  ;;  %1620 = vmatprep.mubr.bf16.mxu1 %v3187_v58  ;;  %v284_v57 = vld [vmem:[%s3314_s30 + $0x1b8] sm:$0xff]  ;;  %v347_v58 = vld [vmem:[%s3314_s30 + $0x3b0] sm:$0xff] }
 0x10f   : > { %v1168_v4 = vpop.f32.mrf.mxu0  ;;  %v1424_v5 = vpop.f32.mrf.mxu1  ;;  %v348_v60 = vld [vmem:[%s3314_s30 + $0x3b8] sm:$0xff]  ;;  %v2615_v3 = vcombine.low %v283_v52, %v284_v57  ;;  %v3211_v57 = vld [vmem:[%s3314_s30 + $0x1e4] ss:$8 sps:$4 sm:$0xff]  }
 0x110   : > { %v1677_v6 = vmax.f32 %v1167_v63, 0.0  ;;  %v1741_v7 = vmax.f32 %v1423_v0, 0.0  ;;  %v2679_v4 = vcombine.low %v347_v58, %v348_v60  ;;  %v3206_v52 = vld [vmem:[%s3314_s30 + $0x3d0] ss:$8 sps:$4 sm:$0xff]  }
 0x111   : > { %v1169_v8 = vpop.f32.mrf.mxu0  ;;  %v1425_v9 = vpop.f32.mrf.mxu1 }
 0x112   : > { %v2836_v12 = vpack.c.bf16 %v1677_v6, %v1677_v6  ;;  %v2900_v13 = vpack.c.bf16 %v1741_v7, %v1741_v7  ;;  %v1170_v14 = vadd.f32 %v3480_v59, %v1169_v8  ;;  %v1426_v15 = vadd.f32 %v3480_v59, %v1425_v9  ;;  %v3199_v9 = vld [vmem:[%s3314_s30 + $0x1c4] ss:$8 sps:$4 sm:$0xff]  }
 0x113   : > { %v1171_v17 = vpop.f32.mrf.mxu0  ;;  %v1427_v18 = vpop.f32.mrf.mxu1 }
 0x114   : > { %2318 = vst.msk [vmem:[%s3492_s9] sm:$0xf] %vm2317_vm0, %v2836_v12  ;;  %2382 = vst.msk [vmem:[%s3492_s9 + $0x100] sm:$0xf] %vm2317_vm0, %v2900_v13  ;;  %v1678_v20 = vmax.f32 %v1170_v14, 0.0  ;;  %v1742_v21 = vmax.f32 %v1426_v15, 0.0 }
 0x115   : > { %v1174_v22 = vpop.f32.mrf.mxu0  ;;  %1365 = vmatmul.mubr.bf16.gmra.mxu0 %v2611_v10  ;;  %v1430_v23 = vpop.f32.mrf.mxu1  ;;  %1621 = vmatmul.mubr.bf16.gmra.mxu1 %v2675_v11  ;;  %v3202_v12 = vld [vmem:[%s3314_s30 + $0x3c4] ss:$8 sps:$4 sm:$0xff]  }
 0x116   : > { %v2837_v25 = vpack.c.bf16 %v1678_v20, %v1678_v20  ;;  %v2901_v26 = vpack.c.bf16 %v1742_v21, %v1742_v21  ;;  %v1175_v27 = vadd.f32 %v3480_v59, %v1174_v22  ;;  %v1431_v28 = vadd.f32 %v3480_v59, %v1430_v23  ;;  %1372 = vmatprep.mubr.bf16.mxu0 %v3189_v16 }
 0x117   : > { %v1176_v32 = vpop.f32.mrf.mxu0  ;;  %v1432_v33 = vpop.f32.mrf.mxu1  ;;  %1628 = vmatprep.mubr.bf16.mxu1 %v3191_v19 }
 0x118   : > { %2319 = vst.msk [vmem:[%s3492_s9 + $0x4] sm:$0xf] %vm2317_vm0, %v2837_v25  ;;  %2383 = vst.msk [vmem:[%s3492_s9 + $0x104] sm:$0xf] %vm2317_vm0, %v2901_v26  ;;  %v1679_v34 = vmax.f32 %v1175_v27, 0.0  ;;  %v1743_v35 = vmax.f32 %v1431_v28, 0.0 }
 0x119   : > { %v1177_v36 = vpop.f32.mrf.mxu0  ;;  %v1433_v37 = vpop.f32.mrf.mxu1  ;;  %v3197_v27 = vld [vmem:[%s3314_s30 + $0x1c0] ss:$8 sps:$4 sm:$0xff]   ;;  %v3205_v33 = vld [vmem:[%s3314_s30 + $0x1d4] ss:$8 sps:$4 sm:$0xff]  }
 0x11a   : > { %v2838_v40 = vpack.c.bf16 %v1679_v34, %v1679_v34  ;;  %v2902_v41 = vpack.c.bf16 %v1743_v35, %v1743_v35  ;;  %v1178_v42 = vadd.f32 %v3480_v59, %v1177_v36  ;;  %v1434_v43 = vadd.f32 %v3480_v59, %v1433_v37  ;;  %v3200_v28 = vld [vmem:[%s3314_s30 + $0x3c0] ss:$8 sps:$4 sm:$0xff]   ;;  %v3208_v36 = vld [vmem:[%s3314_s30 + $0x3d4] ss:$8 sps:$4 sm:$0xff]  }
 0x11b   : > { %v1179_v45 = vpop.f32.mrf.mxu0  ;;  %v1435_v46 = vpop.f32.mrf.mxu1 }
 0x11c   : > { %2320 = vst.msk [vmem:[%s3492_s9 + $0x8] sm:$0xf] %vm2317_vm0, %v2838_v40  ;;  %2384 = vst.msk [vmem:[%s3492_s9 + $0x108] sm:$0xf] %vm2317_vm0, %v2902_v41  ;;  %v1680_v48 = vmax.f32 %v1178_v42, 0.0  ;;  %v1744_v49 = vmax.f32 %v1434_v43, 0.0 }
 0x11d   : > { %v1182_v50 = vpop.f32.mrf.mxu0  ;;  %1373 = vmatmul.mubr.bf16.gmra.mxu0 %v2613_v38  ;;  %v1438_v51 = vpop.f32.mrf.mxu1  ;;  %1629 = vmatmul.mubr.bf16.gmra.mxu1 %v2677_v39 }
 0x11e   : > { %v2839_v53 = vpack.c.bf16 %v1680_v48, %v1680_v48  ;;  %v2903_v54 = vpack.c.bf16 %v1744_v49, %v1744_v49  ;;  %v1183_v55 = vadd.f32 %v3480_v59, %v1182_v50  ;;  %v1439_v56 = vadd.f32 %v3480_v59, %v1438_v51  ;;  %1380 = vmatprep.mubr.bf16.mxu0 %v3193_v44  ;;  %v3203_v51 = vld [vmem:[%s3314_s30 + $0x1d0] ss:$8 sps:$4 sm:$0xff]  }
 0x11f   : > { %v1184_v61 = vpop.f32.mrf.mxu0  ;;  %v1440_v62 = vpop.f32.mrf.mxu1  ;;  %1636 = vmatprep.mubr.bf16.mxu1 %v3195_v47 }
 0x120   : > { %2321 = vst.msk [vmem:[%s3492_s9 + $0xc] sm:$0xf] %vm2317_vm0, %v2839_v53  ;;  %2385 = vst.msk [vmem:[%s3492_s9 + $0x10c] sm:$0xf] %vm2317_vm0, %v2903_v54  ;;  %v1681_v63 = vmax.f32 %v1183_v55, 0.0  ;;  %v1745_v0 = vmax.f32 %v1439_v56, 0.0 }
 0x121   : > { %v1185_v1 = vpop.f32.mrf.mxu0  ;;  %v1441_v2 = vpop.f32.mrf.mxu1  ;;  %v3214_v61 = vld [vmem:[%s3314_s30 + $0x3e4] ss:$8 sps:$4 sm:$0xff]  }
 0x122   : > { %v2840_v5 = vpack.c.bf16 %v1681_v63, %v1681_v63  ;;  %v2904_v6 = vpack.c.bf16 %v1745_v0, %v1745_v0  ;;  %v1186_v7 = vadd.f32 %v3480_v59, %v1185_v1  ;;  %v1442_v8 = vadd.f32 %v3480_v59, %v1441_v2 }
 0x123   : > { %v1187_v10 = vpop.f32.mrf.mxu0  ;;  %v1443_v11 = vpop.f32.mrf.mxu1 }
 0x124   : > { %2322 = vst.msk [vmem:[%s3492_s9 + $0x10] sm:$0xf] %vm2317_vm0, %v2840_v5  ;;  %2386 = vst.msk [vmem:[%s3492_s9 + $0x110] sm:$0xf] %vm2317_vm0, %v2904_v6  ;;  %v1682_v13 = vmax.f32 %v1186_v7, 0.0  ;;  %v1746_v14 = vmax.f32 %v1442_v8, 0.0 }
 0x125   : > { %v1190_v15 = vpop.f32.mrf.mxu0  ;;  %1381 = vmatmul.mubr.bf16.gmra.mxu0 %v2615_v3  ;;  %v1446_v16 = vpop.f32.mrf.mxu1  ;;  %1637 = vmatmul.mubr.bf16.gmra.mxu1 %v2679_v4 }
 0x126   : > { %v2841_v17 = vpack.c.bf16 %v1682_v13, %v1682_v13  ;;  %v2905_v18 = vpack.c.bf16 %v1746_v14, %v1746_v14  ;;  %v1191_v19 = vadd.f32 %v3480_v59, %v1190_v15  ;;  %v1447_v20 = vadd.f32 %v3480_v59, %v1446_v16  ;;  %1388 = vmatprep.mubr.bf16.mxu0 %v3199_v9  ;;  %v3212_v13 = vld [vmem:[%s3314_s30 + $0x3e0] ss:$8 sps:$4 sm:$0xff]  }
 0x127   : > { %v1192_v21 = vpop.f32.mrf.mxu0  ;;  %v1448_v22 = vpop.f32.mrf.mxu1  ;;  %1644 = vmatprep.mubr.bf16.mxu1 %v3202_v12  ;;  %v3209_v12 = vld [vmem:[%s3314_s30 + $0x1e0] ss:$8 sps:$4 sm:$0xff]  }
 0x128   : > { %2323 = vst.msk [vmem:[%s3492_s9 + $0x14] sm:$0xf] %vm2317_vm0, %v2841_v17  ;;  %2387 = vst.msk [vmem:[%s3492_s9 + $0x114] sm:$0xf] %vm2317_vm0, %v2905_v18  ;;  %v1683_v23 = vmax.f32 %v1191_v19, 0.0  ;;  %v1747_v24 = vmax.f32 %v1447_v20, 0.0 }
 0x129   : > { %v1193_v25 = vpop.f32.mrf.mxu0  ;;  %v1449_v26 = vpop.f32.mrf.mxu1  ;;  %v3217_v18 = vld [vmem:[%s3314_s30 + $0x1f4] ss:$8 sps:$4 sm:$0xff]  }
 0x12a   : > { %v2842_v29 = vpack.c.bf16 %v1683_v23, %v1683_v23  ;;  %v2906_v30 = vpack.c.bf16 %v1747_v24, %v1747_v24  ;;  %v1194_v31 = vadd.f32 %v3480_v59, %v1193_v25  ;;  %v1450_v32 = vadd.f32 %v3480_v59, %v1449_v26  ;;  %v3220_v21 = vld [vmem:[%s3314_s30 + $0x3f4] ss:$8 sps:$4 sm:$0xff]  }
 0x12b   : > { %v1195_v34 = vpop.f32.mrf.mxu0  ;;  %v1451_v35 = vpop.f32.mrf.mxu1 }
 0x12c   : > { %2324 = vst.msk [vmem:[%s3492_s9 + $0x18] sm:$0xf] %vm2317_vm0, %v2842_v29  ;;  %2388 = vst.msk [vmem:[%s3492_s9 + $0x118] sm:$0xf] %vm2317_vm0, %v2906_v30  ;;  %v1684_v37 = vmax.f32 %v1194_v31, 0.0  ;;  %v1748_v38 = vmax.f32 %v1450_v32, 0.0 }
 0x12d   : > { %v1198_v39 = vpop.f32.mrf.mxu0  ;;  %1389 = vmatmul.mubr.bf16.gmra.mxu0 %v3197_v27  ;;  %v1454_v40 = vpop.f32.mrf.mxu1  ;;  %1645 = vmatmul.mubr.bf16.gmra.mxu1 %v3200_v28 }
 0x12e   : > { %v2843_v41 = vpack.c.bf16 %v1684_v37, %v1684_v37  ;;  %v2907_v42 = vpack.c.bf16 %v1748_v38, %v1748_v38  ;;  %v1199_v43 = vadd.f32 %v3480_v59, %v1198_v39  ;;  %v1455_v44 = vadd.f32 %v3480_v59, %v1454_v40  ;;  %1396 = vmatprep.mubr.bf16.mxu0 %v3205_v33  ;;  %v3218_v37 = vld [vmem:[%s3314_s30 + $0x3f0] ss:$8 sps:$4 sm:$0xff]  }
 0x12f   : > { %v1200_v45 = vpop.f32.mrf.mxu0  ;;  %v1456_v46 = vpop.f32.mrf.mxu1  ;;  %1652 = vmatprep.mubr.bf16.mxu1 %v3208_v36  ;;  %v3215_v36 = vld [vmem:[%s3314_s30 + $0x1f0] ss:$8 sps:$4 sm:$0xff]  }
 0x130   : > { %2325 = vst.msk [vmem:[%s3492_s9 + $0x1c] sm:$0xf] %vm2317_vm0, %v2843_v41  ;;  %2389 = vst.msk [vmem:[%s3492_s9 + $0x11c] sm:$0xf] %vm2317_vm0, %v2907_v42  ;;  %v1685_v47 = vmax.f32 %v1199_v43, 0.0  ;;  %v1749_v48 = vmax.f32 %v1455_v44, 0.0 }
 0x131   : > { %v1201_v49 = vpop.f32.mrf.mxu0  ;;  %v1457_v50 = vpop.f32.mrf.mxu1 }
 0x132   : > { %v2844_v53 = vpack.c.bf16 %v1685_v47, %v1685_v47  ;;  %v2908_v54 = vpack.c.bf16 %v1749_v48, %v1749_v48  ;;  %v1202_v55 = vadd.f32 %v3480_v59, %v1201_v49  ;;  %v1458_v56 = vadd.f32 %v3480_v59, %v1457_v50 }
 0x133   : > { %v1203_v58 = vpop.f32.mrf.mxu0  ;;  %v1459_v60 = vpop.f32.mrf.mxu1 }
 0x134   : > { %2326 = vst.msk [vmem:[%s3492_s9 + $0x20] sm:$0xf] %vm2317_vm0, %v2844_v53  ;;  %2390 = vst.msk [vmem:[%s3492_s9 + $0x120] sm:$0xf] %vm2317_vm0, %v2908_v54  ;;  %v1686_v62 = vmax.f32 %v1202_v55, 0.0  ;;  %v1750_v63 = vmax.f32 %v1458_v56, 0.0 }
 0x135   : > { %v1206_v0 = vpop.f32.mrf.mxu0  ;;  %1397 = vmatmul.mubr.bf16.gmra.mxu0 %v3203_v51  ;;  %v1462_v1 = vpop.f32.mrf.mxu1  ;;  %1653 = vmatmul.mubr.bf16.gmra.mxu1 %v3206_v52 }
 0x136   : > { %v2845_v2 = vpack.c.bf16 %v1686_v62, %v1686_v62  ;;  %v2909_v3 = vpack.c.bf16 %v1750_v63, %v1750_v63  ;;  %v1207_v4 = vadd.f32 %v3480_v59, %v1206_v0  ;;  %v1463_v5 = vadd.f32 %v3480_v59, %v1462_v1  ;;  %1404 = vmatprep.mubr.bf16.mxu0 %v3211_v57 }
 0x137   : > { %v1208_v6 = vpop.f32.mrf.mxu0  ;;  %v1464_v7 = vpop.f32.mrf.mxu1  ;;  %1660 = vmatprep.mubr.bf16.mxu1 %v3214_v61 }
 0x138   : > { %2327 = vst.msk [vmem:[%s3492_s9 + $0x24] sm:$0xf] %vm2317_vm0, %v2845_v2  ;;  %2391 = vst.msk [vmem:[%s3492_s9 + $0x124] sm:$0xf] %vm2317_vm0, %v2909_v3  ;;  %v1687_v8 = vmax.f32 %v1207_v4, 0.0  ;;  %v1751_v9 = vmax.f32 %v1463_v5, 0.0 }
 0x139   : > { %v1209_v10 = vpop.f32.mrf.mxu0  ;;  %v1465_v11 = vpop.f32.mrf.mxu1 }
 0x13a   : > { %v2846_v14 = vpack.c.bf16 %v1687_v8, %v1687_v8  ;;  %v2910_v15 = vpack.c.bf16 %v1751_v9, %v1751_v9  ;;  %v1210_v16 = vadd.f32 %v3480_v59, %v1209_v10  ;;  %v1466_v17 = vadd.f32 %v3480_v59, %v1465_v11 }
 0x13b   : > { %v1211_v19 = vpop.f32.mrf.mxu0  ;;  %v1467_v20 = vpop.f32.mrf.mxu1 }
 0x13c   : > { %2328 = vst.msk [vmem:[%s3492_s9 + $0x28] sm:$0xf] %vm2317_vm0, %v2846_v14  ;;  %2392 = vst.msk [vmem:[%s3492_s9 + $0x128] sm:$0xf] %vm2317_vm0, %v2910_v15  ;;  %v1688_v22 = vmax.f32 %v1210_v16, 0.0  ;;  %v1752_v23 = vmax.f32 %v1466_v17, 0.0 }
 0x13d   : > { %v1214_v24 = vpop.f32.mrf.mxu0  ;;  %1405 = vmatmul.mubr.bf16.gmra.mxu0 %v3209_v12  ;;  %v1470_v25 = vpop.f32.mrf.mxu1  ;;  %1661 = vmatmul.mubr.bf16.gmra.mxu1 %v3212_v13 }
 0x13e   : > { %v2847_v26 = vpack.c.bf16 %v1688_v22, %v1688_v22  ;;  %v2911_v27 = vpack.c.bf16 %v1752_v23, %v1752_v23  ;;  %v1215_v28 = vadd.f32 %v3480_v59, %v1214_v24  ;;  %v1471_v29 = vadd.f32 %v3480_v59, %v1470_v25  ;;  %1412 = vmatprep.mubr.bf16.mxu0 %v3217_v18 }
 0x13f   : > { %v1216_v30 = vpop.f32.mrf.mxu0  ;;  %v1472_v31 = vpop.f32.mrf.mxu1  ;;  %1668 = vmatprep.mubr.bf16.mxu1 %v3220_v21 }
 0x140   : > { %2329 = vst.msk [vmem:[%s3492_s9 + $0x2c] sm:$0xf] %vm2317_vm0, %v2847_v26  ;;  %2393 = vst.msk [vmem:[%s3492_s9 + $0x12c] sm:$0xf] %vm2317_vm0, %v2911_v27  ;;  %v1689_v32 = vmax.f32 %v1215_v28, 0.0  ;;  %v1753_v33 = vmax.f32 %v1471_v29, 0.0 }
 0x141   : > { %v1217_v34 = vpop.f32.mrf.mxu0  ;;  %v1473_v35 = vpop.f32.mrf.mxu1 }
 0x142   : > { %v2848_v38 = vpack.c.bf16 %v1689_v32, %v1689_v32  ;;  %v2912_v39 = vpack.c.bf16 %v1753_v33, %v1753_v33  ;;  %v1218_v40 = vadd.f32 %v3480_v59, %v1217_v34  ;;  %v1474_v41 = vadd.f32 %v3480_v59, %v1473_v35 }
 0x143   : > { %v1219_v42 = vpop.f32.mrf.mxu0  ;;  %v1475_v43 = vpop.f32.mrf.mxu1 }
 0x144   : > { %2330 = vst.msk [vmem:[%s3492_s9 + $0x30] sm:$0xf] %vm2317_vm0, %v2848_v38  ;;  %2394 = vst.msk [vmem:[%s3492_s9 + $0x130] sm:$0xf] %vm2317_vm0, %v2912_v39  ;;  %v1690_v44 = vmax.f32 %v1218_v40, 0.0  ;;  %v1754_v45 = vmax.f32 %v1474_v41, 0.0 }
 0x145   : > { %v1222_v46 = vpop.f32.mrf.mxu0  ;;  %1413 = vmatmul.mubr.bf16.gmra.mxu0 %v3215_v36  ;;  %v1478_v47 = vpop.f32.mrf.mxu1  ;;  %1669 = vmatmul.mubr.bf16.gmra.mxu1 %v3218_v37 }
 0x146   : > { %v2849_v48 = vpack.c.bf16 %v1690_v44, %v1690_v44  ;;  %v2913_v49 = vpack.c.bf16 %v1754_v45, %v1754_v45  ;;  %v1223_v50 = vadd.f32 %v3480_v59, %v1222_v46  ;;  %v1479_v51 = vadd.f32 %v3480_v59, %v1478_v47 }
 0x147   : > { %v1224_v52 = vpop.f32.mrf.mxu0  ;;  %v1480_v53 = vpop.f32.mrf.mxu1 }
 0x148   : > { %2331 = vst.msk [vmem:[%s3492_s9 + $0x34] sm:$0xf] %vm2317_vm0, %v2849_v48  ;;  %2395 = vst.msk [vmem:[%s3492_s9 + $0x134] sm:$0xf] %vm2317_vm0, %v2913_v49  ;;  %v1691_v54 = vmax.f32 %v1223_v50, 0.0  ;;  %v1755_v55 = vmax.f32 %v1479_v51, 0.0 }
 0x149   : > { %v1225_v56 = vpop.f32.mrf.mxu0  ;;  %v1481_v57 = vpop.f32.mrf.mxu1 }
 0x14a   : > { %v2850_v58 = vpack.c.bf16 %v1691_v54, %v1691_v54  ;;  %v2914_v60 = vpack.c.bf16 %v1755_v55, %v1755_v55  ;;  %v1226_v61 = vadd.f32 %v3480_v59, %v1225_v56  ;;  %v1482_v62 = vadd.f32 %v3480_v59, %v1481_v57 }
 0x14b   : > { %v1227_v63 = vpop.f32.mrf.mxu0  ;;  %v1483_v0 = vpop.f32.mrf.mxu1 }
 0x14c   : > { %2332 = vst.msk [vmem:[%s3492_s9 + $0x38] sm:$0xf] %vm2317_vm0, %v2850_v58  ;;  %2396 = vst.msk [vmem:[%s3492_s9 + $0x138] sm:$0xf] %vm2317_vm0, %v2914_v60  ;;  %v1692_v1 = vmax.f32 %v1226_v61, 0.0  ;;  %v1756_v2 = vmax.f32 %v1482_v62, 0.0 }
 0x14d   : > { %v1230_v3 = vpop.f32.mrf.mxu0  ;;  %v1486_v4 = vpop.f32.mrf.mxu1 }
 0x14e   : > { %v2851_v5 = vpack.c.bf16 %v1692_v1, %v1692_v1  ;;  %v2915_v6 = vpack.c.bf16 %v1756_v2, %v1756_v2  ;;  %v1231_v7 = vadd.f32 %v3480_v59, %v1230_v3  ;;  %v1487_v8 = vadd.f32 %v3480_v59, %v1486_v4 }
 0x14f   : > { %v1232_v9 = vpop.f32.mrf.mxu0  ;;  %v1488_v10 = vpop.f32.mrf.mxu1 }
 0x150   : > { %2333 = vst.msk [vmem:[%s3492_s9 + $0x3c] sm:$0xf] %vm2317_vm0, %v2851_v5  ;;  %2397 = vst.msk [vmem:[%s3492_s9 + $0x13c] sm:$0xf] %vm2317_vm0, %v2915_v6  ;;  %v1693_v11 = vmax.f32 %v1231_v7, 0.0  ;;  %v1757_v12 = vmax.f32 %v1487_v8, 0.0 }
 0x151   : > { %v1233_v13 = vpop.f32.mrf.mxu0  ;;  %v1489_v14 = vpop.f32.mrf.mxu1 }
 0x152   : > { %v2852_v15 = vpack.c.bf16 %v1693_v11, %v1693_v11  ;;  %v2916_v16 = vpack.c.bf16 %v1757_v12, %v1757_v12  ;;  %v1234_v17 = vadd.f32 %v3480_v59, %v1233_v13  ;;  %v1490_v18 = vadd.f32 %v3480_v59, %v1489_v14 }
 0x153   : > { %v1235_v19 = vpop.f32.mrf.mxu0  ;;  %v1491_v20 = vpop.f32.mrf.mxu1 }
 0x154   : > { %2334 = vst.msk [vmem:[%s3492_s9 + $0x40] sm:$0xf] %vm2317_vm0, %v2852_v15  ;;  %2398 = vst.msk [vmem:[%s3492_s9 + $0x140] sm:$0xf] %vm2317_vm0, %v2916_v16  ;;  %v1694_v21 = vmax.f32 %v1234_v17, 0.0  ;;  %v1758_v22 = vmax.f32 %v1490_v18, 0.0 }
 0x155   : > { %v1238_v23 = vpop.f32.mrf.mxu0  ;;  %v1494_v24 = vpop.f32.mrf.mxu1 }
 0x156   : > { %v2853_v25 = vpack.c.bf16 %v1694_v21, %v1694_v21  ;;  %v2917_v26 = vpack.c.bf16 %v1758_v22, %v1758_v22  ;;  %v1239_v27 = vadd.f32 %v3480_v59, %v1238_v23  ;;  %v1495_v28 = vadd.f32 %v3480_v59, %v1494_v24 }
 0x157   : > { %v1240_v29 = vpop.f32.mrf.mxu0  ;;  %v1496_v30 = vpop.f32.mrf.mxu1 }
 0x158   : > { %2335 = vst.msk [vmem:[%s3492_s9 + $0x44] sm:$0xf] %vm2317_vm0, %v2853_v25  ;;  %2399 = vst.msk [vmem:[%s3492_s9 + $0x144] sm:$0xf] %vm2317_vm0, %v2917_v26  ;;  %v1695_v31 = vmax.f32 %v1239_v27, 0.0  ;;  %v1759_v32 = vmax.f32 %v1495_v28, 0.0 }
 0x159   : > { %v1241_v33 = vpop.f32.mrf.mxu0  ;;  %v1497_v34 = vpop.f32.mrf.mxu1 }
 0x15a   : > { %v2854_v35 = vpack.c.bf16 %v1695_v31, %v1695_v31  ;;  %v2918_v36 = vpack.c.bf16 %v1759_v32, %v1759_v32  ;;  %v1242_v37 = vadd.f32 %v3480_v59, %v1241_v33  ;;  %v1498_v38 = vadd.f32 %v3480_v59, %v1497_v34 }
 0x15b   : > { %v1243_v39 = vpop.f32.mrf.mxu0  ;;  %v1499_v40 = vpop.f32.mrf.mxu1 }
 0x15c   : > { %2336 = vst.msk [vmem:[%s3492_s9 + $0x48] sm:$0xf] %vm2317_vm0, %v2854_v35  ;;  %2400 = vst.msk [vmem:[%s3492_s9 + $0x148] sm:$0xf] %vm2317_vm0, %v2918_v36  ;;  %v1696_v41 = vmax.f32 %v1242_v37, 0.0  ;;  %v1760_v42 = vmax.f32 %v1498_v38, 0.0 }
 0x15d   : > { %v1246_v43 = vpop.f32.mrf.mxu0  ;;  %v1502_v44 = vpop.f32.mrf.mxu1 }
 0x15e   : > { %v2855_v45 = vpack.c.bf16 %v1696_v41, %v1696_v41  ;;  %v2919_v46 = vpack.c.bf16 %v1760_v42, %v1760_v42  ;;  %v1247_v47 = vadd.f32 %v3480_v59, %v1246_v43  ;;  %v1503_v48 = vadd.f32 %v3480_v59, %v1502_v44 }
 0x15f   : > { %v1248_v49 = vpop.f32.mrf.mxu0  ;;  %v1504_v50 = vpop.f32.mrf.mxu1 }
 0x160   : > { %2337 = vst.msk [vmem:[%s3492_s9 + $0x4c] sm:$0xf] %vm2317_vm0, %v2855_v45  ;;  %2401 = vst.msk [vmem:[%s3492_s9 + $0x14c] sm:$0xf] %vm2317_vm0, %v2919_v46  ;;  %v1697_v51 = vmax.f32 %v1247_v47, 0.0  ;;  %v1761_v52 = vmax.f32 %v1503_v48, 0.0 }
 0x161   : > { %v1249_v53 = vpop.f32.mrf.mxu0  ;;  %v1505_v54 = vpop.f32.mrf.mxu1 }
 0x162   : > { %v2856_v55 = vpack.c.bf16 %v1697_v51, %v1697_v51  ;;  %v2920_v56 = vpack.c.bf16 %v1761_v52, %v1761_v52  ;;  %v1250_v57 = vadd.f32 %v3480_v59, %v1249_v53  ;;  %v1506_v58 = vadd.f32 %v3480_v59, %v1505_v54 }
 0x163   : > { %v1251_v60 = vpop.f32.mrf.mxu0  ;;  %v1507_v61 = vpop.f32.mrf.mxu1 }
 0x164   : > { %2338 = vst.msk [vmem:[%s3492_s9 + $0x50] sm:$0xf] %vm2317_vm0, %v2856_v55  ;;  %2402 = vst.msk [vmem:[%s3492_s9 + $0x150] sm:$0xf] %vm2317_vm0, %v2920_v56  ;;  %v1698_v62 = vmax.f32 %v1250_v57, 0.0  ;;  %v1762_v63 = vmax.f32 %v1506_v58, 0.0 }
 0x165   : > { %v1254_v0 = vpop.f32.mrf.mxu0  ;;  %v1510_v1 = vpop.f32.mrf.mxu1 }
 0x166   : > { %v2857_v2 = vpack.c.bf16 %v1698_v62, %v1698_v62  ;;  %v2921_v3 = vpack.c.bf16 %v1762_v63, %v1762_v63  ;;  %v1255_v4 = vadd.f32 %v3480_v59, %v1254_v0  ;;  %v1511_v5 = vadd.f32 %v3480_v59, %v1510_v1 }
 0x167   : > { %v1256_v6 = vpop.f32.mrf.mxu0  ;;  %v1512_v7 = vpop.f32.mrf.mxu1 }
 0x168   : > { %2339 = vst.msk [vmem:[%s3492_s9 + $0x54] sm:$0xf] %vm2317_vm0, %v2857_v2  ;;  %2403 = vst.msk [vmem:[%s3492_s9 + $0x154] sm:$0xf] %vm2317_vm0, %v2921_v3  ;;  %v1699_v8 = vmax.f32 %v1255_v4, 0.0  ;;  %v1763_v9 = vmax.f32 %v1511_v5, 0.0 }
 0x169   : > { %v1257_v10 = vpop.f32.mrf.mxu0  ;;  %v1513_v11 = vpop.f32.mrf.mxu1 }
 0x16a   : > { %v2858_v12 = vpack.c.bf16 %v1699_v8, %v1699_v8  ;;  %v2922_v13 = vpack.c.bf16 %v1763_v9, %v1763_v9  ;;  %v1258_v14 = vadd.f32 %v3480_v59, %v1257_v10  ;;  %v1514_v15 = vadd.f32 %v3480_v59, %v1513_v11 }
 0x16b   : > { %v1259_v16 = vpop.f32.mrf.mxu0  ;;  %v1515_v17 = vpop.f32.mrf.mxu1 }
 0x16c   : > { %2340 = vst.msk [vmem:[%s3492_s9 + $0x58] sm:$0xf] %vm2317_vm0, %v2858_v12  ;;  %2404 = vst.msk [vmem:[%s3492_s9 + $0x158] sm:$0xf] %vm2317_vm0, %v2922_v13  ;;  %v1700_v18 = vmax.f32 %v1258_v14, 0.0  ;;  %v1764_v19 = vmax.f32 %v1514_v15, 0.0 }
 0x16d   : > { %v1262_v20 = vpop.f32.mrf.mxu0  ;;  %v1518_v21 = vpop.f32.mrf.mxu1 }
 0x16e   : > { %v2859_v22 = vpack.c.bf16 %v1700_v18, %v1700_v18  ;;  %v2923_v23 = vpack.c.bf16 %v1764_v19, %v1764_v19  ;;  %v1263_v24 = vadd.f32 %v3480_v59, %v1262_v20  ;;  %v1519_v25 = vadd.f32 %v3480_v59, %v1518_v21 }
 0x16f   : > { %v1264_v26 = vpop.f32.mrf.mxu0  ;;  %v1520_v27 = vpop.f32.mrf.mxu1 }
 0x170   : > { %2341 = vst.msk [vmem:[%s3492_s9 + $0x5c] sm:$0xf] %vm2317_vm0, %v2859_v22  ;;  %2405 = vst.msk [vmem:[%s3492_s9 + $0x15c] sm:$0xf] %vm2317_vm0, %v2923_v23  ;;  %v1701_v28 = vmax.f32 %v1263_v24, 0.0  ;;  %v1765_v29 = vmax.f32 %v1519_v25, 0.0 }
 0x171   : > { %v1265_v30 = vpop.f32.mrf.mxu0  ;;  %v1521_v31 = vpop.f32.mrf.mxu1 }
 0x172   : > { %v2860_v32 = vpack.c.bf16 %v1701_v28, %v1701_v28  ;;  %v2924_v33 = vpack.c.bf16 %v1765_v29, %v1765_v29  ;;  %v1266_v34 = vadd.f32 %v3480_v59, %v1265_v30  ;;  %v1522_v35 = vadd.f32 %v3480_v59, %v1521_v31 }
 0x173   : > { %v1267_v36 = vpop.f32.mrf.mxu0  ;;  %v1523_v37 = vpop.f32.mrf.mxu1 }
 0x174   : > { %2342 = vst.msk [vmem:[%s3492_s9 + $0x60] sm:$0xf] %vm2317_vm0, %v2860_v32  ;;  %2406 = vst.msk [vmem:[%s3492_s9 + $0x160] sm:$0xf] %vm2317_vm0, %v2924_v33  ;;  %v1702_v38 = vmax.f32 %v1266_v34, 0.0  ;;  %v1766_v39 = vmax.f32 %v1522_v35, 0.0 }
 0x175   : > { %v1270_v40 = vpop.f32.mrf.mxu0  ;;  %v1526_v41 = vpop.f32.mrf.mxu1 }
 0x176   : > { %v2861_v42 = vpack.c.bf16 %v1702_v38, %v1702_v38  ;;  %v2925_v43 = vpack.c.bf16 %v1766_v39, %v1766_v39  ;;  %v1271_v44 = vadd.f32 %v3480_v59, %v1270_v40  ;;  %v1527_v45 = vadd.f32 %v3480_v59, %v1526_v41 }
 0x177   : > { %v1272_v46 = vpop.f32.mrf.mxu0  ;;  %v1528_v47 = vpop.f32.mrf.mxu1 }
 0x178   : > { %2343 = vst.msk [vmem:[%s3492_s9 + $0x64] sm:$0xf] %vm2317_vm0, %v2861_v42  ;;  %2407 = vst.msk [vmem:[%s3492_s9 + $0x164] sm:$0xf] %vm2317_vm0, %v2925_v43  ;;  %v1703_v48 = vmax.f32 %v1271_v44, 0.0  ;;  %v1767_v49 = vmax.f32 %v1527_v45, 0.0 }
 0x179   : > { %v1273_v50 = vpop.f32.mrf.mxu0  ;;  %v1529_v51 = vpop.f32.mrf.mxu1 }
 0x17a   : > { %v2862_v52 = vpack.c.bf16 %v1703_v48, %v1703_v48  ;;  %v2926_v53 = vpack.c.bf16 %v1767_v49, %v1767_v49  ;;  %v1274_v54 = vadd.f32 %v3480_v59, %v1273_v50  ;;  %v1530_v55 = vadd.f32 %v3480_v59, %v1529_v51 }
 0x17b   : > { %v1275_v56 = vpop.f32.mrf.mxu0  ;;  %v1531_v57 = vpop.f32.mrf.mxu1 }
 0x17c   : > { %2344 = vst.msk [vmem:[%s3492_s9 + $0x68] sm:$0xf] %vm2317_vm0, %v2862_v52  ;;  %2408 = vst.msk [vmem:[%s3492_s9 + $0x168] sm:$0xf] %vm2317_vm0, %v2926_v53  ;;  %v1704_v58 = vmax.f32 %v1274_v54, 0.0  ;;  %v1768_v60 = vmax.f32 %v1530_v55, 0.0 }
 0x17d   : > { %v1278_v61 = vpop.f32.mrf.mxu0  ;;  %v1534_v62 = vpop.f32.mrf.mxu1 }
 0x17e   : > { %v2863_v63 = vpack.c.bf16 %v1704_v58, %v1704_v58  ;;  %v2927_v0 = vpack.c.bf16 %v1768_v60, %v1768_v60  ;;  %v1279_v1 = vadd.f32 %v3480_v59, %v1278_v61  ;;  %v1535_v2 = vadd.f32 %v3480_v59, %v1534_v62 }
 0x17f   : > { %v1280_v3 = vpop.f32.mrf.mxu0  ;;  %v1536_v4 = vpop.f32.mrf.mxu1 }
 0x180   : > { %2345 = vst.msk [vmem:[%s3492_s9 + $0x6c] sm:$0xf] %vm2317_vm0, %v2863_v63  ;;  %2409 = vst.msk [vmem:[%s3492_s9 + $0x16c] sm:$0xf] %vm2317_vm0, %v2927_v0  ;;  %v1705_v5 = vmax.f32 %v1279_v1, 0.0  ;;  %v1769_v6 = vmax.f32 %v1535_v2, 0.0 }
 0x181   : > { %v1281_v7 = vpop.f32.mrf.mxu0  ;;  %v1537_v8 = vpop.f32.mrf.mxu1 }
 0x182   : > { %v2864_v9 = vpack.c.bf16 %v1705_v5, %v1705_v5  ;;  %v2928_v10 = vpack.c.bf16 %v1769_v6, %v1769_v6  ;;  %v1282_v11 = vadd.f32 %v3480_v59, %v1281_v7  ;;  %v1538_v12 = vadd.f32 %v3480_v59, %v1537_v8 }
 0x183   : > { %v1283_v13 = vpop.f32.mrf.mxu0  ;;  %v1539_v14 = vpop.f32.mrf.mxu1 }
 0x184   : > { %2346 = vst.msk [vmem:[%s3492_s9 + $0x70] sm:$0xf] %vm2317_vm0, %v2864_v9  ;;  %2410 = vst.msk [vmem:[%s3492_s9 + $0x170] sm:$0xf] %vm2317_vm0, %v2928_v10  ;;  %v1706_v15 = vmax.f32 %v1282_v11, 0.0  ;;  %v1770_v16 = vmax.f32 %v1538_v12, 0.0 }
 0x185   : > { %v1286_v17 = vpop.f32.mrf.mxu0  ;;  %v1542_v18 = vpop.f32.mrf.mxu1 }
 0x186   : > { %v2865_v19 = vpack.c.bf16 %v1706_v15, %v1706_v15  ;;  %v2929_v20 = vpack.c.bf16 %v1770_v16, %v1770_v16  ;;  %v1287_v21 = vadd.f32 %v3480_v59, %v1286_v17  ;;  %v1543_v22 = vadd.f32 %v3480_v59, %v1542_v18 }
 0x187   : > { %v1288_v23 = vpop.f32.mrf.mxu0  ;;  %v1544_v24 = vpop.f32.mrf.mxu1 }
 0x188   : > { %2347 = vst.msk [vmem:[%s3492_s9 + $0x74] sm:$0xf] %vm2317_vm0, %v2865_v19  ;;  %2411 = vst.msk [vmem:[%s3492_s9 + $0x174] sm:$0xf] %vm2317_vm0, %v2929_v20  ;;  %v1707_v25 = vmax.f32 %v1287_v21, 0.0  ;;  %v1771_v26 = vmax.f32 %v1543_v22, 0.0 }
 0x189   : > { %v1289_v27 = vpop.f32.mrf.mxu0  ;;  %v1545_v28 = vpop.f32.mrf.mxu1 }
 0x18a   : > { %v2866_v29 = vpack.c.bf16 %v1707_v25, %v1707_v25  ;;  %v2930_v30 = vpack.c.bf16 %v1771_v26, %v1771_v26  ;;  %v1290_v31 = vadd.f32 %v3480_v59, %v1289_v27  ;;  %v1546_v32 = vadd.f32 %v3480_v59, %v1545_v28  ;;  %v3741_v28 = vld [vmem:[%s3920_s2] ss:$0 sm:$0xff] }
 0x18b   : > { %v1291_v33 = vpop.f32.mrf.mxu0  ;;  %v1547_v34 = vpop.f32.mrf.mxu1 }
 0x18c   : > { %2348 = vst.msk [vmem:[%s3492_s9 + $0x78] sm:$0xf] %vm2317_vm0, %v2866_v29  ;;  %2412 = vst.msk [vmem:[%s3492_s9 + $0x178] sm:$0xf] %vm2317_vm0, %v2930_v30  ;;  %v1708_v35 = vmax.f32 %v1290_v31, 0.0  ;;  %v1772_v36 = vmax.f32 %v1546_v32, 0.0 }
 0x18d   : > { %v1294_v37 = vpop.f32.mrf.mxu0  ;;  %v1550_v38 = vpop.f32.mrf.mxu1 }
 0x18e   : > { %v2867_v39 = vpack.c.bf16 %v1708_v35, %v1708_v35  ;;  %v2931_v40 = vpack.c.bf16 %v1772_v36, %v1772_v36  ;;  %v1295_v41 = vadd.f32 %v3480_v59, %v1294_v37  ;;  %v1551_v42 = vadd.f32 %v3480_v59, %v1550_v38 }
 0x18f   : > { %v1296_v43 = vpop.f32.mrf.mxu0  ;;  %v1552_v44 = vpop.f32.mrf.mxu1 }
 0x190   : > { %2349 = vst.msk [vmem:[%s3492_s9 + $0x7c] sm:$0xf] %vm2317_vm0, %v2867_v39  ;;  %2413 = vst.msk [vmem:[%s3492_s9 + $0x17c] sm:$0xf] %vm2317_vm0, %v2931_v40  ;;  %v1709_v45 = vmax.f32 %v1295_v41, 0.0  ;;  %v1773_v46 = vmax.f32 %v1551_v42, 0.0 }
 0x191   : > { %v1297_v47 = vpop.f32.mrf.mxu0  ;;  %v1553_v48 = vpop.f32.mrf.mxu1 }
 0x192   : > { %v2868_v49 = vpack.c.bf16 %v1709_v45, %v1709_v45  ;;  %v2932_v50 = vpack.c.bf16 %v1773_v46, %v1773_v46  ;;  %v1298_v51 = vadd.f32 %v3480_v59, %v1297_v47  ;;  %v1554_v52 = vadd.f32 %v3480_v59, %v1553_v48 }
 0x193   : > { %v1299_v53 = vpop.f32.mrf.mxu0  ;;  %v1555_v54 = vpop.f32.mrf.mxu1 }
 0x194   : > { %2350 = vst.msk [vmem:[%s3492_s9 + $0x80] sm:$0xf] %vm2317_vm0, %v2868_v49  ;;  %2414 = vst.msk [vmem:[%s3492_s9 + $0x180] sm:$0xf] %vm2317_vm0, %v2932_v50  ;;  %v1710_v55 = vmax.f32 %v1298_v51, 0.0  ;;  %v1774_v56 = vmax.f32 %v1554_v52, 0.0 }
 0x195   : > { %v1302_v57 = vpop.f32.mrf.mxu0  ;;  %v1558_v58 = vpop.f32.mrf.mxu1 }
 0x196   : > { %v2869_v60 = vpack.c.bf16 %v1710_v55, %v1710_v55  ;;  %v2933_v61 = vpack.c.bf16 %v1774_v56, %v1774_v56  ;;  %v1303_v62 = vadd.f32 %v3480_v59, %v1302_v57  ;;  %v1559_v63 = vadd.f32 %v3480_v59, %v1558_v58 }
 0x197   : > { %v1304_v0 = vpop.f32.mrf.mxu0  ;;  %v1560_v1 = vpop.f32.mrf.mxu1 }
 0x198   : > { %2351 = vst.msk [vmem:[%s3492_s9 + $0x84] sm:$0xf] %vm2317_vm0, %v2869_v60  ;;  %2415 = vst.msk [vmem:[%s3492_s9 + $0x184] sm:$0xf] %vm2317_vm0, %v2933_v61  ;;  %v1711_v2 = vmax.f32 %v1303_v62, 0.0  ;;  %v1775_v3 = vmax.f32 %v1559_v63, 0.0 }
 0x199   : > { %v1305_v4 = vpop.f32.mrf.mxu0  ;;  %v1561_v5 = vpop.f32.mrf.mxu1 }
 0x19a   : > { %v2870_v6 = vpack.c.bf16 %v1711_v2, %v1711_v2  ;;  %v2934_v7 = vpack.c.bf16 %v1775_v3, %v1775_v3  ;;  %v1306_v8 = vadd.f32 %v3480_v59, %v1305_v4  ;;  %v1562_v9 = vadd.f32 %v3480_v59, %v1561_v5 }
 0x19b   : > { %v1307_v10 = vpop.f32.mrf.mxu0  ;;  %v1563_v11 = vpop.f32.mrf.mxu1 }
 0x19c   : > { %2352 = vst.msk [vmem:[%s3492_s9 + $0x88] sm:$0xf] %vm2317_vm0, %v2870_v6  ;;  %2416 = vst.msk [vmem:[%s3492_s9 + $0x188] sm:$0xf] %vm2317_vm0, %v2934_v7  ;;  %v1712_v12 = vmax.f32 %v1306_v8, 0.0  ;;  %v1776_v13 = vmax.f32 %v1562_v9, 0.0 }
 0x19d   : > { %v1310_v14 = vpop.f32.mrf.mxu0  ;;  %v1566_v15 = vpop.f32.mrf.mxu1 }
 0x19e   : > { %v2871_v16 = vpack.c.bf16 %v1712_v12, %v1712_v12  ;;  %v2935_v17 = vpack.c.bf16 %v1776_v13, %v1776_v13  ;;  %v1311_v18 = vadd.f32 %v3480_v59, %v1310_v14  ;;  %v1567_v19 = vadd.f32 %v3480_v59, %v1566_v15 }
 0x19f   : > { %v1312_v20 = vpop.f32.mrf.mxu0  ;;  %v1568_v21 = vpop.f32.mrf.mxu1 }
 0x1a0   : > { %2353 = vst.msk [vmem:[%s3492_s9 + $0x8c] sm:$0xf] %vm2317_vm0, %v2871_v16  ;;  %2417 = vst.msk [vmem:[%s3492_s9 + $0x18c] sm:$0xf] %vm2317_vm0, %v2935_v17  ;;  %v1713_v22 = vmax.f32 %v1311_v18, 0.0  ;;  %v1777_v23 = vmax.f32 %v1567_v19, 0.0 }
 0x1a1   : > { %v1313_v24 = vpop.f32.mrf.mxu0  ;;  %v1569_v25 = vpop.f32.mrf.mxu1 }
 0x1a2   : > { %v2872_v26 = vpack.c.bf16 %v1713_v22, %v1713_v22  ;;  %v2936_v27 = vpack.c.bf16 %v1777_v23, %v1777_v23  ;;  %v1314_v59 = vadd.f32 %v3741_v28, %v1313_v24  ;;  %v1570_v29 = vadd.f32 %v3741_v28, %v1569_v25 }
 0x1a3   : > { %v1315_v30 = vpop.f32.mrf.mxu0  ;;  %v1571_v31 = vpop.f32.mrf.mxu1 }
 0x1a4   : > { %2354 = vst.msk [vmem:[%s3492_s9 + $0x90] sm:$0xf] %vm2317_vm0, %v2872_v26  ;;  %2418 = vst.msk [vmem:[%s3492_s9 + $0x190] sm:$0xf] %vm2317_vm0, %v2936_v27  ;;  %v1714_v32 = vmax.f32 %v1314_v59, 0.0  ;;  %v1778_v33 = vmax.f32 %v1570_v29, 0.0 }
 0x1a5   : > { %v1318_v34 = vpop.f32.mrf.mxu0  ;;  %v1574_v35 = vpop.f32.mrf.mxu1 }
 0x1a6   : > { %v2873_v36 = vpack.c.bf16 %v1714_v32, %v1714_v32  ;;  %v2937_v37 = vpack.c.bf16 %v1778_v33, %v1778_v33  ;;  %v1319_v38 = vadd.f32 %v3741_v28, %v1318_v34  ;;  %v1575_v39 = vadd.f32 %v3741_v28, %v1574_v35 }
 0x1a7   : > { %v1320_v40 = vpop.f32.mrf.mxu0  ;;  %v1576_v41 = vpop.f32.mrf.mxu1 }
 0x1a8   : > { %2355 = vst.msk [vmem:[%s3492_s9 + $0x94] sm:$0xf] %vm2317_vm0, %v2873_v36  ;;  %2419 = vst.msk [vmem:[%s3492_s9 + $0x194] sm:$0xf] %vm2317_vm0, %v2937_v37  ;;  %v1715_v42 = vmax.f32 %v1319_v38, 0.0  ;;  %v1779_v43 = vmax.f32 %v1575_v39, 0.0 }
 0x1a9   : > { %v1321_v44 = vpop.f32.mrf.mxu0  ;;  %v1577_v45 = vpop.f32.mrf.mxu1 }
 0x1aa   : > { %v2874_v46 = vpack.c.bf16 %v1715_v42, %v1715_v42  ;;  %v2938_v47 = vpack.c.bf16 %v1779_v43, %v1779_v43  ;;  %v1322_v48 = vadd.f32 %v3741_v28, %v1321_v44  ;;  %v1578_v49 = vadd.f32 %v3741_v28, %v1577_v45 }
 0x1ab   : > { %v1323_v50 = vpop.f32.mrf.mxu0  ;;  %v1579_v51 = vpop.f32.mrf.mxu1 }
 0x1ac   : > { %2356 = vst.msk [vmem:[%s3492_s9 + $0x98] sm:$0xf] %vm2317_vm0, %v2874_v46  ;;  %2420 = vst.msk [vmem:[%s3492_s9 + $0x198] sm:$0xf] %vm2317_vm0, %v2938_v47  ;;  %v1716_v52 = vmax.f32 %v1322_v48, 0.0  ;;  %v1780_v53 = vmax.f32 %v1578_v49, 0.0 }
 0x1ad   : > { %v1326_v54 = vpop.f32.mrf.mxu0  ;;  %v1582_v55 = vpop.f32.mrf.mxu1 }
 0x1ae   : > { %v2875_v56 = vpack.c.bf16 %v1716_v52, %v1716_v52  ;;  %v2939_v57 = vpack.c.bf16 %v1780_v53, %v1780_v53  ;;  %v1327_v58 = vadd.f32 %v3741_v28, %v1326_v54  ;;  %v1583_v60 = vadd.f32 %v3741_v28, %v1582_v55 }
 0x1af   : > { %v1328_v61 = vpop.f32.mrf.mxu0  ;;  %v1584_v62 = vpop.f32.mrf.mxu1 }
 0x1b0   : > { %2357 = vst.msk [vmem:[%s3492_s9 + $0x9c] sm:$0xf] %vm2317_vm0, %v2875_v56  ;;  %2421 = vst.msk [vmem:[%s3492_s9 + $0x19c] sm:$0xf] %vm2317_vm0, %v2939_v57  ;;  %v1717_v63 = vmax.f32 %v1327_v58, 0.0  ;;  %v1781_v0 = vmax.f32 %v1583_v60, 0.0 }
 0x1b1   : > { %v1329_v1 = vpop.f32.mrf.mxu0  ;;  %v1585_v2 = vpop.f32.mrf.mxu1 }
 0x1b2   : > { %v2876_v3 = vpack.c.bf16 %v1717_v63, %v1717_v63  ;;  %v2940_v4 = vpack.c.bf16 %v1781_v0, %v1781_v0  ;;  %v1330_v5 = vadd.f32 %v3741_v28, %v1329_v1  ;;  %v1586_v6 = vadd.f32 %v3741_v28, %v1585_v2 }
 0x1b3   : > { %v1331_v7 = vpop.f32.mrf.mxu0  ;;  %v1587_v8 = vpop.f32.mrf.mxu1 }
 0x1b4   : > { %2358 = vst.msk [vmem:[%s3492_s9 + $0xa0] sm:$0xf] %vm2317_vm0, %v2876_v3  ;;  %2422 = vst.msk [vmem:[%s3492_s9 + $0x1a0] sm:$0xf] %vm2317_vm0, %v2940_v4  ;;  %v1718_v9 = vmax.f32 %v1330_v5, 0.0  ;;  %v1782_v10 = vmax.f32 %v1586_v6, 0.0 }
 0x1b5   : > { %v1334_v11 = vpop.f32.mrf.mxu0  ;;  %v1590_v12 = vpop.f32.mrf.mxu1 }
 0x1b6   : > { %v2877_v13 = vpack.c.bf16 %v1718_v9, %v1718_v9  ;;  %v2941_v14 = vpack.c.bf16 %v1782_v10, %v1782_v10  ;;  %v1335_v15 = vadd.f32 %v3741_v28, %v1334_v11  ;;  %v1591_v16 = vadd.f32 %v3741_v28, %v1590_v12 }
 0x1b7   : > { %v1336_v17 = vpop.f32.mrf.mxu0  ;;  %v1592_v18 = vpop.f32.mrf.mxu1 }
 0x1b8   : > { %2359 = vst.msk [vmem:[%s3492_s9 + $0xa4] sm:$0xf] %vm2317_vm0, %v2877_v13  ;;  %2423 = vst.msk [vmem:[%s3492_s9 + $0x1a4] sm:$0xf] %vm2317_vm0, %v2941_v14  ;;  %v1719_v19 = vmax.f32 %v1335_v15, 0.0  ;;  %v1783_v20 = vmax.f32 %v1591_v16, 0.0 }
 0x1b9   : > { %v1337_v21 = vpop.f32.mrf.mxu0  ;;  %v1593_v22 = vpop.f32.mrf.mxu1 }
 0x1ba   : > { %v2878_v23 = vpack.c.bf16 %v1719_v19, %v1719_v19  ;;  %v2942_v24 = vpack.c.bf16 %v1783_v20, %v1783_v20  ;;  %v1338_v25 = vadd.f32 %v3741_v28, %v1337_v21  ;;  %v1594_v26 = vadd.f32 %v3741_v28, %v1593_v22 }
 0x1bb   : > { %v1339_v27 = vpop.f32.mrf.mxu0  ;;  %v1595_v59 = vpop.f32.mrf.mxu1 }
 0x1bc   : > { %2360 = vst.msk [vmem:[%s3492_s9 + $0xa8] sm:$0xf] %vm2317_vm0, %v2878_v23  ;;  %2424 = vst.msk [vmem:[%s3492_s9 + $0x1a8] sm:$0xf] %vm2317_vm0, %v2942_v24  ;;  %v1720_v29 = vmax.f32 %v1338_v25, 0.0  ;;  %v1784_v30 = vmax.f32 %v1594_v26, 0.0 }
 0x1bd   : > { %v1342_v31 = vpop.f32.mrf.mxu0  ;;  %v1598_v32 = vpop.f32.mrf.mxu1 }
 0x1be   : > { %v2879_v33 = vpack.c.bf16 %v1720_v29, %v1720_v29  ;;  %v2943_v34 = vpack.c.bf16 %v1784_v30, %v1784_v30  ;;  %v1343_v35 = vadd.f32 %v3741_v28, %v1342_v31  ;;  %v1599_v36 = vadd.f32 %v3741_v28, %v1598_v32 }
 0x1bf   : > { %v1344_v37 = vpop.f32.mrf.mxu0  ;;  %v1600_v38 = vpop.f32.mrf.mxu1 }
 0x1c0   : > { %2361 = vst.msk [vmem:[%s3492_s9 + $0xac] sm:$0xf] %vm2317_vm0, %v2879_v33  ;;  %2425 = vst.msk [vmem:[%s3492_s9 + $0x1ac] sm:$0xf] %vm2317_vm0, %v2943_v34  ;;  %v1721_v39 = vmax.f32 %v1343_v35, 0.0  ;;  %v1785_v40 = vmax.f32 %v1599_v36, 0.0 }
 0x1c1   : > { %v1345_v41 = vpop.f32.mrf.mxu0  ;;  %v1601_v42 = vpop.f32.mrf.mxu1 }
 0x1c2   : > { %v2880_v43 = vpack.c.bf16 %v1721_v39, %v1721_v39  ;;  %v2944_v44 = vpack.c.bf16 %v1785_v40, %v1785_v40  ;;  %v1346_v45 = vadd.f32 %v3741_v28, %v1345_v41  ;;  %v1602_v46 = vadd.f32 %v3741_v28, %v1601_v42 }
 0x1c3   : > { %v1347_v47 = vpop.f32.mrf.mxu0  ;;  %v1603_v48 = vpop.f32.mrf.mxu1 }
 0x1c4   : > { %2362 = vst.msk [vmem:[%s3492_s9 + $0xb0] sm:$0xf] %vm2317_vm0, %v2880_v43  ;;  %2426 = vst.msk [vmem:[%s3492_s9 + $0x1b0] sm:$0xf] %vm2317_vm0, %v2944_v44  ;;  %v1722_v49 = vmax.f32 %v1346_v45, 0.0  ;;  %v1786_v50 = vmax.f32 %v1602_v46, 0.0 }
 0x1c5   : > { %v1350_v51 = vpop.f32.mrf.mxu0  ;;  %v1606_v52 = vpop.f32.mrf.mxu1 }
 0x1c6   : > { %v2881_v53 = vpack.c.bf16 %v1722_v49, %v1722_v49  ;;  %v2945_v54 = vpack.c.bf16 %v1786_v50, %v1786_v50  ;;  %v1351_v55 = vadd.f32 %v3741_v28, %v1350_v51  ;;  %v1607_v56 = vadd.f32 %v3741_v28, %v1606_v52 }
 0x1c7   : > { %v1352_v57 = vpop.f32.mrf.mxu0  ;;  %v1608_v58 = vpop.f32.mrf.mxu1 }
 0x1c8   : > { %2363 = vst.msk [vmem:[%s3492_s9 + $0xb4] sm:$0xf] %vm2317_vm0, %v2881_v53  ;;  %2427 = vst.msk [vmem:[%s3492_s9 + $0x1b4] sm:$0xf] %vm2317_vm0, %v2945_v54  ;;  %v1723_v60 = vmax.f32 %v1351_v55, 0.0  ;;  %v1787_v61 = vmax.f32 %v1607_v56, 0.0 }
 0x1c9   : > { %v1353_v62 = vpop.f32.mrf.mxu0  ;;  %v1609_v63 = vpop.f32.mrf.mxu1 }
 0x1ca   : > { %v2882_v0 = vpack.c.bf16 %v1723_v60, %v1723_v60  ;;  %v2946_v1 = vpack.c.bf16 %v1787_v61, %v1787_v61  ;;  %v1354_v2 = vadd.f32 %v3741_v28, %v1353_v62  ;;  %v1610_v3 = vadd.f32 %v3741_v28, %v1609_v63 }
 0x1cb   : > { %v1355_v4 = vpop.f32.mrf.mxu0  ;;  %v1611_v5 = vpop.f32.mrf.mxu1 }
 0x1cc   : > { %2364 = vst.msk [vmem:[%s3492_s9 + $0xb8] sm:$0xf] %vm2317_vm0, %v2882_v0  ;;  %2428 = vst.msk [vmem:[%s3492_s9 + $0x1b8] sm:$0xf] %vm2317_vm0, %v2946_v1  ;;  %v1724_v6 = vmax.f32 %v1354_v2, 0.0  ;;  %v1788_v7 = vmax.f32 %v1610_v3, 0.0 }
 0x1cd   : > { %v1358_v8 = vpop.f32.mrf.mxu0  ;;  %v1614_v9 = vpop.f32.mrf.mxu1 }
 0x1ce   : > { %v2883_v10 = vpack.c.bf16 %v1724_v6, %v1724_v6  ;;  %v2947_v11 = vpack.c.bf16 %v1788_v7, %v1788_v7  ;;  %v1359_v12 = vadd.f32 %v3741_v28, %v1358_v8  ;;  %v1615_v13 = vadd.f32 %v3741_v28, %v1614_v9 }
 0x1cf   : > { %v1360_v14 = vpop.f32.mrf.mxu0  ;;  %v1616_v15 = vpop.f32.mrf.mxu1 }
 0x1d0   : > { %2365 = vst.msk [vmem:[%s3492_s9 + $0xbc] sm:$0xf] %vm2317_vm0, %v2883_v10  ;;  %2429 = vst.msk [vmem:[%s3492_s9 + $0x1bc] sm:$0xf] %vm2317_vm0, %v2947_v11  ;;  %v1725_v16 = vmax.f32 %v1359_v12, 0.0  ;;  %v1789_v17 = vmax.f32 %v1615_v13, 0.0 }
 0x1d1   : > { %v1361_v18 = vpop.f32.mrf.mxu0  ;;  %v1617_v19 = vpop.f32.mrf.mxu1 }
 0x1d2   : > { %v2884_v20 = vpack.c.bf16 %v1725_v16, %v1725_v16  ;;  %v2948_v21 = vpack.c.bf16 %v1789_v17, %v1789_v17  ;;  %v1362_v22 = vadd.f32 %v3741_v28, %v1361_v18  ;;  %v1618_v23 = vadd.f32 %v3741_v28, %v1617_v19 }
 0x1d3   : > { %v1363_v24 = vpop.f32.mrf.mxu0  ;;  %v1619_v25 = vpop.f32.mrf.mxu1 }
 0x1d4   : > { %2366 = vst.msk [vmem:[%s3492_s9 + $0xc0] sm:$0xf] %vm2317_vm0, %v2884_v20  ;;  %2430 = vst.msk [vmem:[%s3492_s9 + $0x1c0] sm:$0xf] %vm2317_vm0, %v2948_v21  ;;  %v1726_v26 = vmax.f32 %v1362_v22, 0.0  ;;  %v1790_v27 = vmax.f32 %v1618_v23, 0.0 }
 0x1d5   : > { %v1366_v59 = vpop.f32.mrf.mxu0  ;;  %v1622_v29 = vpop.f32.mrf.mxu1 }
 0x1d6   : > { %v2885_v30 = vpack.c.bf16 %v1726_v26, %v1726_v26  ;;  %v2949_v31 = vpack.c.bf16 %v1790_v27, %v1790_v27  ;;  %v1367_v32 = vadd.f32 %v3741_v28, %v1366_v59  ;;  %v1623_v33 = vadd.f32 %v3741_v28, %v1622_v29 }
 0x1d7   : > { %v1368_v34 = vpop.f32.mrf.mxu0  ;;  %v1624_v35 = vpop.f32.mrf.mxu1 }
 0x1d8   : > { %2367 = vst.msk [vmem:[%s3492_s9 + $0xc4] sm:$0xf] %vm2317_vm0, %v2885_v30  ;;  %2431 = vst.msk [vmem:[%s3492_s9 + $0x1c4] sm:$0xf] %vm2317_vm0, %v2949_v31  ;;  %v1727_v36 = vmax.f32 %v1367_v32, 0.0  ;;  %v1791_v37 = vmax.f32 %v1623_v33, 0.0 }
 0x1d9   : > { %v1369_v38 = vpop.f32.mrf.mxu0  ;;  %v1625_v39 = vpop.f32.mrf.mxu1 }
 0x1da   : > { %v2886_v40 = vpack.c.bf16 %v1727_v36, %v1727_v36  ;;  %v2950_v41 = vpack.c.bf16 %v1791_v37, %v1791_v37  ;;  %v1370_v42 = vadd.f32 %v3741_v28, %v1369_v38  ;;  %v1626_v43 = vadd.f32 %v3741_v28, %v1625_v39 }
 0x1db   : > { %v1371_v44 = vpop.f32.mrf.mxu0  ;;  %v1627_v45 = vpop.f32.mrf.mxu1 }
 0x1dc   : > { %2368 = vst.msk [vmem:[%s3492_s9 + $0xc8] sm:$0xf] %vm2317_vm0, %v2886_v40  ;;  %2432 = vst.msk [vmem:[%s3492_s9 + $0x1c8] sm:$0xf] %vm2317_vm0, %v2950_v41  ;;  %v1728_v46 = vmax.f32 %v1370_v42, 0.0  ;;  %v1792_v47 = vmax.f32 %v1626_v43, 0.0 }
 0x1dd   : > { %v1374_v48 = vpop.f32.mrf.mxu0  ;;  %v1630_v49 = vpop.f32.mrf.mxu1 }
 0x1de   : > { %v2887_v50 = vpack.c.bf16 %v1728_v46, %v1728_v46  ;;  %v2951_v51 = vpack.c.bf16 %v1792_v47, %v1792_v47  ;;  %v1375_v52 = vadd.f32 %v3741_v28, %v1374_v48  ;;  %v1631_v53 = vadd.f32 %v3741_v28, %v1630_v49 }
 0x1df   : > { %v1376_v54 = vpop.f32.mrf.mxu0  ;;  %v1632_v55 = vpop.f32.mrf.mxu1 }
 0x1e0   : > { %2369 = vst.msk [vmem:[%s3492_s9 + $0xcc] sm:$0xf] %vm2317_vm0, %v2887_v50  ;;  %2433 = vst.msk [vmem:[%s3492_s9 + $0x1cc] sm:$0xf] %vm2317_vm0, %v2951_v51  ;;  %v1729_v56 = vmax.f32 %v1375_v52, 0.0  ;;  %v1793_v57 = vmax.f32 %v1631_v53, 0.0 }
 0x1e1   : > { %v1377_v58 = vpop.f32.mrf.mxu0  ;;  %v1633_v60 = vpop.f32.mrf.mxu1 }
 0x1e2   : > { %v2888_v61 = vpack.c.bf16 %v1729_v56, %v1729_v56  ;;  %v2952_v62 = vpack.c.bf16 %v1793_v57, %v1793_v57  ;;  %v1378_v63 = vadd.f32 %v3741_v28, %v1377_v58  ;;  %v1634_v0 = vadd.f32 %v3741_v28, %v1633_v60 }
 0x1e3   : > { %v1379_v1 = vpop.f32.mrf.mxu0  ;;  %v1635_v2 = vpop.f32.mrf.mxu1 }
 0x1e4   : > { %2370 = vst.msk [vmem:[%s3492_s9 + $0xd0] sm:$0xf] %vm2317_vm0, %v2888_v61  ;;  %2434 = vst.msk [vmem:[%s3492_s9 + $0x1d0] sm:$0xf] %vm2317_vm0, %v2952_v62  ;;  %v1730_v3 = vmax.f32 %v1378_v63, 0.0  ;;  %v1794_v4 = vmax.f32 %v1634_v0, 0.0 }
 0x1e5   : > { %v1382_v5 = vpop.f32.mrf.mxu0  ;;  %v1638_v6 = vpop.f32.mrf.mxu1 }
 0x1e6   : > { %v2889_v7 = vpack.c.bf16 %v1730_v3, %v1730_v3  ;;  %v2953_v8 = vpack.c.bf16 %v1794_v4, %v1794_v4  ;;  %v1383_v9 = vadd.f32 %v3741_v28, %v1382_v5  ;;  %v1639_v10 = vadd.f32 %v3741_v28, %v1638_v6 }
 0x1e7   : > { %v1384_v11 = vpop.f32.mrf.mxu0  ;;  %v1640_v12 = vpop.f32.mrf.mxu1 }
 0x1e8   : > { %2371 = vst.msk [vmem:[%s3492_s9 + $0xd4] sm:$0xf] %vm2317_vm0, %v2889_v7  ;;  %2435 = vst.msk [vmem:[%s3492_s9 + $0x1d4] sm:$0xf] %vm2317_vm0, %v2953_v8  ;;  %v1731_v13 = vmax.f32 %v1383_v9, 0.0  ;;  %v1795_v14 = vmax.f32 %v1639_v10, 0.0 }
 0x1e9   : > { %v1385_v15 = vpop.f32.mrf.mxu0  ;;  %v1641_v16 = vpop.f32.mrf.mxu1 }
 0x1ea   : > { %v2890_v17 = vpack.c.bf16 %v1731_v13, %v1731_v13  ;;  %v2954_v18 = vpack.c.bf16 %v1795_v14, %v1795_v14  ;;  %v1386_v19 = vadd.f32 %v3741_v28, %v1385_v15  ;;  %v1642_v20 = vadd.f32 %v3741_v28, %v1641_v16 }
 0x1eb   : > { %v1387_v21 = vpop.f32.mrf.mxu0  ;;  %v1643_v22 = vpop.f32.mrf.mxu1 }
 0x1ec   : > { %2372 = vst.msk [vmem:[%s3492_s9 + $0xd8] sm:$0xf] %vm2317_vm0, %v2890_v17  ;;  %2436 = vst.msk [vmem:[%s3492_s9 + $0x1d8] sm:$0xf] %vm2317_vm0, %v2954_v18  ;;  %v1732_v23 = vmax.f32 %v1386_v19, 0.0  ;;  %v1796_v24 = vmax.f32 %v1642_v20, 0.0 }
 0x1ed   : > { %v1390_v25 = vpop.f32.mrf.mxu0  ;;  %v1646_v26 = vpop.f32.mrf.mxu1 }
 0x1ee   : > { %v2891_v27 = vpack.c.bf16 %v1732_v23, %v1732_v23  ;;  %v2955_v59 = vpack.c.bf16 %v1796_v24, %v1796_v24  ;;  %v1391_v29 = vadd.f32 %v3741_v28, %v1390_v25  ;;  %v1647_v30 = vadd.f32 %v3741_v28, %v1646_v26 }
 0x1ef   : > { %v1392_v31 = vpop.f32.mrf.mxu0  ;;  %v1648_v32 = vpop.f32.mrf.mxu1 }
 0x1f0   : > { %2373 = vst.msk [vmem:[%s3492_s9 + $0xdc] sm:$0xf] %vm2317_vm0, %v2891_v27  ;;  %2437 = vst.msk [vmem:[%s3492_s9 + $0x1dc] sm:$0xf] %vm2317_vm0, %v2955_v59  ;;  %v1733_v33 = vmax.f32 %v1391_v29, 0.0  ;;  %v1797_v34 = vmax.f32 %v1647_v30, 0.0 }
 0x1f1   : > { %v1393_v35 = vpop.f32.mrf.mxu0  ;;  %v1649_v36 = vpop.f32.mrf.mxu1 }
 0x1f2   : > { %v2892_v37 = vpack.c.bf16 %v1733_v33, %v1733_v33  ;;  %v2956_v38 = vpack.c.bf16 %v1797_v34, %v1797_v34  ;;  %v1394_v39 = vadd.f32 %v3741_v28, %v1393_v35  ;;  %v1650_v40 = vadd.f32 %v3741_v28, %v1649_v36 }
 0x1f3   : > { %v1395_v41 = vpop.f32.mrf.mxu0  ;;  %v1651_v42 = vpop.f32.mrf.mxu1 }
 0x1f4   : > { %2374 = vst.msk [vmem:[%s3492_s9 + $0xe0] sm:$0xf] %vm2317_vm0, %v2892_v37  ;;  %2438 = vst.msk [vmem:[%s3492_s9 + $0x1e0] sm:$0xf] %vm2317_vm0, %v2956_v38  ;;  %v1734_v43 = vmax.f32 %v1394_v39, 0.0  ;;  %v1798_v44 = vmax.f32 %v1650_v40, 0.0 }
 0x1f5   : > { %v1398_v45 = vpop.f32.mrf.mxu0  ;;  %v1654_v46 = vpop.f32.mrf.mxu1 }
 0x1f6   : > { %v2893_v47 = vpack.c.bf16 %v1734_v43, %v1734_v43  ;;  %v2957_v48 = vpack.c.bf16 %v1798_v44, %v1798_v44  ;;  %v1399_v49 = vadd.f32 %v3741_v28, %v1398_v45  ;;  %v1655_v50 = vadd.f32 %v3741_v28, %v1654_v46 }
 0x1f7   : > { %v1400_v51 = vpop.f32.mrf.mxu0  ;;  %v1656_v52 = vpop.f32.mrf.mxu1 }
 0x1f8   : > { %2375 = vst.msk [vmem:[%s3492_s9 + $0xe4] sm:$0xf] %vm2317_vm0, %v2893_v47  ;;  %2439 = vst.msk [vmem:[%s3492_s9 + $0x1e4] sm:$0xf] %vm2317_vm0, %v2957_v48  ;;  %v1735_v53 = vmax.f32 %v1399_v49, 0.0  ;;  %v1799_v54 = vmax.f32 %v1655_v50, 0.0 }
 0x1f9   : > { %v1401_v55 = vpop.f32.mrf.mxu0  ;;  %v1657_v56 = vpop.f32.mrf.mxu1 }
 0x1fa   : > { %v2894_v57 = vpack.c.bf16 %v1735_v53, %v1735_v53  ;;  %v2958_v58 = vpack.c.bf16 %v1799_v54, %v1799_v54  ;;  %v1402_v60 = vadd.f32 %v3741_v28, %v1401_v55  ;;  %v1658_v61 = vadd.f32 %v3741_v28, %v1657_v56 }
 0x1fb   : > { %v1403_v62 = vpop.f32.mrf.mxu0  ;;  %v1659_v63 = vpop.f32.mrf.mxu1 }
 0x1fc   : > { %2376 = vst.msk [vmem:[%s3492_s9 + $0xe8] sm:$0xf] %vm2317_vm0, %v2894_v57  ;;  %2440 = vst.msk [vmem:[%s3492_s9 + $0x1e8] sm:$0xf] %vm2317_vm0, %v2958_v58  ;;  %v1736_v0 = vmax.f32 %v1402_v60, 0.0  ;;  %v1800_v1 = vmax.f32 %v1658_v61, 0.0 }
 0x1fd   : > { %v1406_v2 = vpop.f32.mrf.mxu0  ;;  %v1662_v3 = vpop.f32.mrf.mxu1 }
 0x1fe   : > { %v2895_v4 = vpack.c.bf16 %v1736_v0, %v1736_v0  ;;  %v2959_v5 = vpack.c.bf16 %v1800_v1, %v1800_v1  ;;  %v1407_v6 = vadd.f32 %v3741_v28, %v1406_v2  ;;  %v1663_v7 = vadd.f32 %v3741_v28, %v1662_v3 }
 0x1ff   : > { %v1408_v8 = vpop.f32.mrf.mxu0  ;;  %v1664_v9 = vpop.f32.mrf.mxu1 }
 0x200   : > { %2377 = vst.msk [vmem:[%s3492_s9 + $0xec] sm:$0xf] %vm2317_vm0, %v2895_v4  ;;  %2441 = vst.msk [vmem:[%s3492_s9 + $0x1ec] sm:$0xf] %vm2317_vm0, %v2959_v5  ;;  %v1737_v10 = vmax.f32 %v1407_v6, 0.0  ;;  %v1801_v11 = vmax.f32 %v1663_v7, 0.0 }
 0x201   : > { %v1409_v12 = vpop.f32.mrf.mxu0  ;;  %v1665_v13 = vpop.f32.mrf.mxu1 }
 0x202   : > { %v2896_v14 = vpack.c.bf16 %v1737_v10, %v1737_v10  ;;  %v2960_v15 = vpack.c.bf16 %v1801_v11, %v1801_v11  ;;  %v1410_v16 = vadd.f32 %v3741_v28, %v1409_v12  ;;  %v1666_v17 = vadd.f32 %v3741_v28, %v1665_v13 }
 0x203   : > { %v1411_v18 = vpop.f32.mrf.mxu0  ;;  %v1667_v19 = vpop.f32.mrf.mxu1 }
 0x204   : > { %2378 = vst.msk [vmem:[%s3492_s9 + $0xf0] sm:$0xf] %vm2317_vm0, %v2896_v14  ;;  %2442 = vst.msk [vmem:[%s3492_s9 + $0x1f0] sm:$0xf] %vm2317_vm0, %v2960_v15  ;;  %v1738_v20 = vmax.f32 %v1410_v16, 0.0  ;;  %v1802_v21 = vmax.f32 %v1666_v17, 0.0 }
 0x205   : > { %v1414_v22 = vpop.f32.mrf.mxu0  ;;  %v1670_v23 = vpop.f32.mrf.mxu1 }
 0x206   : > { %v2897_v24 = vpack.c.bf16 %v1738_v20, %v1738_v20  ;;  %v2961_v25 = vpack.c.bf16 %v1802_v21, %v1802_v21  ;;  %v1415_v26 = vadd.f32 %v3741_v28, %v1414_v22  ;;  %v1671_v27 = vadd.f32 %v3741_v28, %v1670_v23 }
 0x207   : > { %v1416_v59 = vpop.f32.mrf.mxu0  ;;  %v1672_v29 = vpop.f32.mrf.mxu1 }
 0x208   : > { %2379 = vst.msk [vmem:[%s3492_s9 + $0xf4] sm:$0xf] %vm2317_vm0, %v2897_v24  ;;  %2443 = vst.msk [vmem:[%s3492_s9 + $0x1f4] sm:$0xf] %vm2317_vm0, %v2961_v25  ;;  %v1739_v30 = vmax.f32 %v1415_v26, 0.0  ;;  %v1803_v31 = vmax.f32 %v1671_v27, 0.0 }
 0x209   : > { %v1417_v32 = vpop.f32.mrf.mxu0  ;;  %v1673_v33 = vpop.f32.mrf.mxu1 }
 0x20a   : > { %v2898_v34 = vpack.c.bf16 %v1739_v30, %v1739_v30  ;;  %v2962_v35 = vpack.c.bf16 %v1803_v31, %v1803_v31  ;;  %v1418_v36 = vadd.f32 %v3741_v28, %v1417_v32  ;;  %v1674_v37 = vadd.f32 %v3741_v28, %v1673_v33 }
 0x20b   : > { %v1419_v38 = vpop.f32.mrf.mxu0  ;;  %v1675_v39 = vpop.f32.mrf.mxu1 }
 0x20c   : > { %2380 = vst.msk [vmem:[%s3492_s9 + $0xf8] sm:$0xf] %vm2317_vm0, %v2898_v34  ;;  %2444 = vst.msk [vmem:[%s3492_s9 + $0x1f8] sm:$0xf] %vm2317_vm0, %v2962_v35  ;;  %v1740_v40 = vmax.f32 %v1418_v36, 0.0  ;;  %v1804_v41 = vmax.f32 %v1674_v37, 0.0 }
 0x20e   : > { %v2899_v42 = vpack.c.bf16 %v1740_v40, %v1740_v40  ;;  %v2963_v43 = vpack.c.bf16 %v1804_v41, %v1804_v41 }
 0x210   : > { %2381 = vst.msk [vmem:[%s3492_s9 + $0xfc] sm:$0xf] %vm2317_vm0, %v2899_v42  ;;  %2445 = vst.msk [vmem:[%s3492_s9 + $0x1fc] sm:$0xf] %vm2317_vm0, %v2963_v43 }
 0x211 PF: > { %s13_s14 = sadd.s32 1, %s3244_s14   ;;  %s3922_s12 = smov %s3240_s13 }
 0x212   : > { %p10_p5 = scmp.ge.s32.totalorder %s13_s14, 4   ;;  %s3923_s13 = smov %s3925_s15 }
 0x214   :  { %12 = sbr.rel (!%p10_p5) target bundleno = 2 (0x2), region = 68 }

// kernel: facebox_forward.30
= control target key start
LH: loop header
LB: loop body
LE: loop exit
PB: predicated region body
PF: predicated region fallthrough
CT: control target
= control target key end

     0   :  { %vm225_vm0 = vcmask 1043456   ;;  %s2088_s0 = inlined_call_operand.vmem [shape: bf16[9,192,128], index: 0, kind: input, shape index: {}]   ;;  %s2089_s1 = inlined_call_operand.vmem [shape: bf16[192,128], index: 1, kind: output, shape index: {}]  }
   0x1   :  { %v9_v0 = vld [vmem:[%s2088_s0] sm:$0xf]  ;;  %v10_v3 = vld [vmem:[%s2088_s0 + $0x4] sm:$0xf]  ;;  %v11_v39 = vld [vmem:[%s2088_s0 + $0x8] sm:$0xf] }
   0x2   :  { %v33_v1 = vld [vmem:[%s2088_s0 + $0x60] sm:$0xf]  ;;  %v34_v4 = vld [vmem:[%s2088_s0 + $0x64] sm:$0xf]  ;;  %v228_v7 = vsel %vm225_vm0, %v9_v0, 4286644096 }
   0x3   :  { %v57_v2 = vld [vmem:[%s2088_s0 + $0xc0] sm:$0xf]  ;;  %v58_v5 = vld [vmem:[%s2088_s0 + $0xc4] sm:$0xf]  ;;  %v231_v8 = vsel %vm225_vm0, %v33_v1, 4286644096 }
   0x4   :  { %v81_v6 = vld [vmem:[%s2088_s0 + $0x120] sm:$0xf]  ;;  %v235_v9 = vsel %vm225_vm0, %v57_v2, 4286644096  ;;  %v233_v11 = vmax.bf16 %v231_v8, %v228_v7  ;;  %v82_v12 = vld [vmem:[%s2088_s0 + $0x124] sm:$0xf] }
   0x5   :  { %v105_v10 = vld [vmem:[%s2088_s0 + $0x180] sm:$0xf]  ;;  %v239_v14 = vsel %vm225_vm0, %v81_v6, 4286644096  ;;  %v263_v16 = vsel %vm225_vm0, %v10_v3, 4286644096 }
   0x6   :  { %v129_v13 = vld [vmem:[%s2088_s0 + $0x1e0] sm:$0xf]  ;;  %v237_v15 = vmax.bf16 %v235_v9, %v233_v11  ;;  %v266_v17 = vsel %vm225_vm0, %v34_v4, 4286644096  ;;  %v270_v18 = vsel %vm225_vm0, %v58_v5, 4286644096 }
   0x7   :  { %v106_v19 = vld [vmem:[%s2088_s0 + $0x184] sm:$0xf]  ;;  %v243_v20 = vsel %vm225_vm0, %v105_v10, 4286644096  ;;  %v268_v21 = vmax.bf16 %v266_v17, %v263_v16  ;;  %v153_v23 = vld [vmem:[%s2088_s0 + $0x240] sm:$0xf] }
   0x8   :  { %v130_v22 = vld [vmem:[%s2088_s0 + $0x1e4] sm:$0xf]  ;;  %v241_v24 = vmax.bf16 %v239_v14, %v237_v15  ;;  %v274_v25 = vsel %vm225_vm0, %v82_v12, 4286644096  ;;  %v247_v27 = vsel %vm225_vm0, %v129_v13, 4286644096 }
   0x9   :  { %v154_v26 = vld [vmem:[%s2088_s0 + $0x244] sm:$0xf]  ;;  %v272_v28 = vmax.bf16 %v270_v18, %v268_v21  ;;  %v177_v29 = vld [vmem:[%s2088_s0 + $0x2a0] sm:$0xf]  ;;  %v278_v32 = vsel %vm225_vm0, %v106_v19, 4286644096 }
   0xa   :  { %v201_v30 = vld [vmem:[%s2088_s0 + $0x300] sm:$0xf]  ;;  %v245_v31 = vmax.bf16 %v243_v20, %v241_v24  ;;  %v178_v33 = vld [vmem:[%s2088_s0 + $0x2a4] sm:$0xf]  ;;  %v251_v34 = vsel %vm225_vm0, %v153_v23, 4286644096 }
   0xb   :  { %v276_v35 = vmax.bf16 %v274_v25, %v272_v28  ;;  %v282_v36 = vsel %vm225_vm0, %v130_v22, 4286644096  ;;  %v202_v37 = vld [vmem:[%s2088_s0 + $0x304] sm:$0xf]  ;;  %v35_v40 = vld [vmem:[%s2088_s0 + $0x68] sm:$0xf] }
   0xc   :  { %v249_v38 = vmax.bf16 %v247_v27, %v245_v31  ;;  %v59_v41 = vld [vmem:[%s2088_s0 + $0xc8] sm:$0xf]  ;;  %v255_v42 = vsel %vm225_vm0, %v177_v29, 4286644096  ;;  %v259_v43 = vsel %vm225_vm0, %v201_v30, 4286644096 }
   0xd   :  { %v280_v44 = vmax.bf16 %v278_v32, %v276_v35  ;;  %v286_v45 = vsel %vm225_vm0, %v154_v26, 4286644096  ;;  %v12_v47 = vld [vmem:[%s2088_s0 + $0xc] sm:$0xf]  ;;  %v83_v48 = vld [vmem:[%s2088_s0 + $0x128] sm:$0xf] }
   0xe   :  { %v253_v46 = vmax.bf16 %v251_v34, %v249_v38  ;;  %v107_v49 = vld [vmem:[%s2088_s0 + $0x188] sm:$0xf]  ;;  %v298_v51 = vsel %vm225_vm0, %v11_v39, 4286644096  ;;  %v301_v52 = vsel %vm225_vm0, %v35_v40, 4286644096 }
   0xf   :  { %v284_v50 = vmax.bf16 %v282_v36, %v280_v44  ;;  %v305_v53 = vsel %vm225_vm0, %v59_v41, 4286644096  ;;  %v290_v55 = vsel %vm225_vm0, %v178_v33, 4286644096  ;;  %v36_v56 = vld [vmem:[%s2088_s0 + $0x6c] sm:$0xf]  ;;  %v303_v58 = vmax.bf16 %v301_v52, %v298_v51 }
  0x10   :  { %v257_v54 = vmax.bf16 %v255_v42, %v253_v46  ;;  %v60_v57 = vld [vmem:[%s2088_s0 + $0xcc] sm:$0xf]  ;;  %v294_v60 = vsel %vm225_vm0, %v202_v37, 4286644096  ;;  %v309_v62 = vsel %vm225_vm0, %v83_v48, 4286644096 }
  0x11   :  { %v288_v59 = vmax.bf16 %v286_v45, %v284_v50  ;;  %v84_v61 = vld [vmem:[%s2088_s0 + $0x12c] sm:$0xf]  ;;  %v131_v63 = vld [vmem:[%s2088_s0 + $0x1e8] sm:$0xf]  ;;  %v307_v0 = vmax.bf16 %v305_v53, %v303_v58  ;;  %v313_v1 = vsel %vm225_vm0, %v107_v49, 4286644096 }
  0x12   :  { %v333_v2 = vsel %vm225_vm0, %v12_v47, 4286644096  ;;  %v261_v3 = vmax.bf16 %v259_v43, %v257_v54  ;;  %v336_v5 = vsel %vm225_vm0, %v36_v56, 4286644096  ;;  %v340_v6 = vsel %vm225_vm0, %v60_v57, 4286644096 }
  0x13   :  { %v292_v4 = vmax.bf16 %v290_v55, %v288_v59  ;;  %v108_v7 = vld [vmem:[%s2088_s0 + $0x18c] sm:$0xf]  ;;  %v155_v8 = vld [vmem:[%s2088_s0 + $0x248] sm:$0xf]  ;;  %v311_v9 = vmax.bf16 %v309_v62, %v307_v0  ;;  %v338_v10 = vmax.bf16 %v336_v5, %v333_v2  ;;  %v317_v12 = vsel %vm225_vm0, %v131_v63, 4286644096 }
  0x14   :  { %v344_v13 = vsel %vm225_vm0, %v84_v61, 4286644096  ;;  %v132_v14 = vld [vmem:[%s2088_s0 + $0x1ec] sm:$0xf]  ;;  %v179_v16 = vld [vmem:[%s2088_s0 + $0x2a8] sm:$0xf] }
  0x15   :  { %v296_v11 = vmax.bf16 %v294_v60, %v292_v4  ;;  %v156_v15 = vld [vmem:[%s2088_s0 + $0x24c] sm:$0xf]  ;;  %v315_v17 = vmax.bf16 %v313_v1, %v311_v9  ;;  %v342_v18 = vmax.bf16 %v340_v6, %v338_v10  ;;  %v203_v20 = vld [vmem:[%s2088_s0 + $0x308] sm:$0xf]  ;;  %v321_v21 = vsel %vm225_vm0, %v155_v8, 4286644096 }
  0x16   :  { %v348_v22 = vsel %vm225_vm0, %v108_v7, 4286644096  ;;  %v180_v23 = vld [vmem:[%s2088_s0 + $0x2ac] sm:$0xf]  ;;  %v13_v26 = vld [vmem:[%s2088_s0 + $0x10] sm:$0xf] }
  0x17   :  { %v1155_v19 = vcombine.low %v261_v3, %v296_v11  ;;  %v319_v24 = vmax.bf16 %v317_v12, %v315_v17  ;;  %v346_v25 = vmax.bf16 %v344_v13, %v342_v18  ;;  %v37_v27 = vld [vmem:[%s2088_s0 + $0x70] sm:$0xf]  ;;  %v204_v29 = vld [vmem:[%s2088_s0 + $0x30c] sm:$0xf]  ;;  %v325_v30 = vsel %vm225_vm0, %v179_v16, 4286644096 }
  0x18   :  { %v61_v28 = vld [vmem:[%s2088_s0 + $0xd0] sm:$0xf]  ;;  %v352_v31 = vsel %vm225_vm0, %v132_v14, 4286644096  ;;  %v329_v33 = vsel %vm225_vm0, %v203_v20, 4286644096 }
  0x19   :  { %1099 = vst [vmem:[%s2089_s1] sm:$0xff] %v1155_v19   ;;  %v323_v32 = vmax.bf16 %v321_v21, %v319_v24  ;;  %v350_v34 = vmax.bf16 %v348_v22, %v346_v25  ;;  %v356_v35 = vsel %vm225_vm0, %v156_v15, 4286644096  ;;  %v85_v36 = vld [vmem:[%s2088_s0 + $0x130] sm:$0xf]  ;;  %v368_v37 = vsel %vm225_vm0, %v13_v26, 4286644096 }
  0x1a   :  { %v371_v38 = vsel %vm225_vm0, %v37_v27, 4286644096  ;;  %v375_v39 = vsel %vm225_vm0, %v61_v28, 4286644096  ;;  %v14_v42 = vld [vmem:[%s2088_s0 + $0x14] sm:$0xf] }
  0x1b   :  { %v327_v40 = vmax.bf16 %v325_v30, %v323_v32  ;;  %v354_v41 = vmax.bf16 %v352_v31, %v350_v34  ;;  %v38_v43 = vld [vmem:[%s2088_s0 + $0x74] sm:$0xf]  ;;  %v109_v44 = vld [vmem:[%s2088_s0 + $0x190] sm:$0xf]  ;;  %v373_v45 = vmax.bf16 %v371_v38, %v368_v37  ;;  %v360_v46 = vsel %vm225_vm0, %v180_v23, 4286644096 }
  0x1c   :  { %v62_v47 = vld [vmem:[%s2088_s0 + $0xd4] sm:$0xf]  ;;  %v379_v48 = vsel %vm225_vm0, %v85_v36, 4286644096  ;;  %v364_v50 = vsel %vm225_vm0, %v204_v29, 4286644096 }
  0x1d   :  { %v358_v49 = vmax.bf16 %v356_v35, %v354_v41  ;;  %v86_v51 = vld [vmem:[%s2088_s0 + $0x134] sm:$0xf]  ;;  %v133_v52 = vld [vmem:[%s2088_s0 + $0x1f0] sm:$0xf]  ;;  %v377_v53 = vmax.bf16 %v375_v39, %v373_v45  ;;  %v331_v54 = vmax.bf16 %v329_v33, %v327_v40  ;;  %v383_v55 = vsel %vm225_vm0, %v109_v44, 4286644096 }
  0x1e   :  { %v403_v56 = vsel %vm225_vm0, %v14_v42, 4286644096  ;;  %v406_v57 = vsel %vm225_vm0, %v38_v43, 4286644096  ;;  %v110_v59 = vld [vmem:[%s2088_s0 + $0x194] sm:$0xf] }
  0x1f   :  { %v362_v58 = vmax.bf16 %v360_v46, %v358_v49  ;;  %v157_v60 = vld [vmem:[%s2088_s0 + $0x250] sm:$0xf]  ;;  %v381_v61 = vmax.bf16 %v379_v48, %v377_v53  ;;  %v408_v62 = vmax.bf16 %v406_v57, %v403_v56  ;;  %v410_v63 = vsel %vm225_vm0, %v62_v47, 4286644096  ;;  %v134_v3 = vld [vmem:[%s2088_s0 + $0x1f4] sm:$0xf] }
  0x20   :  { %v387_v0 = vsel %vm225_vm0, %v133_v52, 4286644096  ;;  %v414_v1 = vsel %vm225_vm0, %v86_v51, 4286644096  ;;  %v158_v4 = vld [vmem:[%s2088_s0 + $0x254] sm:$0xf] }
  0x21   :  { %v366_v2 = vmax.bf16 %v364_v50, %v362_v58  ;;  %v181_v5 = vld [vmem:[%s2088_s0 + $0x2b0] sm:$0xf]  ;;  %v385_v6 = vmax.bf16 %v383_v55, %v381_v61  ;;  %v412_v7 = vmax.bf16 %v410_v63, %v408_v62  ;;  %v391_v9 = vsel %vm225_vm0, %v157_v60, 4286644096  ;;  %v182_v12 = vld [vmem:[%s2088_s0 + $0x2b4] sm:$0xf] }
  0x22   :  { %v205_v8 = vld [vmem:[%s2088_s0 + $0x310] sm:$0xf]  ;;  %v418_v10 = vsel %vm225_vm0, %v110_v59, 4286644096  ;;  %v15_v15 = vld [vmem:[%s2088_s0 + $0x18] sm:$0xf] }
  0x23   :  { %v1156_v11 = vcombine.low %v331_v54, %v366_v2  ;;  %v389_v13 = vmax.bf16 %v387_v0, %v385_v6  ;;  %v416_v14 = vmax.bf16 %v414_v1, %v412_v7  ;;  %v39_v16 = vld [vmem:[%s2088_s0 + $0x78] sm:$0xf]  ;;  %v206_v18 = vld [vmem:[%s2088_s0 + $0x314] sm:$0xf]  ;;  %v395_v19 = vsel %vm225_vm0, %v181_v5, 4286644096 }
  0x24   :  { %v63_v17 = vld [vmem:[%s2088_s0 + $0xd8] sm:$0xf]  ;;  %v422_v20 = vsel %vm225_vm0, %v134_v3, 4286644096  ;;  %v426_v23 = vsel %vm225_vm0, %v158_v4, 4286644096 }
  0x25   :  { %1157 = vst [vmem:[%s2089_s1 + $0x8] sm:$0xff] %v1156_v11   ;;  %v393_v21 = vmax.bf16 %v391_v9, %v389_v13  ;;  %v420_v22 = vmax.bf16 %v418_v10, %v416_v14  ;;  %v16_v24 = vld [vmem:[%s2088_s0 + $0x1c] sm:$0xf]  ;;  %v87_v25 = vld [vmem:[%s2088_s0 + $0x138] sm:$0xf] }
  0x26   :  { %v438_v26 = vsel %vm225_vm0, %v15_v15, 4286644096  ;;  %v441_v27 = vsel %vm225_vm0, %v39_v16, 4286644096  ;;  %v445_v28 = vsel %vm225_vm0, %v63_v17, 4286644096 }
  0x27   :  { %v397_v29 = vmax.bf16 %v395_v19, %v393_v21  ;;  %v399_v30 = vsel %vm225_vm0, %v205_v8, 4286644096  ;;  %v424_v31 = vmax.bf16 %v422_v20, %v420_v22  ;;  %v40_v32 = vld [vmem:[%s2088_s0 + $0x7c] sm:$0xf]  ;;  %v111_v33 = vld [vmem:[%s2088_s0 + $0x198] sm:$0xf]  ;;  %v443_v34 = vmax.bf16 %v441_v27, %v438_v26 }
  0x28   :  { %v430_v35 = vsel %vm225_vm0, %v182_v12, 4286644096  ;;  %v64_v36 = vld [vmem:[%s2088_s0 + $0xdc] sm:$0xf]  ;;  %v449_v37 = vsel %vm225_vm0, %v87_v25, 4286644096 }
  0x29   :  { %v428_v38 = vmax.bf16 %v426_v23, %v424_v31  ;;  %v434_v39 = vsel %vm225_vm0, %v206_v18, 4286644096  ;;  %v88_v40 = vld [vmem:[%s2088_s0 + $0x13c] sm:$0xf]  ;;  %v135_v41 = vld [vmem:[%s2088_s0 + $0x1f8] sm:$0xf]  ;;  %v447_v42 = vmax.bf16 %v445_v28, %v443_v34  ;;  %v401_v43 = vmax.bf16 %v399_v30, %v397_v29 }
  0x2a   :  { %v453_v44 = vsel %vm225_vm0, %v111_v33, 4286644096  ;;  %v473_v45 = vsel %vm225_vm0, %v16_v24, 4286644096  ;;  %v476_v46 = vsel %vm225_vm0, %v40_v32, 4286644096 }
  0x2b   :  { %v432_v47 = vmax.bf16 %v430_v35, %v428_v38  ;;  %v112_v48 = vld [vmem:[%s2088_s0 + $0x19c] sm:$0xf]  ;;  %v159_v49 = vld [vmem:[%s2088_s0 + $0x258] sm:$0xf]  ;;  %v451_v50 = vmax.bf16 %v449_v37, %v447_v42  ;;  %v478_v51 = vmax.bf16 %v476_v46, %v473_v45  ;;  %v480_v52 = vsel %vm225_vm0, %v64_v36, 4286644096 }
  0x2c   :  { %v457_v53 = vsel %vm225_vm0, %v135_v41, 4286644096  ;;  %v484_v54 = vsel %vm225_vm0, %v88_v40, 4286644096  ;;  %v136_v56 = vld [vmem:[%s2088_s0 + $0x1fc] sm:$0xf] }
  0x2d   :  { %v436_v55 = vmax.bf16 %v434_v39, %v432_v47  ;;  %v160_v57 = vld [vmem:[%s2088_s0 + $0x25c] sm:$0xf]  ;;  %v183_v58 = vld [vmem:[%s2088_s0 + $0x2b8] sm:$0xf]  ;;  %v455_v59 = vmax.bf16 %v453_v44, %v451_v50  ;;  %v482_v60 = vmax.bf16 %v480_v52, %v478_v51  ;;  %v461_v62 = vsel %vm225_vm0, %v159_v49, 4286644096 }
  0x2e   :  { %v207_v61 = vld [vmem:[%s2088_s0 + $0x318] sm:$0xf]  ;;  %v488_v63 = vsel %vm225_vm0, %v112_v48, 4286644096  ;;  %v184_v1 = vld [vmem:[%s2088_s0 + $0x2bc] sm:$0xf] }
  0x2f   :  { %v1158_v0 = vcombine.low %v401_v43, %v436_v55  ;;  %v459_v2 = vmax.bf16 %v457_v53, %v455_v59  ;;  %v486_v3 = vmax.bf16 %v484_v54, %v482_v60  ;;  %v17_v4 = vld [vmem:[%s2088_s0 + $0x20] sm:$0xf]  ;;  %v208_v7 = vld [vmem:[%s2088_s0 + $0x31c] sm:$0xf]  ;;  %v465_v8 = vsel %vm225_vm0, %v183_v58, 4286644096 }
  0x30   :  { %v41_v5 = vld [vmem:[%s2088_s0 + $0x80] sm:$0xf]  ;;  %v492_v9 = vsel %vm225_vm0, %v136_v56, 4286644096  ;;  %v496_v12 = vsel %vm225_vm0, %v160_v57, 4286644096 }
  0x31   :  { %v65_v6 = vld [vmem:[%s2088_s0 + $0xe0] sm:$0xf]  ;;  %1159 = vst [vmem:[%s2089_s1 + $0x10] sm:$0xff] %v1158_v0   ;;  %v463_v10 = vmax.bf16 %v461_v62, %v459_v2  ;;  %v490_v11 = vmax.bf16 %v488_v63, %v486_v3  ;;  %v18_v13 = vld [vmem:[%s2088_s0 + $0x24] sm:$0xf] }
  0x32   :  { %v89_v14 = vld [vmem:[%s2088_s0 + $0x140] sm:$0xf]  ;;  %v508_v15 = vsel %vm225_vm0, %v17_v4, 4286644096  ;;  %v511_v16 = vsel %vm225_vm0, %v41_v5, 4286644096 }
  0x33   :  { %v515_v17 = vsel %vm225_vm0, %v65_v6, 4286644096  ;;  %v467_v18 = vmax.bf16 %v465_v8, %v463_v10  ;;  %v469_v19 = vsel %vm225_vm0, %v207_v61, 4286644096  ;;  %v494_v20 = vmax.bf16 %v492_v9, %v490_v11  ;;  %v42_v21 = vld [vmem:[%s2088_s0 + $0x84] sm:$0xf] }
  0x34   :  { %v113_v22 = vld [vmem:[%s2088_s0 + $0x1a0] sm:$0xf]  ;;  %v513_v23 = vmax.bf16 %v511_v16, %v508_v15  ;;  %v500_v24 = vsel %vm225_vm0, %v184_v1, 4286644096  ;;  %v66_v25 = vld [vmem:[%s2088_s0 + $0xe4] sm:$0xf] }
  0x35   :  { %v519_v26 = vsel %vm225_vm0, %v89_v14, 4286644096  ;;  %v498_v27 = vmax.bf16 %v496_v12, %v494_v20  ;;  %v504_v28 = vsel %vm225_vm0, %v208_v7, 4286644096  ;;  %v90_v29 = vld [vmem:[%s2088_s0 + $0x144] sm:$0xf]  ;;  %v471_v32 = vmax.bf16 %v469_v19, %v467_v18 }
  0x36   :  { %v137_v30 = vld [vmem:[%s2088_s0 + $0x200] sm:$0xf]  ;;  %v517_v31 = vmax.bf16 %v515_v17, %v513_v23  ;;  %v523_v33 = vsel %vm225_vm0, %v113_v22, 4286644096  ;;  %v543_v34 = vsel %vm225_vm0, %v18_v13, 4286644096 }
  0x37   :  { %v546_v35 = vsel %vm225_vm0, %v42_v21, 4286644096  ;;  %v502_v36 = vmax.bf16 %v500_v24, %v498_v27  ;;  %v114_v37 = vld [vmem:[%s2088_s0 + $0x1a4] sm:$0xf]  ;;  %v161_v38 = vld [vmem:[%s2088_s0 + $0x260] sm:$0xf] }
  0x38   :  { %v521_v39 = vmax.bf16 %v519_v26, %v517_v31  ;;  %v548_v40 = vmax.bf16 %v546_v35, %v543_v34  ;;  %v550_v41 = vsel %vm225_vm0, %v66_v25, 4286644096  ;;  %v527_v42 = vsel %vm225_vm0, %v137_v30, 4286644096  ;;  %v138_v45 = vld [vmem:[%s2088_s0 + $0x204] sm:$0xf] }
  0x39   :  { %v554_v43 = vsel %vm225_vm0, %v90_v29, 4286644096  ;;  %v506_v44 = vmax.bf16 %v504_v28, %v502_v36  ;;  %v162_v46 = vld [vmem:[%s2088_s0 + $0x264] sm:$0xf]  ;;  %v185_v47 = vld [vmem:[%s2088_s0 + $0x2c0] sm:$0xf] }
  0x3a   :  { %v525_v48 = vmax.bf16 %v523_v33, %v521_v39  ;;  %v552_v49 = vmax.bf16 %v550_v41, %v548_v40  ;;  %v209_v50 = vld [vmem:[%s2088_s0 + $0x320] sm:$0xf]  ;;  %v531_v51 = vsel %vm225_vm0, %v161_v38, 4286644096  ;;  %v558_v52 = vsel %vm225_vm0, %v114_v37, 4286644096 }
  0x3b   :  { %v1160_v53 = vcombine.low %v471_v32, %v506_v44  ;;  %v186_v54 = vld [vmem:[%s2088_s0 + $0x2c4] sm:$0xf]  ;;  %v19_v57 = vld [vmem:[%s2088_s0 + $0x28] sm:$0xf]  ;;  %v535_v61 = vsel %vm225_vm0, %v185_v47, 4286644096 }
  0x3c   :  { %v529_v55 = vmax.bf16 %v527_v42, %v525_v48  ;;  %v556_v56 = vmax.bf16 %v554_v43, %v552_v49  ;;  %v43_v58 = vld [vmem:[%s2088_s0 + $0x88] sm:$0xf]  ;;  %v210_v60 = vld [vmem:[%s2088_s0 + $0x324] sm:$0xf]  ;;  %v562_v62 = vsel %vm225_vm0, %v138_v45, 4286644096 }
  0x3d   :  { %v67_v59 = vld [vmem:[%s2088_s0 + $0xe8] sm:$0xf]  ;;  %1161 = vst [vmem:[%s2089_s1 + $0x18] sm:$0xff] %v1160_v53   ;;  %v566_v1 = vsel %vm225_vm0, %v162_v46, 4286644096 }
  0x3e   :  { %v533_v63 = vmax.bf16 %v531_v51, %v529_v55  ;;  %v560_v0 = vmax.bf16 %v558_v52, %v556_v56  ;;  %v20_v2 = vld [vmem:[%s2088_s0 + $0x2c] sm:$0xf]  ;;  %v91_v3 = vld [vmem:[%s2088_s0 + $0x148] sm:$0xf]  ;;  %v578_v4 = vsel %vm225_vm0, %v19_v57, 4286644096 }
  0x3f   :  { %v581_v5 = vsel %vm225_vm0, %v43_v58, 4286644096  ;;  %v585_v6 = vsel %vm225_vm0, %v67_v59, 4286644096  ;;  %v539_v8 = vsel %vm225_vm0, %v209_v50, 4286644096 }
  0x40   :  { %v537_v7 = vmax.bf16 %v535_v61, %v533_v63  ;;  %v564_v9 = vmax.bf16 %v562_v62, %v560_v0  ;;  %v44_v10 = vld [vmem:[%s2088_s0 + $0x8c] sm:$0xf]  ;;  %v115_v11 = vld [vmem:[%s2088_s0 + $0x1a8] sm:$0xf]  ;;  %v583_v12 = vmax.bf16 %v581_v5, %v578_v4  ;;  %v570_v13 = vsel %vm225_vm0, %v186_v54, 4286644096 }
  0x41   :  { %v68_v14 = vld [vmem:[%s2088_s0 + $0xec] sm:$0xf]  ;;  %v589_v15 = vsel %vm225_vm0, %v91_v3, 4286644096  ;;  %v574_v17 = vsel %vm225_vm0, %v210_v60, 4286644096 }
  0x42   :  { %v568_v16 = vmax.bf16 %v566_v1, %v564_v9  ;;  %v92_v18 = vld [vmem:[%s2088_s0 + $0x14c] sm:$0xf]  ;;  %v139_v19 = vld [vmem:[%s2088_s0 + $0x208] sm:$0xf]  ;;  %v587_v20 = vmax.bf16 %v585_v6, %v583_v12  ;;  %v541_v21 = vmax.bf16 %v539_v8, %v537_v7  ;;  %v593_v22 = vsel %vm225_vm0, %v115_v11, 4286644096 }
  0x43   :  { %v613_v23 = vsel %vm225_vm0, %v20_v2, 4286644096  ;;  %v616_v24 = vsel %vm225_vm0, %v44_v10, 4286644096  ;;  %v116_v26 = vld [vmem:[%s2088_s0 + $0x1ac] sm:$0xf] }
  0x44   :  { %v572_v25 = vmax.bf16 %v570_v13, %v568_v16  ;;  %v163_v27 = vld [vmem:[%s2088_s0 + $0x268] sm:$0xf]  ;;  %v591_v28 = vmax.bf16 %v589_v15, %v587_v20  ;;  %v618_v29 = vmax.bf16 %v616_v24, %v613_v23  ;;  %v620_v30 = vsel %vm225_vm0, %v68_v14, 4286644096  ;;  %v140_v34 = vld [vmem:[%s2088_s0 + $0x20c] sm:$0xf] }
  0x45   :  { %v597_v31 = vsel %vm225_vm0, %v139_v19, 4286644096  ;;  %v624_v32 = vsel %vm225_vm0, %v92_v18, 4286644096  ;;  %v164_v35 = vld [vmem:[%s2088_s0 + $0x26c] sm:$0xf] }
  0x46   :  { %v576_v33 = vmax.bf16 %v574_v17, %v572_v25  ;;  %v187_v36 = vld [vmem:[%s2088_s0 + $0x2c8] sm:$0xf]  ;;  %v595_v37 = vmax.bf16 %v593_v22, %v591_v28  ;;  %v622_v38 = vmax.bf16 %v620_v30, %v618_v29  ;;  %v601_v40 = vsel %vm225_vm0, %v163_v27, 4286644096  ;;  %v188_v43 = vld [vmem:[%s2088_s0 + $0x2cc] sm:$0xf] }
  0x47   :  { %v211_v39 = vld [vmem:[%s2088_s0 + $0x328] sm:$0xf]  ;;  %v628_v41 = vsel %vm225_vm0, %v116_v26, 4286644096  ;;  %v21_v46 = vld [vmem:[%s2088_s0 + $0x30] sm:$0xf] }
  0x48   :  { %v1162_v42 = vcombine.low %v541_v21, %v576_v33  ;;  %v599_v44 = vmax.bf16 %v597_v31, %v595_v37  ;;  %v626_v45 = vmax.bf16 %v624_v32, %v622_v38  ;;  %v45_v47 = vld [vmem:[%s2088_s0 + $0x90] sm:$0xf]  ;;  %v212_v49 = vld [vmem:[%s2088_s0 + $0x32c] sm:$0xf]  ;;  %v605_v50 = vsel %vm225_vm0, %v187_v36, 4286644096 }
  0x49   :  { %v69_v48 = vld [vmem:[%s2088_s0 + $0xf0] sm:$0xf]  ;;  %v632_v51 = vsel %vm225_vm0, %v140_v34, 4286644096  ;;  %v636_v54 = vsel %vm225_vm0, %v164_v35, 4286644096 }
  0x4a   :  { %1163 = vst [vmem:[%s2089_s1 + $0x20] sm:$0xff] %v1162_v42   ;;  %v603_v52 = vmax.bf16 %v601_v40, %v599_v44  ;;  %v630_v53 = vmax.bf16 %v628_v41, %v626_v45  ;;  %v22_v55 = vld [vmem:[%s2088_s0 + $0x34] sm:$0xf]  ;;  %v93_v56 = vld [vmem:[%s2088_s0 + $0x150] sm:$0xf] }
  0x4b   :  { %v648_v57 = vsel %vm225_vm0, %v21_v46, 4286644096  ;;  %v651_v58 = vsel %vm225_vm0, %v45_v47, 4286644096  ;;  %v655_v59 = vsel %vm225_vm0, %v69_v48, 4286644096 }
  0x4c   :  { %v607_v60 = vmax.bf16 %v605_v50, %v603_v52  ;;  %v609_v61 = vsel %vm225_vm0, %v211_v39, 4286644096  ;;  %v634_v62 = vmax.bf16 %v632_v51, %v630_v53  ;;  %v46_v63 = vld [vmem:[%s2088_s0 + $0x94] sm:$0xf]  ;;  %v117_v0 = vld [vmem:[%s2088_s0 + $0x1b0] sm:$0xf]  ;;  %v653_v1 = vmax.bf16 %v651_v58, %v648_v57 }
  0x4d   :  { %v640_v2 = vsel %vm225_vm0, %v188_v43, 4286644096  ;;  %v70_v3 = vld [vmem:[%s2088_s0 + $0xf4] sm:$0xf]  ;;  %v659_v4 = vsel %vm225_vm0, %v93_v56, 4286644096 }
  0x4e   :  { %v638_v5 = vmax.bf16 %v636_v54, %v634_v62  ;;  %v644_v6 = vsel %vm225_vm0, %v212_v49, 4286644096  ;;  %v94_v7 = vld [vmem:[%s2088_s0 + $0x154] sm:$0xf]  ;;  %v141_v8 = vld [vmem:[%s2088_s0 + $0x210] sm:$0xf]  ;;  %v657_v9 = vmax.bf16 %v655_v59, %v653_v1  ;;  %v611_v10 = vmax.bf16 %v609_v61, %v607_v60 }
  0x4f   :  { %v663_v11 = vsel %vm225_vm0, %v117_v0, 4286644096  ;;  %v683_v12 = vsel %vm225_vm0, %v22_v55, 4286644096  ;;  %v686_v13 = vsel %vm225_vm0, %v46_v63, 4286644096 }
  0x50   :  { %v642_v14 = vmax.bf16 %v640_v2, %v638_v5  ;;  %v118_v15 = vld [vmem:[%s2088_s0 + $0x1b4] sm:$0xf]  ;;  %v165_v16 = vld [vmem:[%s2088_s0 + $0x270] sm:$0xf]  ;;  %v661_v17 = vmax.bf16 %v659_v4, %v657_v9  ;;  %v688_v18 = vmax.bf16 %v686_v13, %v683_v12  ;;  %v690_v19 = vsel %vm225_vm0, %v70_v3, 4286644096 }
  0x51   :  { %v667_v20 = vsel %vm225_vm0, %v141_v8, 4286644096  ;;  %v694_v21 = vsel %vm225_vm0, %v94_v7, 4286644096  ;;  %v142_v23 = vld [vmem:[%s2088_s0 + $0x214] sm:$0xf] }
  0x52   :  { %v646_v22 = vmax.bf16 %v644_v6, %v642_v14  ;;  %v166_v24 = vld [vmem:[%s2088_s0 + $0x274] sm:$0xf]  ;;  %v189_v25 = vld [vmem:[%s2088_s0 + $0x2d0] sm:$0xf]  ;;  %v665_v26 = vmax.bf16 %v663_v11, %v661_v17  ;;  %v692_v27 = vmax.bf16 %v690_v19, %v688_v18  ;;  %v671_v29 = vsel %vm225_vm0, %v165_v16, 4286644096 }
  0x53   :  { %v213_v28 = vld [vmem:[%s2088_s0 + $0x330] sm:$0xf]  ;;  %v698_v30 = vsel %vm225_vm0, %v118_v15, 4286644096  ;;  %v190_v32 = vld [vmem:[%s2088_s0 + $0x2d4] sm:$0xf] }
  0x54   :  { %v1164_v31 = vcombine.low %v611_v10, %v646_v22  ;;  %v669_v33 = vmax.bf16 %v667_v20, %v665_v26  ;;  %v696_v34 = vmax.bf16 %v694_v21, %v692_v27  ;;  %v23_v35 = vld [vmem:[%s2088_s0 + $0x38] sm:$0xf]  ;;  %v214_v38 = vld [vmem:[%s2088_s0 + $0x334] sm:$0xf]  ;;  %v675_v39 = vsel %vm225_vm0, %v189_v25, 4286644096 }
  0x55   :  { %v47_v36 = vld [vmem:[%s2088_s0 + $0x98] sm:$0xf]  ;;  %v702_v40 = vsel %vm225_vm0, %v142_v23, 4286644096  ;;  %v706_v43 = vsel %vm225_vm0, %v166_v24, 4286644096 }
  0x56   :  { %v71_v37 = vld [vmem:[%s2088_s0 + $0xf8] sm:$0xf]  ;;  %1165 = vst [vmem:[%s2089_s1 + $0x28] sm:$0xff] %v1164_v31   ;;  %v673_v41 = vmax.bf16 %v671_v29, %v669_v33  ;;  %v700_v42 = vmax.bf16 %v698_v30, %v696_v34  ;;  %v24_v44 = vld [vmem:[%s2088_s0 + $0x3c] sm:$0xf] }
  0x57   :  { %v95_v45 = vld [vmem:[%s2088_s0 + $0x158] sm:$0xf]  ;;  %v718_v46 = vsel %vm225_vm0, %v23_v35, 4286644096  ;;  %v721_v47 = vsel %vm225_vm0, %v47_v36, 4286644096 }
  0x58   :  { %v725_v48 = vsel %vm225_vm0, %v71_v37, 4286644096  ;;  %v677_v49 = vmax.bf16 %v675_v39, %v673_v41  ;;  %v679_v50 = vsel %vm225_vm0, %v213_v28, 4286644096  ;;  %v704_v51 = vmax.bf16 %v702_v40, %v700_v42  ;;  %v48_v52 = vld [vmem:[%s2088_s0 + $0x9c] sm:$0xf] }
  0x59   :  { %v119_v53 = vld [vmem:[%s2088_s0 + $0x1b8] sm:$0xf]  ;;  %v723_v54 = vmax.bf16 %v721_v47, %v718_v46  ;;  %v710_v55 = vsel %vm225_vm0, %v190_v32, 4286644096  ;;  %v72_v56 = vld [vmem:[%s2088_s0 + $0xfc] sm:$0xf] }
  0x5a   :  { %v729_v57 = vsel %vm225_vm0, %v95_v45, 4286644096  ;;  %v708_v58 = vmax.bf16 %v706_v43, %v704_v51  ;;  %v714_v59 = vsel %vm225_vm0, %v214_v38, 4286644096  ;;  %v96_v60 = vld [vmem:[%s2088_s0 + $0x15c] sm:$0xf]  ;;  %v681_v63 = vmax.bf16 %v679_v50, %v677_v49 }
  0x5b   :  { %v143_v61 = vld [vmem:[%s2088_s0 + $0x218] sm:$0xf]  ;;  %v727_v62 = vmax.bf16 %v725_v48, %v723_v54  ;;  %v733_v0 = vsel %vm225_vm0, %v119_v53, 4286644096  ;;  %v753_v1 = vsel %vm225_vm0, %v24_v44, 4286644096 }
  0x5c   :  { %v756_v2 = vsel %vm225_vm0, %v48_v52, 4286644096  ;;  %v712_v3 = vmax.bf16 %v710_v55, %v708_v58  ;;  %v120_v4 = vld [vmem:[%s2088_s0 + $0x1bc] sm:$0xf]  ;;  %v167_v5 = vld [vmem:[%s2088_s0 + $0x278] sm:$0xf] }
  0x5d   :  { %v731_v6 = vmax.bf16 %v729_v57, %v727_v62  ;;  %v758_v7 = vmax.bf16 %v756_v2, %v753_v1  ;;  %v760_v8 = vsel %vm225_vm0, %v72_v56, 4286644096  ;;  %v737_v9 = vsel %vm225_vm0, %v143_v61, 4286644096  ;;  %v144_v12 = vld [vmem:[%s2088_s0 + $0x21c] sm:$0xf] }
  0x5e   :  { %v764_v10 = vsel %vm225_vm0, %v96_v60, 4286644096  ;;  %v716_v11 = vmax.bf16 %v714_v59, %v712_v3  ;;  %v168_v13 = vld [vmem:[%s2088_s0 + $0x27c] sm:$0xf]  ;;  %v191_v14 = vld [vmem:[%s2088_s0 + $0x2d8] sm:$0xf] }
  0x5f   :  { %v735_v15 = vmax.bf16 %v733_v0, %v731_v6  ;;  %v762_v16 = vmax.bf16 %v760_v8, %v758_v7  ;;  %v215_v17 = vld [vmem:[%s2088_s0 + $0x338] sm:$0xf]  ;;  %v741_v18 = vsel %vm225_vm0, %v167_v5, 4286644096  ;;  %v768_v19 = vsel %vm225_vm0, %v120_v4, 4286644096 }
  0x60   :  { %v1166_v20 = vcombine.low %v681_v63, %v716_v11  ;;  %v192_v21 = vld [vmem:[%s2088_s0 + $0x2dc] sm:$0xf]  ;;  %v25_v24 = vld [vmem:[%s2088_s0 + $0x40] sm:$0xf]  ;;  %v745_v28 = vsel %vm225_vm0, %v191_v14, 4286644096 }
  0x61   :  { %v739_v22 = vmax.bf16 %v737_v9, %v735_v15  ;;  %v766_v23 = vmax.bf16 %v764_v10, %v762_v16  ;;  %v49_v25 = vld [vmem:[%s2088_s0 + $0xa0] sm:$0xf]  ;;  %v216_v27 = vld [vmem:[%s2088_s0 + $0x33c] sm:$0xf]  ;;  %v772_v29 = vsel %vm225_vm0, %v144_v12, 4286644096 }
  0x62   :  { %v73_v26 = vld [vmem:[%s2088_s0 + $0x100] sm:$0xf]  ;;  %1167 = vst [vmem:[%s2089_s1 + $0x30] sm:$0xff] %v1166_v20   ;;  %v776_v32 = vsel %vm225_vm0, %v168_v13, 4286644096 }
  0x63   :  { %v743_v30 = vmax.bf16 %v741_v18, %v739_v22  ;;  %v770_v31 = vmax.bf16 %v768_v19, %v766_v23  ;;  %v26_v33 = vld [vmem:[%s2088_s0 + $0x44] sm:$0xf]  ;;  %v97_v34 = vld [vmem:[%s2088_s0 + $0x160] sm:$0xf]  ;;  %v788_v35 = vsel %vm225_vm0, %v25_v24, 4286644096 }
  0x64   :  { %v791_v36 = vsel %vm225_vm0, %v49_v25, 4286644096  ;;  %v795_v37 = vsel %vm225_vm0, %v73_v26, 4286644096  ;;  %v749_v39 = vsel %vm225_vm0, %v215_v17, 4286644096 }
  0x65   :  { %v747_v38 = vmax.bf16 %v745_v28, %v743_v30  ;;  %v774_v40 = vmax.bf16 %v772_v29, %v770_v31  ;;  %v50_v41 = vld [vmem:[%s2088_s0 + $0xa4] sm:$0xf]  ;;  %v121_v42 = vld [vmem:[%s2088_s0 + $0x1c0] sm:$0xf]  ;;  %v793_v43 = vmax.bf16 %v791_v36, %v788_v35  ;;  %v780_v44 = vsel %vm225_vm0, %v192_v21, 4286644096 }
  0x66   :  { %v74_v45 = vld [vmem:[%s2088_s0 + $0x104] sm:$0xf]  ;;  %v799_v46 = vsel %vm225_vm0, %v97_v34, 4286644096  ;;  %v784_v48 = vsel %vm225_vm0, %v216_v27, 4286644096 }
  0x67   :  { %v778_v47 = vmax.bf16 %v776_v32, %v774_v40  ;;  %v98_v49 = vld [vmem:[%s2088_s0 + $0x164] sm:$0xf]  ;;  %v145_v50 = vld [vmem:[%s2088_s0 + $0x220] sm:$0xf]  ;;  %v797_v51 = vmax.bf16 %v795_v37, %v793_v43  ;;  %v751_v52 = vmax.bf16 %v749_v39, %v747_v38  ;;  %v803_v53 = vsel %vm225_vm0, %v121_v42, 4286644096 }
  0x68   :  { %v823_v54 = vsel %vm225_vm0, %v26_v33, 4286644096  ;;  %v826_v55 = vsel %vm225_vm0, %v50_v41, 4286644096  ;;  %v122_v57 = vld [vmem:[%s2088_s0 + $0x1c4] sm:$0xf] }
  0x69   :  { %v782_v56 = vmax.bf16 %v780_v44, %v778_v47  ;;  %v169_v58 = vld [vmem:[%s2088_s0 + $0x280] sm:$0xf]  ;;  %v801_v59 = vmax.bf16 %v799_v46, %v797_v51  ;;  %v828_v60 = vmax.bf16 %v826_v55, %v823_v54  ;;  %v830_v61 = vsel %vm225_vm0, %v74_v45, 4286644096  ;;  %v146_v1 = vld [vmem:[%s2088_s0 + $0x224] sm:$0xf] }
  0x6a   :  { %v807_v62 = vsel %vm225_vm0, %v145_v50, 4286644096  ;;  %v834_v63 = vsel %vm225_vm0, %v98_v49, 4286644096  ;;  %v170_v2 = vld [vmem:[%s2088_s0 + $0x284] sm:$0xf] }
  0x6b   :  { %v786_v0 = vmax.bf16 %v784_v48, %v782_v56  ;;  %v193_v3 = vld [vmem:[%s2088_s0 + $0x2e0] sm:$0xf]  ;;  %v805_v4 = vmax.bf16 %v803_v53, %v801_v59  ;;  %v832_v5 = vmax.bf16 %v830_v61, %v828_v60  ;;  %v811_v7 = vsel %vm225_vm0, %v169_v58, 4286644096  ;;  %v194_v10 = vld [vmem:[%s2088_s0 + $0x2e4] sm:$0xf] }
  0x6c   :  { %v217_v6 = vld [vmem:[%s2088_s0 + $0x340] sm:$0xf]  ;;  %v838_v8 = vsel %vm225_vm0, %v122_v57, 4286644096  ;;  %v27_v13 = vld [vmem:[%s2088_s0 + $0x48] sm:$0xf] }
  0x6d   :  { %v1168_v9 = vcombine.low %v751_v52, %v786_v0  ;;  %v809_v11 = vmax.bf16 %v807_v62, %v805_v4  ;;  %v836_v12 = vmax.bf16 %v834_v63, %v832_v5  ;;  %v51_v14 = vld [vmem:[%s2088_s0 + $0xa8] sm:$0xf]  ;;  %v218_v16 = vld [vmem:[%s2088_s0 + $0x344] sm:$0xf]  ;;  %v815_v17 = vsel %vm225_vm0, %v193_v3, 4286644096 }
  0x6e   :  { %v75_v15 = vld [vmem:[%s2088_s0 + $0x108] sm:$0xf]  ;;  %v842_v18 = vsel %vm225_vm0, %v146_v1, 4286644096  ;;  %v846_v21 = vsel %vm225_vm0, %v170_v2, 4286644096 }
  0x6f   :  { %1169 = vst [vmem:[%s2089_s1 + $0x38] sm:$0xff] %v1168_v9   ;;  %v813_v19 = vmax.bf16 %v811_v7, %v809_v11  ;;  %v840_v20 = vmax.bf16 %v838_v8, %v836_v12  ;;  %v28_v22 = vld [vmem:[%s2088_s0 + $0x4c] sm:$0xf]  ;;  %v99_v23 = vld [vmem:[%s2088_s0 + $0x168] sm:$0xf] }
  0x70   :  { %v858_v24 = vsel %vm225_vm0, %v27_v13, 4286644096  ;;  %v861_v25 = vsel %vm225_vm0, %v51_v14, 4286644096  ;;  %v865_v26 = vsel %vm225_vm0, %v75_v15, 4286644096 }
  0x71   :  { %v817_v27 = vmax.bf16 %v815_v17, %v813_v19  ;;  %v819_v28 = vsel %vm225_vm0, %v217_v6, 4286644096  ;;  %v844_v29 = vmax.bf16 %v842_v18, %v840_v20  ;;  %v52_v30 = vld [vmem:[%s2088_s0 + $0xac] sm:$0xf]  ;;  %v123_v31 = vld [vmem:[%s2088_s0 + $0x1c8] sm:$0xf]  ;;  %v863_v32 = vmax.bf16 %v861_v25, %v858_v24 }
  0x72   :  { %v850_v33 = vsel %vm225_vm0, %v194_v10, 4286644096  ;;  %v76_v34 = vld [vmem:[%s2088_s0 + $0x10c] sm:$0xf]  ;;  %v869_v35 = vsel %vm225_vm0, %v99_v23, 4286644096 }
  0x73   :  { %v848_v36 = vmax.bf16 %v846_v21, %v844_v29  ;;  %v854_v37 = vsel %vm225_vm0, %v218_v16, 4286644096  ;;  %v100_v38 = vld [vmem:[%s2088_s0 + $0x16c] sm:$0xf]  ;;  %v147_v39 = vld [vmem:[%s2088_s0 + $0x228] sm:$0xf]  ;;  %v867_v40 = vmax.bf16 %v865_v26, %v863_v32  ;;  %v821_v41 = vmax.bf16 %v819_v28, %v817_v27 }
  0x74   :  { %v873_v42 = vsel %vm225_vm0, %v123_v31, 4286644096  ;;  %v893_v43 = vsel %vm225_vm0, %v28_v22, 4286644096  ;;  %v896_v44 = vsel %vm225_vm0, %v52_v30, 4286644096 }
  0x75   :  { %v852_v45 = vmax.bf16 %v850_v33, %v848_v36  ;;  %v124_v46 = vld [vmem:[%s2088_s0 + $0x1cc] sm:$0xf]  ;;  %v171_v47 = vld [vmem:[%s2088_s0 + $0x288] sm:$0xf]  ;;  %v871_v48 = vmax.bf16 %v869_v35, %v867_v40  ;;  %v898_v49 = vmax.bf16 %v896_v44, %v893_v43  ;;  %v900_v50 = vsel %vm225_vm0, %v76_v34, 4286644096 }
  0x76   :  { %v877_v51 = vsel %vm225_vm0, %v147_v39, 4286644096  ;;  %v904_v52 = vsel %vm225_vm0, %v100_v38, 4286644096  ;;  %v148_v54 = vld [vmem:[%s2088_s0 + $0x22c] sm:$0xf] }
  0x77   :  { %v856_v53 = vmax.bf16 %v854_v37, %v852_v45  ;;  %v172_v55 = vld [vmem:[%s2088_s0 + $0x28c] sm:$0xf]  ;;  %v195_v56 = vld [vmem:[%s2088_s0 + $0x2e8] sm:$0xf]  ;;  %v875_v57 = vmax.bf16 %v873_v42, %v871_v48  ;;  %v902_v58 = vmax.bf16 %v900_v50, %v898_v49  ;;  %v881_v60 = vsel %vm225_vm0, %v171_v47, 4286644096 }
  0x78   :  { %v219_v59 = vld [vmem:[%s2088_s0 + $0x348] sm:$0xf]  ;;  %v908_v61 = vsel %vm225_vm0, %v124_v46, 4286644096  ;;  %v196_v63 = vld [vmem:[%s2088_s0 + $0x2ec] sm:$0xf] }
  0x79   :  { %v1170_v62 = vcombine.low %v821_v41, %v856_v53  ;;  %v879_v0 = vmax.bf16 %v877_v51, %v875_v57  ;;  %v906_v1 = vmax.bf16 %v904_v52, %v902_v58  ;;  %v29_v2 = vld [vmem:[%s2088_s0 + $0x50] sm:$0xf]  ;;  %v220_v5 = vld [vmem:[%s2088_s0 + $0x34c] sm:$0xf]  ;;  %v885_v6 = vsel %vm225_vm0, %v195_v56, 4286644096 }
  0x7a   :  { %v53_v3 = vld [vmem:[%s2088_s0 + $0xb0] sm:$0xf]  ;;  %v912_v7 = vsel %vm225_vm0, %v148_v54, 4286644096  ;;  %v916_v10 = vsel %vm225_vm0, %v172_v55, 4286644096 }
  0x7b   :  { %v77_v4 = vld [vmem:[%s2088_s0 + $0x110] sm:$0xf]  ;;  %1171 = vst [vmem:[%s2089_s1 + $0x40] sm:$0xff] %v1170_v62   ;;  %v883_v8 = vmax.bf16 %v881_v60, %v879_v0  ;;  %v910_v9 = vmax.bf16 %v908_v61, %v906_v1  ;;  %v30_v11 = vld [vmem:[%s2088_s0 + $0x54] sm:$0xf] }
  0x7c   :  { %v101_v12 = vld [vmem:[%s2088_s0 + $0x170] sm:$0xf]  ;;  %v928_v13 = vsel %vm225_vm0, %v29_v2, 4286644096  ;;  %v931_v14 = vsel %vm225_vm0, %v53_v3, 4286644096 }
  0x7d   :  { %v935_v15 = vsel %vm225_vm0, %v77_v4, 4286644096  ;;  %v887_v16 = vmax.bf16 %v885_v6, %v883_v8  ;;  %v889_v17 = vsel %vm225_vm0, %v219_v59, 4286644096  ;;  %v914_v18 = vmax.bf16 %v912_v7, %v910_v9  ;;  %v54_v19 = vld [vmem:[%s2088_s0 + $0xb4] sm:$0xf] }
  0x7e   :  { %v125_v20 = vld [vmem:[%s2088_s0 + $0x1d0] sm:$0xf]  ;;  %v933_v21 = vmax.bf16 %v931_v14, %v928_v13  ;;  %v920_v22 = vsel %vm225_vm0, %v196_v63, 4286644096  ;;  %v78_v23 = vld [vmem:[%s2088_s0 + $0x114] sm:$0xf] }
  0x7f   :  { %v939_v24 = vsel %vm225_vm0, %v101_v12, 4286644096  ;;  %v918_v25 = vmax.bf16 %v916_v10, %v914_v18  ;;  %v924_v26 = vsel %vm225_vm0, %v220_v5, 4286644096  ;;  %v102_v27 = vld [vmem:[%s2088_s0 + $0x174] sm:$0xf]  ;;  %v891_v30 = vmax.bf16 %v889_v17, %v887_v16 }
  0x80   :  { %v149_v28 = vld [vmem:[%s2088_s0 + $0x230] sm:$0xf]  ;;  %v937_v29 = vmax.bf16 %v935_v15, %v933_v21  ;;  %v943_v31 = vsel %vm225_vm0, %v125_v20, 4286644096  ;;  %v963_v32 = vsel %vm225_vm0, %v30_v11, 4286644096 }
  0x81   :  { %v966_v33 = vsel %vm225_vm0, %v54_v19, 4286644096  ;;  %v922_v34 = vmax.bf16 %v920_v22, %v918_v25  ;;  %v126_v35 = vld [vmem:[%s2088_s0 + $0x1d4] sm:$0xf]  ;;  %v173_v36 = vld [vmem:[%s2088_s0 + $0x290] sm:$0xf] }
  0x82   :  { %v941_v37 = vmax.bf16 %v939_v24, %v937_v29  ;;  %v968_v38 = vmax.bf16 %v966_v33, %v963_v32  ;;  %v970_v39 = vsel %vm225_vm0, %v78_v23, 4286644096  ;;  %v947_v40 = vsel %vm225_vm0, %v149_v28, 4286644096  ;;  %v150_v43 = vld [vmem:[%s2088_s0 + $0x234] sm:$0xf] }
  0x83   :  { %v974_v41 = vsel %vm225_vm0, %v102_v27, 4286644096  ;;  %v926_v42 = vmax.bf16 %v924_v26, %v922_v34  ;;  %v174_v44 = vld [vmem:[%s2088_s0 + $0x294] sm:$0xf]  ;;  %v197_v45 = vld [vmem:[%s2088_s0 + $0x2f0] sm:$0xf] }
  0x84   :  { %v945_v46 = vmax.bf16 %v943_v31, %v941_v37  ;;  %v972_v47 = vmax.bf16 %v970_v39, %v968_v38  ;;  %v221_v48 = vld [vmem:[%s2088_s0 + $0x350] sm:$0xf]  ;;  %v951_v49 = vsel %vm225_vm0, %v173_v36, 4286644096  ;;  %v978_v50 = vsel %vm225_vm0, %v126_v35, 4286644096 }
  0x85   :  { %v1172_v51 = vcombine.low %v891_v30, %v926_v42  ;;  %v198_v52 = vld [vmem:[%s2088_s0 + $0x2f4] sm:$0xf]  ;;  %v31_v55 = vld [vmem:[%s2088_s0 + $0x58] sm:$0xf]  ;;  %v955_v59 = vsel %vm225_vm0, %v197_v45, 4286644096 }
  0x86   :  { %v949_v53 = vmax.bf16 %v947_v40, %v945_v46  ;;  %v976_v54 = vmax.bf16 %v974_v41, %v972_v47  ;;  %v55_v56 = vld [vmem:[%s2088_s0 + $0xb8] sm:$0xf]  ;;  %v222_v58 = vld [vmem:[%s2088_s0 + $0x354] sm:$0xf]  ;;  %v982_v60 = vsel %vm225_vm0, %v150_v43, 4286644096 }
  0x87   :  { %v79_v57 = vld [vmem:[%s2088_s0 + $0x118] sm:$0xf]  ;;  %1173 = vst [vmem:[%s2089_s1 + $0x48] sm:$0xff] %v1172_v51   ;;  %v986_v63 = vsel %vm225_vm0, %v174_v44, 4286644096 }
  0x88   :  { %v953_v61 = vmax.bf16 %v951_v49, %v949_v53  ;;  %v980_v62 = vmax.bf16 %v978_v50, %v976_v54  ;;  %v32_v0 = vld [vmem:[%s2088_s0 + $0x5c] sm:$0xf]  ;;  %v103_v1 = vld [vmem:[%s2088_s0 + $0x178] sm:$0xf]  ;;  %v998_v2 = vsel %vm225_vm0, %v31_v55, 4286644096 }
  0x89   :  { %v1001_v3 = vsel %vm225_vm0, %v55_v56, 4286644096  ;;  %v1005_v4 = vsel %vm225_vm0, %v79_v57, 4286644096  ;;  %v959_v6 = vsel %vm225_vm0, %v221_v48, 4286644096 }
  0x8a   :  { %v957_v5 = vmax.bf16 %v955_v59, %v953_v61  ;;  %v984_v7 = vmax.bf16 %v982_v60, %v980_v62  ;;  %v56_v8 = vld [vmem:[%s2088_s0 + $0xbc] sm:$0xf]  ;;  %v127_v9 = vld [vmem:[%s2088_s0 + $0x1d8] sm:$0xf]  ;;  %v1003_v10 = vmax.bf16 %v1001_v3, %v998_v2  ;;  %v990_v11 = vsel %vm225_vm0, %v198_v52, 4286644096 }
  0x8b   :  { %v80_v12 = vld [vmem:[%s2088_s0 + $0x11c] sm:$0xf]  ;;  %v1009_v13 = vsel %vm225_vm0, %v103_v1, 4286644096  ;;  %v994_v15 = vsel %vm225_vm0, %v222_v58, 4286644096 }
  0x8c   :  { %v988_v14 = vmax.bf16 %v986_v63, %v984_v7  ;;  %v104_v16 = vld [vmem:[%s2088_s0 + $0x17c] sm:$0xf]  ;;  %v151_v17 = vld [vmem:[%s2088_s0 + $0x238] sm:$0xf]  ;;  %v1007_v18 = vmax.bf16 %v1005_v4, %v1003_v10  ;;  %v961_v19 = vmax.bf16 %v959_v6, %v957_v5  ;;  %v1013_v20 = vsel %vm225_vm0, %v127_v9, 4286644096 }
  0x8d   :  { %v1033_v21 = vsel %vm225_vm0, %v32_v0, 4286644096  ;;  %v1036_v22 = vsel %vm225_vm0, %v56_v8, 4286644096  ;;  %v128_v24 = vld [vmem:[%s2088_s0 + $0x1dc] sm:$0xf] }
  0x8e   :  { %v992_v23 = vmax.bf16 %v990_v11, %v988_v14  ;;  %v175_v25 = vld [vmem:[%s2088_s0 + $0x298] sm:$0xf]  ;;  %v1011_v26 = vmax.bf16 %v1009_v13, %v1007_v18  ;;  %v1038_v27 = vmax.bf16 %v1036_v22, %v1033_v21  ;;  %v1040_v28 = vsel %vm225_vm0, %v80_v12, 4286644096  ;;  %v152_v32 = vld [vmem:[%s2088_s0 + $0x23c] sm:$0xf] }
  0x8f   :  { %v1017_v29 = vsel %vm225_vm0, %v151_v17, 4286644096  ;;  %v1044_v30 = vsel %vm225_vm0, %v104_v16, 4286644096  ;;  %v199_v33 = vld [vmem:[%s2088_s0 + $0x2f8] sm:$0xf] }
  0x90   :  { %v996_v31 = vmax.bf16 %v994_v15, %v992_v23  ;;  %v1015_v34 = vmax.bf16 %v1013_v20, %v1011_v26  ;;  %v1042_v35 = vmax.bf16 %v1040_v28, %v1038_v27  ;;  %v1021_v36 = vsel %vm225_vm0, %v175_v25, 4286644096  ;;  %v176_v39 = vld [vmem:[%s2088_s0 + $0x29c] sm:$0xf]  ;;  %v223_v45 = vld [vmem:[%s2088_s0 + $0x358] sm:$0xf] }
  0x91   :  { %v1048_v37 = vsel %vm225_vm0, %v128_v24, 4286644096  ;;  %v1025_v42 = vsel %vm225_vm0, %v199_v33, 4286644096  ;;  %v1052_v43 = vsel %vm225_vm0, %v152_v32, 4286644096 }
  0x92   :  { %v1174_v38 = vcombine.low %v961_v19, %v996_v31  ;;  %v1019_v40 = vmax.bf16 %v1017_v29, %v1015_v34  ;;  %v1046_v41 = vmax.bf16 %v1044_v30, %v1042_v35  ;;  %v200_v44 = vld [vmem:[%s2088_s0 + $0x2fc] sm:$0xf]  ;;  %v1056_v48 = vsel %vm225_vm0, %v176_v39, 4286644096 }
  0x93   :  { %v224_v49 = vld [vmem:[%s2088_s0 + $0x35c] sm:$0xf]  ;;  %v1029_v52 = vsel %vm225_vm0, %v223_v45, 4286644096  ;;  %v1060_v53 = vsel %vm225_vm0, %v200_v44, 4286644096 }
  0x94   :  { %1175 = vst [vmem:[%s2089_s1 + $0x50] sm:$0xff] %v1174_v38   ;;  %v1023_v46 = vmax.bf16 %v1021_v36, %v1019_v40  ;;  %v1050_v47 = vmax.bf16 %v1048_v37, %v1046_v41  ;;  %v1064_v55 = vsel %vm225_vm0, %v224_v49, 4286644096 }
  0x96   :  { %v1027_v50 = vmax.bf16 %v1025_v42, %v1023_v46  ;;  %v1054_v51 = vmax.bf16 %v1052_v43, %v1050_v47 }
  0x98   :  { %v1058_v54 = vmax.bf16 %v1056_v48, %v1054_v51  ;;  %v1031_v56 = vmax.bf16 %v1029_v52, %v1027_v50 }
  0x9a   :  { %v1062_v57 = vmax.bf16 %v1060_v53, %v1058_v54 }
  0x9c   :  { %v1066_v58 = vmax.bf16 %v1064_v55, %v1062_v57 }
  0x9e   :  { %v1176_v59 = vcombine.low %v1031_v56, %v1066_v58 }
  0xa0   :  { %1177 = vst [vmem:[%s2089_s1 + $0x58] sm:$0xff] %v1176_v59  }

// kernel: facebox_forward.32
= control target key start
LH: loop header
LB: loop body
LE: loop exit
PB: predicated region body
PF: predicated region fallthrough
CT: control target
= control target key end

     0   :  { %vm45_vm0 = vcmask 1043456   ;;  %s368_s0 = inlined_call_operand.vmem [shape: bf16[9,32,128], index: 0, kind: input, shape index: {}]   ;;  %s369_s1 = inlined_call_operand.vmem [shape: bf16[32,128], index: 1, kind: output, shape index: {}]  }
   0x1   :  { %v9_v0 = vld [vmem:[%s368_s0] sm:$0xf]  ;;  %v13_v1 = vld [vmem:[%s368_s0 + $0x10] sm:$0xf]  ;;  %v10_v3 = vld [vmem:[%s368_s0 + $0x4] sm:$0xf] }
   0x2   :  { %v17_v2 = vld [vmem:[%s368_s0 + $0x20] sm:$0xf]  ;;  %v14_v4 = vld [vmem:[%s368_s0 + $0x14] sm:$0xf]  ;;  %v18_v5 = vld [vmem:[%s368_s0 + $0x24] sm:$0xf] }
   0x3   :  { %v21_v6 = vld [vmem:[%s368_s0 + $0x30] sm:$0xf]  ;;  %v48_v7 = vsel %vm45_vm0, %v9_v0, 4286644096  ;;  %v51_v8 = vsel %vm45_vm0, %v13_v1, 4286644096 }
   0x4   :  { %v55_v9 = vsel %vm45_vm0, %v17_v2, 4286644096  ;;  %v25_v10 = vld [vmem:[%s368_s0 + $0x40] sm:$0xf]  ;;  %v53_v11 = vmax.bf16 %v51_v8, %v48_v7  ;;  %v22_v12 = vld [vmem:[%s368_s0 + $0x34] sm:$0xf] }
   0x5   :  { %v29_v13 = vld [vmem:[%s368_s0 + $0x50] sm:$0xf]  ;;  %v59_v14 = vsel %vm45_vm0, %v21_v6, 4286644096  ;;  %v83_v16 = vsel %vm45_vm0, %v10_v3, 4286644096 }
   0x6   :  { %v57_v15 = vmax.bf16 %v55_v9, %v53_v11  ;;  %v86_v17 = vsel %vm45_vm0, %v14_v4, 4286644096  ;;  %v90_v18 = vsel %vm45_vm0, %v18_v5, 4286644096  ;;  %v26_v19 = vld [vmem:[%s368_s0 + $0x44] sm:$0xf] }
   0x7   :  { %v63_v20 = vsel %vm45_vm0, %v25_v10, 4286644096  ;;  %v88_v21 = vmax.bf16 %v86_v17, %v83_v16  ;;  %v30_v22 = vld [vmem:[%s368_s0 + $0x54] sm:$0xf]  ;;  %v33_v23 = vld [vmem:[%s368_s0 + $0x60] sm:$0xf] }
   0x8   :  { %v61_v24 = vmax.bf16 %v59_v14, %v57_v15  ;;  %v94_v25 = vsel %vm45_vm0, %v22_v12, 4286644096  ;;  %v34_v26 = vld [vmem:[%s368_s0 + $0x64] sm:$0xf]  ;;  %v67_v27 = vsel %vm45_vm0, %v29_v13, 4286644096 }
   0x9   :  { %v92_v28 = vmax.bf16 %v90_v18, %v88_v21  ;;  %v37_v29 = vld [vmem:[%s368_s0 + $0x70] sm:$0xf]  ;;  %v41_v30 = vld [vmem:[%s368_s0 + $0x80] sm:$0xf]  ;;  %v98_v32 = vsel %vm45_vm0, %v26_v19, 4286644096 }
   0xa   :  { %v65_v31 = vmax.bf16 %v63_v20, %v61_v24  ;;  %v38_v33 = vld [vmem:[%s368_s0 + $0x74] sm:$0xf]  ;;  %v71_v34 = vsel %vm45_vm0, %v33_v23, 4286644096  ;;  %v102_v36 = vsel %vm45_vm0, %v30_v22, 4286644096 }
   0xb   :  { %v96_v35 = vmax.bf16 %v94_v25, %v92_v28  ;;  %v42_v37 = vld [vmem:[%s368_s0 + $0x84] sm:$0xf]  ;;  %v11_v39 = vld [vmem:[%s368_s0 + $0x8] sm:$0xf]  ;;  %v15_v40 = vld [vmem:[%s368_s0 + $0x18] sm:$0xf] }
   0xc   :  { %v69_v38 = vmax.bf16 %v67_v27, %v65_v31  ;;  %v19_v41 = vld [vmem:[%s368_s0 + $0x28] sm:$0xf]  ;;  %v75_v42 = vsel %vm45_vm0, %v37_v29, 4286644096  ;;  %v79_v43 = vsel %vm45_vm0, %v41_v30, 4286644096 }
   0xd   :  { %v100_v44 = vmax.bf16 %v98_v32, %v96_v35  ;;  %v106_v45 = vsel %vm45_vm0, %v34_v26, 4286644096  ;;  %v12_v47 = vld [vmem:[%s368_s0 + $0xc] sm:$0xf]  ;;  %v23_v48 = vld [vmem:[%s368_s0 + $0x38] sm:$0xf] }
   0xe   :  { %v73_v46 = vmax.bf16 %v71_v34, %v69_v38  ;;  %v27_v49 = vld [vmem:[%s368_s0 + $0x48] sm:$0xf]  ;;  %v118_v51 = vsel %vm45_vm0, %v11_v39, 4286644096  ;;  %v121_v52 = vsel %vm45_vm0, %v15_v40, 4286644096 }
   0xf   :  { %v104_v50 = vmax.bf16 %v102_v36, %v100_v44  ;;  %v125_v53 = vsel %vm45_vm0, %v19_v41, 4286644096  ;;  %v110_v55 = vsel %vm45_vm0, %v38_v33, 4286644096  ;;  %v16_v56 = vld [vmem:[%s368_s0 + $0x1c] sm:$0xf]  ;;  %v123_v58 = vmax.bf16 %v121_v52, %v118_v51 }
  0x10   :  { %v77_v54 = vmax.bf16 %v75_v42, %v73_v46  ;;  %v20_v57 = vld [vmem:[%s368_s0 + $0x2c] sm:$0xf]  ;;  %v114_v60 = vsel %vm45_vm0, %v42_v37, 4286644096  ;;  %v24_v61 = vld [vmem:[%s368_s0 + $0x3c] sm:$0xf] }
  0x11   :  { %v108_v59 = vmax.bf16 %v106_v45, %v104_v50  ;;  %v129_v62 = vsel %vm45_vm0, %v23_v48, 4286644096  ;;  %v31_v63 = vld [vmem:[%s368_s0 + $0x58] sm:$0xf]  ;;  %v127_v0 = vmax.bf16 %v125_v53, %v123_v58  ;;  %v133_v1 = vsel %vm45_vm0, %v27_v49, 4286644096 }
  0x12   :  { %v153_v2 = vsel %vm45_vm0, %v12_v47, 4286644096  ;;  %v81_v3 = vmax.bf16 %v79_v43, %v77_v54  ;;  %v156_v5 = vsel %vm45_vm0, %v16_v56, 4286644096  ;;  %v160_v6 = vsel %vm45_vm0, %v20_v57, 4286644096 }
  0x13   :  { %v112_v4 = vmax.bf16 %v110_v55, %v108_v59  ;;  %v28_v7 = vld [vmem:[%s368_s0 + $0x4c] sm:$0xf]  ;;  %v35_v8 = vld [vmem:[%s368_s0 + $0x68] sm:$0xf]  ;;  %v131_v9 = vmax.bf16 %v129_v62, %v127_v0  ;;  %v158_v10 = vmax.bf16 %v156_v5, %v153_v2  ;;  %v137_v12 = vsel %vm45_vm0, %v31_v63, 4286644096 }
  0x14   :  { %v164_v13 = vsel %vm45_vm0, %v24_v61, 4286644096  ;;  %v32_v14 = vld [vmem:[%s368_s0 + $0x5c] sm:$0xf]  ;;  %v39_v15 = vld [vmem:[%s368_s0 + $0x78] sm:$0xf] }
  0x15   :  { %v116_v11 = vmax.bf16 %v114_v60, %v112_v4  ;;  %v135_v16 = vmax.bf16 %v133_v1, %v131_v9  ;;  %v162_v17 = vmax.bf16 %v160_v6, %v158_v10  ;;  %v141_v19 = vsel %vm45_vm0, %v35_v8, 4286644096  ;;  %v36_v21 = vld [vmem:[%s368_s0 + $0x6c] sm:$0xf]  ;;  %v40_v26 = vld [vmem:[%s368_s0 + $0x7c] sm:$0xf] }
  0x16   :  { %v168_v20 = vsel %vm45_vm0, %v28_v7, 4286644096  ;;  %v145_v24 = vsel %vm45_vm0, %v39_v15, 4286644096  ;;  %v172_v25 = vsel %vm45_vm0, %v32_v14, 4286644096 }
  0x17   :  { %v205_v18 = vcombine.low %v81_v3, %v116_v11  ;;  %v139_v22 = vmax.bf16 %v137_v12, %v135_v16  ;;  %v166_v23 = vmax.bf16 %v164_v13, %v162_v17  ;;  %v43_v27 = vld [vmem:[%s368_s0 + $0x88] sm:$0xf]  ;;  %v176_v30 = vsel %vm45_vm0, %v36_v21, 4286644096  ;;  %v44_v31 = vld [vmem:[%s368_s0 + $0x8c] sm:$0xf] }
  0x18   :  { %v149_v34 = vsel %vm45_vm0, %v43_v27, 4286644096  ;;  %v180_v35 = vsel %vm45_vm0, %v40_v26, 4286644096  ;;  %v184_v37 = vsel %vm45_vm0, %v44_v31, 4286644096 }
  0x19   :  { %199 = vst [vmem:[%s369_s1] sm:$0xff] %v205_v18   ;;  %v143_v28 = vmax.bf16 %v141_v19, %v139_v22  ;;  %v170_v29 = vmax.bf16 %v168_v20, %v166_v23 }
  0x1b   :  { %v147_v32 = vmax.bf16 %v145_v24, %v143_v28  ;;  %v174_v33 = vmax.bf16 %v172_v25, %v170_v29 }
  0x1d   :  { %v178_v36 = vmax.bf16 %v176_v30, %v174_v33  ;;  %v151_v38 = vmax.bf16 %v149_v34, %v147_v32 }
  0x1f   :  { %v182_v39 = vmax.bf16 %v180_v35, %v178_v36 }
  0x21   :  { %v186_v40 = vmax.bf16 %v184_v37, %v182_v39 }
  0x23   :  { %v206_v41 = vcombine.low %v151_v38, %v186_v40 }
  0x25   :  { %207 = vst [vmem:[%s369_s1 + $0x8] sm:$0xff] %v206_v41  }

// kernel: facebox_forward.31
= control target key start
LH: loop header
LB: loop body
LE: loop exit
PB: predicated region body
PF: predicated region fallthrough
CT: control target
= control target key end

     0   :  { %s3204_s1 = inlined_call_operand.vmem [shape: bf16[1280,128], index: 1, kind: input, shape index: {}]   ;;  %s3205_s0 = inlined_call_operand.vmem [shape: bf16[128,1280], index: 0, kind: input, shape index: {}]   ;;  %s3206_s2 = inlined_call_operand.vmem [shape: f32[1,128], index: 2, kind: input, shape index: {}]   ;;  %s3207_s3 = inlined_call_operand.vmem [shape: bf16[128,128], index: 3, kind: output, shape index: {}]  }
   0x1   :  { %v2303_v0 = vld [vmem:[%s3204_s1 + $0x78] sm:$0xff]   ;;  %v2305_v2 = vld [vmem:[%s3204_s1 + $0x70] sm:$0xff]   ;;  %v2307_v4 = vld [vmem:[%s3204_s1 + $0x68] sm:$0xff]  }
   0x2   :  { %v2304_v1 = vld [vmem:[%s3204_s1 + $0x38] sm:$0xff]   ;;  %1967 = vmatprep.subr.bf16.mxu0 %v2303_v0  ;;  %2287 = vmatprep.subr.bf16.mxu1 %v2303_v0  ;;  %v2306_v3 = vld [vmem:[%s3204_s1 + $0x30] sm:$0xff]   ;;  %v2308_v5 = vld [vmem:[%s3204_s1 + $0x28] sm:$0xff]  }
   0x3   :  { %1968 = vmatpush3.bf16.msra.mxu0 %v2304_v1  ;;  %2295 = vmatpush3.bf16.msra.mxu1 %v2304_v1  ;;  %v2309_v6 = vld [vmem:[%s3204_s1 + $0x60] sm:$0xff]   ;;  %v2311_v8 = vld [vmem:[%s3204_s1 + $0x58] sm:$0xff]   ;;  %v2313_v10 = vld [vmem:[%s3204_s1 + $0x50] sm:$0xff]  }
   0x4   :  { %1969 = vmatprep.subr.bf16.mxu0 %v2305_v2  ;;  %2288 = vmatprep.subr.bf16.mxu1 %v2305_v2  ;;  %v2310_v7 = vld [vmem:[%s3204_s1 + $0x20] sm:$0xff]   ;;  %v2312_v9 = vld [vmem:[%s3204_s1 + $0x18] sm:$0xff]   ;;  %v2314_v13 = vld [vmem:[%s3204_s1 + $0x10] sm:$0xff]  }
   0x5   :  { %v2321_v11 = vld [vmem:[%s3205_s0 + $0x4] ss:$40 sps:$4 sm:$0xff]   ;;  %v2319_v18 = vld [vmem:[%s3205_s0] ss:$40 sps:$4 sm:$0xff]   ;;  %v2325_v20 = vld [vmem:[%s3204_s1 + $0xf8] sm:$0xff]  }
   0x6   :  { %v2324_v12 = vld [vmem:[%s3205_s0 + $0x144] ss:$40 sps:$4 sm:$0xff]   ;;  %1174 = vmatprep.mubr.bf16.mxu0 %v2321_v11  ;;  %v2322_v19 = vld [vmem:[%s3205_s0 + $0x140] ss:$40 sps:$4 sm:$0xff]   ;;  %v2326_v21 = vld [vmem:[%s3204_s1 + $0x178] sm:$0xff]  }
   0x7   :  { %1970 = vmatpush3.bf16.msra.mxu0 %v2306_v3  ;;  %2296 = vmatpush3.bf16.msra.mxu1 %v2306_v3  ;;  %v2315_v14 = vld [vmem:[%s3204_s1 + $0x48] sm:$0xff]   ;;  %v2317_v16 = vld [vmem:[%s3204_s1 + $0x40] sm:$0xff]   ;;  %v2327_v22 = vld [vmem:[%s3204_s1 + $0xb8] sm:$0xff]  }
   0x8   :  { %1971 = vmatprep.subr.bf16.mxu0 %v2307_v4  ;;  %2289 = vmatprep.subr.bf16.mxu1 %v2307_v4  ;;  %v2316_v15 = vld [vmem:[%s3204_s1 + $0x8] sm:$0xff]   ;;  %v2318_v17 = vld [vmem:[%s3204_s1] sm:$0xff]   ;;  %v2328_v23 = vld [vmem:[%s3204_s1 + $0x138] sm:$0xff]  }
   0x9   :  { %1206 = vmatprep.mubr.bf16.mxu1 %v2324_v12  ;;  %v2329_v24 = vld [vmem:[%s3204_s1 + $0xf0] sm:$0xff]   ;;  %v2339_v30 = vld [vmem:[%s3204_s1 + $0xe8] sm:$0xff]   ;;  %v2343_v36 = vld [vmem:[%s3204_s1 + $0xe0] sm:$0xff]  }
   0xa   :  { %v2330_v25 = vld [vmem:[%s3204_s1 + $0x170] sm:$0xff]   ;;  %v2340_v32 = vld [vmem:[%s3204_s1 + $0x168] sm:$0xff]   ;;  %v2344_v37 = vld [vmem:[%s3204_s1 + $0x160] sm:$0xff]  }
   0xb   :  { %1972 = vmatpush3.bf16.msra.mxu0 %v2308_v5  ;;  %2297 = vmatpush3.bf16.msra.mxu1 %v2308_v5  ;;  %v2333_v26 = vld [vmem:[%s3205_s0 + $0x54] ss:$40 sps:$4 sm:$0xff]   ;;  %v2337_v31 = vld [vmem:[%s3205_s0 + $0x50] ss:$40 sps:$4 sm:$0xff]   ;;  %v2341_v34 = vld [vmem:[%s3204_s1 + $0xa8] sm:$0xff]  }
   0xc   :  { %1973 = vmatprep.subr.bf16.mxu0 %v2309_v6  ;;  %2290 = vmatprep.subr.bf16.mxu1 %v2309_v6  ;;  %v2331_v27 = vld [vmem:[%s3204_s1 + $0xb0] sm:$0xff]   ;;  %v2342_v35 = vld [vmem:[%s3204_s1 + $0x128] sm:$0xff]   ;;  %v2345_v39 = vld [vmem:[%s3204_s1 + $0xa0] sm:$0xff]  }
   0xd   :  { %v2335_v28 = vld [vmem:[%s3205_s0 + $0x194] ss:$40 sps:$4 sm:$0xff]   ;;  %v2338_v33 = vld [vmem:[%s3205_s0 + $0x190] ss:$40 sps:$4 sm:$0xff]   ;;  %v2347_v38 = vld [vmem:[%s3205_s0 + $0xa4] ss:$40 sps:$4 sm:$0xff]  }
   0xe   :  { %v2332_v29 = vld [vmem:[%s3204_s1 + $0x130] sm:$0xff]   ;;  %v2349_v40 = vld [vmem:[%s3205_s0 + $0x1e4] ss:$40 sps:$4 sm:$0xff]   ;;  %v2353_v42 = vld [vmem:[%s3204_s1 + $0xd8] sm:$0xff]  }
   0xf   :  { %1974 = vmatpush3.bf16.msra.mxu0 %v2310_v7  ;;  %2298 = vmatpush3.bf16.msra.mxu1 %v2310_v7  ;;  %v2346_v41 = vld [vmem:[%s3204_s1 + $0x120] sm:$0xff]   ;;  %v2354_v45 = vld [vmem:[%s3204_s1 + $0x158] sm:$0xff]   ;;  %v2357_v48 = vld [vmem:[%s3204_s1 + $0xd0] sm:$0xff]  }
  0x10   :  { %1975 = vmatprep.subr.bf16.mxu0 %v2311_v8  ;;  %2291 = vmatprep.subr.bf16.mxu1 %v2311_v8  ;;  %v2351_v43 = vld [vmem:[%s3205_s0 + $0xa0] ss:$40 sps:$4 sm:$0xff]   ;;  %v2355_v46 = vld [vmem:[%s3204_s1 + $0x98] sm:$0xff]   ;;  %v2358_v49 = vld [vmem:[%s3204_s1 + $0x150] sm:$0xff]  }
  0x11   :  { %v2352_v44 = vld [vmem:[%s3205_s0 + $0x1e0] ss:$40 sps:$4 sm:$0xff]   ;;  %v2356_v47 = vld [vmem:[%s3204_s1 + $0x118] sm:$0xff]   ;;  %v2359_v52 = vld [vmem:[%s3204_s1 + $0x90] sm:$0xff]  }
  0x12   :  { %v2361_v50 = vld [vmem:[%s3205_s0 + $0xf4] ss:$40 sps:$4 sm:$0xff]   ;;  %v2367_v54 = vld [vmem:[%s3204_s1 + $0xc8] sm:$0xff]   ;;  %v2365_v55 = vld [vmem:[%s3205_s0 + $0xf0] ss:$40 sps:$4 sm:$0xff]  }
  0x13   :  { %1976 = vmatpush3.bf16.msra.mxu0 %v2312_v9  ;;  %2299 = vmatpush3.bf16.msra.mxu1 %v2312_v9  ;;  %v2363_v51 = vld [vmem:[%s3205_s0 + $0x234] ss:$40 sps:$4 sm:$0xff]   ;;  %v2366_v56 = vld [vmem:[%s3205_s0 + $0x230] ss:$40 sps:$4 sm:$0xff]   ;;  %v2368_v57 = vld [vmem:[%s3204_s1 + $0x148] sm:$0xff]  }
  0x14   :  { %1977 = vmatprep.subr.bf16.mxu0 %v2313_v10  ;;  %2292 = vmatprep.subr.bf16.mxu1 %v2313_v10  ;;  %v2360_v53 = vld [vmem:[%s3204_s1 + $0x110] sm:$0xff]   ;;  %v2369_v58 = vld [vmem:[%s3204_s1 + $0x88] sm:$0xff]   ;;  %v2371_v60 = vld [vmem:[%s3204_s1 + $0xc0] sm:$0xff]  }
  0x15   :  { %v2370_v59 = vld [vmem:[%s3204_s1 + $0x108] sm:$0xff]   ;;  %v2372_v61 = vld [vmem:[%s3204_s1 + $0x140] sm:$0xff]   ;;  %v2378_v2 = vld [vmem:[%s3205_s0 + $0x10] ss:$40 sps:$4 sm:$0xff]  }
  0x16   :  { %v2373_v62 = vld [vmem:[%s3204_s1 + $0x80] sm:$0xff]   ;;  %v2377_v0 = vld [vmem:[%s3205_s0 + $0xc] ss:$40 sps:$4 sm:$0xff]   ;;  %v2375_v1 = vld [vmem:[%s3205_s0 + $0x8] ss:$40 sps:$4 sm:$0xff]  }
  0x17   :  { %1978 = vmatpush3.bf16.msra.mxu0 %v2314_v13  ;;  %2300 = vmatpush3.bf16.msra.mxu1 %v2314_v13  ;;  %v2374_v63 = vld [vmem:[%s3204_s1 + $0x100] sm:$0xff]   ;;  %v2380_v3 = vld [vmem:[%s3205_s0 + $0x14] ss:$40 sps:$4 sm:$0xff]  }
  0x18   :  { %1979 = vmatprep.subr.bf16.mxu0 %v2315_v14  ;;  %2293 = vmatprep.subr.bf16.mxu1 %v2315_v14  ;;  %v2381_v4 = vld [vmem:[%s3204_s1 + $0x1f8] sm:$0xff]   ;;  %v2387_v9 = vld [vmem:[%s3205_s0 + $0x64] ss:$40 sps:$4 sm:$0xff]   ;;  %v2390_v11 = vld [vmem:[%s3205_s0 + $0x60] ss:$40 sps:$4 sm:$0xff]  }
  0x19   :  { %v2382_v5 = vld [vmem:[%s3204_s1 + $0x1b8] sm:$0xff]   ;;  %v2391_v12 = vld [vmem:[%s3204_s1 + $0x1f0] sm:$0xff]  }
  0x1a   :  { %v2383_v6 = vld [vmem:[%s3204_s1 + $0x278] sm:$0xff]   ;;  %v2392_v13 = vld [vmem:[%s3204_s1 + $0x1b0] sm:$0xff]  }
  0x1b   :  { %1980 = vmatpush3.bf16.msra.mxu0 %v2316_v15  ;;  %2301 = vmatpush3.bf16.msra.mxu1 %v2316_v15  ;;  %v2384_v7 = vld [vmem:[%s3204_s1 + $0x238] sm:$0xff]   ;;  %v2393_v14 = vld [vmem:[%s3204_s1 + $0x270] sm:$0xff]  }
  0x1c   :  { %1981 = vmatprep.subr.bf16.mxu0 %v2317_v16  ;;  %2294 = vmatprep.subr.bf16.mxu1 %v2317_v16  ;;  %v2385_v8 = vld [vmem:[%s3205_s0 + $0x5c] ss:$40 sps:$4 sm:$0xff]   ;;  %v2389_v10 = vld [vmem:[%s3205_s0 + $0x58] ss:$40 sps:$4 sm:$0xff]   ;;  %v2394_v15 = vld [vmem:[%s3204_s1 + $0x230] sm:$0xff]  }
  0x1d   :  { %v2395_v16 = vld [vmem:[%s3205_s0 + $0xac] ss:$40 sps:$4 sm:$0xff]  }
  0x1f   :  { %1982 = vmatpush3.bf16.msra.mxu0 %v2318_v17  ;;  %2302 = vmatpush3.bf16.msra.mxu1 %v2318_v17  ;;  %v2397_v17 = vld [vmem:[%s3205_s0 + $0xb4] ss:$40 sps:$4 sm:$0xff]  }
  0x20   :  { %2031 = vmatprep.subr.bf16.mxu1 %v2325_v20  ;;  %2095 = vmatprep.subr.bf16.mxu0 %v2326_v21  ;;  %v2400_v20 = vld [vmem:[%s3205_s0 + $0xb0] ss:$40 sps:$4 sm:$0xff]   ;;  %v2402_v21 = vld [vmem:[%s3204_s1 + $0x1a8] sm:$0xff]  }
  0x22   :  { %1175 = vmatmul.mubr.bf16.vlgmr.msra.gmra.mxu0 %v2319_v18  ;;  %1207 = vmatmul.mubr.bf16.vlgmr.msra.gmra.mxu1 %v2322_v19  ;;  %v2401_v18 = vld [vmem:[%s3204_s1 + $0x1e8] sm:$0xff]  }
  0x23   :  { %2032 = vmatpush3.bf16.msra.mxu1 %v2327_v22  ;;  %2096 = vmatpush3.bf16.msra.mxu0 %v2328_v23  ;;  %v2399_v19 = vld [vmem:[%s3205_s0 + $0xa8] ss:$40 sps:$4 sm:$0xff]  }
  0x24   :  { %2033 = vmatprep.subr.bf16.mxu1 %v2329_v24  ;;  %2097 = vmatprep.subr.bf16.mxu0 %v2330_v25  ;;  %v2403_v22 = vld [vmem:[%s3204_s1 + $0x268] sm:$0xff]   ;;  %v2405_v24 = vld [vmem:[%s3205_s0 + $0xfc] ss:$40 sps:$4 sm:$0xff]  }
  0x25   :  { %1182 = vmatprep.mubr.bf16.mxu0 %v2333_v26  ;;  %1214 = vmatprep.mubr.bf16.mxu1 %v2335_v28  ;;  %v2404_v23 = vld [vmem:[%s3204_s1 + $0x228] sm:$0xff]   ;;  %v2411_v26 = vld [vmem:[%s3204_s1 + $0x1e0] sm:$0xff]  }
  0x26   :  { %v2407_v25 = vld [vmem:[%s3205_s0 + $0x104] ss:$40 sps:$4 sm:$0xff]   ;;  %v2409_v28 = vld [vmem:[%s3205_s0 + $0xf8] ss:$40 sps:$4 sm:$0xff]  }
  0x27   :  { %2034 = vmatpush3.bf16.msra.mxu1 %v2331_v27  ;;  %2098 = vmatpush3.bf16.msra.mxu0 %v2332_v29  ;;  %v2412_v27 = vld [vmem:[%s3204_s1 + $0x1a0] sm:$0xff]  }
  0x28   :  { %2035 = vmatprep.subr.bf16.mxu1 %v2339_v30  ;;  %2099 = vmatprep.subr.bf16.mxu0 %v2340_v32  ;;  %v2413_v29 = vld [vmem:[%s3204_s1 + $0x260] sm:$0xff]   ;;  %v2415_v32 = vld [vmem:[%s3205_s0 + $0x14c] ss:$40 sps:$4 sm:$0xff]  }
  0x29   :  { %v2414_v30 = vld [vmem:[%s3204_s1 + $0x220] sm:$0xff]  }
  0x2a   :  { %1183 = vmatmul.mubr.bf16.gmra.mxu0 %v2337_v31  ;;  %1215 = vmatmul.mubr.bf16.gmra.mxu1 %v2338_v33  ;;  %v2410_v31 = vld [vmem:[%s3205_s0 + $0x100] ss:$40 sps:$4 sm:$0xff]   ;;  %v2417_v33 = vld [vmem:[%s3205_s0 + $0x154] ss:$40 sps:$4 sm:$0xff]  }
  0x2b   :  { %2036 = vmatpush3.bf16.msra.mxu1 %v2341_v34  ;;  %2100 = vmatpush3.bf16.msra.mxu0 %v2342_v35  ;;  %v2421_v34 = vld [vmem:[%s3204_s1 + $0x1d8] sm:$0xff]  }
  0x2c   :  { %2037 = vmatprep.subr.bf16.mxu1 %v2343_v36  ;;  %2101 = vmatprep.subr.bf16.mxu0 %v2344_v37  ;;  %v2422_v35 = vld [vmem:[%s3204_s1 + $0x198] sm:$0xff]  }
  0x2d   :  { %1190 = vmatprep.mubr.bf16.mxu0 %v2347_v38  ;;  %1222 = vmatprep.mubr.bf16.mxu1 %v2349_v40  ;;  %v2423_v36 = vld [vmem:[%s3204_s1 + $0x258] sm:$0xff]   ;;  %v2419_v38 = vld [vmem:[%s3205_s0 + $0x148] ss:$40 sps:$4 sm:$0xff]  }
  0x2e   :  { %v2424_v37 = vld [vmem:[%s3204_s1 + $0x218] sm:$0xff]  }
  0x2f   :  { %2038 = vmatpush3.bf16.msra.mxu1 %v2345_v39  ;;  %2102 = vmatpush3.bf16.msra.mxu0 %v2346_v41  ;;  %v2420_v39 = vld [vmem:[%s3205_s0 + $0x150] ss:$40 sps:$4 sm:$0xff]   ;;  %v2425_v40 = vld [vmem:[%s3205_s0 + $0x19c] ss:$40 sps:$4 sm:$0xff]  }
  0x30   :  { %2039 = vmatprep.subr.bf16.mxu1 %v2353_v42  ;;  %2103 = vmatprep.subr.bf16.mxu0 %v2354_v45  ;;  %v2427_v41 = vld [vmem:[%s3205_s0 + $0x1a4] ss:$40 sps:$4 sm:$0xff]   ;;  %v2431_v42 = vld [vmem:[%s3204_s1 + $0x1d0] sm:$0xff]  }
  0x31   :  { %v2434_v45 = vld [vmem:[%s3204_s1 + $0x210] sm:$0xff]  }
  0x32   :  { %1191 = vmatmul.mubr.bf16.gmra.mxu0 %v2351_v43  ;;  %1223 = vmatmul.mubr.bf16.gmra.mxu1 %v2352_v44  ;;  %v2432_v43 = vld [vmem:[%s3204_s1 + $0x190] sm:$0xff]  }
  0x33   :  { %2040 = vmatpush3.bf16.msra.mxu1 %v2355_v46  ;;  %2104 = vmatpush3.bf16.msra.mxu0 %v2356_v47  ;;  %v2433_v44 = vld [vmem:[%s3204_s1 + $0x250] sm:$0xff]   ;;  %v2429_v46 = vld [vmem:[%s3205_s0 + $0x198] ss:$40 sps:$4 sm:$0xff]  }
  0x34   :  { %2041 = vmatprep.subr.bf16.mxu1 %v2357_v48  ;;  %2105 = vmatprep.subr.bf16.mxu0 %v2358_v49  ;;  %v2430_v47 = vld [vmem:[%s3205_s0 + $0x1a0] ss:$40 sps:$4 sm:$0xff]   ;;  %v2435_v48 = vld [vmem:[%s3205_s0 + $0x1ec] ss:$40 sps:$4 sm:$0xff]  }
  0x35   :  { %1198 = vmatprep.mubr.bf16.mxu0 %v2361_v50  ;;  %1230 = vmatprep.mubr.bf16.mxu1 %v2363_v51  ;;  %v2437_v49 = vld [vmem:[%s3205_s0 + $0x1f4] ss:$40 sps:$4 sm:$0xff]   ;;  %v2441_v50 = vld [vmem:[%s3204_s1 + $0x1c8] sm:$0xff]  }
  0x36   :  { %v2442_v51 = vld [vmem:[%s3204_s1 + $0x188] sm:$0xff]  }
  0x37   :  { %2042 = vmatpush3.bf16.msra.mxu1 %v2359_v52  ;;  %2106 = vmatpush3.bf16.msra.mxu0 %v2360_v53  ;;  %v2443_v52 = vld [vmem:[%s3204_s1 + $0x248] sm:$0xff]  }
  0x38   :  { %2043 = vmatprep.subr.bf16.mxu1 %v2367_v54  ;;  %2107 = vmatprep.subr.bf16.mxu0 %v2368_v57  ;;  %v2444_v53 = vld [vmem:[%s3204_s1 + $0x208] sm:$0xff]   ;;  %v2445_v57 = vld [vmem:[%s3205_s0 + $0x23c] ss:$40 sps:$4 sm:$0xff]  }
  0x39   :  { %v2439_v54 = vld [vmem:[%s3205_s0 + $0x1e8] ss:$40 sps:$4 sm:$0xff]  }
  0x3a   :  { %1199 = vmatmul.mubr.bf16.gmra.mxu0 %v2365_v55  ;;  %1231 = vmatmul.mubr.bf16.gmra.mxu1 %v2366_v56  ;;  %v2440_v55 = vld [vmem:[%s3205_s0 + $0x1f0] ss:$40 sps:$4 sm:$0xff]   ;;  %v2451_v56 = vld [vmem:[%s3204_s1 + $0x1c0] sm:$0xff]  }
  0x3b   :  { %2044 = vmatpush3.bf16.msra.mxu1 %v2369_v58  ;;  %2108 = vmatpush3.bf16.msra.mxu0 %v2370_v59  ;;  %v2447_v58 = vld [vmem:[%s3205_s0 + $0x244] ss:$40 sps:$4 sm:$0xff]  }
  0x3c   :  { %2045 = vmatprep.subr.bf16.mxu1 %v2371_v60  ;;  %2109 = vmatprep.subr.bf16.mxu0 %v2372_v61  ;;  %v2452_v59 = vld [vmem:[%s3204_s1 + $0x180] sm:$0xff]  }
  0x3d   :  { %1271 = vmatprep.mubr.bf16.mxu1 %v2377_v0  ;;  %1368 = vmatprep.mubr.bf16.mxu0 %v2380_v3  ;;  %v2453_v60 = vld [vmem:[%s3204_s1 + $0x240] sm:$0xff]  }
  0x3e   :  { %v2454_v61 = vld [vmem:[%s3204_s1 + $0x200] sm:$0xff]  }
  0x3f   :  { %2046 = vmatpush3.bf16.msra.mxu1 %v2373_v62  ;;  %2110 = vmatpush3.bf16.msra.mxu0 %v2374_v63  ;;  %v2449_v62 = vld [vmem:[%s3205_s0 + $0x238] ss:$40 sps:$4 sm:$0xff]   ;;  %v2457_v0 = vld [vmem:[%s3205_s0 + $0x1c] ss:$40 sps:$4 sm:$0xff]  }
  0x40   :  { %2159 = vmatprep.subr.bf16.mxu1 %v2381_v4  ;;  %2223 = vmatprep.subr.bf16.mxu0 %v2383_v6  ;;  %v2450_v63 = vld [vmem:[%s3205_s0 + $0x240] ss:$40 sps:$4 sm:$0xff]   ;;  %v2461_v4 = vld [vmem:[%s3205_s0 + $0x6c] ss:$40 sps:$4 sm:$0xff]  }
  0x41   :  { %v2458_v3 = vld [vmem:[%s3205_s0 + $0x20] ss:$40 sps:$4 sm:$0xff]  }
  0x42   :  { %1272 = vmatmul.mubr.bf16.vlgmr.msra.gmra.mxu1 %v2375_v1  ;;  %1369 = vmatmul.mubr.bf16.vlgmr.msra.gmra.mxu0 %v2378_v2  ;;  %v2460_v1 = vld [vmem:[%s3205_s0 + $0x24] ss:$40 sps:$4 sm:$0xff]   ;;  %v2455_v2 = vld [vmem:[%s3205_s0 + $0x18] ss:$40 sps:$4 sm:$0xff]   ;;  %v2465_v6 = vld [vmem:[%s3205_s0 + $0x68] ss:$40 sps:$4 sm:$0xff]  }
  0x43   :  { %2160 = vmatpush3.bf16.msra.mxu1 %v2382_v5  ;;  %2224 = vmatpush3.bf16.msra.mxu0 %v2384_v7  ;;  %v2463_v5 = vld [vmem:[%s3205_s0 + $0x74] ss:$40 sps:$4 sm:$0xff]   ;;  %v2466_v7 = vld [vmem:[%s3205_s0 + $0x70] ss:$40 sps:$4 sm:$0xff]  }
  0x44   :  { %1279 = vmatprep.mubr.bf16.mxu1 %v2385_v8  ;;  %1376 = vmatprep.mubr.bf16.mxu0 %v2387_v9  ;;  %v2467_v8 = vld [vmem:[%s3205_s0 + $0xbc] ss:$40 sps:$4 sm:$0xff]  }
  0x45   :  { %2161 = vmatprep.subr.bf16.mxu1 %v2391_v12  ;;  %2225 = vmatprep.subr.bf16.mxu0 %v2393_v14  ;;  %v2469_v9 = vld [vmem:[%s3205_s0 + $0xc4] ss:$40 sps:$4 sm:$0xff]   ;;  %v2477_v14 = vld [vmem:[%s3205_s0 + $0x108] ss:$40 sps:$4 sm:$0xff]  }
  0x46   :  { %v2473_v12 = vld [vmem:[%s3205_s0 + $0x10c] ss:$40 sps:$4 sm:$0xff]  }
  0x47   :  { %2162 = vmatpush3.bf16.msra.mxu1 %v2392_v13  ;;  %2226 = vmatpush3.bf16.msra.mxu0 %v2394_v15  ;;  %v2475_v13 = vld [vmem:[%s3205_s0 + $0x114] ss:$40 sps:$4 sm:$0xff]   ;;  %v2478_v15 = vld [vmem:[%s3205_s0 + $0x110] ss:$40 sps:$4 sm:$0xff]  }
  0x48   :  { %2163 = vmatprep.subr.bf16.mxu1 %v2401_v18  ;;  %2227 = vmatprep.subr.bf16.mxu0 %v2403_v22  ;;  %v2483_v18 = vld [vmem:[%s3205_s0 + $0x158] ss:$40 sps:$4 sm:$0xff]   ;;  %v2489_v22 = vld [vmem:[%s3205_s0 + $0x1a8] ss:$40 sps:$4 sm:$0xff]  }
  0x4a   :  { %1280 = vmatmul.mubr.bf16.gmra.mxu1 %v2389_v10  ;;  %1377 = vmatmul.mubr.bf16.gmra.mxu0 %v2390_v11  ;;  %v2471_v10 = vld [vmem:[%s3205_s0 + $0xb8] ss:$40 sps:$4 sm:$0xff]  }
  0x4b   :  { %1287 = vmatprep.mubr.bf16.mxu1 %v2395_v16  ;;  %1384 = vmatprep.mubr.bf16.mxu0 %v2397_v17  ;;  %v2472_v11 = vld [vmem:[%s3205_s0 + $0xc0] ss:$40 sps:$4 sm:$0xff]   ;;  %v2479_v16 = vld [vmem:[%s3205_s0 + $0x15c] ss:$40 sps:$4 sm:$0xff]  }
  0x4c   :  { %2164 = vmatpush3.bf16.msra.mxu1 %v2402_v21  ;;  %2228 = vmatpush3.bf16.msra.mxu0 %v2404_v23  ;;  %v2481_v17 = vld [vmem:[%s3205_s0 + $0x164] ss:$40 sps:$4 sm:$0xff]   ;;  %v2487_v21 = vld [vmem:[%s3205_s0 + $0x1b4] ss:$40 sps:$4 sm:$0xff]   ;;  %v2490_v23 = vld [vmem:[%s3205_s0 + $0x1b0] ss:$40 sps:$4 sm:$0xff]  }
  0x4d   :  { %2165 = vmatprep.subr.bf16.mxu1 %v2411_v26  ;;  %2229 = vmatprep.subr.bf16.mxu0 %v2413_v29  ;;  %v2495_v26 = vld [vmem:[%s3205_s0 + $0x1f8] ss:$40 sps:$4 sm:$0xff]   ;;  %v2499_v29 = vld [vmem:[%s3205_s0 + $0x254] ss:$40 sps:$4 sm:$0xff]  }
  0x50   :  { %2166 = vmatpush3.bf16.msra.mxu1 %v2412_v27  ;;  %2230 = vmatpush3.bf16.msra.mxu0 %v2414_v30  ;;  %v2496_v27 = vld [vmem:[%s3205_s0 + $0x200] ss:$40 sps:$4 sm:$0xff]  }
  0x51   :  { %2167 = vmatprep.subr.bf16.mxu1 %v2421_v34  ;;  %2231 = vmatprep.subr.bf16.mxu0 %v2423_v36  ;;  %v2501_v30 = vld [vmem:[%s3205_s0 + $0x248] ss:$40 sps:$4 sm:$0xff]  }
  0x52   :  { %1288 = vmatmul.mubr.bf16.gmra.mxu1 %v2399_v19  ;;  %1385 = vmatmul.mubr.bf16.gmra.mxu0 %v2400_v20  ;;  %v2484_v19 = vld [vmem:[%s3205_s0 + $0x160] ss:$40 sps:$4 sm:$0xff]   ;;  %v2485_v20 = vld [vmem:[%s3205_s0 + $0x1ac] ss:$40 sps:$4 sm:$0xff]  }
  0x53   :  { %1295 = vmatprep.mubr.bf16.mxu1 %v2405_v24  ;;  %1392 = vmatprep.mubr.bf16.mxu0 %v2407_v25  ;;  %v2491_v24 = vld [vmem:[%s3205_s0 + $0x1fc] ss:$40 sps:$4 sm:$0xff]  }
  0x54   :  { %2168 = vmatpush3.bf16.msra.mxu1 %v2422_v35  ;;  %2232 = vmatpush3.bf16.msra.mxu0 %v2424_v37  ;;  %v2493_v25 = vld [vmem:[%s3205_s0 + $0x204] ss:$40 sps:$4 sm:$0xff]  }
  0x55   :  { %2169 = vmatprep.subr.bf16.mxu1 %v2431_v42  ;;  %2233 = vmatprep.subr.bf16.mxu0 %v2433_v44 }
  0x58   :  { %2170 = vmatpush3.bf16.msra.mxu1 %v2432_v43  ;;  %2234 = vmatpush3.bf16.msra.mxu0 %v2434_v45 }
  0x59   :  { %2171 = vmatprep.subr.bf16.mxu1 %v2441_v50  ;;  %2235 = vmatprep.subr.bf16.mxu0 %v2443_v52 }
  0x5a   :  { %1296 = vmatmul.mubr.bf16.gmra.mxu1 %v2409_v28  ;;  %1393 = vmatmul.mubr.bf16.gmra.mxu0 %v2410_v31  ;;  %v2497_v28 = vld [vmem:[%s3205_s0 + $0x24c] ss:$40 sps:$4 sm:$0xff]   ;;  %v2502_v31 = vld [vmem:[%s3205_s0 + $0x250] ss:$40 sps:$4 sm:$0xff]  }
  0x5b   :  { %1303 = vmatprep.mubr.bf16.mxu1 %v2415_v32  ;;  %1400 = vmatprep.mubr.bf16.mxu0 %v2417_v33 }
  0x5c   :  { %2172 = vmatpush3.bf16.msra.mxu1 %v2442_v51  ;;  %2236 = vmatpush3.bf16.msra.mxu0 %v2444_v53 }
  0x5d   :  { %2173 = vmatprep.subr.bf16.mxu1 %v2451_v56  ;;  %2237 = vmatprep.subr.bf16.mxu0 %v2453_v60 }
  0x60   :  { %2174 = vmatpush3.bf16.msra.mxu1 %v2452_v59  ;;  %2238 = vmatpush3.bf16.msra.mxu0 %v2454_v61 }
  0x62   :  { %1304 = vmatmul.mubr.bf16.gmra.mxu1 %v2419_v38  ;;  %1401 = vmatmul.mubr.bf16.gmra.mxu0 %v2420_v39 }
  0x63   :  { %1311 = vmatprep.mubr.bf16.mxu1 %v2425_v40  ;;  %1408 = vmatprep.mubr.bf16.mxu0 %v2427_v41 }
  0x6a   :  { %1312 = vmatmul.mubr.bf16.gmra.mxu1 %v2429_v46  ;;  %1409 = vmatmul.mubr.bf16.gmra.mxu0 %v2430_v47 }
  0x6b   :  { %1319 = vmatprep.mubr.bf16.mxu1 %v2435_v48  ;;  %1416 = vmatprep.mubr.bf16.mxu0 %v2437_v49 }
  0x72   :  { %1320 = vmatmul.mubr.bf16.gmra.mxu1 %v2439_v54  ;;  %1417 = vmatmul.mubr.bf16.gmra.mxu0 %v2440_v55 }
  0x73   :  { %1327 = vmatprep.mubr.bf16.mxu1 %v2445_v57  ;;  %1424 = vmatprep.mubr.bf16.mxu0 %v2447_v58 }
  0x7a   :  { %1328 = vmatmul.mubr.bf16.gmra.mxu1 %v2449_v62  ;;  %1425 = vmatmul.mubr.bf16.gmra.mxu0 %v2450_v63 }
  0x7b   :  { %1465 = vmatprep.mubr.bf16.mxu1 %v2457_v0  ;;  %1562 = vmatprep.mubr.bf16.mxu0 %v2460_v1 }
  0x82   :  { %1466 = vmatmul.mubr.bf16.vlgmr.msra.gmra.mxu1 %v2455_v2  ;;  %1563 = vmatmul.mubr.bf16.vlgmr.msra.gmra.mxu0 %v2458_v3 }
  0x83   :  { %1473 = vmatprep.mubr.bf16.mxu1 %v2461_v4  ;;  %1570 = vmatprep.mubr.bf16.mxu0 %v2463_v5 }
  0x8a   :  { %1474 = vmatmul.mubr.bf16.gmra.mxu1 %v2465_v6  ;;  %1571 = vmatmul.mubr.bf16.gmra.mxu0 %v2466_v7 }
  0x8b   :  { %1481 = vmatprep.mubr.bf16.mxu1 %v2467_v8  ;;  %1578 = vmatprep.mubr.bf16.mxu0 %v2469_v9 }
  0x92   :  { %1482 = vmatmul.mubr.bf16.gmra.mxu1 %v2471_v10  ;;  %1579 = vmatmul.mubr.bf16.gmra.mxu0 %v2472_v11 }
  0x93   :  { %1489 = vmatprep.mubr.bf16.mxu1 %v2473_v12  ;;  %1586 = vmatprep.mubr.bf16.mxu0 %v2475_v13 }
  0x9a   :  { %1490 = vmatmul.mubr.bf16.gmra.mxu1 %v2477_v14  ;;  %1587 = vmatmul.mubr.bf16.gmra.mxu0 %v2478_v15 }
  0x9b   :  { %1497 = vmatprep.mubr.bf16.mxu1 %v2479_v16  ;;  %1594 = vmatprep.mubr.bf16.mxu0 %v2481_v17  ;;  %v3030_v16 = vld [vmem:[%s3206_s2] ss:$0 sm:$0xff] }
  0xa2   :  { %1498 = vmatmul.mubr.bf16.gmra.mxu1 %v2483_v18  ;;  %1595 = vmatmul.mubr.bf16.gmra.mxu0 %v2484_v19 }
  0xa3   :  { %1505 = vmatprep.mubr.bf16.mxu1 %v2485_v20  ;;  %1602 = vmatprep.mubr.bf16.mxu0 %v2487_v21 }
  0xaa   :  { %1506 = vmatmul.mubr.bf16.gmra.mxu1 %v2489_v22  ;;  %1603 = vmatmul.mubr.bf16.gmra.mxu0 %v2490_v23 }
  0xab   :  { %1513 = vmatprep.mubr.bf16.mxu1 %v2491_v24  ;;  %1610 = vmatprep.mubr.bf16.mxu0 %v2493_v25 }
  0xb2   :  { %1514 = vmatmul.mubr.bf16.gmra.mxu1 %v2495_v26  ;;  %1611 = vmatmul.mubr.bf16.gmra.mxu0 %v2496_v27 }
  0xb3   :  { %1521 = vmatprep.mubr.bf16.mxu1 %v2497_v28  ;;  %1618 = vmatprep.mubr.bf16.mxu0 %v2499_v29 }
  0xba   :  { %1522 = vmatmul.mubr.bf16.gmra.mxu1 %v2501_v30  ;;  %1619 = vmatmul.mubr.bf16.gmra.mxu0 %v2502_v31 }
  0xe2   :  { %v1983_v32 = vpop.f32.mrf.mxu0  ;;  %v2007_v33 = vpop.f32.mrf.mxu1 }
  0xe4   :  { %v1984_v34 = vpop.f32.mrf.mxu0  ;;  %v2008_v35 = vpop.f32.mrf.mxu1 }
  0xe5   :  { %v1985_v36 = vadd.f32 %v1984_v34, %v1983_v32  ;;  %v3003_v37 = vadd.f32 %v2008_v35, %v2007_v33 }
  0xe6   :  { %v1986_v38 = vpop.f32.mrf.mxu0  ;;  %v2010_v39 = vpop.f32.mrf.mxu1 }
  0xe7   :  { %v1177_v21 = vadd.f32 %v1985_v36, %v3030_v16 }
  0xe8   :  { %v1987_v40 = vpop.f32.mrf.mxu0  ;;  %v2011_v41 = vpop.f32.mrf.mxu1 }
  0xe9   :  { %v3005_v42 = vadd.f32 %v1987_v40, %v1986_v38  ;;  %v3007_v43 = vadd.f32 %v2011_v41, %v2010_v39 }
  0xea   :  { %v1989_v44 = vpop.f32.mrf.mxu0  ;;  %v2013_v45 = vpop.f32.mrf.mxu1 }
  0xec   :  { %v1990_v46 = vpop.f32.mrf.mxu0  ;;  %v2014_v47 = vpop.f32.mrf.mxu1 }
  0xed   :  { %v1991_v48 = vadd.f32 %v1990_v46, %v1989_v44  ;;  %v3009_v49 = vadd.f32 %v2014_v47, %v2013_v45 }
  0xee   :  { %v1992_v50 = vpop.f32.mrf.mxu0  ;;  %v2016_v51 = vpop.f32.mrf.mxu1 }
  0xef   :  { %v1185_v34 = vadd.f32 %v1991_v48, %v3030_v16 }
  0xf0   :  { %v1993_v52 = vpop.f32.mrf.mxu0  ;;  %v2017_v53 = vpop.f32.mrf.mxu1 }
  0xf1   :  { %v3011_v54 = vadd.f32 %v1993_v52, %v1992_v50  ;;  %v3013_v55 = vadd.f32 %v2017_v53, %v2016_v51 }
  0xf2   :  { %v1995_v56 = vpop.f32.mrf.mxu0  ;;  %v2019_v57 = vpop.f32.mrf.mxu1 }
  0xf4   :  { %v1996_v58 = vpop.f32.mrf.mxu0  ;;  %v2020_v59 = vpop.f32.mrf.mxu1 }
  0xf5   :  { %v1997_v60 = vadd.f32 %v1996_v58, %v1995_v56  ;;  %v3015_v61 = vadd.f32 %v2020_v59, %v2019_v57 }
  0xf6   :  { %v1998_v62 = vpop.f32.mrf.mxu0  ;;  %v2022_v63 = vpop.f32.mrf.mxu1 }
  0xf7   :  { %v1193_v52 = vadd.f32 %v1997_v60, %v3030_v16 }
  0xf8   :  { %v1999_v0 = vpop.f32.mrf.mxu0  ;;  %v2023_v1 = vpop.f32.mrf.mxu1 }
  0xf9   :  { %v3017_v2 = vadd.f32 %v1999_v0, %v1998_v62  ;;  %v3019_v3 = vadd.f32 %v2023_v1, %v2022_v63 }
  0xfa   :  { %v2001_v4 = vpop.f32.mrf.mxu0  ;;  %v2025_v5 = vpop.f32.mrf.mxu1 }
  0xfc   :  { %v2002_v6 = vpop.f32.mrf.mxu0  ;;  %v2026_v7 = vpop.f32.mrf.mxu1 }
  0xfd   :  { %v2003_v8 = vadd.f32 %v2002_v6, %v2001_v4  ;;  %v3021_v9 = vadd.f32 %v2026_v7, %v2025_v5 }
  0xfe   :  { %v2004_v10 = vpop.f32.mrf.mxu0  ;;  %v2028_v11 = vpop.f32.mrf.mxu1 }
  0xff   :  { %v1201_v6 = vadd.f32 %v2003_v8, %v3030_v16  ;;  %v1209_v8 = vadd.f32 %v3003_v37, %v3030_v16  ;;  %v1217_v37 = vadd.f32 %v3009_v49, %v3030_v16  ;;  %v1225_v49 = vadd.f32 %v3015_v61, %v3030_v16 }
 0x100   :  { %v2005_v12 = vpop.f32.mrf.mxu0  ;;  %v2029_v13 = vpop.f32.mrf.mxu1  ;;  %v1233_v61 = vadd.f32 %v3021_v9, %v3030_v16  ;;  %v1180_v9 = vadd.f32 %v3005_v42, %v3030_v16 }
 0x101   :  { %v3023_v14 = vadd.f32 %v2005_v12, %v2004_v10  ;;  %v3025_v15 = vadd.f32 %v2029_v13, %v2028_v11 }
 0x102   :  { %v2047_v17 = vpop.f32.mrf.mxu1  ;;  %v2111_v18 = vpop.f32.mrf.mxu0 }
 0x103   :  { %3208 = vst [vmem:[#allocation2_spill] sm:$0xff] %v3025_v15 }
 0x104   :  { %v2048_v19 = vpop.f32.mrf.mxu1  ;;  %v2112_v20 = vpop.f32.mrf.mxu0 }
 0x105   :  { %v2049_v22 = vadd.f32 %v2048_v19, %v2047_v17  ;;  %v2113_v23 = vadd.f32 %v2112_v20, %v2111_v18 }
 0x106   :  { %v3033_v24 = vpop.f32.mrf.mxu1  ;;  %v3035_v25 = vpop.f32.mrf.mxu0 }
 0x107   :  { %v1274_v26 = vadd.f32 %v2049_v22, %v1177_v21 }
 0x108   :  { %v3037_v27 = vpop.f32.mrf.mxu1  ;;  %v3039_v28 = vpop.f32.mrf.mxu0 }
 0x109   :  { %v3041_v29 = vadd.f32 %v2113_v23, %v1274_v26 }
 0x10a   :  { %v2053_v30 = vpop.f32.mrf.mxu1  ;;  %v2117_v31 = vpop.f32.mrf.mxu0 }
 0x10c   :  { %v2054_v32 = vpop.f32.mrf.mxu1  ;;  %v2118_v33 = vpop.f32.mrf.mxu0 }
 0x10d   :  { %v2055_v35 = vadd.f32 %v2054_v32, %v2053_v30  ;;  %v2119_v36 = vadd.f32 %v2118_v33, %v2117_v31 }
 0x10e   :  { %v3044_v38 = vpop.f32.mrf.mxu1  ;;  %v3046_v39 = vpop.f32.mrf.mxu0 }
 0x10f   :  { %v1282_v40 = vadd.f32 %v2055_v35, %v1185_v34 }
 0x110   :  { %v3048_v41 = vpop.f32.mrf.mxu1  ;;  %v3050_v44 = vpop.f32.mrf.mxu0 }
 0x111   :  { %v3052_v45 = vadd.f32 %v2119_v36, %v1282_v40 }
 0x112   :  { %v2059_v46 = vpop.f32.mrf.mxu1  ;;  %v2123_v47 = vpop.f32.mrf.mxu0 }
 0x114   :  { %v2060_v50 = vpop.f32.mrf.mxu1  ;;  %v2124_v51 = vpop.f32.mrf.mxu0 }
 0x115   :  { %v2061_v48 = vadd.f32 %v2060_v50, %v2059_v46  ;;  %v2125_v53 = vadd.f32 %v2124_v51, %v2123_v47 }
 0x116   :  { %v3055_v56 = vpop.f32.mrf.mxu1  ;;  %v3057_v57 = vpop.f32.mrf.mxu0 }
 0x117   :  { %v1290_v58 = vadd.f32 %v2061_v48, %v1193_v52 }
 0x118   :  { %v3059_v59 = vpop.f32.mrf.mxu1  ;;  %v3061_v62 = vpop.f32.mrf.mxu0 }
 0x119   :  { %v3063_v63 = vadd.f32 %v2125_v53, %v1290_v58 }
 0x11a   :  { %v2065_v0 = vpop.f32.mrf.mxu1  ;;  %v2129_v1 = vpop.f32.mrf.mxu0 }
 0x11c   :  { %v2066_v4 = vpop.f32.mrf.mxu1  ;;  %v2130_v5 = vpop.f32.mrf.mxu0 }
 0x11d   :  { %v2067_v60 = vadd.f32 %v2066_v4, %v2065_v0  ;;  %v2131_v7 = vadd.f32 %v2130_v5, %v2129_v1 }
 0x11e   :  { %v3066_v10 = vpop.f32.mrf.mxu1  ;;  %v3068_v11 = vpop.f32.mrf.mxu0 }
 0x11f   :  { %v1298_v12 = vadd.f32 %v2067_v60, %v1201_v6 }
 0x120   :  { %v3070_v13 = vpop.f32.mrf.mxu1  ;;  %v3072_v17 = vpop.f32.mrf.mxu0 }
 0x121   :  { %v3074_v18 = vadd.f32 %v2131_v7, %v1298_v12 }
 0x122   :  { %v2071_v19 = vpop.f32.mrf.mxu1  ;;  %v2135_v20 = vpop.f32.mrf.mxu0 }
 0x124   :  { %v2072_v21 = vpop.f32.mrf.mxu1  ;;  %v2136_v22 = vpop.f32.mrf.mxu0 }
 0x125   :  { %v2073_v23 = vadd.f32 %v2072_v21, %v2071_v19  ;;  %v2137_v26 = vadd.f32 %v2136_v22, %v2135_v20 }
 0x126   :  { %v3078_v30 = vpop.f32.mrf.mxu1  ;;  %v3080_v31 = vpop.f32.mrf.mxu0 }
 0x127   :  { %v1306_v32 = vadd.f32 %v2073_v23, %v1209_v8 }
 0x128   :  { %v3082_v33 = vpop.f32.mrf.mxu1  ;;  %v3084_v34 = vpop.f32.mrf.mxu0 }
 0x129   :  { %v3086_v35 = vadd.f32 %v2137_v26, %v1306_v32 }
 0x12a   :  { %v2077_v36 = vpop.f32.mrf.mxu1  ;;  %v2141_v40 = vpop.f32.mrf.mxu0 }
 0x12c   :  { %v2078_v46 = vpop.f32.mrf.mxu1  ;;  %v2142_v47 = vpop.f32.mrf.mxu0 }
 0x12d   :  { %v2079_v50 = vadd.f32 %v2078_v46, %v2077_v36  ;;  %v2143_v51 = vadd.f32 %v2142_v47, %v2141_v40 }
 0x12e   :  { %v3090_v52 = vpop.f32.mrf.mxu1  ;;  %v3092_v48 = vpop.f32.mrf.mxu0 }
 0x12f   :  { %v1314_v53 = vadd.f32 %v2079_v50, %v1217_v37 }
 0x130   :  { %v3094_v58 = vpop.f32.mrf.mxu1  ;;  %v3096_v0 = vpop.f32.mrf.mxu0 }
 0x131   :  { %v3098_v1 = vadd.f32 %v2143_v51, %v1314_v53 }
 0x132   :  { %v2083_v4 = vpop.f32.mrf.mxu1  ;;  %v2147_v5 = vpop.f32.mrf.mxu0 }
 0x134   :  { %v2084_v6 = vpop.f32.mrf.mxu1  ;;  %v2148_v60 = vpop.f32.mrf.mxu0 }
 0x135   :  { %v2085_v7 = vadd.f32 %v2084_v6, %v2083_v4  ;;  %v2149_v12 = vadd.f32 %v2148_v60, %v2147_v5  ;;  %v2052_v5 = vadd.f32 %v3037_v27, %v3033_v24 }
 0x136   :  { %v3102_v19 = vpop.f32.mrf.mxu1  ;;  %v3104_v20 = vpop.f32.mrf.mxu0 }
 0x137   :  { %v1322_v21 = vadd.f32 %v2085_v7, %v1225_v49 }
 0x138   :  { %v3106_v22 = vpop.f32.mrf.mxu1  ;;  %v3108_v8 = vpop.f32.mrf.mxu0 }
 0x139   :  { %v3110_v23 = vadd.f32 %v2149_v12, %v1322_v21  ;;  %v1277_v21 = vadd.f32 %v2052_v5, %v1180_v9  ;;  %v1188_v5 = vadd.f32 %v3011_v54, %v3030_v16  ;;  %v2064_v54 = vadd.f32 %v3059_v59, %v3055_v56 }
 0x13a   :  { %v2089_v26 = vpop.f32.mrf.mxu1  ;;  %v2153_v32 = vpop.f32.mrf.mxu0 }
 0x13c   :  { %v2090_v36 = vpop.f32.mrf.mxu1  ;;  %v2154_v40 = vpop.f32.mrf.mxu0 }
 0x13d   :  { %v2091_v46 = vadd.f32 %v2090_v36, %v2089_v26  ;;  %v2155_v47 = vadd.f32 %v2154_v40, %v2153_v32  ;;  %v2116_v40 = vadd.f32 %v3039_v28, %v3035_v25 }
 0x13e   :  { %v3114_v37 = vpop.f32.mrf.mxu1  ;;  %v3116_v50 = vpop.f32.mrf.mxu0 }
 0x13f   :  { %3209 = vst [vmem:[#allocation3_spill] sm:$0xff] %v3116_v50  ;;  %v1330_v51 = vadd.f32 %v2091_v46, %v1233_v61  ;;  %v1374_v27 = vadd.f32 %v2116_v40, %v1277_v21 }
 0x140   :  { %v3118_v53 = vpop.f32.mrf.mxu1  ;;  %v3120_v4 = vpop.f32.mrf.mxu0 }
 0x141   :  { %3210 = vst [vmem:[#allocation4_spill] sm:$0xff] %v3120_v4  ;;  %v3124_v6 = vadd.f32 %v2155_v47, %v1330_v51  ;;  %v2058_v47 = vadd.f32 %v3048_v41, %v3044_v38  ;;  %v2122_v38 = vadd.f32 %v3050_v44, %v3046_v39 }
 0x142   :  { %v2175_v60 = vpop.f32.mrf.mxu1  ;;  %v2239_v49 = vpop.f32.mrf.mxu0 }
 0x143   :  { %3211 = vst [vmem:[#allocation5_spill] sm:$0xff] %v3124_v6  ;;  %v1285_v28 = vadd.f32 %v2058_v47, %v1188_v5 }
 0x144   :  { %v2176_v7 = vpop.f32.mrf.mxu1  ;;  %v2240_v12 = vpop.f32.mrf.mxu0 }
 0x145   :  { %v2177_v26 = vadd.f32 %v2176_v7, %v2175_v60  ;;  %v2241_v51 = vadd.f32 %v2240_v12, %v2239_v49 }
 0x146   :  { %v2178_v32 = vpop.f32.mrf.mxu1  ;;  %v2242_v36 = vpop.f32.mrf.mxu0 }
 0x147   :  { %v1468_v61 = vadd.f32 %v2177_v26, %v3041_v29 }
 0x148   :  { %v2179_v46 = vpop.f32.mrf.mxu1  ;;  %v2243_v24 = vpop.f32.mrf.mxu0 }
 0x149   :  { %v2180_v6 = vadd.f32 %v2179_v46, %v2178_v32  ;;  %v1565_v60 = vadd.f32 %v2241_v51, %v1468_v61  ;;  %v2244_v7 = vadd.f32 %v2243_v24, %v2242_v36  ;;  %v1382_v36 = vadd.f32 %v2122_v38, %v1285_v28 }
 0x14a   :  { %v2181_v42 = vpop.f32.mrf.mxu1  ;;  %v2245_v4 = vpop.f32.mrf.mxu0 }
 0x14b   :  { %v1471_v9 = vadd.f32 %v2180_v6, %v1374_v27  ;;  %v1627_v41 = vmax.f32 %v1565_v60, 0.0 }
 0x14c   :  { %v2182_v50 = vpop.f32.mrf.mxu1  ;;  %v2246_v25 = vpop.f32.mrf.mxu0 }
 0x14d   :  { %v1568_v29 = vadd.f32 %v2244_v7, %v1471_v9  ;;  %v2183_v26 = vadd.f32 %v2182_v50, %v2181_v42  ;;  %v2247_v61 = vadd.f32 %v2246_v25, %v2245_v4  ;;  %v1196_v50 = vadd.f32 %v3017_v2, %v3030_v16 }
 0x14e   :  { %v2184_v15 = vpop.f32.mrf.mxu1  ;;  %v2248_v21 = vpop.f32.mrf.mxu0 }
 0x14f   :  { %v1628_v49 = vmax.f32 %v1568_v29, 0.0  ;;  %v1476_v12 = vadd.f32 %v2183_v26, %v3052_v45  ;;  %v1293_v47 = vadd.f32 %v2064_v54, %v1196_v50  ;;  %v2070_v29 = vadd.f32 %v3070_v13, %v3066_v10 }
 0x150   :  { %v2185_v32 = vpop.f32.mrf.mxu1  ;;  %v2249_v6 = vpop.f32.mrf.mxu0 }
 0x151   :  { %v1923_v40 = vpack.c.bf16 %v1628_v49, %v1627_v41  ;;  %v2186_v46 = vadd.f32 %v2185_v32, %v2184_v15  ;;  %v1573_v39 = vadd.f32 %v2247_v61, %v1476_v12  ;;  %v2250_v45 = vadd.f32 %v2249_v6, %v2248_v21 }
 0x152   :  { %v2187_v24 = vpop.f32.mrf.mxu1  ;;  %v2251_v27 = vpop.f32.mrf.mxu0  ;;  %v2128_v15 = vadd.f32 %v3061_v62, %v3057_v57  ;;  %v1204_v57 = vadd.f32 %v3023_v14, %v3030_v16  ;;  %v2134_v61 = vadd.f32 %v3072_v17, %v3068_v11 }
 0x153   :  { %1924 = vst [vmem:[%s3207_s3] sm:$0xff] %v1923_v40   ;;  %v1479_v44 = vadd.f32 %v2186_v46, %v1382_v36  ;;  %v1629_v2 = vmax.f32 %v1573_v39, 0.0 }
 0x154   :  { %v2188_v56 = vpop.f32.mrf.mxu1  ;;  %v2252_v59 = vpop.f32.mrf.mxu0  ;;  %v1390_v7 = vadd.f32 %v2128_v15, %v1293_v47  ;;  %v1301_v6 = vadd.f32 %v2070_v29, %v1204_v57 }
 0x155   :  { %v1576_v51 = vadd.f32 %v2250_v45, %v1479_v44  ;;  %v2189_v42 = vadd.f32 %v2188_v56, %v2187_v24  ;;  %v2253_v21 = vadd.f32 %v2252_v59, %v2251_v27  ;;  %v2076_v24 = vadd.f32 %v3082_v33, %v3078_v30 }
 0x156   :  { %v2190_v4 = vpop.f32.mrf.mxu1  ;;  %v2254_v5 = vpop.f32.mrf.mxu0  ;;  %v1398_v44 = vadd.f32 %v2134_v61, %v1301_v6  ;;  %v1212_v59 = vadd.f32 %v3007_v43, %v3030_v16  ;;  %v2088_v61 = vadd.f32 %v3106_v22, %v3102_v19 }
 0x157   :  { %v1630_v60 = vmax.f32 %v1576_v51, 0.0  ;;  %v1484_v9 = vadd.f32 %v2189_v42, %v3063_v63 }
 0x158   :  { %v2191_v25 = vpop.f32.mrf.mxu1  ;;  %v2255_v28 = vpop.f32.mrf.mxu0  ;;  %v1309_v15 = vadd.f32 %v2076_v24, %v1212_v59 }
 0x159   :  { %v1928_v26 = vpack.c.bf16 %v1630_v60, %v1629_v2  ;;  %v2192_v38 = vadd.f32 %v2191_v25, %v2190_v4  ;;  %v1581_v62 = vadd.f32 %v2253_v21, %v1484_v9  ;;  %v2256_v12 = vadd.f32 %v2255_v28, %v2254_v5 }
 0x15a   :  { %v2193_v41 = vpop.f32.mrf.mxu1  ;;  %v2257_v49 = vpop.f32.mrf.mxu0  ;;  %v2140_v2 = vadd.f32 %v3084_v34, %v3080_v31  ;;  %v2082_v21 = vadd.f32 %v3094_v58, %v3090_v52  ;;  %v1220_v31 = vadd.f32 %v3013_v55, %v3030_v16 }
 0x15b   :  { %1960 = vst [vmem:[%s3207_s3 + $0x8] sm:$0xff] %v1928_v26   ;;  %v1487_v63 = vadd.f32 %v2192_v38, %v1390_v7  ;;  %v1631_v46 = vmax.f32 %v1581_v62, 0.0 }
 0x15c   :  { %v2194_v54 = vpop.f32.mrf.mxu1  ;;  %v2258_v32 = vpop.f32.mrf.mxu0  ;;  %v1406_v28 = vadd.f32 %v2140_v2, %v1309_v15 }
 0x15d   :  { %v1584_v36 = vadd.f32 %v2256_v12, %v1487_v63  ;;  %v2195_v10 = vadd.f32 %v2194_v54, %v2193_v41  ;;  %v2259_v47 = vadd.f32 %v2258_v32, %v2257_v49  ;;  %v1317_v32 = vadd.f32 %v2082_v21, %v1220_v31 }
 0x15e   :  { %v2196_v13 = vpop.f32.mrf.mxu1  ;;  %v2260_v40 = vpop.f32.mrf.mxu0 }
 0x15f   :  { %v1632_v50 = vmax.f32 %v1584_v36, 0.0  ;;  %v1492_v14 = vadd.f32 %v2195_v10, %v3074_v18  ;;  %v2146_v10 = vadd.f32 %v3096_v0, %v3092_v48 }
 0x160   :  { %v2197_v27 = vpop.f32.mrf.mxu1  ;;  %v2261_v39 = vpop.f32.mrf.mxu0 }
 0x161   :  { %v1933_v45 = vpack.c.bf16 %v1632_v50, %v1631_v46  ;;  %v2198_v56 = vadd.f32 %v2197_v27, %v2196_v13  ;;  %v1589_v11 = vadd.f32 %v2259_v47, %v1492_v14  ;;  %v2262_v18 = vadd.f32 %v2261_v39, %v2260_v40 }
 0x162   :  { %v2199_v51 = vpop.f32.mrf.mxu1  ;;  %v2263_v42 = vpop.f32.mrf.mxu0  ;;  %v1414_v14 = vadd.f32 %v2146_v10, %v1317_v32 }
 0x163   :  { %1961 = vst [vmem:[%s3207_s3 + $0x10] sm:$0xff] %v1933_v45   ;;  %v1495_v17 = vadd.f32 %v2198_v56, %v1398_v44  ;;  %v1633_v43 = vmax.f32 %v1589_v11, 0.0  ;;  %v1228_v44 = vadd.f32 %v3019_v3, %v3030_v16 }
 0x164   :  { %v2200_v30 = vpop.f32.mrf.mxu1  ;;  %v2264_v33 = vpop.f32.mrf.mxu0 }
 0x165   :  { %v1592_v4 = vadd.f32 %v2262_v18, %v1495_v17  ;;  %v2201_v5 = vadd.f32 %v2200_v30, %v2199_v51  ;;  %v2265_v41 = vadd.f32 %v2264_v33, %v2263_v42  ;;  %v1325_v56 = vadd.f32 %v2088_v61, %v1228_v44 }
 0x166   :  { %v2202_v60 = vpop.f32.mrf.mxu1  ;;  %v2266_v9 = vpop.f32.mrf.mxu0  ;;  %v2152_v42 = vadd.f32 %v3108_v8, %v3104_v20 }
 0x167   :  { %v1634_v7 = vmax.f32 %v1592_v4, 0.0  ;;  %v1500_v25 = vadd.f32 %v2201_v5, %v3086_v35  ;;  %v2094_v5 = vadd.f32 %v3118_v53, %v3114_v37 }
 0x168   :  { %v2203_v29 = vpop.f32.mrf.mxu1  ;;  %v2267_v26 = vpop.f32.mrf.mxu0  ;;  %v1422_v30 = vadd.f32 %v2152_v42, %v1325_v56 }
 0x169   :  { %v1938_v38 = vpack.c.bf16 %v1634_v7, %v1633_v43  ;;  %v2204_v49 = vadd.f32 %v2203_v29, %v2202_v60  ;;  %v1597_v34 = vadd.f32 %v2265_v41, %v1500_v25  ;;  %v2268_v63 = vadd.f32 %v2267_v26, %v2266_v9  ;;  %v3212_v25 = vld [vmem:[#allocation2_spill] sm:$0xff] }
 0x16a   :  { %v2205_v57 = vpop.f32.mrf.mxu1  ;;  %v2269_v62 = vpop.f32.mrf.mxu0  ;;  %v1236_v20 = vadd.f32 %v3212_v25, %v3030_v16  ;;  %v3215_v16 = vld [vmem:[#allocation5_spill] sm:$0xff] }
 0x16b   :  { %1962 = vst [vmem:[%s3207_s3 + $0x18] sm:$0xff] %v1938_v38   ;;  %v1503_v35 = vadd.f32 %v2204_v49, %v1406_v28  ;;  %v1635_v13 = vmax.f32 %v1597_v34, 0.0  ;;  %v3213_v49 = vld [vmem:[#allocation3_spill] sm:$0xff] }
 0x16c   :  { %v2206_v12 = vpop.f32.mrf.mxu1  ;;  %v2270_v54 = vpop.f32.mrf.mxu0  ;;  %v1333_v21 = vadd.f32 %v2094_v5, %v1236_v20 }
 0x16d   :  { %v1600_v6 = vadd.f32 %v2268_v63, %v1503_v35  ;;  %v2207_v52 = vadd.f32 %v2206_v12, %v2205_v57  ;;  %v2271_v27 = vadd.f32 %v2270_v54, %v2269_v62  ;;  %v3214_v57 = vld [vmem:[#allocation4_spill] sm:$0xff] }
 0x16e   :  { %v2208_v58 = vpop.f32.mrf.mxu1  ;;  %v2272_v36 = vpop.f32.mrf.mxu0  ;;  %v2158_v62 = vadd.f32 %v3214_v57, %v3213_v49 }
 0x16f   :  { %v1636_v40 = vmax.f32 %v1600_v6, 0.0  ;;  %v1508_v55 = vadd.f32 %v2207_v52, %v3098_v1 }
 0x170   :  { %v2209_v46 = vpop.f32.mrf.mxu1  ;;  %v2273_v50 = vpop.f32.mrf.mxu0  ;;  %v1430_v54 = vadd.f32 %v2158_v62, %v1333_v21 }
 0x171   :  { %v1943_v24 = vpack.c.bf16 %v1636_v40, %v1635_v13  ;;  %v2210_v39 = vadd.f32 %v2209_v46, %v2208_v58  ;;  %v1605_v48 = vadd.f32 %v2271_v27, %v1508_v55  ;;  %v2274_v1 = vadd.f32 %v2273_v50, %v2272_v36 }
 0x172   :  { %v2211_v45 = vpop.f32.mrf.mxu1  ;;  %v2275_v47 = vpop.f32.mrf.mxu0 }
 0x173   :  { %1963 = vst [vmem:[%s3207_s3 + $0x20] sm:$0xff] %v1943_v24   ;;  %v1511_v0 = vadd.f32 %v2210_v39, %v1414_v14  ;;  %v1637_v3 = vmax.f32 %v1605_v48, 0.0 }
 0x174   :  { %v2212_v19 = vpop.f32.mrf.mxu1  ;;  %v2276_v22 = vpop.f32.mrf.mxu0 }
 0x175   :  { %v1608_v59 = vadd.f32 %v2274_v1, %v1511_v0  ;;  %v2213_v51 = vadd.f32 %v2212_v19, %v2211_v45  ;;  %v2277_v60 = vadd.f32 %v2276_v22, %v2275_v47 }
 0x176   :  { %v2214_v11 = vpop.f32.mrf.mxu1  ;;  %v2278_v17 = vpop.f32.mrf.mxu0 }
 0x177   :  { %v1638_v18 = vmax.f32 %v1608_v59, 0.0  ;;  %v1516_v15 = vadd.f32 %v2213_v51, %v3110_v23 }
 0x178   :  { %v2215_v33 = vpop.f32.mrf.mxu1  ;;  %v2279_v4 = vpop.f32.mrf.mxu0 }
 0x179   :  { %v1948_v2 = vpack.c.bf16 %v1638_v18, %v1637_v3  ;;  %v2216_v9 = vadd.f32 %v2215_v33, %v2214_v11  ;;  %v1613_v8 = vadd.f32 %v2277_v60, %v1516_v15  ;;  %v2280_v28 = vadd.f32 %v2279_v4, %v2278_v17 }
 0x17a   :  { %v2217_v43 = vpop.f32.mrf.mxu1  ;;  %v2281_v7 = vpop.f32.mrf.mxu0 }
 0x17b   :  { %1964 = vst [vmem:[%s3207_s3 + $0x28] sm:$0xff] %v1948_v2   ;;  %v1519_v23 = vadd.f32 %v2216_v9, %v1422_v30  ;;  %v1639_v31 = vmax.f32 %v1613_v8, 0.0 }
 0x17c   :  { %v2218_v29 = vpop.f32.mrf.mxu1  ;;  %v2282_v26 = vpop.f32.mrf.mxu0 }
 0x17d   :  { %v1616_v38 = vadd.f32 %v2280_v28, %v1519_v23  ;;  %v2219_v37 = vadd.f32 %v2218_v29, %v2217_v43  ;;  %v2283_v6 = vadd.f32 %v2282_v26, %v2281_v7 }
 0x17e   :  { %v2220_v53 = vpop.f32.mrf.mxu1  ;;  %v2284_v41 = vpop.f32.mrf.mxu0 }
 0x17f   :  { %v1640_v34 = vmax.f32 %v1616_v38, 0.0  ;;  %v1524_v35 = vadd.f32 %v2219_v37, %v3215_v16 }
 0x180   :  { %v2221_v63 = vpop.f32.mrf.mxu1  ;;  %v2285_v12 = vpop.f32.mrf.mxu0 }
 0x181   :  { %v1953_v32 = vpack.c.bf16 %v1640_v34, %v1639_v31  ;;  %v2222_v52 = vadd.f32 %v2221_v63, %v2220_v53  ;;  %v1621_v58 = vadd.f32 %v2283_v6, %v1524_v35  ;;  %v2286_v10 = vadd.f32 %v2285_v12, %v2284_v41 }
 0x183   :  { %1965 = vst [vmem:[%s3207_s3 + $0x30] sm:$0xff] %v1953_v32   ;;  %v1527_v36 = vadd.f32 %v2222_v52, %v1430_v54  ;;  %v1641_v40 = vmax.f32 %v1621_v58, 0.0 }
 0x185   :  { %v1624_v13 = vadd.f32 %v2286_v10, %v1527_v36 }
 0x187   :  { %v1642_v55 = vmax.f32 %v1624_v13, 0.0 }
 0x189   :  { %v1958_v61 = vpack.c.bf16 %v1642_v55, %v1641_v40 }
 0x18b   :  { %1966 = vst [vmem:[%s3207_s3 + $0x38] sm:$0xff] %v1958_v61  }

// kernel: facebox_forward.35
= control target key start
LH: loop header
LB: loop body
LE: loop exit
PB: predicated region body
PF: predicated region fallthrough
CT: control target
= control target key end

     0   :  { %vm171_vm0 = vcmask 257024   ;;  %s304_s1 = inlined_call_operand.vmem [shape: bf16[128,32], index: 1, kind: input, shape index: {}]   ;;  %s305_s0 = inlined_call_operand.vmem [shape: bf16[32,128], index: 0, kind: input, shape index: {}]   ;;  %s306_s2 = inlined_call_operand.vmem [shape: f32[1,32], index: 2, kind: input, shape index: {}]   ;;  %s307_s3 = inlined_call_operand.vmem [shape: bf16[32,32], index: 3, kind: output, shape index: {}]  }
   0x1   :  { %v229_v0 = vld [vmem:[%s304_s1 + $0x38] sm:$0xff]   ;;  %v230_v1 = vld [vmem:[%s304_s1 + $0x30] sm:$0xff]   ;;  %v231_v2 = vld [vmem:[%s304_s1 + $0x28] sm:$0xff]  }
   0x2   :  { %209 = vmatprep.subr.bf16.mxu0 %v229_v0  ;;  %v232_v3 = vld [vmem:[%s304_s1 + $0x20] sm:$0xff]   ;;  %v233_v5 = vld [vmem:[%s304_s1 + $0x18] sm:$0xff]   ;;  %v234_v6 = vld [vmem:[%s304_s1 + $0x10] sm:$0xff]  }
   0x3   :  { %210 = vmatpush3.bf16.msra.mxu0 %v229_v0  ;;  %v237_v4 = vld [vmem:[%s305_s0] sm:$0xff]   ;;  %v235_v7 = vld [vmem:[%s304_s1 + $0x8] sm:$0xff]  }
   0x4   :  { %211 = vmatprep.subr.bf16.mxu0 %v230_v1  ;;  %225 = vmatprep.mubr.bf16.mxu0 %v237_v4  ;;  %v236_v8 = vld [vmem:[%s304_s1] sm:$0xff]   ;;  %v238_v9 = vld [vmem:[%s305_s0 + $0x8] sm:$0xff]  }
   0x5   :  { %v180_v10 = vld [vmem:[%s306_s2] ss:$0 sm:$0xff] }
   0x7   :  { %212 = vmatpush3.bf16.msra.mxu0 %v230_v1 }
   0x8   :  { %213 = vmatprep.subr.bf16.mxu0 %v231_v2 }
   0xb   :  { %214 = vmatpush3.bf16.msra.mxu0 %v231_v2 }
   0xc   :  { %215 = vmatprep.subr.bf16.mxu0 %v232_v3 }
   0xf   :  { %216 = vmatpush3.bf16.msra.mxu0 %v232_v3 }
  0x10   :  { %217 = vmatprep.subr.bf16.mxu0 %v233_v5 }
  0x13   :  { %218 = vmatpush3.bf16.msra.mxu0 %v233_v5 }
  0x14   :  { %219 = vmatprep.subr.bf16.mxu0 %v234_v6 }
  0x17   :  { %220 = vmatpush3.bf16.msra.mxu0 %v234_v6 }
  0x18   :  { %221 = vmatprep.subr.bf16.mxu0 %v235_v7 }
  0x1b   :  { %222 = vmatpush3.bf16.msra.mxu0 %v235_v7 }
  0x1c   :  { %223 = vmatprep.subr.bf16.mxu0 %v236_v8 }
  0x1f   :  { %224 = vmatpush3.bf16.msra.mxu0 %v236_v8 }
  0x22   :  { %226 = vmatmul.mubr.bf16.vlgmr.msra.gmra.mxu0 %v238_v9 }
  0xe2   :  { %v227_v11 = vpop.f32.mrf.mxu0 }
  0xe3   :  { %v145_v12 = vadd.f32 %v227_v11, %v180_v10 }
  0xe4   :  { %v136_v13 = vpop.f32.mrf.mxu0 }
  0xe5   :  { %v153_v14 = vmax.f32 %v145_v12, 0.0  ;;  %v137_v15 = vadd.f32 %v180_v10, %v136_v13 }
  0xe6   :  { %v228_v16 = vpop.f32.mrf.mxu0 }
  0xe7   :  { %v197_v17 = vpack.c.bf16 %v153_v14, %v153_v14  ;;  %v151_v18 = vmax.f32 %v137_v15, 0.0  ;;  %v148_v19 = vadd.f32 %v228_v16, %v180_v10 }
  0xe8   :  { %v139_v20 = vpop.f32.mrf.mxu0 }
  0xe9   :  { %174 = vst.msk [vmem:[%s307_s3 + $0x8] sm:$0xf] %vm171_vm0, %v197_v17  ;;  %v195_v21 = vpack.c.bf16 %v151_v18, %v151_v18  ;;  %v154_v22 = vmax.f32 %v148_v19, 0.0  ;;  %v140_v23 = vadd.f32 %v180_v10, %v139_v20 }
  0xeb   :  { %172 = vst.msk [vmem:[%s307_s3] sm:$0xf] %vm171_vm0, %v195_v21  ;;  %v198_v24 = vpack.c.bf16 %v154_v22, %v154_v22  ;;  %v152_v25 = vmax.f32 %v140_v23, 0.0 }
  0xed   :  { %175 = vst.msk [vmem:[%s307_s3 + $0xc] sm:$0xf] %vm171_vm0, %v198_v24  ;;  %v196_v26 = vpack.c.bf16 %v152_v25, %v152_v25 }
  0xef   :  { %173 = vst.msk [vmem:[%s307_s3 + $0x4] sm:$0xf] %vm171_vm0, %v196_v26 }

// kernel: facebox_forward.33
= control target key start
LH: loop header
LB: loop body
LE: loop exit
PB: predicated region body
PF: predicated region fallthrough
CT: control target
= control target key end

     0   :  { %vm171_vm0 = vcmask 650240   ;;  %s304_s1 = inlined_call_operand.vmem [shape: bf16[128,80], index: 1, kind: input, shape index: {}]   ;;  %s305_s0 = inlined_call_operand.vmem [shape: bf16[32,128], index: 0, kind: input, shape index: {}]   ;;  %s306_s2 = inlined_call_operand.vmem [shape: f32[1,80], index: 2, kind: input, shape index: {}]   ;;  %s307_s3 = inlined_call_operand.vmem [shape: bf16[32,80], index: 3, kind: output, shape index: {}]  }
   0x1   :  { %v229_v0 = vld [vmem:[%s304_s1 + $0x38] sm:$0xff]   ;;  %v230_v1 = vld [vmem:[%s304_s1 + $0x30] sm:$0xff]   ;;  %v231_v2 = vld [vmem:[%s304_s1 + $0x28] sm:$0xff]  }
   0x2   :  { %209 = vmatprep.subr.bf16.mxu0 %v229_v0  ;;  %v232_v3 = vld [vmem:[%s304_s1 + $0x20] sm:$0xff]   ;;  %v233_v5 = vld [vmem:[%s304_s1 + $0x18] sm:$0xff]   ;;  %v234_v6 = vld [vmem:[%s304_s1 + $0x10] sm:$0xff]  }
   0x3   :  { %210 = vmatpush3.bf16.msra.mxu0 %v229_v0  ;;  %v237_v4 = vld [vmem:[%s305_s0] sm:$0xff]   ;;  %v235_v7 = vld [vmem:[%s304_s1 + $0x8] sm:$0xff]  }
   0x4   :  { %211 = vmatprep.subr.bf16.mxu0 %v230_v1  ;;  %225 = vmatprep.mubr.bf16.mxu0 %v237_v4  ;;  %v236_v8 = vld [vmem:[%s304_s1] sm:$0xff]   ;;  %v238_v9 = vld [vmem:[%s305_s0 + $0x8] sm:$0xff]  }
   0x5   :  { %v180_v10 = vld [vmem:[%s306_s2] ss:$0 sm:$0xff] }
   0x7   :  { %212 = vmatpush3.bf16.msra.mxu0 %v230_v1 }
   0x8   :  { %213 = vmatprep.subr.bf16.mxu0 %v231_v2 }
   0xb   :  { %214 = vmatpush3.bf16.msra.mxu0 %v231_v2 }
   0xc   :  { %215 = vmatprep.subr.bf16.mxu0 %v232_v3 }
   0xf   :  { %216 = vmatpush3.bf16.msra.mxu0 %v232_v3 }
  0x10   :  { %217 = vmatprep.subr.bf16.mxu0 %v233_v5 }
  0x13   :  { %218 = vmatpush3.bf16.msra.mxu0 %v233_v5 }
  0x14   :  { %219 = vmatprep.subr.bf16.mxu0 %v234_v6 }
  0x17   :  { %220 = vmatpush3.bf16.msra.mxu0 %v234_v6 }
  0x18   :  { %221 = vmatprep.subr.bf16.mxu0 %v235_v7 }
  0x1b   :  { %222 = vmatpush3.bf16.msra.mxu0 %v235_v7 }
  0x1c   :  { %223 = vmatprep.subr.bf16.mxu0 %v236_v8 }
  0x1f   :  { %224 = vmatpush3.bf16.msra.mxu0 %v236_v8 }
  0x22   :  { %226 = vmatmul.mubr.bf16.vlgmr.msra.gmra.mxu0 %v238_v9 }
  0xe2   :  { %v227_v11 = vpop.f32.mrf.mxu0 }
  0xe3   :  { %v145_v12 = vadd.f32 %v227_v11, %v180_v10 }
  0xe4   :  { %v136_v13 = vpop.f32.mrf.mxu0 }
  0xe5   :  { %v153_v14 = vmax.f32 %v145_v12, 0.0  ;;  %v137_v15 = vadd.f32 %v180_v10, %v136_v13 }
  0xe6   :  { %v228_v16 = vpop.f32.mrf.mxu0 }
  0xe7   :  { %v197_v17 = vpack.c.bf16 %v153_v14, %v153_v14  ;;  %v151_v18 = vmax.f32 %v137_v15, 0.0  ;;  %v148_v19 = vadd.f32 %v228_v16, %v180_v10 }
  0xe8   :  { %v139_v20 = vpop.f32.mrf.mxu0 }
  0xe9   :  { %174 = vst.msk [vmem:[%s307_s3 + $0x8] sm:$0xf] %vm171_vm0, %v197_v17  ;;  %v195_v21 = vpack.c.bf16 %v151_v18, %v151_v18  ;;  %v154_v22 = vmax.f32 %v148_v19, 0.0  ;;  %v140_v23 = vadd.f32 %v180_v10, %v139_v20 }
  0xeb   :  { %172 = vst.msk [vmem:[%s307_s3] sm:$0xf] %vm171_vm0, %v195_v21  ;;  %v198_v24 = vpack.c.bf16 %v154_v22, %v154_v22  ;;  %v152_v25 = vmax.f32 %v140_v23, 0.0 }
  0xed   :  { %175 = vst.msk [vmem:[%s307_s3 + $0xc] sm:$0xf] %vm171_vm0, %v198_v24  ;;  %v196_v26 = vpack.c.bf16 %v152_v25, %v152_v25 }
  0xef   :  { %173 = vst.msk [vmem:[%s307_s3 + $0x4] sm:$0xf] %vm171_vm0, %v196_v26 }

// kernel: facebox_forward.36
= control target key start
LH: loop header
LB: loop body
LE: loop exit
PB: predicated region body
PF: predicated region fallthrough
CT: control target
= control target key end

     0   :  { %vm243_vm0 = vcmask 257024   ;;  %s442_s1 = inlined_call_operand.vmem [shape: bf16[256,32], index: 1, kind: input, shape index: {}]   ;;  %s443_s0 = inlined_call_operand.vmem [shape: bf16[32,256], index: 0, kind: input, shape index: {}]   ;;  %s444_s2 = inlined_call_operand.vmem [shape: f32[1,32], index: 2, kind: input, shape index: {}]   ;;  %s445_s3 = inlined_call_operand.vmem [shape: bf16[32,32], index: 3, kind: output, shape index: {}]  }
   0x1   :  { %v325_v0 = vld [vmem:[%s442_s1 + $0x78] sm:$0xff]   ;;  %v327_v2 = vld [vmem:[%s442_s1 + $0x70] sm:$0xff]   ;;  %v329_v4 = vld [vmem:[%s442_s1 + $0x68] sm:$0xff]  }
   0x2   :  { %v326_v1 = vld [vmem:[%s442_s1 + $0x38] sm:$0xff]   ;;  %281 = vmatprep.subr.bf16.mxu0 %v325_v0  ;;  %309 = vmatprep.subr.bf16.mxu1 %v325_v0  ;;  %v328_v3 = vld [vmem:[%s442_s1 + $0x30] sm:$0xff]   ;;  %v330_v5 = vld [vmem:[%s442_s1 + $0x28] sm:$0xff]  }
   0x3   :  { %282 = vmatpush3.bf16.msra.mxu0 %v326_v1  ;;  %317 = vmatpush3.bf16.msra.mxu1 %v326_v1  ;;  %v331_v6 = vld [vmem:[%s442_s1 + $0x60] sm:$0xff]   ;;  %v333_v8 = vld [vmem:[%s442_s1 + $0x58] sm:$0xff]   ;;  %v335_v10 = vld [vmem:[%s442_s1 + $0x50] sm:$0xff]  }
   0x4   :  { %283 = vmatprep.subr.bf16.mxu0 %v327_v2  ;;  %310 = vmatprep.subr.bf16.mxu1 %v327_v2  ;;  %v332_v7 = vld [vmem:[%s442_s1 + $0x20] sm:$0xff]   ;;  %v334_v9 = vld [vmem:[%s442_s1 + $0x18] sm:$0xff]   ;;  %v336_v13 = vld [vmem:[%s442_s1 + $0x10] sm:$0xff]  }
   0x5   :  { %v343_v11 = vld [vmem:[%s443_s0 + $0x4] ss:$8 sps:$4 sm:$0xff]   ;;  %v346_v12 = vld [vmem:[%s443_s0 + $0x14] ss:$8 sps:$4 sm:$0xff]   ;;  %v341_v18 = vld [vmem:[%s443_s0] ss:$8 sps:$4 sm:$0xff]  }
   0x6   :  { %v337_v14 = vld [vmem:[%s442_s1 + $0x48] sm:$0xff]   ;;  %206 = vmatprep.mubr.bf16.mxu0 %v343_v11  ;;  %214 = vmatprep.mubr.bf16.mxu1 %v346_v12  ;;  %v339_v16 = vld [vmem:[%s442_s1 + $0x40] sm:$0xff]   ;;  %v344_v19 = vld [vmem:[%s443_s0 + $0x10] ss:$8 sps:$4 sm:$0xff]  }
   0x7   :  { %284 = vmatpush3.bf16.msra.mxu0 %v328_v3  ;;  %318 = vmatpush3.bf16.msra.mxu1 %v328_v3  ;;  %v338_v15 = vld [vmem:[%s442_s1 + $0x8] sm:$0xff]   ;;  %v340_v17 = vld [vmem:[%s442_s1] sm:$0xff]  }
   0x8   :  { %285 = vmatprep.subr.bf16.mxu0 %v329_v4  ;;  %311 = vmatprep.subr.bf16.mxu1 %v329_v4  ;;  %v252_v22 = vld [vmem:[%s444_s2] ss:$0 sm:$0xff] }
   0xb   :  { %286 = vmatpush3.bf16.msra.mxu0 %v330_v5  ;;  %319 = vmatpush3.bf16.msra.mxu1 %v330_v5 }
   0xc   :  { %287 = vmatprep.subr.bf16.mxu0 %v331_v6  ;;  %312 = vmatprep.subr.bf16.mxu1 %v331_v6 }
   0xf   :  { %288 = vmatpush3.bf16.msra.mxu0 %v332_v7  ;;  %320 = vmatpush3.bf16.msra.mxu1 %v332_v7 }
  0x10   :  { %289 = vmatprep.subr.bf16.mxu0 %v333_v8  ;;  %313 = vmatprep.subr.bf16.mxu1 %v333_v8 }
  0x13   :  { %290 = vmatpush3.bf16.msra.mxu0 %v334_v9  ;;  %321 = vmatpush3.bf16.msra.mxu1 %v334_v9 }
  0x14   :  { %291 = vmatprep.subr.bf16.mxu0 %v335_v10  ;;  %314 = vmatprep.subr.bf16.mxu1 %v335_v10 }
  0x17   :  { %292 = vmatpush3.bf16.msra.mxu0 %v336_v13  ;;  %322 = vmatpush3.bf16.msra.mxu1 %v336_v13 }
  0x18   :  { %293 = vmatprep.subr.bf16.mxu0 %v337_v14  ;;  %315 = vmatprep.subr.bf16.mxu1 %v337_v14 }
  0x1b   :  { %294 = vmatpush3.bf16.msra.mxu0 %v338_v15  ;;  %323 = vmatpush3.bf16.msra.mxu1 %v338_v15 }
  0x1c   :  { %295 = vmatprep.subr.bf16.mxu0 %v339_v16  ;;  %316 = vmatprep.subr.bf16.mxu1 %v339_v16 }
  0x1f   :  { %296 = vmatpush3.bf16.msra.mxu0 %v340_v17  ;;  %324 = vmatpush3.bf16.msra.mxu1 %v340_v17 }
  0x22   :  { %207 = vmatmul.mubr.bf16.vlgmr.msra.gmra.mxu0 %v341_v18  ;;  %215 = vmatmul.mubr.bf16.vlgmr.msra.gmra.mxu1 %v344_v19 }
  0xe2   :  { %v297_v20 = vpop.f32.mrf.mxu0  ;;  %v303_v21 = vpop.f32.mrf.mxu1 }
  0xe4   :  { %v298_v23 = vpop.f32.mrf.mxu0  ;;  %v304_v24 = vpop.f32.mrf.mxu1 }
  0xe5   :  { %v299_v25 = vadd.f32 %v298_v23, %v297_v20  ;;  %v305_v26 = vadd.f32 %v304_v24, %v303_v21 }
  0xe6   :  { %v300_v27 = vpop.f32.mrf.mxu0  ;;  %v306_v28 = vpop.f32.mrf.mxu1 }
  0xe7   :  { %v209_v29 = vadd.f32 %v299_v25, %v252_v22  ;;  %v217_v30 = vadd.f32 %v305_v26, %v252_v22 }
  0xe8   :  { %v301_v31 = vpop.f32.mrf.mxu0  ;;  %v307_v32 = vpop.f32.mrf.mxu1 }
  0xe9   :  { %v223_v33 = vmax.f32 %v209_v29, 0.0  ;;  %v225_v34 = vmax.f32 %v217_v30, 0.0  ;;  %v302_v35 = vadd.f32 %v301_v31, %v300_v27  ;;  %v308_v36 = vadd.f32 %v307_v32, %v306_v28 }
  0xeb   :  { %v277_v37 = vpack.c.bf16 %v223_v33, %v223_v33  ;;  %v279_v38 = vpack.c.bf16 %v225_v34, %v225_v34  ;;  %v212_v39 = vadd.f32 %v302_v35, %v252_v22  ;;  %v220_v40 = vadd.f32 %v308_v36, %v252_v22 }
  0xed   :  { %244 = vst.msk [vmem:[%s445_s3] sm:$0xf] %vm243_vm0, %v277_v37  ;;  %246 = vst.msk [vmem:[%s445_s3 + $0x8] sm:$0xf] %vm243_vm0, %v279_v38  ;;  %v224_v41 = vmax.f32 %v212_v39, 0.0  ;;  %v226_v42 = vmax.f32 %v220_v40, 0.0 }
  0xef   :  { %v278_v43 = vpack.c.bf16 %v224_v41, %v224_v41  ;;  %v280_v44 = vpack.c.bf16 %v226_v42, %v226_v42 }
  0xf1   :  { %245 = vst.msk [vmem:[%s445_s3 + $0x4] sm:$0xf] %vm243_vm0, %v278_v43  ;;  %247 = vst.msk [vmem:[%s445_s3 + $0xc] sm:$0xf] %vm243_vm0, %v280_v44 }

// kernel: facebox_forward.38
= control target key start
LH: loop header
LB: loop body
LE: loop exit
PB: predicated region body
PF: predicated region fallthrough
CT: control target
= control target key end

     0   :  { %vm372_vm0 = vcmask 257024   ;;  %s639_s1 = inlined_call_operand.vmem [shape: bf16[384,32], index: 1, kind: input, shape index: {}]   ;;  %s640_s0 = inlined_call_operand.vmem [shape: bf16[32,384], index: 0, kind: input, shape index: {}]   ;;  %s641_s2 = inlined_call_operand.vmem [shape: f32[1,32], index: 2, kind: input, shape index: {}]   ;;  %s642_s3 = inlined_call_operand.vmem [shape: bf16[32,32], index: 3, kind: output, shape index: {}]  }
   0x1   :  { %v478_v0 = vld [vmem:[%s639_s1 + $0x78] sm:$0xff]   ;;  %v480_v2 = vld [vmem:[%s639_s1 + $0x70] sm:$0xff]   ;;  %v483_v5 = vld [vmem:[%s639_s1 + $0x68] sm:$0xff]  }
   0x2   :  { %v479_v1 = vld [vmem:[%s639_s1 + $0x38] sm:$0xff]   ;;  %420 = vmatprep.subr.bf16.mxu0 %v478_v0  ;;  %v482_v4 = vld [vmem:[%s639_s1 + $0x30] sm:$0xff]   ;;  %v485_v7 = vld [vmem:[%s639_s1 + $0x28] sm:$0xff]  }
   0x3   :  { %421 = vmatpush3.bf16.msra.mxu0 %v479_v1  ;;  %v481_v3 = vld [vmem:[%s639_s1 + $0xb8] sm:$0xff]   ;;  %v484_v6 = vld [vmem:[%s639_s1 + $0xb0] sm:$0xff]   ;;  %v486_v8 = vld [vmem:[%s639_s1 + $0x60] sm:$0xff]  }
   0x4   :  { %422 = vmatprep.subr.bf16.mxu0 %v480_v2  ;;  %458 = vmatprep.subr.bf16.mxu1 %v481_v3  ;;  %v487_v9 = vld [vmem:[%s639_s1 + $0xa8] sm:$0xff]   ;;  %v488_v10 = vld [vmem:[%s639_s1 + $0x20] sm:$0xff]   ;;  %v489_v11 = vld [vmem:[%s639_s1 + $0x58] sm:$0xff]  }
   0x5   :  { %459 = vmatpush3.bf16.msra.mxu1 %v481_v3  ;;  %v490_v12 = vld [vmem:[%s639_s1 + $0xa0] sm:$0xff]   ;;  %v491_v13 = vld [vmem:[%s639_s1 + $0x18] sm:$0xff]   ;;  %v492_v15 = vld [vmem:[%s639_s1 + $0x50] sm:$0xff]  }
   0x6   :  { %460 = vmatprep.subr.bf16.mxu1 %v484_v6  ;;  %v493_v14 = vld [vmem:[%s639_s1 + $0x98] sm:$0xff]   ;;  %v494_v16 = vld [vmem:[%s639_s1 + $0x10] sm:$0xff]   ;;  %v495_v18 = vld [vmem:[%s639_s1 + $0x48] sm:$0xff]  }
   0x7   :  { %423 = vmatpush3.bf16.msra.mxu0 %v482_v4  ;;  %v496_v17 = vld [vmem:[%s639_s1 + $0x90] sm:$0xff]   ;;  %v497_v19 = vld [vmem:[%s639_s1 + $0x8] sm:$0xff]   ;;  %v498_v20 = vld [vmem:[%s639_s1 + $0x40] sm:$0xff]  }
   0x8   :  { %424 = vmatprep.subr.bf16.mxu0 %v483_v5  ;;  %v499_v21 = vld [vmem:[%s639_s1 + $0x88] sm:$0xff]   ;;  %v503_v22 = vld [vmem:[%s640_s0 + $0x4] ss:$12 sps:$4 sm:$0xff]   ;;  %v381_v32 = vld [vmem:[%s641_s2] ss:$0 sm:$0xff] }
   0x9   :  { %461 = vmatpush3.bf16.msra.mxu1 %v484_v6  ;;  %v500_v23 = vld [vmem:[%s639_s1] sm:$0xff]   ;;  %286 = vmatprep.mubr.bf16.mxu0 %v503_v22  ;;  %v505_v24 = vld [vmem:[%s640_s0 + $0x8] ss:$12 sps:$4 sm:$0xff]  }
   0xa   :  { %462 = vmatprep.subr.bf16.mxu1 %v487_v9  ;;  %v504_v25 = vld [vmem:[%s639_s1 + $0x80] sm:$0xff]   ;;  %474 = vmatprep.mubr.bf16.mxu1 %v505_v24  ;;  %v507_v27 = vld [vmem:[%s640_s0 + $0x1c] ss:$12 sps:$4 sm:$0xff]  }
   0xb   :  { %425 = vmatpush3.bf16.msra.mxu0 %v485_v7  ;;  %v501_v26 = vld [vmem:[%s640_s0] ss:$12 sps:$4 sm:$0xff]   ;;  %v509_v29 = vld [vmem:[%s640_s0 + $0x18] ss:$12 sps:$4 sm:$0xff]  }
   0xc   :  { %426 = vmatprep.subr.bf16.mxu0 %v486_v8  ;;  %v506_v28 = vld [vmem:[%s640_s0 + $0x20] ss:$12 sps:$4 sm:$0xff]  }
   0xd   :  { %463 = vmatpush3.bf16.msra.mxu1 %v487_v9 }
   0xe   :  { %464 = vmatprep.subr.bf16.mxu1 %v490_v12 }
   0xf   :  { %427 = vmatpush3.bf16.msra.mxu0 %v488_v10 }
  0x10   :  { %428 = vmatprep.subr.bf16.mxu0 %v489_v11 }
  0x11   :  { %465 = vmatpush3.bf16.msra.mxu1 %v490_v12 }
  0x12   :  { %466 = vmatprep.subr.bf16.mxu1 %v493_v14 }
  0x13   :  { %429 = vmatpush3.bf16.msra.mxu0 %v491_v13 }
  0x14   :  { %430 = vmatprep.subr.bf16.mxu0 %v492_v15 }
  0x15   :  { %467 = vmatpush3.bf16.msra.mxu1 %v493_v14 }
  0x16   :  { %468 = vmatprep.subr.bf16.mxu1 %v496_v17 }
  0x17   :  { %431 = vmatpush3.bf16.msra.mxu0 %v494_v16 }
  0x18   :  { %432 = vmatprep.subr.bf16.mxu0 %v495_v18 }
  0x19   :  { %469 = vmatpush3.bf16.msra.mxu1 %v496_v17 }
  0x1a   :  { %470 = vmatprep.subr.bf16.mxu1 %v499_v21 }
  0x1b   :  { %433 = vmatpush3.bf16.msra.mxu0 %v497_v19 }
  0x1c   :  { %434 = vmatprep.subr.bf16.mxu0 %v498_v20 }
  0x1d   :  { %471 = vmatpush3.bf16.msra.mxu1 %v499_v21 }
  0x1e   :  { %472 = vmatprep.subr.bf16.mxu1 %v504_v25 }
  0x1f   :  { %435 = vmatpush3.bf16.msra.mxu0 %v500_v23 }
  0x21   :  { %473 = vmatpush3.bf16.msra.mxu1 %v504_v25 }
  0x22   :  { %287 = vmatmul.mubr.bf16.vlgmr.msra.gmra.mxu0 %v501_v26 }
  0x23   :  { %294 = vmatprep.mubr.bf16.mxu0 %v507_v27 }
  0x24   :  { %475 = vmatmul.mubr.bf16.vlgmr.msra.gmra.mxu1 %v506_v28 }
  0x2a   :  { %295 = vmatmul.mubr.bf16.gmra.mxu0 %v509_v29 }
  0xe2   :  { %v436_v30 = vpop.f32.mrf.mxu0 }
  0xe4   :  { %v437_v31 = vpop.f32.mrf.mxu0  ;;  %v476_v34 = vpop.f32.mrf.mxu1 }
  0xe5   :  { %v438_v33 = vadd.f32 %v437_v31, %v436_v30 }
  0xe6   :  { %v439_v35 = vpop.f32.mrf.mxu0  ;;  %v337_v37 = vpop.f32.mrf.mxu1 }
  0xe7   :  { %v289_v36 = vadd.f32 %v438_v33, %v381_v32 }
  0xe8   :  { %v440_v38 = vpop.f32.mrf.mxu0  ;;  %v477_v41 = vpop.f32.mrf.mxu1 }
  0xe9   :  { %v441_v39 = vadd.f32 %v440_v38, %v439_v35  ;;  %v338_v40 = vadd.f32 %v337_v37, %v289_v36 }
  0xea   :  { %v442_v42 = vpop.f32.mrf.mxu0  ;;  %v340_v45 = vpop.f32.mrf.mxu1 }
  0xeb   :  { %v352_v43 = vmax.f32 %v338_v40, 0.0  ;;  %v292_v44 = vadd.f32 %v441_v39, %v381_v32 }
  0xec   :  { %v443_v46 = vpop.f32.mrf.mxu0 }
  0xed   :  { %v416_v47 = vpack.c.bf16 %v352_v43, %v352_v43  ;;  %v444_v48 = vadd.f32 %v443_v46, %v442_v42  ;;  %v341_v49 = vadd.f32 %v340_v45, %v292_v44 }
  0xee   :  { %v445_v50 = vpop.f32.mrf.mxu0 }
  0xef   :  { %373 = vst.msk [vmem:[%s642_s3] sm:$0xf] %vm372_vm0, %v416_v47  ;;  %v297_v51 = vadd.f32 %v444_v48, %v381_v32  ;;  %v353_v52 = vmax.f32 %v341_v49, 0.0 }
  0xf0   :  { %v446_v53 = vpop.f32.mrf.mxu0 }
  0xf1   :  { %v346_v54 = vadd.f32 %v476_v34, %v297_v51  ;;  %v417_v55 = vpack.c.bf16 %v353_v52, %v353_v52  ;;  %v447_v56 = vadd.f32 %v446_v53, %v445_v50 }
  0xf3   :  { %v354_v57 = vmax.f32 %v346_v54, 0.0  ;;  %374 = vst.msk [vmem:[%s642_s3 + $0x4] sm:$0xf] %vm372_vm0, %v417_v55  ;;  %v300_v58 = vadd.f32 %v447_v56, %v381_v32 }
  0xf5   :  { %v418_v59 = vpack.c.bf16 %v354_v57, %v354_v57  ;;  %v349_v60 = vadd.f32 %v477_v41, %v300_v58 }
  0xf7   :  { %375 = vst.msk [vmem:[%s642_s3 + $0x8] sm:$0xf] %vm372_vm0, %v418_v59  ;;  %v355_v61 = vmax.f32 %v349_v60, 0.0 }
  0xf9   :  { %v419_v62 = vpack.c.bf16 %v355_v61, %v355_v61 }
  0xfb   :  { %376 = vst.msk [vmem:[%s642_s3 + $0xc] sm:$0xf] %vm372_vm0, %v419_v62 }

// kernel: facebox_forward.51
= control target key start
LH: loop header
LB: loop body
LE: loop exit
PB: predicated region body
PF: predicated region fallthrough
CT: control target
= control target key end

     0   :  { %s308_s1 = inlined_call_operand.vmem [shape: bf16[128,128], index: 1, kind: input, shape index: {}]   ;;  %s309_s0 = inlined_call_operand.vmem [shape: bf16[32,128], index: 0, kind: input, shape index: {}]   ;;  %s310_s2 = inlined_call_operand.vmem [shape: f32[1,128], index: 2, kind: input, shape index: {}]   ;;  %s311_s3 = inlined_call_operand.vmem [shape: bf16[32,128], index: 3, kind: output, shape index: {}]  }
   0x1   :  { %v239_v0 = vld [vmem:[%s308_s1 + $0x38] sm:$0xff]   ;;  %v240_v1 = vld [vmem:[%s308_s1 + $0x30] sm:$0xff]   ;;  %v241_v2 = vld [vmem:[%s308_s1 + $0x28] sm:$0xff]  }
   0x2   :  { %219 = vmatprep.subr.bf16.mxu0 %v239_v0  ;;  %v242_v3 = vld [vmem:[%s308_s1 + $0x20] sm:$0xff]   ;;  %v243_v5 = vld [vmem:[%s308_s1 + $0x18] sm:$0xff]   ;;  %v244_v6 = vld [vmem:[%s308_s1 + $0x10] sm:$0xff]  }
   0x3   :  { %220 = vmatpush3.bf16.msra.mxu0 %v239_v0  ;;  %v247_v4 = vld [vmem:[%s309_s0] sm:$0xff]   ;;  %v245_v7 = vld [vmem:[%s308_s1 + $0x8] sm:$0xff]  }
   0x4   :  { %221 = vmatprep.subr.bf16.mxu0 %v240_v1  ;;  %235 = vmatprep.mubr.bf16.mxu0 %v247_v4  ;;  %v246_v8 = vld [vmem:[%s308_s1] sm:$0xff]   ;;  %v248_v9 = vld [vmem:[%s309_s0 + $0x8] sm:$0xff]  }
   0x5   :  { %v179_v11 = vld [vmem:[%s310_s2] ss:$0 sm:$0xff] }
   0x7   :  { %222 = vmatpush3.bf16.msra.mxu0 %v240_v1 }
   0x8   :  { %223 = vmatprep.subr.bf16.mxu0 %v241_v2 }
   0xb   :  { %224 = vmatpush3.bf16.msra.mxu0 %v241_v2 }
   0xc   :  { %225 = vmatprep.subr.bf16.mxu0 %v242_v3 }
   0xf   :  { %226 = vmatpush3.bf16.msra.mxu0 %v242_v3 }
  0x10   :  { %227 = vmatprep.subr.bf16.mxu0 %v243_v5 }
  0x13   :  { %228 = vmatpush3.bf16.msra.mxu0 %v243_v5 }
  0x14   :  { %229 = vmatprep.subr.bf16.mxu0 %v244_v6 }
  0x17   :  { %230 = vmatpush3.bf16.msra.mxu0 %v244_v6 }
  0x18   :  { %231 = vmatprep.subr.bf16.mxu0 %v245_v7 }
  0x1b   :  { %232 = vmatpush3.bf16.msra.mxu0 %v245_v7 }
  0x1c   :  { %233 = vmatprep.subr.bf16.mxu0 %v246_v8 }
  0x1f   :  { %234 = vmatpush3.bf16.msra.mxu0 %v246_v8 }
  0x22   :  { %236 = vmatmul.mubr.bf16.vlgmr.msra.gmra.mxu0 %v248_v9 }
  0xe2   :  { %v237_v10 = vpop.f32.mrf.mxu0 }
  0xe3   :  { %v145_v13 = vadd.f32 %v237_v10, %v179_v11 }
  0xe4   :  { %v136_v12 = vpop.f32.mrf.mxu0 }
  0xe5   :  { %v137_v15 = vadd.f32 %v179_v11, %v136_v12  ;;  %v153_v18 = vmax.f32 %v145_v13, 0.0 }
  0xe6   :  { %v238_v14 = vpop.f32.mrf.mxu0 }
  0xe7   :  { %v148_v16 = vadd.f32 %v238_v14, %v179_v11  ;;  %v151_v21 = vmax.f32 %v137_v15, 0.0 }
  0xe8   :  { %v139_v17 = vpop.f32.mrf.mxu0 }
  0xe9   :  { %v154_v19 = vmax.f32 %v148_v16, 0.0  ;;  %v140_v20 = vadd.f32 %v179_v11, %v139_v17 }
  0xeb   :  { %v206_v22 = vpack.c.bf16 %v154_v19, %v153_v18  ;;  %v152_v23 = vmax.f32 %v140_v20, 0.0 }
  0xed   :  { %208 = vst [vmem:[%s311_s3 + $0x8] sm:$0xff] %v206_v22   ;;  %v201_v24 = vpack.c.bf16 %v152_v23, %v151_v21 }
  0xef   :  { %202 = vst [vmem:[%s311_s3] sm:$0xff] %v201_v24  }

// kernel: facebox_forward.55
= control target key start
LH: loop header
LB: loop body
LE: loop exit
PB: predicated region body
PF: predicated region fallthrough
CT: control target
= control target key end

     0   :  { %vm955_vm0 = vcmask 1031168   ;;  %s1604_s1 = inlined_call_operand.vmem [shape: bf16[1152,126], index: 1, kind: input, shape index: {}]   ;;  %s1605_s0 = inlined_call_operand.vmem [shape: bf16[32,1152], index: 0, kind: input, shape index: {}]   ;;  %s1606_s2 = inlined_call_operand.vmem [shape: f32[1,126], index: 2, kind: input, shape index: {}]   ;;  %s1607_s3 = inlined_call_operand.vmem [shape: f32[32,126], index: 3, kind: output, shape index: {}]  }
   0x1   :  { %v1197_v0 = vld [vmem:[%s1604_s1 + $0x78] sm:$0xff]   ;;  %v1201_v4 = vld [vmem:[%s1604_s1 + $0x70] sm:$0xff]   ;;  %v1205_v8 = vld [vmem:[%s1604_s1 + $0x68] sm:$0xff]  }
   0x2   :  { %v1198_v1 = vld [vmem:[%s1604_s1 + $0x38] sm:$0xff]   ;;  %1055 = vmatprep.subr.bf16.mxu0 %v1197_v0  ;;  %v1202_v5 = vld [vmem:[%s1604_s1 + $0x30] sm:$0xff]   ;;  %v1206_v9 = vld [vmem:[%s1604_s1 + $0x28] sm:$0xff]  }
   0x3   :  { %v1199_v2 = vld [vmem:[%s1604_s1 + $0xf8] sm:$0xff]   ;;  %1056 = vmatpush3.bf16.msra.mxu0 %v1198_v1  ;;  %v1203_v6 = vld [vmem:[%s1604_s1 + $0xf0] sm:$0xff]   ;;  %v1207_v10 = vld [vmem:[%s1604_s1 + $0xe8] sm:$0xff]  }
   0x4   :  { %v1200_v3 = vld [vmem:[%s1604_s1 + $0xb8] sm:$0xff]   ;;  %1083 = vmatprep.subr.bf16.mxu1 %v1199_v2  ;;  %1057 = vmatprep.subr.bf16.mxu0 %v1201_v4  ;;  %v1204_v7 = vld [vmem:[%s1604_s1 + $0xb0] sm:$0xff]   ;;  %v1208_v11 = vld [vmem:[%s1604_s1 + $0xa8] sm:$0xff]  }
   0x5   :  { %1084 = vmatpush3.bf16.msra.mxu1 %v1200_v3  ;;  %v1209_v12 = vld [vmem:[%s1604_s1 + $0x60] sm:$0xff]   ;;  %v1213_v16 = vld [vmem:[%s1604_s1 + $0x58] sm:$0xff]   ;;  %v1217_v20 = vld [vmem:[%s1604_s1 + $0x50] sm:$0xff]  }
   0x6   :  { %1085 = vmatprep.subr.bf16.mxu1 %v1203_v6  ;;  %v1210_v13 = vld [vmem:[%s1604_s1 + $0x20] sm:$0xff]   ;;  %v1214_v17 = vld [vmem:[%s1604_s1 + $0x18] sm:$0xff]   ;;  %v1218_v21 = vld [vmem:[%s1604_s1 + $0x10] sm:$0xff]  }
   0x7   :  { %1058 = vmatpush3.bf16.msra.mxu0 %v1202_v5  ;;  %v1211_v14 = vld [vmem:[%s1604_s1 + $0xe0] sm:$0xff]   ;;  %v1215_v18 = vld [vmem:[%s1604_s1 + $0xd8] sm:$0xff]   ;;  %v1219_v22 = vld [vmem:[%s1604_s1 + $0xd0] sm:$0xff]  }
   0x8   :  { %1059 = vmatprep.subr.bf16.mxu0 %v1205_v8  ;;  %v1212_v15 = vld [vmem:[%s1604_s1 + $0xa0] sm:$0xff]   ;;  %v1216_v19 = vld [vmem:[%s1604_s1 + $0x98] sm:$0xff]   ;;  %v1220_v23 = vld [vmem:[%s1604_s1 + $0x90] sm:$0xff]  }
   0x9   :  { %1086 = vmatpush3.bf16.msra.mxu1 %v1204_v7  ;;  %v1221_v24 = vld [vmem:[%s1604_s1 + $0x48] sm:$0xff]   ;;  %v1225_v28 = vld [vmem:[%s1604_s1 + $0x40] sm:$0xff]   ;;  %v1232_v34 = vld [vmem:[%s1604_s1 + $0x178] sm:$0xff]  }
   0xa   :  { %1087 = vmatprep.subr.bf16.mxu1 %v1207_v10  ;;  %v1222_v25 = vld [vmem:[%s1604_s1 + $0x8] sm:$0xff]   ;;  %v1226_v29 = vld [vmem:[%s1604_s1] sm:$0xff]   ;;  %v1236_v37 = vld [vmem:[%s1604_s1 + $0x138] sm:$0xff]  }
   0xb   :  { %1060 = vmatpush3.bf16.msra.mxu0 %v1206_v9  ;;  %v1223_v26 = vld [vmem:[%s1604_s1 + $0xc8] sm:$0xff]   ;;  %v1227_v30 = vld [vmem:[%s1604_s1 + $0xc0] sm:$0xff]   ;;  %v1237_v38 = vld [vmem:[%s1604_s1 + $0x1f8] sm:$0xff]  }
   0xc   :  { %1061 = vmatprep.subr.bf16.mxu0 %v1209_v12  ;;  %v1224_v27 = vld [vmem:[%s1604_s1 + $0x88] sm:$0xff]   ;;  %v1228_v31 = vld [vmem:[%s1605_s0] ss:$36 sps:$4 sm:$0xff]   ;;  %v1238_v39 = vld [vmem:[%s1604_s1 + $0x1b8] sm:$0xff]  }
   0xd   :  { %1088 = vmatpush3.bf16.msra.mxu1 %v1208_v11  ;;  %v1230_v32 = vld [vmem:[%s1605_s0 + $0x4] ss:$36 sps:$4 sm:$0xff]   ;;  %v1235_v36 = vld [vmem:[%s1605_s0 + $0xc] ss:$36 sps:$4 sm:$0xff]   ;;  %v1251_v52 = vld [vmem:[%s1604_s1 + $0x158] sm:$0xff]  }
   0xe   :  { %1089 = vmatprep.subr.bf16.mxu1 %v1211_v14  ;;  %v1231_v33 = vld [vmem:[%s1604_s1 + $0x80] sm:$0xff]   ;;  %742 = vmatprep.mubr.bf16.mxu0 %v1230_v32  ;;  %v1233_v35 = vld [vmem:[%s1605_s0 + $0x8] ss:$36 sps:$4 sm:$0xff]   ;;  %v1239_v40 = vld [vmem:[%s1604_s1 + $0x170] sm:$0xff]  }
   0xf   :  { %1062 = vmatpush3.bf16.msra.mxu0 %v1210_v13  ;;  %791 = vmatprep.mubr.bf16.mxu1 %v1235_v36  ;;  %v1240_v41 = vld [vmem:[%s1604_s1 + $0x130] sm:$0xff]   ;;  %v1243_v44 = vld [vmem:[%s1604_s1 + $0x168] sm:$0xff]   ;;  %v1247_v48 = vld [vmem:[%s1604_s1 + $0x160] sm:$0xff]  }
  0x10   :  { %1063 = vmatprep.subr.bf16.mxu0 %v1213_v16  ;;  %v1241_v42 = vld [vmem:[%s1604_s1 + $0x1f0] sm:$0xff]   ;;  %v1244_v45 = vld [vmem:[%s1604_s1 + $0x128] sm:$0xff]   ;;  %v1248_v49 = vld [vmem:[%s1604_s1 + $0x120] sm:$0xff]  }
  0x11   :  { %1090 = vmatpush3.bf16.msra.mxu1 %v1212_v15  ;;  %v1242_v43 = vld [vmem:[%s1604_s1 + $0x1b0] sm:$0xff]   ;;  %v1245_v46 = vld [vmem:[%s1604_s1 + $0x1e8] sm:$0xff]   ;;  %v1249_v50 = vld [vmem:[%s1604_s1 + $0x1e0] sm:$0xff]  }
  0x12   :  { %1091 = vmatprep.subr.bf16.mxu1 %v1215_v18  ;;  %v1246_v47 = vld [vmem:[%s1604_s1 + $0x1a8] sm:$0xff]   ;;  %v1250_v51 = vld [vmem:[%s1604_s1 + $0x1a0] sm:$0xff]   ;;  %v1252_v53 = vld [vmem:[%s1604_s1 + $0x118] sm:$0xff]  }
  0x13   :  { %1064 = vmatpush3.bf16.msra.mxu0 %v1214_v17  ;;  %v1253_v54 = vld [vmem:[%s1605_s0 + $0x4c] ss:$36 sps:$4 sm:$0xff]   ;;  %v1255_v55 = vld [vmem:[%s1604_s1 + $0x1d8] sm:$0xff]   ;;  %v1269_v4 = vld [vmem:[%s1604_s1 + $0x140] sm:$0xff]  }
  0x14   :  { %1065 = vmatprep.subr.bf16.mxu0 %v1217_v20  ;;  %v1256_v56 = vld [vmem:[%s1605_s0 + $0x48] ss:$36 sps:$4 sm:$0xff]   ;;  %v1257_v57 = vld [vmem:[%s1604_s1 + $0x198] sm:$0xff]   ;;  %v1260_v59 = vld [vmem:[%s1604_s1 + $0x150] sm:$0xff]  }
  0x15   :  { %1092 = vmatpush3.bf16.msra.mxu1 %v1216_v19  ;;  %v1258_v58 = vld [vmem:[%s1605_s0 + $0x54] ss:$36 sps:$4 sm:$0xff]   ;;  %v1265_v0 = vld [vmem:[%s1604_s1 + $0x148] sm:$0xff]   ;;  %v1270_v5 = vld [vmem:[%s1604_s1 + $0x100] sm:$0xff]  }
  0x16   :  { %1093 = vmatprep.subr.bf16.mxu1 %v1219_v22  ;;  %v1261_v60 = vld [vmem:[%s1605_s0 + $0x50] ss:$36 sps:$4 sm:$0xff]   ;;  %v1266_v1 = vld [vmem:[%s1604_s1 + $0x108] sm:$0xff]   ;;  %v1271_v6 = vld [vmem:[%s1604_s1 + $0x1c0] sm:$0xff]  }
  0x17   :  { %1066 = vmatpush3.bf16.msra.mxu0 %v1218_v21  ;;  %v1262_v61 = vld [vmem:[%s1604_s1 + $0x110] sm:$0xff]   ;;  %v1267_v2 = vld [vmem:[%s1604_s1 + $0x1c8] sm:$0xff]   ;;  %v1275_v9 = vld [vmem:[%s1604_s1 + $0x180] sm:$0xff]  }
  0x18   :  { %1067 = vmatprep.subr.bf16.mxu0 %v1221_v24  ;;  %v1263_v62 = vld [vmem:[%s1604_s1 + $0x1d0] sm:$0xff]   ;;  %v1268_v3 = vld [vmem:[%s1604_s1 + $0x188] sm:$0xff]   ;;  %v1276_v10 = vld [vmem:[%s1604_s1 + $0x238] sm:$0xff]  }
  0x19   :  { %1094 = vmatpush3.bf16.msra.mxu1 %v1220_v23  ;;  %v1264_v63 = vld [vmem:[%s1604_s1 + $0x190] sm:$0xff]   ;;  %v1277_v11 = vld [vmem:[%s1605_s0 + $0x18] ss:$36 sps:$4 sm:$0xff]   ;;  %v1284_v16 = vld [vmem:[%s1604_s1 + $0x228] sm:$0xff]  }
  0x1a   :  { %1095 = vmatprep.subr.bf16.mxu1 %v1223_v26  ;;  %v1272_v7 = vld [vmem:[%s1605_s0 + $0x10] ss:$36 sps:$4 sm:$0xff]   ;;  %v1279_v12 = vld [vmem:[%s1605_s0 + $0x1c] ss:$36 sps:$4 sm:$0xff]   ;;  %v1285_v17 = vld [vmem:[%s1605_s0 + $0x64] ss:$36 sps:$4 sm:$0xff]  }
  0x1b   :  { %1068 = vmatpush3.bf16.msra.mxu0 %v1222_v25  ;;  %v1274_v8 = vld [vmem:[%s1605_s0 + $0x14] ss:$36 sps:$4 sm:$0xff]   ;;  %v1281_v14 = vld [vmem:[%s1605_s0 + $0x5c] ss:$36 sps:$4 sm:$0xff]   ;;  %v1291_v23 = vld [vmem:[%s1604_s1 + $0x208] sm:$0xff]  }
  0x1c   :  { %1069 = vmatprep.subr.bf16.mxu0 %v1225_v28  ;;  %v1280_v13 = vld [vmem:[%s1604_s1 + $0x230] sm:$0xff]   ;;  %v1283_v15 = vld [vmem:[%s1605_s0 + $0x58] ss:$36 sps:$4 sm:$0xff]   ;;  %v1287_v18 = vld [vmem:[%s1605_s0 + $0x60] ss:$36 sps:$4 sm:$0xff]  }
  0x1d   :  { %1096 = vmatpush3.bf16.msra.mxu1 %v1224_v27  ;;  %v1288_v19 = vld [vmem:[%s1604_s1 + $0x220] sm:$0xff]   ;;  %v1289_v20 = vld [vmem:[%s1604_s1 + $0x218] sm:$0xff]   ;;  %v1290_v22 = vld [vmem:[%s1604_s1 + $0x210] sm:$0xff]  }
  0x1e   :  { %1097 = vmatprep.subr.bf16.mxu1 %v1227_v30  ;;  %v1293_v21 = vld [vmem:[%s1605_s0 + $0x20] ss:$36 sps:$4 sm:$0xff]   ;;  %v1294_v25 = vld [vmem:[%s1605_s0 + $0x68] ss:$36 sps:$4 sm:$0xff]  }
  0x1f   :  { %1070 = vmatpush3.bf16.msra.mxu0 %v1226_v29  ;;  %v1292_v24 = vld [vmem:[%s1604_s1 + $0x200] sm:$0xff]  }
  0x20   :  { %1111 = vmatprep.subr.bf16.mxu0 %v1232_v34 }
  0x21   :  { %1098 = vmatpush3.bf16.msra.mxu1 %v1231_v33 }
  0x22   :  { %743 = vmatmul.mubr.bf16.vlgmr.msra.gmra.mxu0 %v1228_v31  ;;  %1139 = vmatprep.subr.bf16.mxu1 %v1237_v38 }
  0x23   :  { %1112 = vmatpush3.bf16.msra.mxu0 %v1236_v37  ;;  %750 = vmatprep.mubr.bf16.mxu0 %v1253_v54 }
  0x24   :  { %792 = vmatmul.mubr.bf16.vlgmr.msra.gmra.mxu1 %v1233_v35  ;;  %1113 = vmatprep.subr.bf16.mxu0 %v1239_v40 }
  0x25   :  { %1140 = vmatpush3.bf16.msra.mxu1 %v1238_v39  ;;  %799 = vmatprep.mubr.bf16.mxu1 %v1258_v58 }
  0x26   :  { %1141 = vmatprep.subr.bf16.mxu1 %v1241_v42 }
  0x27   :  { %1114 = vmatpush3.bf16.msra.mxu0 %v1240_v41 }
  0x28   :  { %1115 = vmatprep.subr.bf16.mxu0 %v1243_v44 }
  0x29   :  { %1142 = vmatpush3.bf16.msra.mxu1 %v1242_v43 }
  0x2a   :  { %1143 = vmatprep.subr.bf16.mxu1 %v1245_v46  ;;  %751 = vmatmul.mubr.bf16.gmra.mxu0 %v1256_v56 }
  0x2b   :  { %1116 = vmatpush3.bf16.msra.mxu0 %v1244_v45  ;;  %840 = vmatprep.mubr.bf16.mxu0 %v1274_v8 }
  0x2c   :  { %1117 = vmatprep.subr.bf16.mxu0 %v1247_v48  ;;  %800 = vmatmul.mubr.bf16.gmra.mxu1 %v1261_v60 }
  0x2d   :  { %1144 = vmatpush3.bf16.msra.mxu1 %v1246_v47  ;;  %889 = vmatprep.mubr.bf16.mxu1 %v1279_v12 }
  0x2e   :  { %1145 = vmatprep.subr.bf16.mxu1 %v1249_v50 }
  0x2f   :  { %1118 = vmatpush3.bf16.msra.mxu0 %v1248_v49 }
  0x30   :  { %1119 = vmatprep.subr.bf16.mxu0 %v1251_v52 }
  0x31   :  { %1146 = vmatpush3.bf16.msra.mxu1 %v1250_v51 }
  0x32   :  { %1147 = vmatprep.subr.bf16.mxu1 %v1255_v55  ;;  %v964_v55 = vld [vmem:[%s1606_s2] ss:$0 sm:$0xff] }
  0x33   :  { %1120 = vmatpush3.bf16.msra.mxu0 %v1252_v53 }
  0x34   :  { %1121 = vmatprep.subr.bf16.mxu0 %v1260_v59 }
  0x35   :  { %1148 = vmatpush3.bf16.msra.mxu1 %v1257_v57 }
  0x36   :  { %1149 = vmatprep.subr.bf16.mxu1 %v1263_v62 }
  0x37   :  { %1122 = vmatpush3.bf16.msra.mxu0 %v1262_v61 }
  0x38   :  { %1123 = vmatprep.subr.bf16.mxu0 %v1265_v0 }
  0x39   :  { %1150 = vmatpush3.bf16.msra.mxu1 %v1264_v63 }
  0x3a   :  { %1151 = vmatprep.subr.bf16.mxu1 %v1267_v2 }
  0x3b   :  { %1124 = vmatpush3.bf16.msra.mxu0 %v1266_v1 }
  0x3c   :  { %1125 = vmatprep.subr.bf16.mxu0 %v1269_v4 }
  0x3d   :  { %1152 = vmatpush3.bf16.msra.mxu1 %v1268_v3 }
  0x3e   :  { %1153 = vmatprep.subr.bf16.mxu1 %v1271_v6 }
  0x3f   :  { %1126 = vmatpush3.bf16.msra.mxu0 %v1270_v5 }
  0x40   :  { %1177 = vmatprep.subr.bf16.mxu0 %v1276_v10 }
  0x41   :  { %1154 = vmatpush3.bf16.msra.mxu1 %v1275_v9 }
  0x42   :  { %841 = vmatmul.mubr.bf16.vlgmr.msra.gmra.mxu0 %v1272_v7 }
  0x43   :  { %1178 = vmatpush3.bf16.msra.mxu0 %v1276_v10  ;;  %848 = vmatprep.mubr.bf16.mxu0 %v1281_v14 }
  0x44   :  { %890 = vmatmul.mubr.bf16.vlgmr.msra.gmra.mxu1 %v1277_v11  ;;  %1179 = vmatprep.subr.bf16.mxu0 %v1280_v13 }
  0x45   :  { %897 = vmatprep.mubr.bf16.mxu1 %v1285_v17 }
  0x47   :  { %1180 = vmatpush3.bf16.msra.mxu0 %v1280_v13 }
  0x48   :  { %1181 = vmatprep.subr.bf16.mxu0 %v1284_v16 }
  0x4a   :  { %849 = vmatmul.mubr.bf16.gmra.mxu0 %v1283_v15 }
  0x4b   :  { %1182 = vmatpush3.bf16.msra.mxu0 %v1284_v16  ;;  %1193 = vmatprep.mubr.bf16.mxu0 %v1293_v21 }
  0x4c   :  { %898 = vmatmul.mubr.bf16.gmra.mxu1 %v1287_v18  ;;  %1183 = vmatprep.subr.bf16.mxu0 %v1288_v19 }
  0x4f   :  { %1184 = vmatpush3.bf16.msra.mxu0 %v1288_v19 }
  0x50   :  { %1185 = vmatprep.subr.bf16.mxu0 %v1289_v20 }
  0x53   :  { %1186 = vmatpush3.bf16.msra.mxu0 %v1289_v20 }
  0x54   :  { %1187 = vmatprep.subr.bf16.mxu0 %v1290_v22 }
  0x57   :  { %1188 = vmatpush3.bf16.msra.mxu0 %v1290_v22 }
  0x58   :  { %1189 = vmatprep.subr.bf16.mxu0 %v1291_v23 }
  0x5b   :  { %1190 = vmatpush3.bf16.msra.mxu0 %v1291_v23 }
  0x5c   :  { %1191 = vmatprep.subr.bf16.mxu0 %v1292_v24 }
  0x5f   :  { %1192 = vmatpush3.bf16.msra.mxu0 %v1292_v24 }
  0x62   :  { %1194 = vmatmul.mubr.bf16.vlgmr.msra.gmra.mxu0 %v1294_v25 }
  0xe2   :  { %v1071_v26 = vpop.f32.mrf.mxu0 }
  0xe4   :  { %v1099_v27 = vpop.f32.mrf.mxu1  ;;  %v1072_v28 = vpop.f32.mrf.mxu0 }
  0xe5   :  { %v1073_v54 = vadd.f32 %v1072_v28, %v1071_v26 }
  0xe6   :  { %v1100_v29 = vpop.f32.mrf.mxu1  ;;  %v1074_v30 = vpop.f32.mrf.mxu0 }
  0xe7   :  { %v745_v61 = vadd.f32 %v1073_v54, %v964_v55  ;;  %v1101_v62 = vadd.f32 %v1100_v29, %v1099_v27 }
  0xe8   :  { %v1102_v31 = vpop.f32.mrf.mxu1  ;;  %v1075_v32 = vpop.f32.mrf.mxu0 }
  0xe9   :  { %v1076_v63 = vadd.f32 %v1075_v32, %v1074_v30  ;;  %v794_v7 = vadd.f32 %v1101_v62, %v745_v61 }
  0xea   :  { %v1077_v33 = vpop.f32.mrf.mxu0  ;;  %v1103_v34 = vpop.f32.mrf.mxu1 }
  0xeb   :  { %v748_v8 = vadd.f32 %v1076_v63, %v964_v55  ;;  %v1104_v9 = vadd.f32 %v1103_v34, %v1102_v31 }
  0xec   :  { %v1105_v35 = vpop.f32.mrf.mxu1  ;;  %v1078_v36 = vpop.f32.mrf.mxu0 }
  0xed   :  { %v1079_v53 = vadd.f32 %v1078_v36, %v1077_v33  ;;  %v797_v18 = vadd.f32 %v1104_v9, %v748_v8 }
  0xee   :  { %v1106_v37 = vpop.f32.mrf.mxu1  ;;  %v1080_v38 = vpop.f32.mrf.mxu0 }
  0xef   :  { %v753_v58 = vadd.f32 %v1079_v53, %v964_v55  ;;  %v1107_v59 = vadd.f32 %v1106_v37, %v1105_v35 }
  0xf0   :  { %v1108_v39 = vpop.f32.mrf.mxu1  ;;  %v1081_v40 = vpop.f32.mrf.mxu0 }
  0xf1   :  { %v1082_v60 = vadd.f32 %v1081_v40, %v1080_v38  ;;  %v802_v3 = vadd.f32 %v1107_v59, %v753_v58 }
  0xf2   :  { %v1109_v42 = vpop.f32.mrf.mxu1 }
  0xf3   :  { %v756_v4 = vadd.f32 %v1082_v60, %v964_v55  ;;  %v1110_v5 = vadd.f32 %v1109_v42, %v1108_v39 }
  0xf5   :  { %v805_v14 = vadd.f32 %v1110_v5, %v756_v4 }
 0x102   :  { %v1127_v41 = vpop.f32.mrf.mxu0 }
 0x104   :  { %v1128_v43 = vpop.f32.mrf.mxu0  ;;  %v1155_v44 = vpop.f32.mrf.mxu1 }
 0x105   :  { %v1129_v6 = vadd.f32 %v1128_v43, %v1127_v41 }
 0x106   :  { %v1130_v45 = vpop.f32.mrf.mxu0  ;;  %v1156_v46 = vpop.f32.mrf.mxu1 }
 0x107   :  { %v843_v15 = vadd.f32 %v1129_v6, %v794_v7  ;;  %v1157_v16 = vadd.f32 %v1156_v46, %v1155_v44 }
 0x108   :  { %v1131_v47 = vpop.f32.mrf.mxu0  ;;  %v1158_v48 = vpop.f32.mrf.mxu1 }
 0x109   :  { %v1132_v17 = vadd.f32 %v1131_v47, %v1130_v45  ;;  %v892_v26 = vadd.f32 %v1157_v16, %v843_v15 }
 0x10a   :  { %v1133_v49 = vpop.f32.mrf.mxu0  ;;  %v1159_v50 = vpop.f32.mrf.mxu1 }
 0x10b   :  { %v846_v23 = vadd.f32 %v1132_v17, %v797_v18  ;;  %v1160_v24 = vadd.f32 %v1159_v50, %v1158_v48 }
 0x10c   :  { %v1134_v51 = vpop.f32.mrf.mxu0  ;;  %v1161_v52 = vpop.f32.mrf.mxu1 }
 0x10d   :  { %v1135_v0 = vadd.f32 %v1134_v51, %v1133_v49  ;;  %v895_v32 = vadd.f32 %v1160_v24, %v846_v23 }
 0x10e   :  { %v1136_v56 = vpop.f32.mrf.mxu0  ;;  %v1162_v57 = vpop.f32.mrf.mxu1 }
 0x10f   :  { %v851_v10 = vadd.f32 %v1135_v0, %v802_v3  ;;  %v1163_v11 = vadd.f32 %v1162_v57, %v1161_v52 }
 0x110   :  { %v1137_v1 = vpop.f32.mrf.mxu0  ;;  %v1164_v2 = vpop.f32.mrf.mxu1 }
 0x111   :  { %v1138_v12 = vadd.f32 %v1137_v1, %v1136_v56  ;;  %v900_v21 = vadd.f32 %v1163_v11, %v851_v10 }
 0x112   :  { %v1165_v13 = vpop.f32.mrf.mxu1 }
 0x113   :  { %v854_v19 = vadd.f32 %v1138_v12, %v805_v14  ;;  %v1166_v20 = vadd.f32 %v1165_v13, %v1164_v2 }
 0x115   :  { %v903_v29 = vadd.f32 %v1166_v20, %v854_v19 }
 0x122   :  { %v1195_v22 = vpop.f32.mrf.mxu0 }
 0x123   :  { %v949_v25 = vadd.f32 %v1195_v22, %v900_v21 }
 0x124   :  { %v940_v27 = vpop.f32.mrf.mxu0 }
 0x125   :  { %958 = vst.msk [vmem:[%s1607_s3 + $0x10] sm:$0xff] %vm955_vm0, %v949_v25  ;;  %v941_v28 = vadd.f32 %v940_v27, %v892_v26 }
 0x126   :  { %v1196_v30 = vpop.f32.mrf.mxu0 }
 0x127   :  { %956 = vst.msk [vmem:[%s1607_s3] sm:$0xff] %vm955_vm0, %v941_v28  ;;  %v952_v31 = vadd.f32 %v1196_v30, %v903_v29 }
 0x128   :  { %v943_v33 = vpop.f32.mrf.mxu0 }
 0x129   :  { %959 = vst.msk [vmem:[%s1607_s3 + $0x18] sm:$0xff] %vm955_vm0, %v952_v31  ;;  %v944_v34 = vadd.f32 %v943_v33, %v895_v32 }
 0x12b   :  { %957 = vst.msk [vmem:[%s1607_s3 + $0x8] sm:$0xff] %vm955_vm0, %v944_v34 }

// kernel: facebox_forward.52
= control target key start
LH: loop header
LB: loop body
LE: loop exit
PB: predicated region body
PF: predicated region fallthrough
CT: control target
= control target key end

     0   :  { %s2060_s1 = inlined_call_operand.vmem [shape: bf16[1152,256], index: 1, kind: input, shape index: {}]   ;;  %s2061_s0 = inlined_call_operand.vmem [shape: bf16[16,1152], index: 0, kind: input, shape index: {}]   ;;  %s2062_s2 = inlined_call_operand.vmem [shape: f32[1,256], index: 2, kind: input, shape index: {}]   ;;  %s2063_s3 = inlined_call_operand.vmem [shape: bf16[16,256], index: 3, kind: output, shape index: {}]  }
   0x1   :  { %v1342_v0 = vld [vmem:[%s2060_s1 + $0x74] ss:$8 sps:$4 sm:$0xff]   ;;  %v1344_v1 = vld [vmem:[%s2060_s1 + $0x70] ss:$8 sps:$4 sm:$0xff]   ;;  %v1348_v4 = vld [vmem:[%s2060_s1 + $0x64] ss:$8 sps:$4 sm:$0xff]  }
   0x2   :  { %947 = vmatprep.subr.bf16.mxu0 %v1342_v0  ;;  %v1345_v2 = vld [vmem:[%s2060_s1 + $0x174] ss:$8 sps:$4 sm:$0xff]   ;;  %v1347_v3 = vld [vmem:[%s2060_s1 + $0x170] ss:$8 sps:$4 sm:$0xff]   ;;  %v1350_v5 = vld [vmem:[%s2060_s1 + $0x60] ss:$8 sps:$4 sm:$0xff]  }
   0x3   :  { %948 = vmatpush1.bf16.msra.mxu0 %v1344_v1  ;;  %990 = vmatprep.subr.bf16.mxu1 %v1345_v2  ;;  %v1351_v6 = vld [vmem:[%s2060_s1 + $0x164] ss:$8 sps:$4 sm:$0xff]   ;;  %v1353_v7 = vld [vmem:[%s2060_s1 + $0x160] ss:$8 sps:$4 sm:$0xff]   ;;  %v1354_v8 = vld [vmem:[%s2060_s1 + $0x54] ss:$8 sps:$4 sm:$0xff]  }
   0x4   :  { %991 = vmatpush1.bf16.msra.mxu1 %v1347_v3  ;;  %949 = vmatprep.subr.bf16.mxu0 %v1348_v4  ;;  %v1356_v9 = vld [vmem:[%s2060_s1 + $0x50] ss:$8 sps:$4 sm:$0xff]   ;;  %v1357_v10 = vld [vmem:[%s2060_s1 + $0x154] ss:$8 sps:$4 sm:$0xff]   ;;  %v1360_v11 = vld [vmem:[%s2060_s1 + $0x44] ss:$8 sps:$4 sm:$0xff]  }
   0x5   :  { %992 = vmatprep.subr.bf16.mxu1 %v1351_v6  ;;  %v1359_v12 = vld [vmem:[%s2060_s1 + $0x150] ss:$8 sps:$4 sm:$0xff]   ;;  %v1363_v13 = vld [vmem:[%s2060_s1 + $0x144] ss:$8 sps:$4 sm:$0xff]   ;;  %v1362_v14 = vld [vmem:[%s2060_s1 + $0x40] ss:$8 sps:$4 sm:$0xff]  }
   0x6   :  { %v1366_v15 = vld [vmem:[%s2060_s1 + $0x34] ss:$8 sps:$4 sm:$0xff]   ;;  %v1365_v16 = vld [vmem:[%s2060_s1 + $0x140] ss:$8 sps:$4 sm:$0xff]   ;;  %v1368_v18 = vld [vmem:[%s2060_s1 + $0x30] ss:$8 sps:$4 sm:$0xff]  }
   0x7   :  { %950 = vmatpush1.bf16.msra.mxu0 %v1350_v5  ;;  %v1369_v17 = vld [vmem:[%s2060_s1 + $0x134] ss:$8 sps:$4 sm:$0xff]   ;;  %v1372_v19 = vld [vmem:[%s2060_s1 + $0x24] ss:$8 sps:$4 sm:$0xff]   ;;  %v1371_v20 = vld [vmem:[%s2060_s1 + $0x130] ss:$8 sps:$4 sm:$0xff]  }
   0x8   :  { %951 = vmatprep.subr.bf16.mxu0 %v1354_v8  ;;  %993 = vmatpush1.bf16.msra.mxu1 %v1353_v7  ;;  %v1375_v21 = vld [vmem:[%s2060_s1 + $0x124] ss:$8 sps:$4 sm:$0xff]   ;;  %v1374_v22 = vld [vmem:[%s2060_s1 + $0x20] ss:$8 sps:$4 sm:$0xff]   ;;  %v1378_v23 = vld [vmem:[%s2060_s1 + $0x14] ss:$8 sps:$4 sm:$0xff]  }
   0x9   :  { %994 = vmatprep.subr.bf16.mxu1 %v1357_v10  ;;  %v1377_v24 = vld [vmem:[%s2060_s1 + $0x120] ss:$8 sps:$4 sm:$0xff]   ;;  %v1381_v25 = vld [vmem:[%s2060_s1 + $0x114] ss:$8 sps:$4 sm:$0xff]   ;;  %v1380_v26 = vld [vmem:[%s2060_s1 + $0x10] ss:$8 sps:$4 sm:$0xff]  }
   0xa   :  { %v1384_v27 = vld [vmem:[%s2060_s1 + $0x4] ss:$8 sps:$4 sm:$0xff]   ;;  %v1383_v28 = vld [vmem:[%s2060_s1 + $0x110] ss:$8 sps:$4 sm:$0xff]   ;;  %v1386_v30 = vld [vmem:[%s2060_s1] ss:$8 sps:$4 sm:$0xff]  }
   0xb   :  { %952 = vmatpush1.bf16.msra.mxu0 %v1356_v9  ;;  %v1387_v29 = vld [vmem:[%s2060_s1 + $0x104] ss:$8 sps:$4 sm:$0xff]   ;;  %v1390_v31 = vld [vmem:[%s2060_s1 + $0xf4] ss:$8 sps:$4 sm:$0xff]   ;;  %v1389_v32 = vld [vmem:[%s2060_s1 + $0x100] ss:$8 sps:$4 sm:$0xff]  }
   0xc   :  { %953 = vmatprep.subr.bf16.mxu0 %v1360_v11  ;;  %995 = vmatpush1.bf16.msra.mxu1 %v1359_v12  ;;  %v1393_v33 = vld [vmem:[%s2060_s1 + $0x1f4] ss:$8 sps:$4 sm:$0xff]   ;;  %v1392_v34 = vld [vmem:[%s2060_s1 + $0xf0] ss:$8 sps:$4 sm:$0xff]   ;;  %v1396_v35 = vld [vmem:[%s2060_s1 + $0xe4] ss:$8 sps:$4 sm:$0xff]  }
   0xd   :  { %996 = vmatprep.subr.bf16.mxu1 %v1363_v13  ;;  %v1395_v36 = vld [vmem:[%s2060_s1 + $0x1f0] ss:$8 sps:$4 sm:$0xff]   ;;  %v1399_v37 = vld [vmem:[%s2060_s1 + $0x1e4] ss:$8 sps:$4 sm:$0xff]   ;;  %v1398_v38 = vld [vmem:[%s2060_s1 + $0xe0] ss:$8 sps:$4 sm:$0xff]  }
   0xe   :  { %v1402_v39 = vld [vmem:[%s2060_s1 + $0xd4] ss:$8 sps:$4 sm:$0xff]   ;;  %v1401_v40 = vld [vmem:[%s2060_s1 + $0x1e0] ss:$8 sps:$4 sm:$0xff]   ;;  %v1404_v42 = vld [vmem:[%s2060_s1 + $0xd0] ss:$8 sps:$4 sm:$0xff]  }
   0xf   :  { %954 = vmatpush1.bf16.msra.mxu0 %v1362_v14  ;;  %v1405_v41 = vld [vmem:[%s2060_s1 + $0x1d4] ss:$8 sps:$4 sm:$0xff]   ;;  %v1408_v43 = vld [vmem:[%s2060_s1 + $0xc4] ss:$8 sps:$4 sm:$0xff]   ;;  %v1407_v44 = vld [vmem:[%s2060_s1 + $0x1d0] ss:$8 sps:$4 sm:$0xff]  }
  0x10   :  { %955 = vmatprep.subr.bf16.mxu0 %v1366_v15  ;;  %997 = vmatpush1.bf16.msra.mxu1 %v1365_v16  ;;  %v1411_v45 = vld [vmem:[%s2060_s1 + $0x1c4] ss:$8 sps:$4 sm:$0xff]   ;;  %v1410_v46 = vld [vmem:[%s2060_s1 + $0xc0] ss:$8 sps:$4 sm:$0xff]   ;;  %v1414_v48 = vld [vmem:[%s2060_s1 + $0xb4] ss:$8 sps:$4 sm:$0xff]  }
  0x11   :  { %998 = vmatprep.subr.bf16.mxu1 %v1369_v17  ;;  %v1439_v47 = vld [vmem:[%s2061_s0 + $0x4] ss:$36 sps:$4 sm:$0xff]   ;;  %v1417_v50 = vld [vmem:[%s2060_s1 + $0x1b4] ss:$8 sps:$4 sm:$0xff]   ;;  %v1446_v51 = vld [vmem:[%s2061_s0 + $0xc] ss:$36 sps:$4 sm:$0xff]  }
  0x12   :  { %v1413_v49 = vld [vmem:[%s2060_s1 + $0x1c0] ss:$8 sps:$4 sm:$0xff]   ;;  %979 = vmatprep.mubr.bf16.mxu0 %v1439_v47  ;;  %v1416_v52 = vld [vmem:[%s2060_s1 + $0xb0] ss:$8 sps:$4 sm:$0xff]   ;;  %v1420_v53 = vld [vmem:[%s2060_s1 + $0xa4] ss:$8 sps:$4 sm:$0xff]   ;;  %1022 = vmatprep.mubr.bf16.mxu1 %v1446_v51 }
  0x13   :  { %956 = vmatpush1.bf16.msra.mxu0 %v1368_v18  ;;  %v1419_v54 = vld [vmem:[%s2060_s1 + $0x1b0] ss:$8 sps:$4 sm:$0xff]   ;;  %v1423_v55 = vld [vmem:[%s2060_s1 + $0x1a4] ss:$8 sps:$4 sm:$0xff]   ;;  %v1422_v56 = vld [vmem:[%s2060_s1 + $0xa0] ss:$8 sps:$4 sm:$0xff]  }
  0x14   :  { %957 = vmatprep.subr.bf16.mxu0 %v1372_v19  ;;  %999 = vmatpush1.bf16.msra.mxu1 %v1371_v20  ;;  %v1426_v57 = vld [vmem:[%s2060_s1 + $0x94] ss:$8 sps:$4 sm:$0xff]   ;;  %v1425_v58 = vld [vmem:[%s2060_s1 + $0x1a0] ss:$8 sps:$4 sm:$0xff]   ;;  %v1428_v60 = vld [vmem:[%s2060_s1 + $0x90] ss:$8 sps:$4 sm:$0xff]  }
  0x15   :  { %1000 = vmatprep.subr.bf16.mxu1 %v1375_v21  ;;  %v1429_v59 = vld [vmem:[%s2060_s1 + $0x194] ss:$8 sps:$4 sm:$0xff]   ;;  %v1432_v61 = vld [vmem:[%s2060_s1 + $0x84] ss:$8 sps:$4 sm:$0xff]   ;;  %v1431_v62 = vld [vmem:[%s2060_s1 + $0x190] ss:$8 sps:$4 sm:$0xff]  }
  0x16   :  { %v1435_v63 = vld [vmem:[%s2060_s1 + $0x184] ss:$8 sps:$4 sm:$0xff]   ;;  %v1434_v0 = vld [vmem:[%s2060_s1 + $0x80] ss:$8 sps:$4 sm:$0xff]   ;;  %v1443_v1 = vld [vmem:[%s2060_s1 + $0x274] ss:$8 sps:$4 sm:$0xff]  }
  0x17   :  { %958 = vmatpush1.bf16.msra.mxu0 %v1374_v22  ;;  %v1440_v2 = vld [vmem:[%s2060_s1 + $0x180] ss:$8 sps:$4 sm:$0xff]   ;;  %v1449_v4 = vld [vmem:[%s2060_s1 + $0x374] ss:$8 sps:$4 sm:$0xff]   ;;  %v1441_v5 = vld [vmem:[%s2060_s1 + $0x270] ss:$8 sps:$4 sm:$0xff]  }
  0x18   :  { %959 = vmatprep.subr.bf16.mxu0 %v1378_v23  ;;  %1001 = vmatpush1.bf16.msra.mxu1 %v1377_v24  ;;  %v1437_v3 = vld [vmem:[%s2061_s0] ss:$36 sps:$4 sm:$0xff]   ;;  %v1444_v6 = vld [vmem:[%s2061_s0 + $0x8] ss:$36 sps:$4 sm:$0xff]   ;;  %v1447_v8 = vld [vmem:[%s2060_s1 + $0x370] ss:$8 sps:$4 sm:$0xff]  }
  0x19   :  { %1002 = vmatprep.subr.bf16.mxu1 %v1381_v25  ;;  %v1452_v7 = vld [vmem:[%s2060_s1 + $0x264] ss:$8 sps:$4 sm:$0xff]   ;;  %v1450_v10 = vld [vmem:[%s2060_s1 + $0x260] ss:$8 sps:$4 sm:$0xff]   ;;  %v1458_v11 = vld [vmem:[%s2060_s1 + $0x254] ss:$8 sps:$4 sm:$0xff]  }
  0x1a   :  { %v1455_v9 = vld [vmem:[%s2060_s1 + $0x364] ss:$8 sps:$4 sm:$0xff]   ;;  %v1453_v12 = vld [vmem:[%s2060_s1 + $0x360] ss:$8 sps:$4 sm:$0xff]   ;;  %v1461_v13 = vld [vmem:[%s2060_s1 + $0x354] ss:$8 sps:$4 sm:$0xff]  }
  0x1b   :  { %960 = vmatpush1.bf16.msra.mxu0 %v1380_v26  ;;  %v1456_v14 = vld [vmem:[%s2060_s1 + $0x250] ss:$8 sps:$4 sm:$0xff]   ;;  %v1464_v15 = vld [vmem:[%s2060_s1 + $0x244] ss:$8 sps:$4 sm:$0xff]   ;;  %v1462_v18 = vld [vmem:[%s2060_s1 + $0x240] ss:$8 sps:$4 sm:$0xff]  }
  0x1c   :  { %961 = vmatprep.subr.bf16.mxu0 %v1384_v27  ;;  %1003 = vmatpush1.bf16.msra.mxu1 %v1383_v28  ;;  %v1459_v16 = vld [vmem:[%s2060_s1 + $0x350] ss:$8 sps:$4 sm:$0xff]   ;;  %v1467_v17 = vld [vmem:[%s2060_s1 + $0x344] ss:$8 sps:$4 sm:$0xff]   ;;  %v1470_v19 = vld [vmem:[%s2060_s1 + $0x234] ss:$8 sps:$4 sm:$0xff]  }
  0x1d   :  { %1004 = vmatprep.subr.bf16.mxu1 %v1387_v29  ;;  %v1465_v20 = vld [vmem:[%s2060_s1 + $0x340] ss:$8 sps:$4 sm:$0xff]   ;;  %v1473_v21 = vld [vmem:[%s2060_s1 + $0x334] ss:$8 sps:$4 sm:$0xff]   ;;  %v1468_v22 = vld [vmem:[%s2060_s1 + $0x230] ss:$8 sps:$4 sm:$0xff]  }
  0x1e   :  { %v1476_v23 = vld [vmem:[%s2060_s1 + $0x224] ss:$8 sps:$4 sm:$0xff]   ;;  %v1471_v24 = vld [vmem:[%s2060_s1 + $0x330] ss:$8 sps:$4 sm:$0xff]   ;;  %v1474_v26 = vld [vmem:[%s2060_s1 + $0x220] ss:$8 sps:$4 sm:$0xff]  }
  0x1f   :  { %962 = vmatpush1.bf16.msra.mxu0 %v1386_v30  ;;  %v1479_v25 = vld [vmem:[%s2060_s1 + $0x324] ss:$8 sps:$4 sm:$0xff]   ;;  %v1482_v27 = vld [vmem:[%s2060_s1 + $0x214] ss:$8 sps:$4 sm:$0xff]   ;;  %v1477_v28 = vld [vmem:[%s2060_s1 + $0x320] ss:$8 sps:$4 sm:$0xff]  }
  0x20   :  { %963 = vmatprep.subr.bf16.mxu0 %v1390_v31  ;;  %1005 = vmatpush1.bf16.msra.mxu1 %v1389_v32  ;;  %v1485_v29 = vld [vmem:[%s2060_s1 + $0x314] ss:$8 sps:$4 sm:$0xff]   ;;  %v1480_v30 = vld [vmem:[%s2060_s1 + $0x210] ss:$8 sps:$4 sm:$0xff]   ;;  %v1488_v32 = vld [vmem:[%s2060_s1 + $0x204] ss:$8 sps:$4 sm:$0xff]  }
  0x21   :  { %1006 = vmatprep.subr.bf16.mxu1 %v1393_v33  ;;  %v1483_v31 = vld [vmem:[%s2060_s1 + $0x310] ss:$8 sps:$4 sm:$0xff]   ;;  %v1509_v47 = vld [vmem:[%s2060_s1 + $0x3d4] ss:$8 sps:$4 sm:$0xff]   ;;  %v1515_v51 = vld [vmem:[%s2060_s1 + $0x3c4] ss:$8 sps:$4 sm:$0xff]  }
  0x22   :  { %v1542_v33 = vld [vmem:[%s2061_s0 + $0x14] ss:$36 sps:$4 sm:$0xff]  }
  0x23   :  { %964 = vmatpush2.bf16.msra.mxu0 %v1392_v34  ;;  %v1491_v34 = vld [vmem:[%s2060_s1 + $0x304] ss:$8 sps:$4 sm:$0xff]  }
  0x24   :  { %965 = vmatprep.subr.bf16.mxu0 %v1396_v35  ;;  %1007 = vmatpush2.bf16.msra.mxu1 %v1395_v36  ;;  %v1486_v35 = vld [vmem:[%s2060_s1 + $0x200] ss:$8 sps:$4 sm:$0xff]  }
  0x25   :  { %1008 = vmatprep.subr.bf16.mxu1 %v1399_v37  ;;  %v1548_v36 = vld [vmem:[%s2061_s0 + $0x1c] ss:$36 sps:$4 sm:$0xff]  }
  0x26   :  { %v1494_v37 = vld [vmem:[%s2060_s1 + $0x2f4] ss:$8 sps:$4 sm:$0xff]  }
  0x27   :  { %966 = vmatpush2.bf16.msra.mxu0 %v1398_v38  ;;  %v1489_v38 = vld [vmem:[%s2060_s1 + $0x300] ss:$8 sps:$4 sm:$0xff]  }
  0x28   :  { %967 = vmatprep.subr.bf16.mxu0 %v1402_v39  ;;  %1009 = vmatpush2.bf16.msra.mxu1 %v1401_v40  ;;  %v1497_v39 = vld [vmem:[%s2060_s1 + $0x3f4] ss:$8 sps:$4 sm:$0xff]   ;;  %v1492_v40 = vld [vmem:[%s2060_s1 + $0x2f0] ss:$8 sps:$4 sm:$0xff]  }
  0x29   :  { %1010 = vmatprep.subr.bf16.mxu1 %v1405_v41  ;;  %v1500_v41 = vld [vmem:[%s2060_s1 + $0x2e4] ss:$8 sps:$4 sm:$0xff]  }
  0x2b   :  { %968 = vmatpush2.bf16.msra.mxu0 %v1404_v42  ;;  %v1495_v42 = vld [vmem:[%s2060_s1 + $0x3f0] ss:$8 sps:$4 sm:$0xff]  }
  0x2c   :  { %969 = vmatprep.subr.bf16.mxu0 %v1408_v43  ;;  %1011 = vmatpush2.bf16.msra.mxu1 %v1407_v44  ;;  %v1503_v43 = vld [vmem:[%s2060_s1 + $0x3e4] ss:$8 sps:$4 sm:$0xff]   ;;  %v1498_v44 = vld [vmem:[%s2060_s1 + $0x2e0] ss:$8 sps:$4 sm:$0xff]  }
  0x2d   :  { %1012 = vmatprep.subr.bf16.mxu1 %v1411_v45  ;;  %v1506_v45 = vld [vmem:[%s2060_s1 + $0x2d4] ss:$8 sps:$4 sm:$0xff]  }
  0x2f   :  { %970 = vmatpush2.bf16.msra.mxu0 %v1410_v46  ;;  %v1501_v46 = vld [vmem:[%s2060_s1 + $0x3e0] ss:$8 sps:$4 sm:$0xff]  }
  0x30   :  { %971 = vmatprep.subr.bf16.mxu0 %v1414_v48  ;;  %1013 = vmatpush2.bf16.msra.mxu1 %v1413_v49  ;;  %v1504_v48 = vld [vmem:[%s2060_s1 + $0x2d0] ss:$8 sps:$4 sm:$0xff]   ;;  %v1512_v49 = vld [vmem:[%s2060_s1 + $0x2c4] ss:$8 sps:$4 sm:$0xff]  }
  0x31   :  { %1014 = vmatprep.subr.bf16.mxu1 %v1417_v50  ;;  %v1507_v50 = vld [vmem:[%s2060_s1 + $0x3d0] ss:$8 sps:$4 sm:$0xff]  }
  0x33   :  { %972 = vmatpush2.bf16.msra.mxu0 %v1416_v52  ;;  %v1510_v52 = vld [vmem:[%s2060_s1 + $0x2c0] ss:$8 sps:$4 sm:$0xff]  }
  0x34   :  { %973 = vmatprep.subr.bf16.mxu0 %v1420_v53  ;;  %1015 = vmatpush2.bf16.msra.mxu1 %v1419_v54  ;;  %v1518_v53 = vld [vmem:[%s2060_s1 + $0x2b4] ss:$8 sps:$4 sm:$0xff]   ;;  %v1513_v54 = vld [vmem:[%s2060_s1 + $0x3c0] ss:$8 sps:$4 sm:$0xff]  }
  0x35   :  { %1016 = vmatprep.subr.bf16.mxu1 %v1423_v55  ;;  %v1521_v55 = vld [vmem:[%s2060_s1 + $0x3b4] ss:$8 sps:$4 sm:$0xff]  }
  0x37   :  { %974 = vmatpush2.bf16.msra.mxu0 %v1422_v56  ;;  %v1516_v56 = vld [vmem:[%s2060_s1 + $0x2b0] ss:$8 sps:$4 sm:$0xff]  }
  0x38   :  { %975 = vmatprep.subr.bf16.mxu0 %v1426_v57  ;;  %1017 = vmatpush2.bf16.msra.mxu1 %v1425_v58  ;;  %v1524_v57 = vld [vmem:[%s2060_s1 + $0x2a4] ss:$8 sps:$4 sm:$0xff]   ;;  %v1519_v58 = vld [vmem:[%s2060_s1 + $0x3b0] ss:$8 sps:$4 sm:$0xff]  }
  0x39   :  { %1018 = vmatprep.subr.bf16.mxu1 %v1429_v59  ;;  %v1527_v59 = vld [vmem:[%s2060_s1 + $0x3a4] ss:$8 sps:$4 sm:$0xff]  }
  0x3b   :  { %976 = vmatpush2.bf16.msra.mxu0 %v1428_v60  ;;  %v1522_v60 = vld [vmem:[%s2060_s1 + $0x2a0] ss:$8 sps:$4 sm:$0xff]  }
  0x3c   :  { %977 = vmatprep.subr.bf16.mxu0 %v1432_v61  ;;  %1019 = vmatpush2.bf16.msra.mxu1 %v1431_v62  ;;  %v1530_v61 = vld [vmem:[%s2060_s1 + $0x294] ss:$8 sps:$4 sm:$0xff]   ;;  %v1525_v62 = vld [vmem:[%s2060_s1 + $0x3a0] ss:$8 sps:$4 sm:$0xff]  }
  0x3d   :  { %1020 = vmatprep.subr.bf16.mxu1 %v1435_v63  ;;  %v1533_v63 = vld [vmem:[%s2060_s1 + $0x394] ss:$8 sps:$4 sm:$0xff]  }
  0x3f   :  { %978 = vmatpush2.bf16.msra.mxu0 %v1434_v0  ;;  %v1528_v0 = vld [vmem:[%s2060_s1 + $0x290] ss:$8 sps:$4 sm:$0xff]  }
  0x40   :  { %1033 = vmatprep.subr.bf16.mxu0 %v1443_v1  ;;  %1021 = vmatpush2.bf16.msra.mxu1 %v1440_v2  ;;  %v1536_v1 = vld [vmem:[%s2060_s1 + $0x284] ss:$8 sps:$4 sm:$0xff]   ;;  %v1531_v2 = vld [vmem:[%s2060_s1 + $0x390] ss:$8 sps:$4 sm:$0xff]  }
  0x41   :  { %1076 = vmatprep.subr.bf16.mxu1 %v1449_v4  ;;  %v1534_v4 = vld [vmem:[%s2060_s1 + $0x280] ss:$8 sps:$4 sm:$0xff]  }
  0x42   :  { %980 = vmatmul.mubr.bf16.vlgmr.msra.gmra.mxu0 %v1437_v3  ;;  %v1539_v3 = vld [vmem:[%s2060_s1 + $0x384] ss:$8 sps:$4 sm:$0xff]  }
  0x43   :  { %1034 = vmatpush1.bf16.msra.mxu0 %v1441_v5  ;;  %1023 = vmatmul.mubr.bf16.vlgmr.msra.gmra.mxu1 %v1444_v6  ;;  %v1545_v5 = vld [vmem:[%s2060_s1 + $0x474] ss:$8 sps:$4 sm:$0xff]   ;;  %v1537_v6 = vld [vmem:[%s2060_s1 + $0x380] ss:$8 sps:$4 sm:$0xff]  }
  0x44   :  { %1035 = vmatprep.subr.bf16.mxu0 %v1452_v7  ;;  %1077 = vmatpush1.bf16.msra.mxu1 %v1447_v8  ;;  %v1540_v7 = vld [vmem:[%s2061_s0 + $0x10] ss:$36 sps:$4 sm:$0xff]  }
  0x45   :  { %1078 = vmatprep.subr.bf16.mxu1 %v1455_v9  ;;  %1065 = vmatprep.mubr.bf16.mxu0 %v1542_v33  ;;  %v1543_v8 = vld [vmem:[%s2060_s1 + $0x470] ss:$8 sps:$4 sm:$0xff]  }
  0x46   :  { %1108 = vmatprep.mubr.bf16.mxu1 %v1548_v36  ;;  %v1546_v9 = vld [vmem:[%s2061_s0 + $0x18] ss:$36 sps:$4 sm:$0xff]  }
  0x47   :  { %1036 = vmatpush1.bf16.msra.mxu0 %v1450_v10  ;;  %v1551_v10 = vld [vmem:[%s2060_s1 + $0x464] ss:$8 sps:$4 sm:$0xff]  }
  0x48   :  { %1037 = vmatprep.subr.bf16.mxu0 %v1458_v11  ;;  %1079 = vmatpush1.bf16.msra.mxu1 %v1453_v12  ;;  %v1549_v11 = vld [vmem:[%s2060_s1 + $0x460] ss:$8 sps:$4 sm:$0xff]   ;;  %v1571_v12 = vmov 0  }
  0x49   :  { %1080 = vmatprep.subr.bf16.mxu1 %v1461_v13  ;;  %v1554_v13 = vld [vmem:[%s2060_s1 + $0x454] ss:$8 sps:$4 sm:$0xff]  }
  0x4b   :  { %1038 = vmatpush1.bf16.msra.mxu0 %v1456_v14  ;;  %v1552_v14 = vld [vmem:[%s2060_s1 + $0x450] ss:$8 sps:$4 sm:$0xff]  }
  0x4c   :  { %1039 = vmatprep.subr.bf16.mxu0 %v1464_v15  ;;  %1081 = vmatpush1.bf16.msra.mxu1 %v1459_v16  ;;  %v1557_v15 = vld [vmem:[%s2060_s1 + $0x444] ss:$8 sps:$4 sm:$0xff]   ;;  %v1555_v16 = vld [vmem:[%s2060_s1 + $0x440] ss:$8 sps:$4 sm:$0xff]  }
  0x4d   :  { %1082 = vmatprep.subr.bf16.mxu1 %v1467_v17  ;;  %v1560_v17 = vld [vmem:[%s2060_s1 + $0x434] ss:$8 sps:$4 sm:$0xff]  }
  0x4f   :  { %1040 = vmatpush1.bf16.msra.mxu0 %v1462_v18  ;;  %v1558_v18 = vld [vmem:[%s2060_s1 + $0x430] ss:$8 sps:$4 sm:$0xff]  }
  0x50   :  { %1041 = vmatprep.subr.bf16.mxu0 %v1470_v19  ;;  %1083 = vmatpush1.bf16.msra.mxu1 %v1465_v20  ;;  %v1563_v19 = vld [vmem:[%s2060_s1 + $0x424] ss:$8 sps:$4 sm:$0xff]   ;;  %v1561_v20 = vld [vmem:[%s2060_s1 + $0x420] ss:$8 sps:$4 sm:$0xff]  }
  0x51   :  { %1084 = vmatprep.subr.bf16.mxu1 %v1473_v21  ;;  %v1566_v21 = vld [vmem:[%s2060_s1 + $0x414] ss:$8 sps:$4 sm:$0xff]  }
  0x53   :  { %1042 = vmatpush1.bf16.msra.mxu0 %v1468_v22  ;;  %v1564_v22 = vld [vmem:[%s2060_s1 + $0x410] ss:$8 sps:$4 sm:$0xff]  }
  0x54   :  { %1043 = vmatprep.subr.bf16.mxu0 %v1476_v23  ;;  %1085 = vmatpush1.bf16.msra.mxu1 %v1471_v24  ;;  %v1569_v23 = vld [vmem:[%s2060_s1 + $0x404] ss:$8 sps:$4 sm:$0xff]   ;;  %v1567_v24 = vld [vmem:[%s2060_s1 + $0x400] ss:$8 sps:$4 sm:$0xff]  }
  0x55   :  { %1086 = vmatprep.subr.bf16.mxu1 %v1479_v25  ;;  %v1570_v25 = vld [vmem:[%s2061_s0 + $0x20] ss:$36 sps:$4 sm:$0xff]  }
  0x57   :  { %1044 = vmatpush1.bf16.msra.mxu0 %v1474_v26 }
  0x58   :  { %1045 = vmatprep.subr.bf16.mxu0 %v1482_v27  ;;  %1087 = vmatpush1.bf16.msra.mxu1 %v1477_v28  ;;  %v171_v27 = vlaneseq }
  0x59   :  { %1088 = vmatprep.subr.bf16.mxu1 %v1485_v29 }
  0x5b   :  { %1046 = vmatpush1.bf16.msra.mxu0 %v1480_v30  ;;  %v172_v30 = vshrl.u32 %v171_v27, 7 }
  0x5c   :  { %1047 = vmatprep.subr.bf16.mxu0 %v1488_v32  ;;  %1089 = vmatpush1.bf16.msra.mxu1 %v1483_v31 }
  0x5d   :  { %1090 = vmatprep.subr.bf16.mxu1 %v1491_v34  ;;  %v173_v33 = vsub.s32 0, %v172_v30  ;;  %v169_v34 = vld [vmem:[%s2062_s2] sm:$0x3] }
  0x5f   :  { %1048 = vmatpush1.bf16.msra.mxu0 %v1486_v35  ;;  %v177_v35 = vsub.s32 1, %v172_v30 }
  0x60   :  { %1049 = vmatprep.subr.bf16.mxu0 %v1494_v37  ;;  %1091 = vmatpush1.bf16.msra.mxu1 %v1489_v38  ;;  %v174_v38 = vrot.slane %v169_v34, %v173_v33 }
  0x61   :  { %1092 = vmatprep.subr.bf16.mxu1 %v1497_v39 }
  0x63   :  { %1050 = vmatpush2.bf16.msra.mxu0 %v1492_v40  ;;  %v178_v40 = vrot.slane %v169_v34, %v177_v35 }
  0x64   :  { %1051 = vmatprep.subr.bf16.mxu0 %v1500_v41  ;;  %1093 = vmatpush2.bf16.msra.mxu1 %v1495_v42 }
  0x65   :  { %1094 = vmatprep.subr.bf16.mxu1 %v1503_v43 }
  0x67   :  { %1052 = vmatpush2.bf16.msra.mxu0 %v1498_v44 }
  0x68   :  { %1053 = vmatprep.subr.bf16.mxu0 %v1506_v45  ;;  %1095 = vmatpush2.bf16.msra.mxu1 %v1501_v46 }
  0x69   :  { %1096 = vmatprep.subr.bf16.mxu1 %v1509_v47 }
  0x6b   :  { %1054 = vmatpush2.bf16.msra.mxu0 %v1504_v48 }
  0x6c   :  { %1055 = vmatprep.subr.bf16.mxu0 %v1512_v49  ;;  %1097 = vmatpush2.bf16.msra.mxu1 %v1507_v50 }
  0x6d   :  { %1098 = vmatprep.subr.bf16.mxu1 %v1515_v51 }
  0x6f   :  { %1056 = vmatpush2.bf16.msra.mxu0 %v1510_v52 }
  0x70   :  { %1057 = vmatprep.subr.bf16.mxu0 %v1518_v53  ;;  %1099 = vmatpush2.bf16.msra.mxu1 %v1513_v54 }
  0x71   :  { %1100 = vmatprep.subr.bf16.mxu1 %v1521_v55 }
  0x73   :  { %1058 = vmatpush2.bf16.msra.mxu0 %v1516_v56 }
  0x74   :  { %1059 = vmatprep.subr.bf16.mxu0 %v1524_v57  ;;  %1101 = vmatpush2.bf16.msra.mxu1 %v1519_v58 }
  0x75   :  { %1102 = vmatprep.subr.bf16.mxu1 %v1527_v59 }
  0x77   :  { %1060 = vmatpush2.bf16.msra.mxu0 %v1522_v60 }
  0x78   :  { %1061 = vmatprep.subr.bf16.mxu0 %v1530_v61  ;;  %1103 = vmatpush2.bf16.msra.mxu1 %v1525_v62 }
  0x79   :  { %1104 = vmatprep.subr.bf16.mxu1 %v1533_v63 }
  0x7b   :  { %1062 = vmatpush2.bf16.msra.mxu0 %v1528_v0 }
  0x7c   :  { %1063 = vmatprep.subr.bf16.mxu0 %v1536_v1  ;;  %1105 = vmatpush2.bf16.msra.mxu1 %v1531_v2 }
  0x7d   :  { %1106 = vmatprep.subr.bf16.mxu1 %v1539_v3 }
  0x7f   :  { %1064 = vmatpush2.bf16.msra.mxu0 %v1534_v4 }
  0x80   :  { %1119 = vmatprep.subr.bf16.mxu0 %v1545_v5  ;;  %1107 = vmatpush2.bf16.msra.mxu1 %v1537_v6 }
  0x82   :  { %1066 = vmatmul.mubr.bf16.vlgmr.msra.gmra.mxu0 %v1540_v7 }
  0x83   :  { %1120 = vmatpush1.bf16.msra.mxu0 %v1543_v8  ;;  %1151 = vmatprep.mubr.bf16.mxu0 %v1571_v12 }
  0x84   :  { %1109 = vmatmul.mubr.bf16.vlgmr.msra.gmra.mxu1 %v1546_v9  ;;  %1121 = vmatprep.subr.bf16.mxu0 %v1551_v10 }
  0x87   :  { %1122 = vmatpush1.bf16.msra.mxu0 %v1549_v11 }
  0x88   :  { %1123 = vmatprep.subr.bf16.mxu0 %v1554_v13 }
  0x8b   :  { %1124 = vmatpush1.bf16.msra.mxu0 %v1552_v14 }
  0x8c   :  { %1125 = vmatprep.subr.bf16.mxu0 %v1557_v15 }
  0x8f   :  { %1126 = vmatpush1.bf16.msra.mxu0 %v1555_v16 }
  0x90   :  { %1127 = vmatprep.subr.bf16.mxu0 %v1560_v17 }
  0x93   :  { %1128 = vmatpush1.bf16.msra.mxu0 %v1558_v18 }
  0x94   :  { %1129 = vmatprep.subr.bf16.mxu0 %v1563_v19 }
  0x97   :  { %1130 = vmatpush1.bf16.msra.mxu0 %v1561_v20 }
  0x98   :  { %1131 = vmatprep.subr.bf16.mxu0 %v1566_v21 }
  0x9b   :  { %1132 = vmatpush1.bf16.msra.mxu0 %v1564_v22 }
  0x9c   :  { %1133 = vmatprep.subr.bf16.mxu0 %v1569_v23 }
  0x9f   :  { %1134 = vmatpush1.bf16.msra.mxu0 %v1567_v24 }
  0xa2   :  { %1152 = vmatmul.mubr.bf16.vlgmr.msra.gmra.mxu0 %v1570_v25 }
 0x102   :  { %v981_v26 = vpop.f32.mrf.mxu0 }
 0x103   :  { %v1024_v29 = vpop.f32.mrf.mxu1  ;;  %v982_v42 = vadd.f32 %v981_v26, %v174_v38 }
 0x104   :  { %v983_v28 = vpop.f32.mrf.mxu0 }
 0x105   :  { %v1026_v32 = vpop.f32.mrf.mxu1  ;;  %v984_v45 = vadd.f32 %v983_v28, %v178_v40  ;;  %v1025_v46 = vadd.f32 %v1024_v29, %v982_v42 }
 0x106   :  { %v985_v31 = vpop.f32.mrf.mxu0 }
 0x107   :  { %v1028_v37 = vpop.f32.mrf.mxu1  ;;  %v986_v47 = vadd.f32 %v985_v31, %v174_v38  ;;  %v1027_v50 = vadd.f32 %v1026_v32, %v984_v45 }
 0x108   :  { %v987_v36 = vpop.f32.mrf.mxu0 }
 0x109   :  { %v1030_v41 = vpop.f32.mrf.mxu1  ;;  %v988_v51 = vadd.f32 %v987_v36, %v178_v40  ;;  %v1029_v53 = vadd.f32 %v1028_v37, %v986_v47 }
 0x10b   :  { %v1031_v57 = vadd.f32 %v1030_v41, %v988_v51 }
 0x142   :  { %v1067_v39 = vpop.f32.mrf.mxu0 }
 0x143   :  { %v1068_v52 = vadd.f32 %v1067_v39, %v1025_v46 }
 0x144   :  { %v1069_v43 = vpop.f32.mrf.mxu0  ;;  %v1110_v44 = vpop.f32.mrf.mxu1 }
 0x145   :  { %v1070_v54 = vadd.f32 %v1069_v43, %v1027_v50  ;;  %v1111_v58 = vadd.f32 %v1110_v44, %v1068_v52 }
 0x146   :  { %v1071_v48 = vpop.f32.mrf.mxu0  ;;  %v1112_v49 = vpop.f32.mrf.mxu1 }
 0x147   :  { %v1072_v59 = vadd.f32 %v1071_v48, %v1029_v53  ;;  %v1113_v61 = vadd.f32 %v1112_v49, %v1070_v54 }
 0x148   :  { %v1073_v55 = vpop.f32.mrf.mxu0  ;;  %v1114_v56 = vpop.f32.mrf.mxu1 }
 0x149   :  { %v1074_v62 = vadd.f32 %v1073_v55, %v1031_v57  ;;  %v1115_v2 = vadd.f32 %v1114_v56, %v1072_v59 }
 0x14a   :  { %v1116_v0 = vpop.f32.mrf.mxu1 }
 0x14b   :  { %v1117_v5 = vadd.f32 %v1116_v0, %v1074_v62 }
 0x162   :  { %v1153_v60 = vpop.f32.mrf.mxu0 }
 0x163   :  { %v1154_v63 = vadd.f32 %v1153_v60, %v1111_v58 }
 0x164   :  { %v1155_v1 = vpop.f32.mrf.mxu0 }
 0x165   :  { %v1156_v3 = vadd.f32 %v1155_v1, %v1113_v61  ;;  %v1162_v6 = vmax.f32 %v1154_v63, 0.0 }
 0x166   :  { %v1157_v4 = vpop.f32.mrf.mxu0 }
 0x167   :  { %v1163_v7 = vmax.f32 %v1156_v3, 0.0  ;;  %v1158_v8 = vadd.f32 %v1157_v4, %v1115_v2 }
 0x168   :  { %v1159_v9 = vpop.f32.mrf.mxu0 }
 0x169   :  { %v1339_v10 = vpack.c.bf16 %v1163_v7, %v1162_v6  ;;  %v1160_v11 = vadd.f32 %v1159_v9, %v1117_v5  ;;  %v1164_v12 = vmax.f32 %v1158_v8, 0.0 }
 0x16b   :  { %1178 = vst [vmem:[%s2063_s3] sm:$0xff] %v1339_v10  ;;  %v1165_v13 = vmax.f32 %v1160_v11, 0.0 }
 0x16d   :  { %v1340_v14 = vpack.c.bf16 %v1165_v13, %v1164_v12 }
 0x16f   :  { %1179 = vst [vmem:[%s2063_s3 + $0x8] sm:$0xff] %v1340_v14 }

// kernel: facebox_forward.53
= control target key start
LH: loop header
LB: loop body
LE: loop exit
PB: predicated region body
PF: predicated region fallthrough
CT: control target
= control target key end

     0   :  { %s368_s1 = inlined_call_operand.vmem [shape: bf16[256,128], index: 1, kind: input, shape index: {}]   ;;  %s369_s0 = inlined_call_operand.vmem [shape: bf16[16,256], index: 0, kind: input, shape index: {}]   ;;  %s370_s2 = inlined_call_operand.vmem [shape: f32[1,128], index: 2, kind: input, shape index: {}]   ;;  %s371_s3 = inlined_call_operand.vmem [shape: bf16[16,128], index: 3, kind: output, shape index: {}]  }
   0x1   :  { %v269_v0 = vld [vmem:[%s368_s1 + $0x78] sm:$0xff]   ;;  %v271_v2 = vld [vmem:[%s368_s1 + $0x70] sm:$0xff]   ;;  %v273_v4 = vld [vmem:[%s368_s1 + $0x68] sm:$0xff]  }
   0x2   :  { %v270_v1 = vld [vmem:[%s368_s1 + $0x38] sm:$0xff]   ;;  %247 = vmatprep.subr.bf16.mxu0 %v269_v0  ;;  %v272_v3 = vld [vmem:[%s368_s1 + $0x30] sm:$0xff]   ;;  %v274_v5 = vld [vmem:[%s368_s1 + $0x28] sm:$0xff]  }
   0x3   :  { %248 = vmatpush3.bf16.msra.mxu0 %v270_v1  ;;  %v275_v6 = vld [vmem:[%s368_s1 + $0x60] sm:$0xff]   ;;  %v277_v8 = vld [vmem:[%s368_s1 + $0x58] sm:$0xff]   ;;  %v279_v10 = vld [vmem:[%s368_s1 + $0x50] sm:$0xff]  }
   0x4   :  { %249 = vmatprep.subr.bf16.mxu0 %v271_v2  ;;  %v276_v7 = vld [vmem:[%s368_s1 + $0x20] sm:$0xff]   ;;  %v278_v9 = vld [vmem:[%s368_s1 + $0x18] sm:$0xff]   ;;  %v280_v12 = vld [vmem:[%s368_s1 + $0x10] sm:$0xff]  }
   0x5   :  { %v287_v11 = vld [vmem:[%s369_s0 + $0x4] ss:$8 sps:$4 sm:$0xff]   ;;  %v285_v17 = vld [vmem:[%s369_s0] ss:$8 sps:$4 sm:$0xff]  }
   0x6   :  { %194 = vmatprep.mubr.bf16.mxu0 %v287_v11  ;;  %v281_v13 = vld [vmem:[%s368_s1 + $0x48] sm:$0xff]   ;;  %v283_v15 = vld [vmem:[%s368_s1 + $0x40] sm:$0xff]  }
   0x7   :  { %250 = vmatpush3.bf16.msra.mxu0 %v272_v3  ;;  %v282_v14 = vld [vmem:[%s368_s1 + $0x8] sm:$0xff]   ;;  %v284_v16 = vld [vmem:[%s368_s1] sm:$0xff]  }
   0x8   :  { %251 = vmatprep.subr.bf16.mxu0 %v273_v4  ;;  %v219_v21 = vld [vmem:[%s370_s2] ss:$0 sm:$0xff] }
   0xb   :  { %252 = vmatpush3.bf16.msra.mxu0 %v274_v5 }
   0xc   :  { %253 = vmatprep.subr.bf16.mxu0 %v275_v6 }
   0xf   :  { %254 = vmatpush3.bf16.msra.mxu0 %v276_v7 }
  0x10   :  { %255 = vmatprep.subr.bf16.mxu0 %v277_v8 }
  0x13   :  { %256 = vmatpush3.bf16.msra.mxu0 %v278_v9 }
  0x14   :  { %257 = vmatprep.subr.bf16.mxu0 %v279_v10 }
  0x17   :  { %258 = vmatpush3.bf16.msra.mxu0 %v280_v12 }
  0x18   :  { %259 = vmatprep.subr.bf16.mxu0 %v281_v13 }
  0x1b   :  { %260 = vmatpush3.bf16.msra.mxu0 %v282_v14 }
  0x1c   :  { %261 = vmatprep.subr.bf16.mxu0 %v283_v15 }
  0x1f   :  { %262 = vmatpush3.bf16.msra.mxu0 %v284_v16 }
  0x22   :  { %195 = vmatmul.mubr.bf16.vlgmr.msra.gmra.mxu0 %v285_v17 }
  0xe2   :  { %v263_v18 = vpop.f32.mrf.mxu0 }
  0xe4   :  { %v264_v19 = vpop.f32.mrf.mxu0 }
  0xe5   :  { %v265_v20 = vadd.f32 %v264_v19, %v263_v18 }
  0xe6   :  { %v266_v22 = vpop.f32.mrf.mxu0 }
  0xe7   :  { %v197_v24 = vadd.f32 %v265_v20, %v219_v21 }
  0xe8   :  { %v267_v23 = vpop.f32.mrf.mxu0 }
  0xe9   :  { %v268_v25 = vadd.f32 %v267_v23, %v266_v22  ;;  %v203_v27 = vmax.f32 %v197_v24, 0.0 }
  0xeb   :  { %v200_v26 = vadd.f32 %v268_v25, %v219_v21 }
  0xed   :  { %v204_v28 = vmax.f32 %v200_v26, 0.0 }
  0xef   :  { %v245_v29 = vpack.c.bf16 %v204_v28, %v203_v27 }
  0xf1   :  { %246 = vst [vmem:[%s371_s3] sm:$0xff] %v245_v29  }

// kernel: facebox_forward.56
= control target key start
LH: loop header
LB: loop body
LE: loop exit
PB: predicated region body
PF: predicated region fallthrough
CT: control target
= control target key end

     0   :  { %vm1651_vm0 = vcmask 48128   ;;  %s2705_s1 = inlined_call_operand.vmem [shape: bf16[2304,6], index: 1, kind: input, shape index: {}]   ;;  %s2706_s0 = inlined_call_operand.vmem [shape: bf16[16,2304], index: 0, kind: input, shape index: {}]   ;;  %s2707_s2 = inlined_call_operand.vmem [shape: f32[1,6], index: 2, kind: input, shape index: {}]   ;;  %s2708_s3 = inlined_call_operand.vmem [shape: f32[16,6], index: 3, kind: output, shape index: {}]  }
   0x1   :  { %v2019_v0 = vld [vmem:[%s2705_s1 + $0x78] sm:$0xff]   ;;  %v2023_v4 = vld [vmem:[%s2705_s1 + $0x70] sm:$0xff]   ;;  %v2027_v8 = vld [vmem:[%s2705_s1 + $0x68] sm:$0xff]  }
   0x2   :  { %v2020_v1 = vld [vmem:[%s2705_s1 + $0x38] sm:$0xff]   ;;  %1821 = vmatprep.subr.bf16.mxu0 %v2019_v0  ;;  %v2024_v5 = vld [vmem:[%s2705_s1 + $0x30] sm:$0xff]   ;;  %v2028_v9 = vld [vmem:[%s2705_s1 + $0x28] sm:$0xff]  }
   0x3   :  { %v2021_v2 = vld [vmem:[%s2705_s1 + $0xf8] sm:$0xff]   ;;  %1822 = vmatpush3.bf16.msra.mxu0 %v2020_v1  ;;  %v2025_v6 = vld [vmem:[%s2705_s1 + $0xf0] sm:$0xff]   ;;  %v2029_v10 = vld [vmem:[%s2705_s1 + $0xe8] sm:$0xff]  }
   0x4   :  { %v2022_v3 = vld [vmem:[%s2705_s1 + $0xb8] sm:$0xff]   ;;  %1843 = vmatprep.subr.bf16.mxu1 %v2021_v2  ;;  %1823 = vmatprep.subr.bf16.mxu0 %v2023_v4  ;;  %v2026_v7 = vld [vmem:[%s2705_s1 + $0xb0] sm:$0xff]   ;;  %v2030_v11 = vld [vmem:[%s2705_s1 + $0xa8] sm:$0xff]  }
   0x5   :  { %1844 = vmatpush3.bf16.msra.mxu1 %v2022_v3  ;;  %v2031_v12 = vld [vmem:[%s2705_s1 + $0x60] sm:$0xff]   ;;  %v2035_v16 = vld [vmem:[%s2705_s1 + $0x58] sm:$0xff]   ;;  %v2039_v20 = vld [vmem:[%s2705_s1 + $0x50] sm:$0xff]  }
   0x6   :  { %1845 = vmatprep.subr.bf16.mxu1 %v2025_v6  ;;  %v2032_v13 = vld [vmem:[%s2705_s1 + $0x20] sm:$0xff]   ;;  %v2036_v17 = vld [vmem:[%s2705_s1 + $0x18] sm:$0xff]   ;;  %v2040_v21 = vld [vmem:[%s2705_s1 + $0x10] sm:$0xff]  }
   0x7   :  { %1824 = vmatpush3.bf16.msra.mxu0 %v2024_v5  ;;  %v2033_v14 = vld [vmem:[%s2705_s1 + $0xe0] sm:$0xff]   ;;  %v2037_v18 = vld [vmem:[%s2705_s1 + $0xd8] sm:$0xff]   ;;  %v2041_v22 = vld [vmem:[%s2705_s1 + $0xd0] sm:$0xff]  }
   0x8   :  { %1825 = vmatprep.subr.bf16.mxu0 %v2027_v8  ;;  %v2034_v15 = vld [vmem:[%s2705_s1 + $0xa0] sm:$0xff]   ;;  %v2038_v19 = vld [vmem:[%s2705_s1 + $0x98] sm:$0xff]   ;;  %v2042_v23 = vld [vmem:[%s2705_s1 + $0x90] sm:$0xff]  }
   0x9   :  { %1846 = vmatpush3.bf16.msra.mxu1 %v2026_v7  ;;  %v2043_v24 = vld [vmem:[%s2705_s1 + $0x48] sm:$0xff]   ;;  %v2047_v28 = vld [vmem:[%s2705_s1 + $0x40] sm:$0xff]   ;;  %v2054_v34 = vld [vmem:[%s2705_s1 + $0x178] sm:$0xff]  }
   0xa   :  { %1847 = vmatprep.subr.bf16.mxu1 %v2029_v10  ;;  %v2044_v25 = vld [vmem:[%s2705_s1 + $0x8] sm:$0xff]   ;;  %v2048_v29 = vld [vmem:[%s2705_s1] sm:$0xff]   ;;  %v2058_v37 = vld [vmem:[%s2705_s1 + $0x138] sm:$0xff]  }
   0xb   :  { %1826 = vmatpush3.bf16.msra.mxu0 %v2028_v9  ;;  %v2045_v26 = vld [vmem:[%s2705_s1 + $0xc8] sm:$0xff]   ;;  %v2049_v30 = vld [vmem:[%s2705_s1 + $0xc0] sm:$0xff]   ;;  %v2059_v38 = vld [vmem:[%s2705_s1 + $0x1f8] sm:$0xff]  }
   0xc   :  { %1827 = vmatprep.subr.bf16.mxu0 %v2031_v12  ;;  %v2046_v27 = vld [vmem:[%s2705_s1 + $0x88] sm:$0xff]   ;;  %v2053_v33 = vld [vmem:[%s2705_s1 + $0x80] sm:$0xff]   ;;  %v2060_v39 = vld [vmem:[%s2705_s1 + $0x1b8] sm:$0xff]  }
   0xd   :  { %1848 = vmatpush3.bf16.msra.mxu1 %v2030_v11  ;;  %v2050_v31 = vld [vmem:[%s2706_s0] ss:$72 sps:$4 sm:$0xff]   ;;  %v2052_v32 = vld [vmem:[%s2706_s0 + $0x4] ss:$72 sps:$4 sm:$0xff]   ;;  %v2061_v40 = vld [vmem:[%s2705_s1 + $0x170] sm:$0xff]  }
   0xe   :  { %1849 = vmatprep.subr.bf16.mxu1 %v2033_v14  ;;  %1314 = vmatprep.mubr.bf16.mxu0 %v2052_v32  ;;  %v2055_v35 = vld [vmem:[%s2706_s0 + $0x8] ss:$72 sps:$4 sm:$0xff]   ;;  %v2057_v36 = vld [vmem:[%s2706_s0 + $0xc] ss:$72 sps:$4 sm:$0xff]   ;;  %v2069_v48 = vld [vmem:[%s2705_s1 + $0x160] sm:$0xff]  }
   0xf   :  { %1828 = vmatpush3.bf16.msra.mxu0 %v2032_v13  ;;  %1355 = vmatprep.mubr.bf16.mxu1 %v2057_v36  ;;  %v2062_v41 = vld [vmem:[%s2705_s1 + $0x130] sm:$0xff]   ;;  %v2065_v44 = vld [vmem:[%s2705_s1 + $0x168] sm:$0xff]   ;;  %v2070_v49 = vld [vmem:[%s2705_s1 + $0x120] sm:$0xff]  }
  0x10   :  { %1829 = vmatprep.subr.bf16.mxu0 %v2035_v16  ;;  %v2063_v42 = vld [vmem:[%s2705_s1 + $0x1f0] sm:$0xff]   ;;  %v2066_v45 = vld [vmem:[%s2705_s1 + $0x128] sm:$0xff]   ;;  %v2071_v50 = vld [vmem:[%s2705_s1 + $0x1e0] sm:$0xff]  }
  0x11   :  { %1850 = vmatpush3.bf16.msra.mxu1 %v2034_v15  ;;  %v2064_v43 = vld [vmem:[%s2705_s1 + $0x1b0] sm:$0xff]   ;;  %v2067_v46 = vld [vmem:[%s2705_s1 + $0x1e8] sm:$0xff]   ;;  %v2072_v51 = vld [vmem:[%s2705_s1 + $0x1a0] sm:$0xff]  }
  0x12   :  { %1851 = vmatprep.subr.bf16.mxu1 %v2037_v18  ;;  %v2068_v47 = vld [vmem:[%s2705_s1 + $0x1a8] sm:$0xff]   ;;  %v2073_v52 = vld [vmem:[%s2705_s1 + $0x158] sm:$0xff]   ;;  %v2077_v56 = vld [vmem:[%s2705_s1 + $0x150] sm:$0xff]  }
  0x13   :  { %1830 = vmatpush3.bf16.msra.mxu0 %v2036_v17  ;;  %v2074_v53 = vld [vmem:[%s2705_s1 + $0x118] sm:$0xff]   ;;  %v2078_v57 = vld [vmem:[%s2705_s1 + $0x110] sm:$0xff]   ;;  %v2081_v60 = vld [vmem:[%s2705_s1 + $0x148] sm:$0xff]  }
  0x14   :  { %1831 = vmatprep.subr.bf16.mxu0 %v2039_v20  ;;  %v2075_v54 = vld [vmem:[%s2705_s1 + $0x1d8] sm:$0xff]   ;;  %v2079_v58 = vld [vmem:[%s2705_s1 + $0x1d0] sm:$0xff]   ;;  %v2082_v61 = vld [vmem:[%s2705_s1 + $0x108] sm:$0xff]  }
  0x15   :  { %1852 = vmatpush3.bf16.msra.mxu1 %v2038_v19  ;;  %v2076_v55 = vld [vmem:[%s2705_s1 + $0x198] sm:$0xff]   ;;  %v2080_v59 = vld [vmem:[%s2705_s1 + $0x190] sm:$0xff]   ;;  %v2083_v62 = vld [vmem:[%s2705_s1 + $0x1c8] sm:$0xff]  }
  0x16   :  { %1853 = vmatprep.subr.bf16.mxu1 %v2041_v22  ;;  %v2084_v63 = vld [vmem:[%s2705_s1 + $0x188] sm:$0xff]   ;;  %v2085_v0 = vld [vmem:[%s2705_s1 + $0x140] sm:$0xff]   ;;  %v2088_v3 = vld [vmem:[%s2706_s0 + $0x10] ss:$72 sps:$4 sm:$0xff]  }
  0x17   :  { %1832 = vmatpush3.bf16.msra.mxu0 %v2040_v21  ;;  %v2086_v1 = vld [vmem:[%s2705_s1 + $0x100] sm:$0xff]   ;;  %v2090_v4 = vld [vmem:[%s2706_s0 + $0x14] ss:$72 sps:$4 sm:$0xff]   ;;  %v2103_v16 = vld [vmem:[%s2705_s1 + $0x268] sm:$0xff]  }
  0x18   :  { %1833 = vmatprep.subr.bf16.mxu0 %v2043_v24  ;;  %v2087_v2 = vld [vmem:[%s2705_s1 + $0x1c0] sm:$0xff]   ;;  %v2092_v6 = vld [vmem:[%s2705_s1 + $0x278] sm:$0xff]   ;;  %v2099_v12 = vld [vmem:[%s2705_s1 + $0x270] sm:$0xff]  }
  0x19   :  { %1854 = vmatpush3.bf16.msra.mxu1 %v2042_v23  ;;  %v2091_v5 = vld [vmem:[%s2705_s1 + $0x180] sm:$0xff]   ;;  %v2096_v9 = vld [vmem:[%s2705_s1 + $0x238] sm:$0xff]   ;;  %v2100_v13 = vld [vmem:[%s2705_s1 + $0x230] sm:$0xff]  }
  0x1a   :  { %1855 = vmatprep.subr.bf16.mxu1 %v2045_v26  ;;  %v2093_v7 = vld [vmem:[%s2706_s0 + $0x18] ss:$72 sps:$4 sm:$0xff]   ;;  %v2095_v8 = vld [vmem:[%s2706_s0 + $0x1c] ss:$72 sps:$4 sm:$0xff]   ;;  %v2101_v14 = vld [vmem:[%s2705_s1 + $0x2f0] sm:$0xff]  }
  0x1b   :  { %1834 = vmatpush3.bf16.msra.mxu0 %v2044_v25  ;;  %v2097_v10 = vld [vmem:[%s2705_s1 + $0x2f8] sm:$0xff]   ;;  %v2102_v15 = vld [vmem:[%s2705_s1 + $0x2b0] sm:$0xff]   ;;  %v2104_v17 = vld [vmem:[%s2705_s1 + $0x228] sm:$0xff]  }
  0x1c   :  { %1835 = vmatprep.subr.bf16.mxu0 %v2047_v28  ;;  %v2098_v11 = vld [vmem:[%s2705_s1 + $0x2b8] sm:$0xff]   ;;  %v2105_v18 = vld [vmem:[%s2705_s1 + $0x2e8] sm:$0xff]   ;;  %v2107_v20 = vld [vmem:[%s2705_s1 + $0x260] sm:$0xff]  }
  0x1d   :  { %1856 = vmatpush3.bf16.msra.mxu1 %v2046_v27  ;;  %v2106_v19 = vld [vmem:[%s2705_s1 + $0x2a8] sm:$0xff]   ;;  %v2108_v21 = vld [vmem:[%s2705_s1 + $0x220] sm:$0xff]   ;;  %v2111_v24 = vld [vmem:[%s2705_s1 + $0x258] sm:$0xff]  }
  0x1e   :  { %1857 = vmatprep.subr.bf16.mxu1 %v2049_v30  ;;  %v2109_v22 = vld [vmem:[%s2705_s1 + $0x2e0] sm:$0xff]   ;;  %v2112_v25 = vld [vmem:[%s2705_s1 + $0x218] sm:$0xff]   ;;  %v2115_v28 = vld [vmem:[%s2705_s1 + $0x250] sm:$0xff]  }
  0x1f   :  { %1836 = vmatpush3.bf16.msra.mxu0 %v2048_v29  ;;  %v2110_v23 = vld [vmem:[%s2705_s1 + $0x2a0] sm:$0xff]   ;;  %v2113_v26 = vld [vmem:[%s2705_s1 + $0x2d8] sm:$0xff]   ;;  %v2116_v29 = vld [vmem:[%s2705_s1 + $0x210] sm:$0xff]  }
  0x20   :  { %1865 = vmatprep.subr.bf16.mxu0 %v2054_v34  ;;  %v2114_v27 = vld [vmem:[%s2705_s1 + $0x298] sm:$0xff]   ;;  %v2117_v30 = vld [vmem:[%s2705_s1 + $0x2d0] sm:$0xff]   ;;  %v2119_v32 = vld [vmem:[%s2705_s1 + $0x248] sm:$0xff]  }
  0x21   :  { %1858 = vmatpush3.bf16.msra.mxu1 %v2053_v33  ;;  %v2120_v33 = vld [vmem:[%s2705_s1 + $0x208] sm:$0xff]   ;;  %v2123_v36 = vld [vmem:[%s2705_s1 + $0x240] sm:$0xff]  }
  0x22   :  { %1315 = vmatmul.mubr.bf16.vlgmr.msra.gmra.mxu0 %v2050_v31  ;;  %1887 = vmatprep.subr.bf16.mxu1 %v2059_v38  ;;  %v2118_v31 = vld [vmem:[%s2705_s1 + $0x290] sm:$0xff]   ;;  %v2121_v34 = vld [vmem:[%s2705_s1 + $0x2c8] sm:$0xff]   ;;  %v2125_v38 = vld [vmem:[%s2705_s1 + $0x2c0] sm:$0xff]  }
  0x23   :  { %1866 = vmatpush3.bf16.msra.mxu0 %v2058_v37  ;;  %1396 = vmatprep.mubr.bf16.mxu0 %v2090_v4  ;;  %v2124_v37 = vld [vmem:[%s2705_s1 + $0x200] sm:$0xff]   ;;  %v2157_v4 = vld [vmem:[%s2705_s1 + $0x348] sm:$0xff]  }
  0x24   :  { %1356 = vmatmul.mubr.bf16.vlgmr.msra.gmra.mxu1 %v2055_v35  ;;  %1867 = vmatprep.subr.bf16.mxu0 %v2061_v40  ;;  %v2122_v35 = vld [vmem:[%s2705_s1 + $0x288] sm:$0xff]  }
  0x25   :  { %1888 = vmatpush3.bf16.msra.mxu1 %v2060_v39  ;;  %1437 = vmatprep.mubr.bf16.mxu1 %v2095_v8  ;;  %v2126_v39 = vld [vmem:[%s2706_s0 + $0x20] ss:$72 sps:$4 sm:$0xff]   ;;  %v2128_v40 = vld [vmem:[%s2706_s0 + $0x24] ss:$72 sps:$4 sm:$0xff]  }
  0x26   :  { %1889 = vmatprep.subr.bf16.mxu1 %v2063_v42  ;;  %v2130_v42 = vld [vmem:[%s2705_s1 + $0x378] sm:$0xff]   ;;  %v2161_v8 = vld [vmem:[%s2705_s1 + $0x340] sm:$0xff]  }
  0x27   :  { %1868 = vmatpush3.bf16.msra.mxu0 %v2062_v41  ;;  %v2129_v41 = vld [vmem:[%s2705_s1 + $0x280] sm:$0xff]  }
  0x28   :  { %1869 = vmatprep.subr.bf16.mxu0 %v2065_v44  ;;  %v2133_v44 = vld [vmem:[%s2706_s0 + $0x2c] ss:$72 sps:$4 sm:$0xff]  }
  0x29   :  { %1890 = vmatpush3.bf16.msra.mxu1 %v2064_v43  ;;  %v2131_v43 = vld [vmem:[%s2706_s0 + $0x28] ss:$72 sps:$4 sm:$0xff]  }
  0x2a   :  { %1891 = vmatprep.subr.bf16.mxu1 %v2067_v46  ;;  %v2135_v46 = vld [vmem:[%s2705_s1 + $0x3f8] sm:$0xff]  }
  0x2b   :  { %1870 = vmatpush3.bf16.msra.mxu0 %v2066_v45  ;;  %v2134_v45 = vld [vmem:[%s2705_s1 + $0x338] sm:$0xff]  }
  0x2c   :  { %1871 = vmatprep.subr.bf16.mxu0 %v2069_v48  ;;  %v2137_v48 = vld [vmem:[%s2705_s1 + $0x370] sm:$0xff]  }
  0x2d   :  { %1892 = vmatpush3.bf16.msra.mxu1 %v2068_v47  ;;  %v2136_v47 = vld [vmem:[%s2705_s1 + $0x3b8] sm:$0xff]  }
  0x2e   :  { %1893 = vmatprep.subr.bf16.mxu1 %v2071_v50  ;;  %v2139_v50 = vld [vmem:[%s2705_s1 + $0x3f0] sm:$0xff]  }
  0x2f   :  { %1872 = vmatpush3.bf16.msra.mxu0 %v2070_v49  ;;  %v2138_v49 = vld [vmem:[%s2705_s1 + $0x330] sm:$0xff]  }
  0x30   :  { %1873 = vmatprep.subr.bf16.mxu0 %v2073_v52  ;;  %v2141_v52 = vld [vmem:[%s2705_s1 + $0x368] sm:$0xff]  }
  0x31   :  { %1894 = vmatpush3.bf16.msra.mxu1 %v2072_v51  ;;  %v2140_v51 = vld [vmem:[%s2705_s1 + $0x3b0] sm:$0xff]  }
  0x32   :  { %1895 = vmatprep.subr.bf16.mxu1 %v2075_v54  ;;  %v2143_v54 = vld [vmem:[%s2705_s1 + $0x3e8] sm:$0xff]  }
  0x33   :  { %1874 = vmatpush3.bf16.msra.mxu0 %v2074_v53  ;;  %v2142_v53 = vld [vmem:[%s2705_s1 + $0x328] sm:$0xff]  }
  0x34   :  { %1875 = vmatprep.subr.bf16.mxu0 %v2077_v56  ;;  %v2145_v56 = vld [vmem:[%s2705_s1 + $0x360] sm:$0xff]  }
  0x35   :  { %1896 = vmatpush3.bf16.msra.mxu1 %v2076_v55  ;;  %v2144_v55 = vld [vmem:[%s2705_s1 + $0x3a8] sm:$0xff]  }
  0x36   :  { %1897 = vmatprep.subr.bf16.mxu1 %v2079_v58  ;;  %v2147_v58 = vld [vmem:[%s2705_s1 + $0x3e0] sm:$0xff]  }
  0x37   :  { %1876 = vmatpush3.bf16.msra.mxu0 %v2078_v57  ;;  %v2146_v57 = vld [vmem:[%s2705_s1 + $0x320] sm:$0xff]  }
  0x38   :  { %1877 = vmatprep.subr.bf16.mxu0 %v2081_v60  ;;  %v2149_v60 = vld [vmem:[%s2705_s1 + $0x358] sm:$0xff]  }
  0x39   :  { %1898 = vmatpush3.bf16.msra.mxu1 %v2080_v59  ;;  %v2148_v59 = vld [vmem:[%s2705_s1 + $0x3a0] sm:$0xff]  }
  0x3a   :  { %1899 = vmatprep.subr.bf16.mxu1 %v2083_v62  ;;  %v2151_v62 = vld [vmem:[%s2705_s1 + $0x3d8] sm:$0xff]  }
  0x3b   :  { %1878 = vmatpush3.bf16.msra.mxu0 %v2082_v61  ;;  %v2150_v61 = vld [vmem:[%s2705_s1 + $0x318] sm:$0xff]  }
  0x3c   :  { %1879 = vmatprep.subr.bf16.mxu0 %v2085_v0  ;;  %v2153_v0 = vld [vmem:[%s2705_s1 + $0x350] sm:$0xff]  }
  0x3d   :  { %1900 = vmatpush3.bf16.msra.mxu1 %v2084_v63  ;;  %v2152_v63 = vld [vmem:[%s2705_s1 + $0x398] sm:$0xff]  }
  0x3e   :  { %1901 = vmatprep.subr.bf16.mxu1 %v2087_v2  ;;  %v2155_v2 = vld [vmem:[%s2705_s1 + $0x3d0] sm:$0xff]  }
  0x3f   :  { %1880 = vmatpush3.bf16.msra.mxu0 %v2086_v1  ;;  %v2154_v1 = vld [vmem:[%s2705_s1 + $0x310] sm:$0xff]  }
  0x40   :  { %1909 = vmatprep.subr.bf16.mxu0 %v2092_v6  ;;  %v2159_v6 = vld [vmem:[%s2705_s1 + $0x3c8] sm:$0xff]  }
  0x41   :  { %1902 = vmatpush3.bf16.msra.mxu1 %v2091_v5  ;;  %v2158_v5 = vld [vmem:[%s2705_s1 + $0x308] sm:$0xff]  }
  0x42   :  { %1397 = vmatmul.mubr.bf16.vlgmr.msra.gmra.mxu0 %v2088_v3  ;;  %1931 = vmatprep.subr.bf16.mxu1 %v2097_v10  ;;  %v2156_v3 = vld [vmem:[%s2705_s1 + $0x390] sm:$0xff]   ;;  %v2163_v10 = vld [vmem:[%s2705_s1 + $0x3c0] sm:$0xff]  }
  0x43   :  { %1910 = vmatpush3.bf16.msra.mxu0 %v2096_v9  ;;  %1478 = vmatprep.mubr.bf16.mxu0 %v2128_v40  ;;  %v2162_v9 = vld [vmem:[%s2705_s1 + $0x300] sm:$0xff]  }
  0x44   :  { %1438 = vmatmul.mubr.bf16.vlgmr.msra.gmra.mxu1 %v2093_v7  ;;  %1911 = vmatprep.subr.bf16.mxu0 %v2099_v12  ;;  %v2160_v7 = vld [vmem:[%s2705_s1 + $0x388] sm:$0xff]   ;;  %v2166_v12 = vld [vmem:[%s2706_s0 + $0x34] ss:$72 sps:$4 sm:$0xff]  }
  0x45   :  { %1932 = vmatpush3.bf16.msra.mxu1 %v2098_v11  ;;  %1519 = vmatprep.mubr.bf16.mxu1 %v2133_v44  ;;  %v2164_v11 = vld [vmem:[%s2706_s0 + $0x30] ss:$72 sps:$4 sm:$0xff]  }
  0x46   :  { %1933 = vmatprep.subr.bf16.mxu1 %v2101_v14  ;;  %v2168_v14 = vld [vmem:[%s2705_s1 + $0x478] sm:$0xff]  }
  0x47   :  { %1912 = vmatpush3.bf16.msra.mxu0 %v2100_v13  ;;  %v2167_v13 = vld [vmem:[%s2705_s1 + $0x380] sm:$0xff]  }
  0x48   :  { %1913 = vmatprep.subr.bf16.mxu0 %v2103_v16  ;;  %v2171_v16 = vld [vmem:[%s2706_s0 + $0x3c] ss:$72 sps:$4 sm:$0xff]  }
  0x49   :  { %1934 = vmatpush3.bf16.msra.mxu1 %v2102_v15  ;;  %v2169_v15 = vld [vmem:[%s2706_s0 + $0x38] ss:$72 sps:$4 sm:$0xff]  }
  0x4a   :  { %1935 = vmatprep.subr.bf16.mxu1 %v2105_v18  ;;  %v2173_v18 = vld [vmem:[%s2705_s1 + $0x470] sm:$0xff]  }
  0x4b   :  { %1914 = vmatpush3.bf16.msra.mxu0 %v2104_v17  ;;  %v2172_v17 = vld [vmem:[%s2705_s1 + $0x438] sm:$0xff]  }
  0x4c   :  { %1915 = vmatprep.subr.bf16.mxu0 %v2107_v20  ;;  %v2175_v20 = vld [vmem:[%s2705_s1 + $0x468] sm:$0xff]  }
  0x4d   :  { %1936 = vmatpush3.bf16.msra.mxu1 %v2106_v19  ;;  %v2174_v19 = vld [vmem:[%s2705_s1 + $0x430] sm:$0xff]  }
  0x4e   :  { %1937 = vmatprep.subr.bf16.mxu1 %v2109_v22  ;;  %v2177_v22 = vld [vmem:[%s2705_s1 + $0x460] sm:$0xff]  }
  0x4f   :  { %1916 = vmatpush3.bf16.msra.mxu0 %v2108_v21  ;;  %v2176_v21 = vld [vmem:[%s2705_s1 + $0x428] sm:$0xff]  }
  0x50   :  { %1917 = vmatprep.subr.bf16.mxu0 %v2111_v24  ;;  %v2179_v24 = vld [vmem:[%s2705_s1 + $0x458] sm:$0xff]  }
  0x51   :  { %1938 = vmatpush3.bf16.msra.mxu1 %v2110_v23  ;;  %v2178_v23 = vld [vmem:[%s2705_s1 + $0x420] sm:$0xff]  }
  0x52   :  { %1939 = vmatprep.subr.bf16.mxu1 %v2113_v26  ;;  %v2181_v26 = vld [vmem:[%s2705_s1 + $0x450] sm:$0xff]  }
  0x53   :  { %1918 = vmatpush3.bf16.msra.mxu0 %v2112_v25  ;;  %v2180_v25 = vld [vmem:[%s2705_s1 + $0x418] sm:$0xff]  }
  0x54   :  { %1919 = vmatprep.subr.bf16.mxu0 %v2115_v28  ;;  %v2182_v28 = vld [vmem:[%s2705_s1 + $0x410] sm:$0xff]  }
  0x55   :  { %1940 = vmatpush3.bf16.msra.mxu1 %v2114_v27  ;;  %v2189_v27 = vld [vmem:[%s2706_s0 + $0x44] ss:$72 sps:$4 sm:$0xff]  }
  0x56   :  { %1941 = vmatprep.subr.bf16.mxu1 %v2117_v30  ;;  %v2184_v30 = vld [vmem:[%s2705_s1 + $0x408] sm:$0xff]  }
  0x57   :  { %1920 = vmatpush3.bf16.msra.mxu0 %v2116_v29  ;;  %v2183_v29 = vld [vmem:[%s2705_s1 + $0x448] sm:$0xff]  }
  0x58   :  { %1921 = vmatprep.subr.bf16.mxu0 %v2119_v32  ;;  %v2186_v32 = vld [vmem:[%s2705_s1 + $0x400] sm:$0xff]  }
  0x59   :  { %1942 = vmatpush3.bf16.msra.mxu1 %v2118_v31  ;;  %v2185_v31 = vld [vmem:[%s2705_s1 + $0x440] sm:$0xff]  }
  0x5a   :  { %1943 = vmatprep.subr.bf16.mxu1 %v2121_v34 }
  0x5b   :  { %1922 = vmatpush3.bf16.msra.mxu0 %v2120_v33  ;;  %v2187_v33 = vld [vmem:[%s2706_s0 + $0x40] ss:$72 sps:$4 sm:$0xff]  }
  0x5c   :  { %1923 = vmatprep.subr.bf16.mxu0 %v2123_v36 }
  0x5d   :  { %1944 = vmatpush3.bf16.msra.mxu1 %v2122_v35 }
  0x5e   :  { %1945 = vmatprep.subr.bf16.mxu1 %v2125_v38 }
  0x5f   :  { %1924 = vmatpush3.bf16.msra.mxu0 %v2124_v37 }
  0x60   :  { %1953 = vmatprep.subr.bf16.mxu0 %v2130_v42 }
  0x61   :  { %1946 = vmatpush3.bf16.msra.mxu1 %v2129_v41 }
  0x62   :  { %1479 = vmatmul.mubr.bf16.vlgmr.msra.gmra.mxu0 %v2126_v39  ;;  %1975 = vmatprep.subr.bf16.mxu1 %v2135_v46 }
  0x63   :  { %1954 = vmatpush3.bf16.msra.mxu0 %v2134_v45  ;;  %1560 = vmatprep.mubr.bf16.mxu0 %v2166_v12 }
  0x64   :  { %1520 = vmatmul.mubr.bf16.vlgmr.msra.gmra.mxu1 %v2131_v43  ;;  %1955 = vmatprep.subr.bf16.mxu0 %v2137_v48 }
  0x65   :  { %1976 = vmatpush3.bf16.msra.mxu1 %v2136_v47  ;;  %1601 = vmatprep.mubr.bf16.mxu1 %v2171_v16 }
  0x66   :  { %1977 = vmatprep.subr.bf16.mxu1 %v2139_v50 }
  0x67   :  { %1956 = vmatpush3.bf16.msra.mxu0 %v2138_v49 }
  0x68   :  { %1957 = vmatprep.subr.bf16.mxu0 %v2141_v52 }
  0x69   :  { %1978 = vmatpush3.bf16.msra.mxu1 %v2140_v51 }
  0x6a   :  { %1979 = vmatprep.subr.bf16.mxu1 %v2143_v54  ;;  %v1658_v54 = vld [vmem:[%s2707_s2] ss:$0 sm:$0xff] }
  0x6b   :  { %1958 = vmatpush3.bf16.msra.mxu0 %v2142_v53 }
  0x6c   :  { %1959 = vmatprep.subr.bf16.mxu0 %v2145_v56 }
  0x6d   :  { %1980 = vmatpush3.bf16.msra.mxu1 %v2144_v55 }
  0x6e   :  { %1981 = vmatprep.subr.bf16.mxu1 %v2147_v58 }
  0x6f   :  { %1960 = vmatpush3.bf16.msra.mxu0 %v2146_v57 }
  0x70   :  { %1961 = vmatprep.subr.bf16.mxu0 %v2149_v60 }
  0x71   :  { %1982 = vmatpush3.bf16.msra.mxu1 %v2148_v59 }
  0x72   :  { %1983 = vmatprep.subr.bf16.mxu1 %v2151_v62 }
  0x73   :  { %1962 = vmatpush3.bf16.msra.mxu0 %v2150_v61 }
  0x74   :  { %1963 = vmatprep.subr.bf16.mxu0 %v2153_v0 }
  0x75   :  { %1984 = vmatpush3.bf16.msra.mxu1 %v2152_v63 }
  0x76   :  { %1985 = vmatprep.subr.bf16.mxu1 %v2155_v2 }
  0x77   :  { %1964 = vmatpush3.bf16.msra.mxu0 %v2154_v1 }
  0x78   :  { %1965 = vmatprep.subr.bf16.mxu0 %v2157_v4 }
  0x79   :  { %1986 = vmatpush3.bf16.msra.mxu1 %v2156_v3 }
  0x7a   :  { %1987 = vmatprep.subr.bf16.mxu1 %v2159_v6 }
  0x7b   :  { %1966 = vmatpush3.bf16.msra.mxu0 %v2158_v5 }
  0x7c   :  { %1967 = vmatprep.subr.bf16.mxu0 %v2161_v8 }
  0x7d   :  { %1988 = vmatpush3.bf16.msra.mxu1 %v2160_v7 }
  0x7e   :  { %1989 = vmatprep.subr.bf16.mxu1 %v2163_v10 }
  0x7f   :  { %1968 = vmatpush3.bf16.msra.mxu0 %v2162_v9 }
  0x80   :  { %1997 = vmatprep.subr.bf16.mxu0 %v2168_v14 }
  0x81   :  { %1990 = vmatpush3.bf16.msra.mxu1 %v2167_v13 }
  0x82   :  { %1561 = vmatmul.mubr.bf16.vlgmr.msra.gmra.mxu0 %v2164_v11 }
  0x83   :  { %1998 = vmatpush3.bf16.msra.mxu0 %v2172_v17  ;;  %1642 = vmatprep.mubr.bf16.mxu0 %v2189_v27 }
  0x84   :  { %1602 = vmatmul.mubr.bf16.vlgmr.msra.gmra.mxu1 %v2169_v15  ;;  %1999 = vmatprep.subr.bf16.mxu0 %v2173_v18 }
  0x87   :  { %2000 = vmatpush3.bf16.msra.mxu0 %v2174_v19 }
  0x88   :  { %2001 = vmatprep.subr.bf16.mxu0 %v2175_v20 }
  0x8b   :  { %2002 = vmatpush3.bf16.msra.mxu0 %v2176_v21 }
  0x8c   :  { %2003 = vmatprep.subr.bf16.mxu0 %v2177_v22 }
  0x8f   :  { %2004 = vmatpush3.bf16.msra.mxu0 %v2178_v23 }
  0x90   :  { %2005 = vmatprep.subr.bf16.mxu0 %v2179_v24 }
  0x93   :  { %2006 = vmatpush3.bf16.msra.mxu0 %v2180_v25 }
  0x94   :  { %2007 = vmatprep.subr.bf16.mxu0 %v2181_v26 }
  0x97   :  { %2008 = vmatpush3.bf16.msra.mxu0 %v2182_v28 }
  0x98   :  { %2009 = vmatprep.subr.bf16.mxu0 %v2183_v29 }
  0x9b   :  { %2010 = vmatpush3.bf16.msra.mxu0 %v2184_v30 }
  0x9c   :  { %2011 = vmatprep.subr.bf16.mxu0 %v2185_v31 }
  0x9f   :  { %2012 = vmatpush3.bf16.msra.mxu0 %v2186_v32 }
  0xa2   :  { %1643 = vmatmul.mubr.bf16.vlgmr.msra.gmra.mxu0 %v2187_v33 }
  0xe2   :  { %v1837_v34 = vpop.f32.mrf.mxu0 }
  0xe4   :  { %v1838_v35 = vpop.f32.mrf.mxu0  ;;  %v1859_v36 = vpop.f32.mrf.mxu1 }
  0xe5   :  { %v1839_v53 = vadd.f32 %v1838_v35, %v1837_v34 }
  0xe6   :  { %v1840_v37 = vpop.f32.mrf.mxu0  ;;  %v1860_v38 = vpop.f32.mrf.mxu1 }
  0xe7   :  { %v1317_v57 = vadd.f32 %v1839_v53, %v1658_v54  ;;  %v1861_v58 = vadd.f32 %v1860_v38, %v1859_v36 }
  0xe8   :  { %v1841_v39 = vpop.f32.mrf.mxu0  ;;  %v1862_v40 = vpop.f32.mrf.mxu1 }
  0xe9   :  { %v1842_v59 = vadd.f32 %v1841_v39, %v1840_v37  ;;  %v1358_v0 = vadd.f32 %v1861_v58, %v1317_v57 }
  0xea   :  { %v1863_v42 = vpop.f32.mrf.mxu1 }
  0xeb   :  { %v1320_v1 = vadd.f32 %v1842_v59, %v1658_v54  ;;  %v1864_v2 = vadd.f32 %v1863_v42, %v1862_v40 }
  0xed   :  { %v1361_v9 = vadd.f32 %v1864_v2, %v1320_v1 }
 0x102   :  { %v1881_v41 = vpop.f32.mrf.mxu0 }
 0x104   :  { %v1882_v43 = vpop.f32.mrf.mxu0  ;;  %v1903_v44 = vpop.f32.mrf.mxu1 }
 0x105   :  { %v1883_v62 = vadd.f32 %v1882_v43, %v1881_v41 }
 0x106   :  { %v1884_v45 = vpop.f32.mrf.mxu0  ;;  %v1904_v46 = vpop.f32.mrf.mxu1 }
 0x107   :  { %v1399_v4 = vadd.f32 %v1883_v62, %v1358_v0  ;;  %v1905_v5 = vadd.f32 %v1904_v46, %v1903_v44 }
 0x108   :  { %v1885_v47 = vpop.f32.mrf.mxu0  ;;  %v1906_v48 = vpop.f32.mrf.mxu1 }
 0x109   :  { %v1886_v6 = vadd.f32 %v1885_v47, %v1884_v45  ;;  %v1440_v11 = vadd.f32 %v1905_v5, %v1399_v4 }
 0x10a   :  { %v1907_v50 = vpop.f32.mrf.mxu1 }
 0x10b   :  { %v1402_v12 = vadd.f32 %v1886_v6, %v1361_v9  ;;  %v1908_v13 = vadd.f32 %v1907_v50, %v1906_v48 }
 0x10d   :  { %v1443_v19 = vadd.f32 %v1908_v13, %v1402_v12 }
 0x122   :  { %v1925_v49 = vpop.f32.mrf.mxu0 }
 0x124   :  { %v1926_v51 = vpop.f32.mrf.mxu0  ;;  %v1947_v52 = vpop.f32.mrf.mxu1 }
 0x125   :  { %v1927_v10 = vadd.f32 %v1926_v51, %v1925_v49 }
 0x126   :  { %v1928_v55 = vpop.f32.mrf.mxu0  ;;  %v1948_v56 = vpop.f32.mrf.mxu1 }
 0x127   :  { %v1481_v16 = vadd.f32 %v1927_v10, %v1440_v11  ;;  %v1949_v17 = vadd.f32 %v1948_v56, %v1947_v52 }
 0x128   :  { %v1929_v60 = vpop.f32.mrf.mxu0  ;;  %v1950_v61 = vpop.f32.mrf.mxu1 }
 0x129   :  { %v1930_v18 = vadd.f32 %v1929_v60, %v1928_v55  ;;  %v1522_v23 = vadd.f32 %v1949_v17, %v1481_v16 }
 0x12a   :  { %v1951_v3 = vpop.f32.mrf.mxu1 }
 0x12b   :  { %v1484_v24 = vadd.f32 %v1930_v18, %v1443_v19  ;;  %v1952_v25 = vadd.f32 %v1951_v3, %v1950_v61 }
 0x12d   :  { %v1525_v31 = vadd.f32 %v1952_v25, %v1484_v24 }
 0x142   :  { %v1969_v63 = vpop.f32.mrf.mxu0 }
 0x144   :  { %v1970_v7 = vpop.f32.mrf.mxu0  ;;  %v1991_v8 = vpop.f32.mrf.mxu1 }
 0x145   :  { %v1971_v20 = vadd.f32 %v1970_v7, %v1969_v63 }
 0x146   :  { %v1972_v14 = vpop.f32.mrf.mxu0  ;;  %v1992_v15 = vpop.f32.mrf.mxu1 }
 0x147   :  { %v1563_v26 = vadd.f32 %v1971_v20, %v1522_v23  ;;  %v1993_v27 = vadd.f32 %v1992_v15, %v1991_v8 }
 0x148   :  { %v1973_v21 = vpop.f32.mrf.mxu0  ;;  %v1994_v22 = vpop.f32.mrf.mxu1 }
 0x149   :  { %v1974_v28 = vadd.f32 %v1973_v21, %v1972_v14  ;;  %v1604_v33 = vadd.f32 %v1993_v27, %v1563_v26 }
 0x14a   :  { %v1995_v29 = vpop.f32.mrf.mxu1 }
 0x14b   :  { %v1566_v34 = vadd.f32 %v1974_v28, %v1525_v31  ;;  %v1996_v35 = vadd.f32 %v1995_v29, %v1994_v22 }
 0x14d   :  { %v1607_v40 = vadd.f32 %v1996_v35, %v1566_v34 }
 0x162   :  { %v2013_v30 = vpop.f32.mrf.mxu0 }
 0x164   :  { %v2014_v32 = vpop.f32.mrf.mxu0 }
 0x165   :  { %v2015_v36 = vadd.f32 %v2014_v32, %v2013_v30 }
 0x166   :  { %v2016_v37 = vpop.f32.mrf.mxu0 }
 0x167   :  { %v1645_v38 = vadd.f32 %v2015_v36, %v1604_v33 }
 0x168   :  { %v2017_v39 = vpop.f32.mrf.mxu0 }
 0x169   :  { %1652 = vst.msk [vmem:[%s2708_s3] sm:$0xff] %vm1651_vm0, %v1645_v38  ;;  %v2018_v41 = vadd.f32 %v2017_v39, %v2016_v37 }
 0x16b   :  { %v1648_v42 = vadd.f32 %v2018_v41, %v1607_v40 }
 0x16d   :  { %1653 = vst.msk [vmem:[%s2708_s3 + $0x8] sm:$0xff] %vm1651_vm0, %v1648_v42 }

</bundles_post_ra>
